<compile_context>
chip_gen: v5e
topology: v5e:2x2
jax: 0.10.0
libtpu: 0.0.40
codegen_flags: <defaults>
</compile_context>

<pallas_src>
import functools

import jax
import jax.numpy as jnp
from jax.experimental import pallas as pl
from jax.experimental.pallas import tpu as pltpu


def _layernorm(x, eps=1e-6):
    # PyTorch nn.LayerNorm(elementwise_affine=False): biased variance over last dim.
    mu = jnp.mean(x, axis=-1, keepdims=True)
    var = jnp.mean((x - mu) ** 2, axis=-1, keepdims=True)
    return (x - mu) * jax.lax.rsqrt(var + eps)


def _silu(x):
    return x * jax.nn.sigmoid(x)


def dit_block_kernel(
    x_ref, c_ref,
    mod_w_ref, mod_b_ref,
    qkv_w_ref, qkv_b_ref,
    proj_w_ref, proj_b_ref,
    w1_ref, b1_ref,
    w2_ref, b2_ref,
    o_ref,
    attn_scratch,
    *, num_heads,
):
    f32 = jnp.float32
    bf16 = jnp.bfloat16

    # Per-grid-step: one batch element (leading dim squeezed away by BlockSpec).
    x = x_ref[...].astype(f32)                 # (N, D) residual stream, f32
    c = c_ref[...].astype(f32)                 # (1, D)
    N, D = x.shape
    hd = D // num_heads
    scale_attn = 1.0 / (hd ** 0.5)

    # --- adaLN modulation: Linear(SiLU(c)) -> 6 chunks of D --------------------
    # Elementwise math in f32; bf16 only at the MXU (f32 accumulate).
    mod = jnp.dot(_silu(c).astype(bf16), mod_w_ref[...],
                  preferred_element_type=f32) + mod_b_ref[...]
    shift_msa = mod[:, 0 * D:1 * D]
    scale_msa = mod[:, 1 * D:2 * D]
    gate_msa  = mod[:, 2 * D:3 * D]
    shift_mlp = mod[:, 3 * D:4 * D]
    scale_mlp = mod[:, 4 * D:5 * D]
    gate_mlp  = mod[:, 5 * D:6 * D]

    # --- attention branch -------------------------------------------------------
    h1 = _layernorm(x) * (1.0 + scale_msa) + shift_msa             # (N, D) f32
    qkv = jnp.dot(h1.astype(bf16), qkv_w_ref[...],
                  preferred_element_type=f32) + qkv_b_ref[...]     # (N, 3D) f32

    # Batch all heads into single MXU calls: (H, N, hd), heads on the leading
    # (batch) axis, head_dim staying on the lane axis.
    def split_heads(t):                                            # (N, D) -> (H, N, hd)
        return jnp.stack(
            [t[:, h * hd:(h + 1) * hd] for h in range(num_heads)], axis=0)

    q = (split_heads(qkv[:, 0 * D:1 * D]) * scale_attn).astype(bf16)
    k = split_heads(qkv[:, 1 * D:2 * D]).astype(bf16)
    v = split_heads(qkv[:, 2 * D:3 * D]).astype(bf16)

    s = jnp.einsum("hqd,hkd->hqk", q, k,
                   preferred_element_type=f32)                     # (H, N, N) f32
    s = s - jnp.max(s, axis=-1, keepdims=True)
    p = jnp.exp(s)                                                 # f32
    inv_l = pl.reciprocal(jnp.sum(p, axis=-1, keepdims=True),
                          approx=True)                             # (H, N, 1), EUP
    pv = jnp.einsum("hqk,hkd->hqd", p.astype(bf16), v,
                    preferred_element_type=f32)                    # (H, N, hd) f32

    # Re-assemble (N, D) by writing each head's normalized slice into a bf16
    # VMEM scratch slab (avoids a lane-axis concatenate / relayout chain; the
    # projection matmul below consumes the slab directly with no extra cast).
    for h in range(num_heads):
        attn_scratch[:, h * hd:(h + 1) * hd] = (pv[h] * inv_l[h]).astype(bf16)

    attn = jnp.dot(attn_scratch[...], proj_w_ref[...],
                   preferred_element_type=f32) + proj_b_ref[...]   # (N, D) f32
    x = x + gate_msa * attn

    # --- MLP branch ---------------------------------------------------------------
    h2 = _layernorm(x) * (1.0 + scale_mlp) + shift_mlp
    m = jnp.dot(h2.astype(bf16), w1_ref[...],
                preferred_element_type=f32) + b1_ref[...]          # (N, Dh) f32
    m = _silu(m)
    m = jnp.dot(m.astype(bf16), w2_ref[...],
                preferred_element_type=f32) + b2_ref[...]          # (N, D) f32

    x = x + gate_mlp * m
    o_ref[...] = x.astype(o_ref.dtype)


def _dit_block_call(x, c3, w, num_heads, single_buffer_weights):
    B, N, D = x.shape

    def weight_spec(arr):
        kwargs = {}
        if single_buffer_weights:
            # Constant index_map -> the second pipeline buffer is pure VMEM waste.
            kwargs["pipeline_mode"] = pl.Buffered(1)
        return pl.BlockSpec(arr.shape, lambda b: (0, 0), **kwargs)

    kernel = functools.partial(dit_block_kernel, num_heads=num_heads)

    return pl.pallas_call(
        kernel,
        out_shape=jax.ShapeDtypeStruct((B, N, D), x.dtype),
        grid_spec=pltpu.PrefetchScalarGridSpec(
            num_scalar_prefetch=0,
            grid=(B,),
            in_specs=[
                pl.BlockSpec((None, N, D), lambda b: (b, 0, 0)),    # x -> (N, D)
                pl.BlockSpec((None, 1, D), lambda b: (b, 0, 0)),    # c -> (1, D)
                weight_spec(w["mod_w"]),  weight_spec(w["mod_b"]),  # (D, 6D), (1, 6D)
                weight_spec(w["qkv_w"]),  weight_spec(w["qkv_b"]),  # (D, 3D), (1, 3D)
                weight_spec(w["proj_w"]), weight_spec(w["proj_b"]), # (D, D),  (1, D)
                weight_spec(w["w1"]),     weight_spec(w["b1"]),     # (D, Dh), (1, Dh)
                weight_spec(w["w2"]),     weight_spec(w["b2"]),     # (Dh, D), (1, D)
            ],
            out_specs=pl.BlockSpec((None, N, D), lambda b: (b, 0, 0)),
            scratch_shapes=[pltpu.VMEM((N, D), jnp.bfloat16)],      # attention slab
        ),
        compiler_params=pltpu.CompilerParams(
            dimension_semantics=("parallel",),
            vmem_limit_bytes=48 * 1024 * 1024,
        ),
        # Residual update: write the result back over x's HBM buffer.
        input_output_aliases={0: 0},
    )(x, c3,
      w["mod_w"], w["mod_b"],
      w["qkv_w"], w["qkv_b"],
      w["proj_w"], w["proj_b"],
      w["w1"], w["b1"],
      w["w2"], w["b2"])


def dit_block(x, c, params, num_heads):
    B, N, D = x.shape
    assert D % num_heads == 0
    c3 = c.reshape(B, 1, D)   # keep conditioning 3-D so the per-batch block is (1, D)

    # Weights in bf16 for the MXU (f32 accumulate); biases stay f32.
    w = {k: (v.astype(jnp.bfloat16)
             if k in ("mod_w", "qkv_w", "proj_w", "w1", "w2") else v)
         for k, v in params.items()}

    try:
        return _dit_block_call(x, c3, w, num_heads, single_buffer_weights=True)
    except Exception:
        # This JAX build may reject pipeline_mode=pl.Buffered(1) on top-level
        # pallas_call BlockSpecs; retry with default double-buffering.
        return _dit_block_call(x, c3, w, num_heads, single_buffer_weights=False)


def dit_block_reference(x, c, params, num_heads):
    """Pure-JAX f32 reference implementing the same math (for verification)."""
    B, N, D = x.shape
    hd = D // num_heads

    mod = _silu(c) @ params["mod_w"] + params["mod_b"]             # (B, 6D)
    s_msa, sc_msa, g_msa, s_mlp, sc_mlp, g_mlp = jnp.split(mod, 6, axis=-1)

    def modulate(h, shift, scale):
        return h * (1.0 + scale[:, None, :]) + shift[:, None, :]

    h1 = modulate(_layernorm(x), s_msa, sc_msa)
    qkv = h1 @ params["qkv_w"] + params["qkv_b"]                   # (B, N, 3D)
    q, k, v = jnp.split(qkv, 3, axis=-1)
    q = q.reshape(B, N, num_heads, hd).transpose(0, 2, 1, 3)
    k = k.reshape(B, N, num_heads, hd).transpose(0, 2, 1, 3)
    v = v.reshape(B, N, num_heads, hd).transpose(0, 2, 1, 3)
    s = jnp.einsum("bhqd,bhkd->bhqk", q, k) / (hd ** 0.5)
    p = jax.nn.softmax(s, axis=-1)
    a = jnp.einsum("bhqk,bhkd->bhqd", p, v).transpose(0, 2, 1, 3).reshape(B, N, D)
    a = a @ params["proj_w"] + params["proj_b"]
    x = x + g_msa[:, None, :] * a

    h2 = modulate(_layernorm(x), s_mlp, sc_mlp)
    m = _silu(h2 @ params["w1"] + params["b1"]) @ params["w2"] + params["b2"]
    x = x + g_mlp[:, None, :] * m
    return x


def init_params(key, hidden, num_heads, mlp_ratio=4.0):
    D = hidden
    Dh = int(D * mlp_ratio)
    ks = jax.random.split(key, 6)
    std = 0.02
    return {
        "mod_w":  jax.random.normal(ks[0], (D, 6 * D), jnp.float32) * std,
        "mod_b":  jnp.zeros((1, 6 * D), jnp.float32) + 0.05,
        "qkv_w":  jax.random.normal(ks[1], (D, 3 * D), jnp.float32) * std,
        "qkv_b":  jnp.zeros((1, 3 * D), jnp.float32),
        "proj_w": jax.random.normal(ks[2], (D, D), jnp.float32) * std,
        "proj_b": jnp.zeros((1, D), jnp.float32),
        "w1":     jax.random.normal(ks[3], (D, Dh), jnp.float32) * std,
        "b1":     jnp.zeros((1, Dh), jnp.float32),
        "w2":     jax.random.normal(ks[4], (Dh, D), jnp.float32) * std,
        "b2":     jnp.zeros((1, D), jnp.float32),
    }


if __name__ == "__main__":
    # Small but lane-aligned shapes: D multiple of 128, N multiple of 8.
    B, N, D, H = 2, 64, 128, 4

    key = jax.random.PRNGKey(0)
    kx, kc, kp = jax.random.split(key, 3)
    x = jax.random.normal(kx, (B, N, D), jnp.float32)
    c = jax.random.normal(kc, (B, D), jnp.float32)
    params = init_params(kp, D, H)

    ref = dit_block_reference(x, c, params, num_heads=H)

    out = jax.block_until_ready(dit_block(x, c, params, num_heads=H))

    assert out.shape == (B, N, D)
    max_err = float(jnp.max(jnp.abs(out - ref)))
    # bf16 MXU operands (f32 accumulate) vs. the pure-f32 reference: ~1e-2 level.
    assert jnp.allclose(out, ref, atol=2e-2, rtol=2e-2), max_err

    print("KERNEL_OK")
</pallas_src>

<mosaic_0001>
module attributes {stable_mosaic.version = 11 : i64} {
  func.func @dit_block_kernel(%arg0: i32, %arg1: memref<1x64x128xf32, #tpu.memory_space<vmem>>, %arg2: memref<1x1x128xf32, #tpu.memory_space<vmem>>, %arg3: memref<128x768xbf16, #tpu.memory_space<vmem>>, %arg4: memref<1x768xf32, #tpu.memory_space<vmem>>, %arg5: memref<128x384xbf16, #tpu.memory_space<vmem>>, %arg6: memref<1x384xf32, #tpu.memory_space<vmem>>, %arg7: memref<128x128xbf16, #tpu.memory_space<vmem>>, %arg8: memref<1x128xf32, #tpu.memory_space<vmem>>, %arg9: memref<128x512xbf16, #tpu.memory_space<vmem>>, %arg10: memref<1x512xf32, #tpu.memory_space<vmem>>, %arg11: memref<512x128xbf16, #tpu.memory_space<vmem>>, %arg12: memref<1x128xf32, #tpu.memory_space<vmem>>, %arg13: memref<1x64x128xf32, #tpu.memory_space<vmem>>, %arg14: memref<64x128xbf16, #tpu.memory_space<vmem>>) attributes {dimension_semantics = [#tpu.dimension_semantics<parallel>], iteration_bounds = array<i64: 2>, scalar_prefetch = 0 : i64, scratch_operands = 1 : i64, tpu.core_type = #tpu.core_type<tc>, window_params = [{transform_indices = @transform_0, window_bounds = array<i64: 1, 64, 128>}, {transform_indices = @transform_1, window_bounds = array<i64: 1, 1, 128>}, {pipeline_mode = #tpu.pipeline_mode<synchronous>, transform_indices = @transform_2, window_bounds = array<i64: 128, 768>}, {pipeline_mode = #tpu.pipeline_mode<synchronous>, transform_indices = @transform_3, window_bounds = array<i64: 1, 768>}, {pipeline_mode = #tpu.pipeline_mode<synchronous>, transform_indices = @transform_4, window_bounds = array<i64: 128, 384>}, {pipeline_mode = #tpu.pipeline_mode<synchronous>, transform_indices = @transform_5, window_bounds = array<i64: 1, 384>}, {pipeline_mode = #tpu.pipeline_mode<synchronous>, transform_indices = @transform_6, window_bounds = array<i64: 128, 128>}, {pipeline_mode = #tpu.pipeline_mode<synchronous>, transform_indices = @transform_7, window_bounds = array<i64: 1, 128>}, {pipeline_mode = #tpu.pipeline_mode<synchronous>, transform_indices = @transform_8, window_bounds = array<i64: 128, 512>}, {pipeline_mode = #tpu.pipeline_mode<synchronous>, transform_indices = @transform_9, window_bounds = array<i64: 1, 512>}, {pipeline_mode = #tpu.pipeline_mode<synchronous>, transform_indices = @transform_10, window_bounds = array<i64: 512, 128>}, {pipeline_mode = #tpu.pipeline_mode<synchronous>, transform_indices = @transform_11, window_bounds = array<i64: 1, 128>}, {transform_indices = @transform_12, window_bounds = array<i64: 1, 64, 128>}]} {
    %c0 = arith.constant 0 : index
    %c0_0 = arith.constant 0 : index
    %c0_1 = arith.constant 0 : index
    %0 = vector.load %arg1[%c0, %c0_0, %c0_1] : memref<1x64x128xf32, #tpu.memory_space<vmem>>, vector<1x64x128xf32>
    %1 = vector.shape_cast %0 : vector<1x64x128xf32> to vector<64x128xf32>
    %c0_2 = arith.constant 0 : index
    %c0_3 = arith.constant 0 : index
    %c0_4 = arith.constant 0 : index
    %2 = vector.load %arg2[%c0_2, %c0_3, %c0_4] : memref<1x1x128xf32, #tpu.memory_space<vmem>>, vector<1x1x128xf32>
    %3 = vector.shape_cast %2 : vector<1x1x128xf32> to vector<1x128xf32>
    %4 = arith.negf %3 : vector<1x128xf32>
    %5 = math.exp %4 : vector<1x128xf32>
    %cst = arith.constant 1.000000e+00 : f32
    %6 = vector.broadcast %cst : f32 to vector<1x128xf32>
    %7 = arith.addf %6, %5 : vector<1x128xf32>
    %8 = arith.divf %6, %7 : vector<1x128xf32>
    %9 = arith.mulf %3, %8 : vector<1x128xf32>
    %10 = arith.truncf %9 : vector<1x128xf32> to vector<1x128xbf16>
    %c0_5 = arith.constant 0 : index
    %c0_6 = arith.constant 0 : index
    %11 = vector.load %arg3[%c0_5, %c0_6] : memref<128x768xbf16, #tpu.memory_space<vmem>>, vector<128x768xbf16>
    %cst_7 = arith.constant dense<0.000000e+00> : vector<1x768xf32>
    %12 = tpu.matmul %10, %11, %cst_7 {dimension_numbers = #tpu.dot_dimension_numbers<[1], [0], [0], [1], [0, 0, 1, 1], [], []>} : vector<1x128xbf16>, vector<128x768xbf16>, vector<1x768xf32> -> vector<1x768xf32>
    %c0_8 = arith.constant 0 : index
    %c0_9 = arith.constant 0 : index
    %13 = vector.load %arg4[%c0_8, %c0_9] : memref<1x768xf32, #tpu.memory_space<vmem>>, vector<1x768xf32>
    %14 = arith.addf %12, %13 : vector<1x768xf32>
    %15 = vector.extract_strided_slice %14 {offsets = [0, 0], sizes = [1, 128], strides = [1, 1]} : vector<1x768xf32> to vector<1x128xf32>
    %16 = vector.extract_strided_slice %14 {offsets = [0, 128], sizes = [1, 128], strides = [1, 1]} : vector<1x768xf32> to vector<1x128xf32>
    %17 = vector.extract_strided_slice %14 {offsets = [0, 256], sizes = [1, 128], strides = [1, 1]} : vector<1x768xf32> to vector<1x128xf32>
    %18 = vector.extract_strided_slice %14 {offsets = [0, 384], sizes = [1, 128], strides = [1, 1]} : vector<1x768xf32> to vector<1x128xf32>
    %19 = vector.extract_strided_slice %14 {offsets = [0, 512], sizes = [1, 128], strides = [1, 1]} : vector<1x768xf32> to vector<1x128xf32>
    %20 = vector.extract_strided_slice %14 {offsets = [0, 640], sizes = [1, 128], strides = [1, 1]} : vector<1x768xf32> to vector<1x128xf32>
    %cst_10 = arith.constant dense<0.000000e+00> : vector<64xf32>
    %21 = vector.multi_reduction <add>, %1, %cst_10 [1] : vector<64x128xf32> to vector<64xf32>
    %22 = vector.shape_cast %21 : vector<64xf32> to vector<64x1xf32>
    %cst_11 = arith.constant 1.280000e+02 : f32
    %23 = vector.broadcast %cst_11 : f32 to vector<64x1xf32>
    %24 = arith.divf %22, %23 : vector<64x1xf32>
    %25 = vector.broadcast %24 : vector<64x1xf32> to vector<64x128xf32>
    %26 = arith.subf %1, %25 : vector<64x128xf32>
    %27 = arith.mulf %26, %26 : vector<64x128xf32>
    %cst_12 = arith.constant dense<0.000000e+00> : vector<64xf32>
    %28 = vector.multi_reduction <add>, %27, %cst_12 [1] : vector<64x128xf32> to vector<64xf32>
    %29 = vector.shape_cast %28 : vector<64xf32> to vector<64x1xf32>
    %cst_13 = arith.constant 1.280000e+02 : f32
    %30 = vector.broadcast %cst_13 : f32 to vector<64x1xf32>
    %31 = arith.divf %29, %30 : vector<64x1xf32>
    %32 = vector.broadcast %24 : vector<64x1xf32> to vector<64x128xf32>
    %33 = arith.subf %1, %32 : vector<64x128xf32>
    %cst_14 = arith.constant 9.99999997E-7 : f32
    %34 = vector.broadcast %cst_14 : f32 to vector<64x1xf32>
    %35 = arith.addf %31, %34 : vector<64x1xf32>
    %36 = math.rsqrt %35 : vector<64x1xf32>
    %37 = vector.broadcast %36 : vector<64x1xf32> to vector<64x128xf32>
    %38 = arith.mulf %33, %37 : vector<64x128xf32>
    %cst_15 = arith.constant 1.000000e+00 : f32
    %39 = vector.broadcast %cst_15 : f32 to vector<1x128xf32>
    %40 = arith.addf %39, %16 : vector<1x128xf32>
    %41 = vector.broadcast %40 : vector<1x128xf32> to vector<64x128xf32>
    %42 = arith.mulf %38, %41 : vector<64x128xf32>
    %43 = vector.broadcast %15 : vector<1x128xf32> to vector<64x128xf32>
    %44 = arith.addf %42, %43 : vector<64x128xf32>
    %45 = arith.truncf %44 : vector<64x128xf32> to vector<64x128xbf16>
    %c0_16 = arith.constant 0 : index
    %c0_17 = arith.constant 0 : index
    %46 = vector.load %arg5[%c0_16, %c0_17] : memref<128x384xbf16, #tpu.memory_space<vmem>>, vector<128x384xbf16>
    %cst_18 = arith.constant dense<0.000000e+00> : vector<64x384xf32>
    %47 = tpu.matmul %45, %46, %cst_18 {dimension_numbers = #tpu.dot_dimension_numbers<[1], [0], [0], [1], [0, 0, 1, 1], [], []>} : vector<64x128xbf16>, vector<128x384xbf16>, vector<64x384xf32> -> vector<64x384xf32>
    %c0_19 = arith.constant 0 : index
    %c0_20 = arith.constant 0 : index
    %48 = vector.load %arg6[%c0_19, %c0_20] : memref<1x384xf32, #tpu.memory_space<vmem>>, vector<1x384xf32>
    %49 = vector.broadcast %48 : vector<1x384xf32> to vector<64x384xf32>
    %50 = arith.addf %47, %49 : vector<64x384xf32>
    %51 = vector.extract_strided_slice %50 {offsets = [0, 0], sizes = [64, 128], strides = [1, 1]} : vector<64x384xf32> to vector<64x128xf32>
    %52 = vector.extract_strided_slice %51 {offsets = [0, 0], sizes = [64, 32], strides = [1, 1]} : vector<64x128xf32> to vector<64x32xf32>
    %53 = vector.extract_strided_slice %51 {offsets = [0, 32], sizes = [64, 32], strides = [1, 1]} : vector<64x128xf32> to vector<64x32xf32>
    %54 = vector.extract_strided_slice %51 {offsets = [0, 64], sizes = [64, 32], strides = [1, 1]} : vector<64x128xf32> to vector<64x32xf32>
    %55 = vector.extract_strided_slice %51 {offsets = [0, 96], sizes = [64, 32], strides = [1, 1]} : vector<64x128xf32> to vector<64x32xf32>
    %56 = vector.shape_cast %52 : vector<64x32xf32> to vector<1x64x32xf32>
    %57 = vector.shape_cast %53 : vector<64x32xf32> to vector<1x64x32xf32>
    %58 = vector.shape_cast %54 : vector<64x32xf32> to vector<1x64x32xf32>
    %59 = vector.shape_cast %55 : vector<64x32xf32> to vector<1x64x32xf32>
    %60 = tpu.concatenate %56, %57, %58, %59 in 0 : vector<1x64x32xf32>, vector<1x64x32xf32>, vector<1x64x32xf32>, vector<1x64x32xf32> -> vector<4x64x32xf32>
    %cst_21 = arith.constant 0.176776692 : f32
    %61 = vector.broadcast %cst_21 : f32 to vector<4x64x32xf32>
    %62 = arith.mulf %60, %61 : vector<4x64x32xf32>
    %63 = arith.truncf %62 : vector<4x64x32xf32> to vector<4x64x32xbf16>
    %64 = vector.extract_strided_slice %50 {offsets = [0, 128], sizes = [64, 128], strides = [1, 1]} : vector<64x384xf32> to vector<64x128xf32>
    %65 = vector.extract_strided_slice %64 {offsets = [0, 0], sizes = [64, 32], strides = [1, 1]} : vector<64x128xf32> to vector<64x32xf32>
    %66 = vector.extract_strided_slice %64 {offsets = [0, 32], sizes = [64, 32], strides = [1, 1]} : vector<64x128xf32> to vector<64x32xf32>
    %67 = vector.extract_strided_slice %64 {offsets = [0, 64], sizes = [64, 32], strides = [1, 1]} : vector<64x128xf32> to vector<64x32xf32>
    %68 = vector.extract_strided_slice %64 {offsets = [0, 96], sizes = [64, 32], strides = [1, 1]} : vector<64x128xf32> to vector<64x32xf32>
    %69 = vector.shape_cast %65 : vector<64x32xf32> to vector<1x64x32xf32>
    %70 = vector.shape_cast %66 : vector<64x32xf32> to vector<1x64x32xf32>
    %71 = vector.shape_cast %67 : vector<64x32xf32> to vector<1x64x32xf32>
    %72 = vector.shape_cast %68 : vector<64x32xf32> to vector<1x64x32xf32>
    %73 = tpu.concatenate %69, %70, %71, %72 in 0 : vector<1x64x32xf32>, vector<1x64x32xf32>, vector<1x64x32xf32>, vector<1x64x32xf32> -> vector<4x64x32xf32>
    %74 = arith.truncf %73 : vector<4x64x32xf32> to vector<4x64x32xbf16>
    %75 = vector.extract_strided_slice %50 {offsets = [0, 256], sizes = [64, 128], strides = [1, 1]} : vector<64x384xf32> to vector<64x128xf32>
    %76 = vector.extract_strided_slice %75 {offsets = [0, 0], sizes = [64, 32], strides = [1, 1]} : vector<64x128xf32> to vector<64x32xf32>
    %77 = vector.extract_strided_slice %75 {offsets = [0, 32], sizes = [64, 32], strides = [1, 1]} : vector<64x128xf32> to vector<64x32xf32>
    %78 = vector.extract_strided_slice %75 {offsets = [0, 64], sizes = [64, 32], strides = [1, 1]} : vector<64x128xf32> to vector<64x32xf32>
    %79 = vector.extract_strided_slice %75 {offsets = [0, 96], sizes = [64, 32], strides = [1, 1]} : vector<64x128xf32> to vector<64x32xf32>
    %80 = vector.shape_cast %76 : vector<64x32xf32> to vector<1x64x32xf32>
    %81 = vector.shape_cast %77 : vector<64x32xf32> to vector<1x64x32xf32>
    %82 = vector.shape_cast %78 : vector<64x32xf32> to vector<1x64x32xf32>
    %83 = vector.shape_cast %79 : vector<64x32xf32> to vector<1x64x32xf32>
    %84 = tpu.concatenate %80, %81, %82, %83 in 0 : vector<1x64x32xf32>, vector<1x64x32xf32>, vector<1x64x32xf32>, vector<1x64x32xf32> -> vector<4x64x32xf32>
    %85 = arith.truncf %84 : vector<4x64x32xf32> to vector<4x64x32xbf16>
    "tpu.trace_start"() <{level = 10 : i32, message = "hqd,hkd->hqk"}> : () -> ()
    %cst_22 = arith.constant dense<0.000000e+00> : vector<4x64x64xf32>
    %86 = tpu.matmul %63, %74, %cst_22 {dimension_numbers = #tpu.dot_dimension_numbers<[2], [2], [1], [1], [0, 0, 0, 1, 1, 1], [0], [0]>} : vector<4x64x32xbf16>, vector<4x64x32xbf16>, vector<4x64x64xf32> -> vector<4x64x64xf32>
    "tpu.trace_stop"() : () -> ()
    %cst_23 = arith.constant dense<0xFF800000> : vector<4x64xf32>
    %87 = vector.multi_reduction <maximumf>, %86, %cst_23 [2] : vector<4x64x64xf32> to vector<4x64xf32>
    %88 = vector.shape_cast %87 : vector<4x64xf32> to vector<4x64x1xf32>
    %89 = vector.broadcast %88 : vector<4x64x1xf32> to vector<4x64x64xf32>
    %90 = arith.subf %86, %89 : vector<4x64x64xf32>
    %91 = math.exp %90 : vector<4x64x64xf32>
    %cst_24 = arith.constant dense<0.000000e+00> : vector<4x64xf32>
    %92 = vector.multi_reduction <add>, %91, %cst_24 [2] : vector<4x64x64xf32> to vector<4x64xf32>
    %93 = vector.shape_cast %92 : vector<4x64xf32> to vector<4x64x1xf32>
    %94 = tpu.reciprocal %93 {approx = true} : vector<4x64x1xf32> -> vector<4x64x1xf32>
    %95 = arith.truncf %91 : vector<4x64x64xf32> to vector<4x64x64xbf16>
    "tpu.trace_start"() <{level = 10 : i32, message = "hqk,hkd->hqd"}> : () -> ()
    %cst_25 = arith.constant dense<0.000000e+00> : vector<4x64x32xf32>
    %96 = tpu.matmul %95, %85, %cst_25 {dimension_numbers = #tpu.dot_dimension_numbers<[2], [1], [1], [2], [0, 0, 0, 1, 1, 2], [0], [0]>} : vector<4x64x64xbf16>, vector<4x64x32xbf16>, vector<4x64x32xf32> -> vector<4x64x32xf32>
    "tpu.trace_stop"() : () -> ()
    %97 = vector.extract_strided_slice %96 {offsets = [0, 0, 0], sizes = [1, 64, 32], strides = [1, 1, 1]} : vector<4x64x32xf32> to vector<1x64x32xf32>
    %98 = vector.shape_cast %97 : vector<1x64x32xf32> to vector<64x32xf32>
    %99 = vector.extract_strided_slice %94 {offsets = [0, 0, 0], sizes = [1, 64, 1], strides = [1, 1, 1]} : vector<4x64x1xf32> to vector<1x64x1xf32>
    %100 = vector.shape_cast %99 : vector<1x64x1xf32> to vector<64x1xf32>
    %101 = vector.broadcast %100 : vector<64x1xf32> to vector<64x32xf32>
    %102 = arith.mulf %98, %101 : vector<64x32xf32>
    %103 = arith.truncf %102 : vector<64x32xf32> to vector<64x32xbf16>
    %c0_26 = arith.constant 0 : index
    %c0_27 = arith.constant 0 : index
    %104 = vector.load %arg14[%c0_26, %c0_27] : memref<64x128xbf16, #tpu.memory_space<vmem>>, vector<64x32xbf16>
    tpu.vector_store %arg14[%c0_26, %c0_27], %103 {strides = array<i32>} : memref<64x128xbf16, #tpu.memory_space<vmem>>, vector<64x32xbf16>,
    %105 = vector.extract_strided_slice %96 {offsets = [1, 0, 0], sizes = [1, 64, 32], strides = [1, 1, 1]} : vector<4x64x32xf32> to vector<1x64x32xf32>
    %106 = vector.shape_cast %105 : vector<1x64x32xf32> to vector<64x32xf32>
    %107 = vector.extract_strided_slice %94 {offsets = [1, 0, 0], sizes = [1, 64, 1], strides = [1, 1, 1]} : vector<4x64x1xf32> to vector<1x64x1xf32>
    %108 = vector.shape_cast %107 : vector<1x64x1xf32> to vector<64x1xf32>
    %109 = vector.broadcast %108 : vector<64x1xf32> to vector<64x32xf32>
    %110 = arith.mulf %106, %109 : vector<64x32xf32>
    %111 = arith.truncf %110 : vector<64x32xf32> to vector<64x32xbf16>
    %c0_28 = arith.constant 0 : index
    %c32 = arith.constant 32 : index
    %112 = vector.load %arg14[%c0_28, %c32] : memref<64x128xbf16, #tpu.memory_space<vmem>>, vector<64x32xbf16>
    tpu.vector_store %arg14[%c0_28, %c32], %111 {strides = array<i32>} : memref<64x128xbf16, #tpu.memory_space<vmem>>, vector<64x32xbf16>,
    %113 = vector.extract_strided_slice %96 {offsets = [2, 0, 0], sizes = [1, 64, 32], strides = [1, 1, 1]} : vector<4x64x32xf32> to vector<1x64x32xf32>
    %114 = vector.shape_cast %113 : vector<1x64x32xf32> to vector<64x32xf32>
    %115 = vector.extract_strided_slice %94 {offsets = [2, 0, 0], sizes = [1, 64, 1], strides = [1, 1, 1]} : vector<4x64x1xf32> to vector<1x64x1xf32>
    %116 = vector.shape_cast %115 : vector<1x64x1xf32> to vector<64x1xf32>
    %117 = vector.broadcast %116 : vector<64x1xf32> to vector<64x32xf32>
    %118 = arith.mulf %114, %117 : vector<64x32xf32>
    %119 = arith.truncf %118 : vector<64x32xf32> to vector<64x32xbf16>
    %c0_29 = arith.constant 0 : index
    %c64 = arith.constant 64 : index
    %120 = vector.load %arg14[%c0_29, %c64] : memref<64x128xbf16, #tpu.memory_space<vmem>>, vector<64x32xbf16>
    tpu.vector_store %arg14[%c0_29, %c64], %119 {strides = array<i32>} : memref<64x128xbf16, #tpu.memory_space<vmem>>, vector<64x32xbf16>,
    %121 = vector.extract_strided_slice %96 {offsets = [3, 0, 0], sizes = [1, 64, 32], strides = [1, 1, 1]} : vector<4x64x32xf32> to vector<1x64x32xf32>
    %122 = vector.shape_cast %121 : vector<1x64x32xf32> to vector<64x32xf32>
    %123 = vector.extract_strided_slice %94 {offsets = [3, 0, 0], sizes = [1, 64, 1], strides = [1, 1, 1]} : vector<4x64x1xf32> to vector<1x64x1xf32>
    %124 = vector.shape_cast %123 : vector<1x64x1xf32> to vector<64x1xf32>
    %125 = vector.broadcast %124 : vector<64x1xf32> to vector<64x32xf32>
    %126 = arith.mulf %122, %125 : vector<64x32xf32>
    %127 = arith.truncf %126 : vector<64x32xf32> to vector<64x32xbf16>
    %c0_30 = arith.constant 0 : index
    %c96 = arith.constant 96 : index
    %128 = vector.load %arg14[%c0_30, %c96] : memref<64x128xbf16, #tpu.memory_space<vmem>>, vector<64x32xbf16>
    tpu.vector_store %arg14[%c0_30, %c96], %127 {strides = array<i32>} : memref<64x128xbf16, #tpu.memory_space<vmem>>, vector<64x32xbf16>,
    %c0_31 = arith.constant 0 : index
    %c0_32 = arith.constant 0 : index
    %129 = vector.load %arg14[%c0_31, %c0_32] : memref<64x128xbf16, #tpu.memory_space<vmem>>, vector<64x128xbf16>
    %c0_33 = arith.constant 0 : index
    %c0_34 = arith.constant 0 : index
    %130 = vector.load %arg7[%c0_33, %c0_34] : memref<128x128xbf16, #tpu.memory_space<vmem>>, vector<128x128xbf16>
    %cst_35 = arith.constant dense<0.000000e+00> : vector<64x128xf32>
    %131 = tpu.matmul %129, %130, %cst_35 {dimension_numbers = #tpu.dot_dimension_numbers<[1], [0], [0], [1], [0, 0, 1, 1], [], []>} : vector<64x128xbf16>, vector<128x128xbf16>, vector<64x128xf32> -> vector<64x128xf32>
    %c0_36 = arith.constant 0 : index
    %c0_37 = arith.constant 0 : index
    %132 = vector.load %arg8[%c0_36, %c0_37] : memref<1x128xf32, #tpu.memory_space<vmem>>, vector<1x128xf32>
    %133 = vector.broadcast %132 : vector<1x128xf32> to vector<64x128xf32>
    %134 = arith.addf %131, %133 : vector<64x128xf32>
    %135 = vector.broadcast %17 : vector<1x128xf32> to vector<64x128xf32>
    %136 = arith.mulf %135, %134 : vector<64x128xf32>
    %137 = arith.addf %1, %136 : vector<64x128xf32>
    %cst_38 = arith.constant dense<0.000000e+00> : vector<64xf32>
    %138 = vector.multi_reduction <add>, %137, %cst_38 [1] : vector<64x128xf32> to vector<64xf32>
    %139 = vector.shape_cast %138 : vector<64xf32> to vector<64x1xf32>
    %cst_39 = arith.constant 1.280000e+02 : f32
    %140 = vector.broadcast %cst_39 : f32 to vector<64x1xf32>
    %141 = arith.divf %139, %140 : vector<64x1xf32>
    %142 = vector.broadcast %141 : vector<64x1xf32> to vector<64x128xf32>
    %143 = arith.subf %137, %142 : vector<64x128xf32>
    %144 = arith.mulf %143, %143 : vector<64x128xf32>
    %cst_40 = arith.constant dense<0.000000e+00> : vector<64xf32>
    %145 = vector.multi_reduction <add>, %144, %cst_40 [1] : vector<64x128xf32> to vector<64xf32>
    %146 = vector.shape_cast %145 : vector<64xf32> to vector<64x1xf32>
    %cst_41 = arith.constant 1.280000e+02 : f32
    %147 = vector.broadcast %cst_41 : f32 to vector<64x1xf32>
    %148 = arith.divf %146, %147 : vector<64x1xf32>
    %149 = vector.broadcast %141 : vector<64x1xf32> to vector<64x128xf32>
    %150 = arith.subf %137, %149 : vector<64x128xf32>
    %cst_42 = arith.constant 9.99999997E-7 : f32
    %151 = vector.broadcast %cst_42 : f32 to vector<64x1xf32>
    %152 = arith.addf %148, %151 : vector<64x1xf32>
    %153 = math.rsqrt %152 : vector<64x1xf32>
    %154 = vector.broadcast %153 : vector<64x1xf32> to vector<64x128xf32>
    %155 = arith.mulf %150, %154 : vector<64x128xf32>
    %cst_43 = arith.constant 1.000000e+00 : f32
    %156 = vector.broadcast %cst_43 : f32 to vector<1x128xf32>
    %157 = arith.addf %156, %19 : vector<1x128xf32>
    %158 = vector.broadcast %157 : vector<1x128xf32> to vector<64x128xf32>
    %159 = arith.mulf %155, %158 : vector<64x128xf32>
    %160 = vector.broadcast %18 : vector<1x128xf32> to vector<64x128xf32>
    %161 = arith.addf %159, %160 : vector<64x128xf32>
    %162 = arith.truncf %161 : vector<64x128xf32> to vector<64x128xbf16>
    %c0_44 = arith.constant 0 : index
    %c0_45 = arith.constant 0 : index
    %163 = vector.load %arg9[%c0_44, %c0_45] : memref<128x512xbf16, #tpu.memory_space<vmem>>, vector<128x512xbf16>
    %cst_46 = arith.constant dense<0.000000e+00> : vector<64x512xf32>
    %164 = tpu.matmul %162, %163, %cst_46 {dimension_numbers = #tpu.dot_dimension_numbers<[1], [0], [0], [1], [0, 0, 1, 1], [], []>} : vector<64x128xbf16>, vector<128x512xbf16>, vector<64x512xf32> -> vector<64x512xf32>
    %c0_47 = arith.constant 0 : index
    %c0_48 = arith.constant 0 : index
    %165 = vector.load %arg10[%c0_47, %c0_48] : memref<1x512xf32, #tpu.memory_space<vmem>>, vector<1x512xf32>
    %166 = vector.broadcast %165 : vector<1x512xf32> to vector<64x512xf32>
    %167 = arith.addf %164, %166 : vector<64x512xf32>
    %168 = arith.negf %167 : vector<64x512xf32>
    %169 = math.exp %168 : vector<64x512xf32>
    %cst_49 = arith.constant 1.000000e+00 : f32
    %170 = vector.broadcast %cst_49 : f32 to vector<64x512xf32>
    %171 = arith.addf %170, %169 : vector<64x512xf32>
    %172 = arith.divf %170, %171 : vector<64x512xf32>
    %173 = arith.mulf %167, %172 : vector<64x512xf32>
    %174 = arith.truncf %173 : vector<64x512xf32> to vector<64x512xbf16>
    %c0_50 = arith.constant 0 : index
    %c0_51 = arith.constant 0 : index
    %175 = vector.load %arg11[%c0_50, %c0_51] : memref<512x128xbf16, #tpu.memory_space<vmem>>, vector<512x128xbf16>
    %cst_52 = arith.constant dense<0.000000e+00> : vector<64x128xf32>
    %176 = tpu.matmul %174, %175, %cst_52 {dimension_numbers = #tpu.dot_dimension_numbers<[1], [0], [0], [1], [0, 0, 1, 1], [], []>} : vector<64x512xbf16>, vector<512x128xbf16>, vector<64x128xf32> -> vector<64x128xf32>
    %c0_53 = arith.constant 0 : index
    %c0_54 = arith.constant 0 : index
    %177 = vector.load %arg12[%c0_53, %c0_54] : memref<1x128xf32, #tpu.memory_space<vmem>>, vector<1x128xf32>
    %178 = vector.broadcast %177 : vector<1x128xf32> to vector<64x128xf32>
    %179 = arith.addf %176, %178 : vector<64x128xf32>
    %180 = vector.broadcast %20 : vector<1x128xf32> to vector<64x128xf32>
    %181 = arith.mulf %180, %179 : vector<64x128xf32>
    %182 = arith.addf %137, %181 : vector<64x128xf32>
    %c0_55 = arith.constant 0 : index
    %c0_56 = arith.constant 0 : index
    %c0_57 = arith.constant 0 : index
    %183 = vector.load %arg13[%c0_55, %c0_56, %c0_57] : memref<1x64x128xf32, #tpu.memory_space<vmem>>, vector<1x64x128xf32>
    %184 = vector.shape_cast %183 : vector<1x64x128xf32> to vector<64x128xf32>
    %185 = vector.shape_cast %182 : vector<64x128xf32> to vector<1x64x128xf32>
    tpu.vector_store %arg13[%c0_55, %c0_56, %c0_57], %185 {strides = array<i32>} : memref<1x64x128xf32, #tpu.memory_space<vmem>>, vector<1x64x128xf32>,
    return
  }
  func.func @transform_0(%arg0: i32) -> (i32, i32, i32) {
    %c0_i32 = arith.constant 0 : i32
    %c0_i32_0 = arith.constant 0 : i32
    %c0_i32_1 = arith.constant 0 : i32
    return %arg0, %c0_i32, %c0_i32_0 : i32, i32, i32
  }
  func.func @transform_1(%arg0: i32) -> (i32, i32, i32) {
    %c0_i32 = arith.constant 0 : i32
    %c0_i32_0 = arith.constant 0 : i32
    %c0_i32_1 = arith.constant 0 : i32
    return %arg0, %c0_i32, %c0_i32_0 : i32, i32, i32
  }
  func.func @transform_2(%arg0: i32) -> (i32, i32) {
    %c0_i32 = arith.constant 0 : i32
    %c0_i32_0 = arith.constant 0 : i32
    %c0_i32_1 = arith.constant 0 : i32
    return %c0_i32, %c0_i32_0 : i32, i32
  }
  func.func @transform_3(%arg0: i32) -> (i32, i32) {
    %c0_i32 = arith.constant 0 : i32
    %c0_i32_0 = arith.constant 0 : i32
    %c0_i32_1 = arith.constant 0 : i32
    return %c0_i32, %c0_i32_0 : i32, i32
  }
  func.func @transform_4(%arg0: i32) -> (i32, i32) {
    %c0_i32 = arith.constant 0 : i32
    %c0_i32_0 = arith.constant 0 : i32
    %c0_i32_1 = arith.constant 0 : i32
    return %c0_i32, %c0_i32_0 : i32, i32
  }
  func.func @transform_5(%arg0: i32) -> (i32, i32) {
    %c0_i32 = arith.constant 0 : i32
    %c0_i32_0 = arith.constant 0 : i32
    %c0_i32_1 = arith.constant 0 : i32
    return %c0_i32, %c0_i32_0 : i32, i32
  }
  func.func @transform_6(%arg0: i32) -> (i32, i32) {
    %c0_i32 = arith.constant 0 : i32
    %c0_i32_0 = arith.constant 0 : i32
    %c0_i32_1 = arith.constant 0 : i32
    return %c0_i32, %c0_i32_0 : i32, i32
  }
  func.func @transform_7(%arg0: i32) -> (i32, i32) {
    %c0_i32 = arith.constant 0 : i32
    %c0_i32_0 = arith.constant 0 : i32
    %c0_i32_1 = arith.constant 0 : i32
    return %c0_i32, %c0_i32_0 : i32, i32
  }
  func.func @transform_8(%arg0: i32) -> (i32, i32) {
    %c0_i32 = arith.constant 0 : i32
    %c0_i32_0 = arith.constant 0 : i32
    %c0_i32_1 = arith.constant 0 : i32
    return %c0_i32, %c0_i32_0 : i32, i32
  }
  func.func @transform_9(%arg0: i32) -> (i32, i32) {
    %c0_i32 = arith.constant 0 : i32
    %c0_i32_0 = arith.constant 0 : i32
    %c0_i32_1 = arith.constant 0 : i32
    return %c0_i32, %c0_i32_0 : i32, i32
  }
  func.func @transform_10(%arg0: i32) -> (i32, i32) {
    %c0_i32 = arith.constant 0 : i32
    %c0_i32_0 = arith.constant 0 : i32
    %c0_i32_1 = arith.constant 0 : i32
    return %c0_i32, %c0_i32_0 : i32, i32
  }
  func.func @transform_11(%arg0: i32) -> (i32, i32) {
    %c0_i32 = arith.constant 0 : i32
    %c0_i32_0 = arith.constant 0 : i32
    %c0_i32_1 = arith.constant 0 : i32
    return %c0_i32, %c0_i32_0 : i32, i32
  }
  func.func @transform_12(%arg0: i32) -> (i32, i32, i32) {
    %c0_i32 = arith.constant 0 : i32
    %c0_i32_0 = arith.constant 0 : i32
    %c0_i32_1 = arith.constant 0 : i32
    return %arg0, %c0_i32, %c0_i32_0 : i32, i32, i32
  }
}

module attributes {stable_mosaic.version = 11 : i64} {
  func.func @dit_block_kernel(%arg0: i32, %arg1: memref<1x64x128xf32, #tpu.memory_space<vmem>>, %arg2: memref<1x1x128xf32, #tpu.memory_space<vmem>>, %arg3: memref<128x768xbf16, #tpu.memory_space<vmem>>, %arg4: memref<1x768xf32, #tpu.memory_space<vmem>>, %arg5: memref<128x384xbf16, #tpu.memory_space<vmem>>, %arg6: memref<1x384xf32, #tpu.memory_space<vmem>>, %arg7: memref<128x128xbf16, #tpu.memory_space<vmem>>, %arg8: memref<1x128xf32, #tpu.memory_space<vmem>>, %arg9: memref<128x512xbf16, #tpu.memory_space<vmem>>, %arg10: memref<1x512xf32, #tpu.memory_space<vmem>>, %arg11: memref<512x128xbf16, #tpu.memory_space<vmem>>, %arg12: memref<1x128xf32, #tpu.memory_space<vmem>>, %arg13: memref<1x64x128xf32, #tpu.memory_space<vmem>>, %arg14: memref<64x128xbf16, #tpu.memory_space<vmem>>) attributes {dimension_semantics = [#tpu.dimension_semantics<parallel>], iteration_bounds = array<i64: 2>, scalar_prefetch = 0 : i64, scratch_operands = 1 : i64, tpu.core_type = #tpu.core_type<tc>, window_params = [{transform_indices = @transform_0, window_bounds = array<i64: 1, 64, 128>}, {transform_indices = @transform_1, window_bounds = array<i64: 1, 1, 128>}, {pipeline_mode = #tpu.pipeline_mode<synchronous>, transform_indices = @transform_2, window_bounds = array<i64: 128, 768>}, {pipeline_mode = #tpu.pipeline_mode<synchronous>, transform_indices = @transform_3, window_bounds = array<i64: 1, 768>}, {pipeline_mode = #tpu.pipeline_mode<synchronous>, transform_indices = @transform_4, window_bounds = array<i64: 128, 384>}, {pipeline_mode = #tpu.pipeline_mode<synchronous>, transform_indices = @transform_5, window_bounds = array<i64: 1, 384>}, {pipeline_mode = #tpu.pipeline_mode<synchronous>, transform_indices = @transform_6, window_bounds = array<i64: 128, 128>}, {pipeline_mode = #tpu.pipeline_mode<synchronous>, transform_indices = @transform_7, window_bounds = array<i64: 1, 128>}, {pipeline_mode = #tpu.pipeline_mode<synchronous>, transform_indices = @transform_8, window_bounds = array<i64: 128, 512>}, {pipeline_mode = #tpu.pipeline_mode<synchronous>, transform_indices = @transform_9, window_bounds = array<i64: 1, 512>}, {pipeline_mode = #tpu.pipeline_mode<synchronous>, transform_indices = @transform_10, window_bounds = array<i64: 512, 128>}, {pipeline_mode = #tpu.pipeline_mode<synchronous>, transform_indices = @transform_11, window_bounds = array<i64: 1, 128>}, {transform_indices = @transform_12, window_bounds = array<i64: 1, 64, 128>}]} {
    %c0 = arith.constant 0 : index
    %c0_0 = arith.constant 0 : index
    %c0_1 = arith.constant 0 : index
    %0 = vector.load %arg1[%c0, %c0_0, %c0_1] : memref<1x64x128xf32, #tpu.memory_space<vmem>>, vector<1x64x128xf32>
    %1 = vector.shape_cast %0 : vector<1x64x128xf32> to vector<64x128xf32>
    %c0_2 = arith.constant 0 : index
    %c0_3 = arith.constant 0 : index
    %c0_4 = arith.constant 0 : index
    %2 = vector.load %arg2[%c0_2, %c0_3, %c0_4] : memref<1x1x128xf32, #tpu.memory_space<vmem>>, vector<1x1x128xf32>
    %3 = vector.shape_cast %2 : vector<1x1x128xf32> to vector<1x128xf32>
    %4 = arith.negf %3 : vector<1x128xf32>
    %5 = math.exp %4 : vector<1x128xf32>
    %cst = arith.constant 1.000000e+00 : f32
    %6 = vector.broadcast %cst : f32 to vector<1x128xf32>
    %7 = arith.addf %6, %5 : vector<1x128xf32>
    %8 = arith.divf %6, %7 : vector<1x128xf32>
    %9 = arith.mulf %3, %8 : vector<1x128xf32>
    %10 = arith.truncf %9 : vector<1x128xf32> to vector<1x128xbf16>
    %c0_5 = arith.constant 0 : index
    %c0_6 = arith.constant 0 : index
    %11 = vector.load %arg3[%c0_5, %c0_6] : memref<128x768xbf16, #tpu.memory_space<vmem>>, vector<128x768xbf16>
    %cst_7 = arith.constant dense<0.000000e+00> : vector<1x768xf32>
    %12 = tpu.matmul %10, %11, %cst_7 {dimension_numbers = #tpu.dot_dimension_numbers<[1], [0], [0], [1], [0, 0, 1, 1], [], []>} : vector<1x128xbf16>, vector<128x768xbf16>, vector<1x768xf32> -> vector<1x768xf32>
    %c0_8 = arith.constant 0 : index
    %c0_9 = arith.constant 0 : index
    %13 = vector.load %arg4[%c0_8, %c0_9] : memref<1x768xf32, #tpu.memory_space<vmem>>, vector<1x768xf32>
    %14 = arith.addf %12, %13 : vector<1x768xf32>
    %15 = vector.extract_strided_slice %14 {offsets = [0, 0], sizes = [1, 128], strides = [1, 1]} : vector<1x768xf32> to vector<1x128xf32>
    %16 = vector.extract_strided_slice %14 {offsets = [0, 128], sizes = [1, 128], strides = [1, 1]} : vector<1x768xf32> to vector<1x128xf32>
    %17 = vector.extract_strided_slice %14 {offsets = [0, 256], sizes = [1, 128], strides = [1, 1]} : vector<1x768xf32> to vector<1x128xf32>
    %18 = vector.extract_strided_slice %14 {offsets = [0, 384], sizes = [1, 128], strides = [1, 1]} : vector<1x768xf32> to vector<1x128xf32>
    %19 = vector.extract_strided_slice %14 {offsets = [0, 512], sizes = [1, 128], strides = [1, 1]} : vector<1x768xf32> to vector<1x128xf32>
    %20 = vector.extract_strided_slice %14 {offsets = [0, 640], sizes = [1, 128], strides = [1, 1]} : vector<1x768xf32> to vector<1x128xf32>
    %cst_10 = arith.constant dense<0.000000e+00> : vector<64xf32>
    %21 = vector.multi_reduction <add>, %1, %cst_10 [1] : vector<64x128xf32> to vector<64xf32>
    %22 = vector.shape_cast %21 : vector<64xf32> to vector<64x1xf32>
    %cst_11 = arith.constant 1.280000e+02 : f32
    %23 = vector.broadcast %cst_11 : f32 to vector<64x1xf32>
    %24 = arith.divf %22, %23 : vector<64x1xf32>
    %25 = vector.broadcast %24 : vector<64x1xf32> to vector<64x128xf32>
    %26 = arith.subf %1, %25 : vector<64x128xf32>
    %27 = arith.mulf %26, %26 : vector<64x128xf32>
    %cst_12 = arith.constant dense<0.000000e+00> : vector<64xf32>
    %28 = vector.multi_reduction <add>, %27, %cst_12 [1] : vector<64x128xf32> to vector<64xf32>
    %29 = vector.shape_cast %28 : vector<64xf32> to vector<64x1xf32>
    %cst_13 = arith.constant 1.280000e+02 : f32
    %30 = vector.broadcast %cst_13 : f32 to vector<64x1xf32>
    %31 = arith.divf %29, %30 : vector<64x1xf32>
    %32 = vector.broadcast %24 : vector<64x1xf32> to vector<64x128xf32>
    %33 = arith.subf %1, %32 : vector<64x128xf32>
    %cst_14 = arith.constant 9.99999997E-7 : f32
    %34 = vector.broadcast %cst_14 : f32 to vector<64x1xf32>
    %35 = arith.addf %31, %34 : vector<64x1xf32>
    %36 = math.rsqrt %35 : vector<64x1xf32>
    %37 = vector.broadcast %36 : vector<64x1xf32> to vector<64x128xf32>
    %38 = arith.mulf %33, %37 : vector<64x128xf32>
    %cst_15 = arith.constant 1.000000e+00 : f32
    %39 = vector.broadcast %cst_15 : f32 to vector<1x128xf32>
    %40 = arith.addf %39, %16 : vector<1x128xf32>
    %41 = vector.broadcast %40 : vector<1x128xf32> to vector<64x128xf32>
    %42 = arith.mulf %38, %41 : vector<64x128xf32>
    %43 = vector.broadcast %15 : vector<1x128xf32> to vector<64x128xf32>
    %44 = arith.addf %42, %43 : vector<64x128xf32>
    %45 = arith.truncf %44 : vector<64x128xf32> to vector<64x128xbf16>
    %c0_16 = arith.constant 0 : index
    %c0_17 = arith.constant 0 : index
    %46 = vector.load %arg5[%c0_16, %c0_17] : memref<128x384xbf16, #tpu.memory_space<vmem>>, vector<128x384xbf16>
    %cst_18 = arith.constant dense<0.000000e+00> : vector<64x384xf32>
    %47 = tpu.matmul %45, %46, %cst_18 {dimension_numbers = #tpu.dot_dimension_numbers<[1], [0], [0], [1], [0, 0, 1, 1], [], []>} : vector<64x128xbf16>, vector<128x384xbf16>, vector<64x384xf32> -> vector<64x384xf32>
    %c0_19 = arith.constant 0 : index
    %c0_20 = arith.constant 0 : index
    %48 = vector.load %arg6[%c0_19, %c0_20] : memref<1x384xf32, #tpu.memory_space<vmem>>, vector<1x384xf32>
    %49 = vector.broadcast %48 : vector<1x384xf32> to vector<64x384xf32>
    %50 = arith.addf %47, %49 : vector<64x384xf32>
    %51 = vector.extract_strided_slice %50 {offsets = [0, 0], sizes = [64, 128], strides = [1, 1]} : vector<64x384xf32> to vector<64x128xf32>
    %52 = vector.extract_strided_slice %51 {offsets = [0, 0], sizes = [64, 32], strides = [1, 1]} : vector<64x128xf32> to vector<64x32xf32>
    %53 = vector.extract_strided_slice %51 {offsets = [0, 32], sizes = [64, 32], strides = [1, 1]} : vector<64x128xf32> to vector<64x32xf32>
    %54 = vector.extract_strided_slice %51 {offsets = [0, 64], sizes = [64, 32], strides = [1, 1]} : vector<64x128xf32> to vector<64x32xf32>
    %55 = vector.extract_strided_slice %51 {offsets = [0, 96], sizes = [64, 32], strides = [1, 1]} : vector<64x128xf32> to vector<64x32xf32>
    %56 = vector.shape_cast %52 : vector<64x32xf32> to vector<1x64x32xf32>
    %57 = vector.shape_cast %53 : vector<64x32xf32> to vector<1x64x32xf32>
    %58 = vector.shape_cast %54 : vector<64x32xf32> to vector<1x64x32xf32>
    %59 = vector.shape_cast %55 : vector<64x32xf32> to vector<1x64x32xf32>
    %60 = tpu.concatenate %56, %57, %58, %59 in 0 : vector<1x64x32xf32>, vector<1x64x32xf32>, vector<1x64x32xf32>, vector<1x64x32xf32> -> vector<4x64x32xf32>
    %cst_21 = arith.constant 0.176776692 : f32
    %61 = vector.broadcast %cst_21 : f32 to vector<4x64x32xf32>
    %62 = arith.mulf %60, %61 : vector<4x64x32xf32>
    %63 = arith.truncf %62 : vector<4x64x32xf32> to vector<4x64x32xbf16>
    %64 = vector.extract_strided_slice %50 {offsets = [0, 128], sizes = [64, 128], strides = [1, 1]} : vector<64x384xf32> to vector<64x128xf32>
    %65 = vector.extract_strided_slice %64 {offsets = [0, 0], sizes = [64, 32], strides = [1, 1]} : vector<64x128xf32> to vector<64x32xf32>
    %66 = vector.extract_strided_slice %64 {offsets = [0, 32], sizes = [64, 32], strides = [1, 1]} : vector<64x128xf32> to vector<64x32xf32>
    %67 = vector.extract_strided_slice %64 {offsets = [0, 64], sizes = [64, 32], strides = [1, 1]} : vector<64x128xf32> to vector<64x32xf32>
    %68 = vector.extract_strided_slice %64 {offsets = [0, 96], sizes = [64, 32], strides = [1, 1]} : vector<64x128xf32> to vector<64x32xf32>
    %69 = vector.shape_cast %65 : vector<64x32xf32> to vector<1x64x32xf32>
    %70 = vector.shape_cast %66 : vector<64x32xf32> to vector<1x64x32xf32>
    %71 = vector.shape_cast %67 : vector<64x32xf32> to vector<1x64x32xf32>
    %72 = vector.shape_cast %68 : vector<64x32xf32> to vector<1x64x32xf32>
    %73 = tpu.concatenate %69, %70, %71, %72 in 0 : vector<1x64x32xf32>, vector<1x64x32xf32>, vector<1x64x32xf32>, vector<1x64x32xf32> -> vector<4x64x32xf32>
    %74 = arith.truncf %73 : vector<4x64x32xf32> to vector<4x64x32xbf16>
    %75 = vector.extract_strided_slice %50 {offsets = [0, 256], sizes = [64, 128], strides = [1, 1]} : vector<64x384xf32> to vector<64x128xf32>
    %76 = vector.extract_strided_slice %75 {offsets = [0, 0], sizes = [64, 32], strides = [1, 1]} : vector<64x128xf32> to vector<64x32xf32>
    %77 = vector.extract_strided_slice %75 {offsets = [0, 32], sizes = [64, 32], strides = [1, 1]} : vector<64x128xf32> to vector<64x32xf32>
    %78 = vector.extract_strided_slice %75 {offsets = [0, 64], sizes = [64, 32], strides = [1, 1]} : vector<64x128xf32> to vector<64x32xf32>
    %79 = vector.extract_strided_slice %75 {offsets = [0, 96], sizes = [64, 32], strides = [1, 1]} : vector<64x128xf32> to vector<64x32xf32>
    %80 = vector.shape_cast %76 : vector<64x32xf32> to vector<1x64x32xf32>
    %81 = vector.shape_cast %77 : vector<64x32xf32> to vector<1x64x32xf32>
    %82 = vector.shape_cast %78 : vector<64x32xf32> to vector<1x64x32xf32>
    %83 = vector.shape_cast %79 : vector<64x32xf32> to vector<1x64x32xf32>
    %84 = tpu.concatenate %80, %81, %82, %83 in 0 : vector<1x64x32xf32>, vector<1x64x32xf32>, vector<1x64x32xf32>, vector<1x64x32xf32> -> vector<4x64x32xf32>
    %85 = arith.truncf %84 : vector<4x64x32xf32> to vector<4x64x32xbf16>
    "tpu.trace_start"() <{level = 10 : i32, message = "hqd,hkd->hqk"}> : () -> ()
    %cst_22 = arith.constant dense<0.000000e+00> : vector<4x64x64xf32>
    %86 = tpu.matmul %63, %74, %cst_22 {dimension_numbers = #tpu.dot_dimension_numbers<[2], [2], [1], [1], [0, 0, 0, 1, 1, 1], [0], [0]>} : vector<4x64x32xbf16>, vector<4x64x32xbf16>, vector<4x64x64xf32> -> vector<4x64x64xf32>
    "tpu.trace_stop"() : () -> ()
    %cst_23 = arith.constant dense<0xFF800000> : vector<4x64xf32>
    %87 = vector.multi_reduction <maximumf>, %86, %cst_23 [2] : vector<4x64x64xf32> to vector<4x64xf32>
    %88 = vector.shape_cast %87 : vector<4x64xf32> to vector<4x64x1xf32>
    %89 = vector.broadcast %88 : vector<4x64x1xf32> to vector<4x64x64xf32>
    %90 = arith.subf %86, %89 : vector<4x64x64xf32>
    %91 = math.exp %90 : vector<4x64x64xf32>
    %cst_24 = arith.constant dense<0.000000e+00> : vector<4x64xf32>
    %92 = vector.multi_reduction <add>, %91, %cst_24 [2] : vector<4x64x64xf32> to vector<4x64xf32>
    %93 = vector.shape_cast %92 : vector<4x64xf32> to vector<4x64x1xf32>
    %94 = tpu.reciprocal %93 {approx = true} : vector<4x64x1xf32> -> vector<4x64x1xf32>
    %95 = arith.truncf %91 : vector<4x64x64xf32> to vector<4x64x64xbf16>
    "tpu.trace_start"() <{level = 10 : i32, message = "hqk,hkd->hqd"}> : () -> ()
    %cst_25 = arith.constant dense<0.000000e+00> : vector<4x64x32xf32>
    %96 = tpu.matmul %95, %85, %cst_25 {dimension_numbers = #tpu.dot_dimension_numbers<[2], [1], [1], [2], [0, 0, 0, 1, 1, 2], [0], [0]>} : vector<4x64x64xbf16>, vector<4x64x32xbf16>, vector<4x64x32xf32> -> vector<4x64x32xf32>
    "tpu.trace_stop"() : () -> ()
    %97 = vector.extract_strided_slice %96 {offsets = [0, 0, 0], sizes = [1, 64, 32], strides = [1, 1, 1]} : vector<4x64x32xf32> to vector<1x64x32xf32>
    %98 = vector.shape_cast %97 : vector<1x64x32xf32> to vector<64x32xf32>
    %99 = vector.extract_strided_slice %94 {offsets = [0, 0, 0], sizes = [1, 64, 1], strides = [1, 1, 1]} : vector<4x64x1xf32> to vector<1x64x1xf32>
    %100 = vector.shape_cast %99 : vector<1x64x1xf32> to vector<64x1xf32>
    %101 = vector.broadcast %100 : vector<64x1xf32> to vector<64x32xf32>
    %102 = arith.mulf %98, %101 : vector<64x32xf32>
    %103 = arith.truncf %102 : vector<64x32xf32> to vector<64x32xbf16>
    %c0_26 = arith.constant 0 : index
    %c0_27 = arith.constant 0 : index
    %104 = vector.load %arg14[%c0_26, %c0_27] : memref<64x128xbf16, #tpu.memory_space<vmem>>, vector<64x32xbf16>
    tpu.vector_store %arg14[%c0_26, %c0_27], %103 {strides = array<i32>} : memref<64x128xbf16, #tpu.memory_space<vmem>>, vector<64x32xbf16>,
    %105 = vector.extract_strided_slice %96 {offsets = [1, 0, 0], sizes = [1, 64, 32], strides = [1, 1, 1]} : vector<4x64x32xf32> to vector<1x64x32xf32>
    %106 = vector.shape_cast %105 : vector<1x64x32xf32> to vector<64x32xf32>
    %107 = vector.extract_strided_slice %94 {offsets = [1, 0, 0], sizes = [1, 64, 1], strides = [1, 1, 1]} : vector<4x64x1xf32> to vector<1x64x1xf32>
    %108 = vector.shape_cast %107 : vector<1x64x1xf32> to vector<64x1xf32>
    %109 = vector.broadcast %108 : vector<64x1xf32> to vector<64x32xf32>
    %110 = arith.mulf %106, %109 : vector<64x32xf32>
    %111 = arith.truncf %110 : vector<64x32xf32> to vector<64x32xbf16>
    %c0_28 = arith.constant 0 : index
    %c32 = arith.constant 32 : index
    %112 = vector.load %arg14[%c0_28, %c32] : memref<64x128xbf16, #tpu.memory_space<vmem>>, vector<64x32xbf16>
    tpu.vector_store %arg14[%c0_28, %c32], %111 {strides = array<i32>} : memref<64x128xbf16, #tpu.memory_space<vmem>>, vector<64x32xbf16>,
    %113 = vector.extract_strided_slice %96 {offsets = [2, 0, 0], sizes = [1, 64, 32], strides = [1, 1, 1]} : vector<4x64x32xf32> to vector<1x64x32xf32>
    %114 = vector.shape_cast %113 : vector<1x64x32xf32> to vector<64x32xf32>
    %115 = vector.extract_strided_slice %94 {offsets = [2, 0, 0], sizes = [1, 64, 1], strides = [1, 1, 1]} : vector<4x64x1xf32> to vector<1x64x1xf32>
    %116 = vector.shape_cast %115 : vector<1x64x1xf32> to vector<64x1xf32>
    %117 = vector.broadcast %116 : vector<64x1xf32> to vector<64x32xf32>
    %118 = arith.mulf %114, %117 : vector<64x32xf32>
    %119 = arith.truncf %118 : vector<64x32xf32> to vector<64x32xbf16>
    %c0_29 = arith.constant 0 : index
    %c64 = arith.constant 64 : index
    %120 = vector.load %arg14[%c0_29, %c64] : memref<64x128xbf16, #tpu.memory_space<vmem>>, vector<64x32xbf16>
    tpu.vector_store %arg14[%c0_29, %c64], %119 {strides = array<i32>} : memref<64x128xbf16, #tpu.memory_space<vmem>>, vector<64x32xbf16>,
    %121 = vector.extract_strided_slice %96 {offsets = [3, 0, 0], sizes = [1, 64, 32], strides = [1, 1, 1]} : vector<4x64x32xf32> to vector<1x64x32xf32>
    %122 = vector.shape_cast %121 : vector<1x64x32xf32> to vector<64x32xf32>
    %123 = vector.extract_strided_slice %94 {offsets = [3, 0, 0], sizes = [1, 64, 1], strides = [1, 1, 1]} : vector<4x64x1xf32> to vector<1x64x1xf32>
    %124 = vector.shape_cast %123 : vector<1x64x1xf32> to vector<64x1xf32>
    %125 = vector.broadcast %124 : vector<64x1xf32> to vector<64x32xf32>
    %126 = arith.mulf %122, %125 : vector<64x32xf32>
    %127 = arith.truncf %126 : vector<64x32xf32> to vector<64x32xbf16>
    %c0_30 = arith.constant 0 : index
    %c96 = arith.constant 96 : index
    %128 = vector.load %arg14[%c0_30, %c96] : memref<64x128xbf16, #tpu.memory_space<vmem>>, vector<64x32xbf16>
    tpu.vector_store %arg14[%c0_30, %c96], %127 {strides = array<i32>} : memref<64x128xbf16, #tpu.memory_space<vmem>>, vector<64x32xbf16>,
    %c0_31 = arith.constant 0 : index
    %c0_32 = arith.constant 0 : index
    %129 = vector.load %arg14[%c0_31, %c0_32] : memref<64x128xbf16, #tpu.memory_space<vmem>>, vector<64x128xbf16>
    %c0_33 = arith.constant 0 : index
    %c0_34 = arith.constant 0 : index
    %130 = vector.load %arg7[%c0_33, %c0_34] : memref<128x128xbf16, #tpu.memory_space<vmem>>, vector<128x128xbf16>
    %cst_35 = arith.constant dense<0.000000e+00> : vector<64x128xf32>
    %131 = tpu.matmul %129, %130, %cst_35 {dimension_numbers = #tpu.dot_dimension_numbers<[1], [0], [0], [1], [0, 0, 1, 1], [], []>} : vector<64x128xbf16>, vector<128x128xbf16>, vector<64x128xf32> -> vector<64x128xf32>
    %c0_36 = arith.constant 0 : index
    %c0_37 = arith.constant 0 : index
    %132 = vector.load %arg8[%c0_36, %c0_37] : memref<1x128xf32, #tpu.memory_space<vmem>>, vector<1x128xf32>
    %133 = vector.broadcast %132 : vector<1x128xf32> to vector<64x128xf32>
    %134 = arith.addf %131, %133 : vector<64x128xf32>
    %135 = vector.broadcast %17 : vector<1x128xf32> to vector<64x128xf32>
    %136 = arith.mulf %135, %134 : vector<64x128xf32>
    %137 = arith.addf %1, %136 : vector<64x128xf32>
    %cst_38 = arith.constant dense<0.000000e+00> : vector<64xf32>
    %138 = vector.multi_reduction <add>, %137, %cst_38 [1] : vector<64x128xf32> to vector<64xf32>
    %139 = vector.shape_cast %138 : vector<64xf32> to vector<64x1xf32>
    %cst_39 = arith.constant 1.280000e+02 : f32
    %140 = vector.broadcast %cst_39 : f32 to vector<64x1xf32>
    %141 = arith.divf %139, %140 : vector<64x1xf32>
    %142 = vector.broadcast %141 : vector<64x1xf32> to vector<64x128xf32>
    %143 = arith.subf %137, %142 : vector<64x128xf32>
    %144 = arith.mulf %143, %143 : vector<64x128xf32>
    %cst_40 = arith.constant dense<0.000000e+00> : vector<64xf32>
    %145 = vector.multi_reduction <add>, %144, %cst_40 [1] : vector<64x128xf32> to vector<64xf32>
    %146 = vector.shape_cast %145 : vector<64xf32> to vector<64x1xf32>
    %cst_41 = arith.constant 1.280000e+02 : f32
    %147 = vector.broadcast %cst_41 : f32 to vector<64x1xf32>
    %148 = arith.divf %146, %147 : vector<64x1xf32>
    %149 = vector.broadcast %141 : vector<64x1xf32> to vector<64x128xf32>
    %150 = arith.subf %137, %149 : vector<64x128xf32>
    %cst_42 = arith.constant 9.99999997E-7 : f32
    %151 = vector.broadcast %cst_42 : f32 to vector<64x1xf32>
    %152 = arith.addf %148, %151 : vector<64x1xf32>
    %153 = math.rsqrt %152 : vector<64x1xf32>
    %154 = vector.broadcast %153 : vector<64x1xf32> to vector<64x128xf32>
    %155 = arith.mulf %150, %154 : vector<64x128xf32>
    %cst_43 = arith.constant 1.000000e+00 : f32
    %156 = vector.broadcast %cst_43 : f32 to vector<1x128xf32>
    %157 = arith.addf %156, %19 : vector<1x128xf32>
    %158 = vector.broadcast %157 : vector<1x128xf32> to vector<64x128xf32>
    %159 = arith.mulf %155, %158 : vector<64x128xf32>
    %160 = vector.broadcast %18 : vector<1x128xf32> to vector<64x128xf32>
    %161 = arith.addf %159, %160 : vector<64x128xf32>
    %162 = arith.truncf %161 : vector<64x128xf32> to vector<64x128xbf16>
    %c0_44 = arith.constant 0 : index
    %c0_45 = arith.constant 0 : index
    %163 = vector.load %arg9[%c0_44, %c0_45] : memref<128x512xbf16, #tpu.memory_space<vmem>>, vector<128x512xbf16>
    %cst_46 = arith.constant dense<0.000000e+00> : vector<64x512xf32>
    %164 = tpu.matmul %162, %163, %cst_46 {dimension_numbers = #tpu.dot_dimension_numbers<[1], [0], [0], [1], [0, 0, 1, 1], [], []>} : vector<64x128xbf16>, vector<128x512xbf16>, vector<64x512xf32> -> vector<64x512xf32>
    %c0_47 = arith.constant 0 : index
    %c0_48 = arith.constant 0 : index
    %165 = vector.load %arg10[%c0_47, %c0_48] : memref<1x512xf32, #tpu.memory_space<vmem>>, vector<1x512xf32>
    %166 = vector.broadcast %165 : vector<1x512xf32> to vector<64x512xf32>
    %167 = arith.addf %164, %166 : vector<64x512xf32>
    %168 = arith.negf %167 : vector<64x512xf32>
    %169 = math.exp %168 : vector<64x512xf32>
    %cst_49 = arith.constant 1.000000e+00 : f32
    %170 = vector.broadcast %cst_49 : f32 to vector<64x512xf32>
    %171 = arith.addf %170, %169 : vector<64x512xf32>
    %172 = arith.divf %170, %171 : vector<64x512xf32>
    %173 = arith.mulf %167, %172 : vector<64x512xf32>
    %174 = arith.truncf %173 : vector<64x512xf32> to vector<64x512xbf16>
    %c0_50 = arith.constant 0 : index
    %c0_51 = arith.constant 0 : index
    %175 = vector.load %arg11[%c0_50, %c0_51] : memref<512x128xbf16, #tpu.memory_space<vmem>>, vector<512x128xbf16>
    %cst_52 = arith.constant dense<0.000000e+00> : vector<64x128xf32>
    %176 = tpu.matmul %174, %175, %cst_52 {dimension_numbers = #tpu.dot_dimension_numbers<[1], [0], [0], [1], [0, 0, 1, 1], [], []>} : vector<64x512xbf16>, vector<512x128xbf16>, vector<64x128xf32> -> vector<64x128xf32>
    %c0_53 = arith.constant 0 : index
    %c0_54 = arith.constant 0 : index
    %177 = vector.load %arg12[%c0_53, %c0_54] : memref<1x128xf32, #tpu.memory_space<vmem>>, vector<1x128xf32>
    %178 = vector.broadcast %177 : vector<1x128xf32> to vector<64x128xf32>
    %179 = arith.addf %176, %178 : vector<64x128xf32>
    %180 = vector.broadcast %20 : vector<1x128xf32> to vector<64x128xf32>
    %181 = arith.mulf %180, %179 : vector<64x128xf32>
    %182 = arith.addf %137, %181 : vector<64x128xf32>
    %c0_55 = arith.constant 0 : index
    %c0_56 = arith.constant 0 : index
    %c0_57 = arith.constant 0 : index
    %183 = vector.load %arg13[%c0_55, %c0_56, %c0_57] : memref<1x64x128xf32, #tpu.memory_space<vmem>>, vector<1x64x128xf32>
    %184 = vector.shape_cast %183 : vector<1x64x128xf32> to vector<64x128xf32>
    %185 = vector.shape_cast %182 : vector<64x128xf32> to vector<1x64x128xf32>
    tpu.vector_store %arg13[%c0_55, %c0_56, %c0_57], %185 {strides = array<i32>} : memref<1x64x128xf32, #tpu.memory_space<vmem>>, vector<1x64x128xf32>,
    return
  }
  func.func @transform_0(%arg0: i32) -> (i32, i32, i32) {
    %c0_i32 = arith.constant 0 : i32
    %c0_i32_0 = arith.constant 0 : i32
    %c0_i32_1 = arith.constant 0 : i32
    return %arg0, %c0_i32, %c0_i32_0 : i32, i32, i32
  }
  func.func @transform_1(%arg0: i32) -> (i32, i32, i32) {
    %c0_i32 = arith.constant 0 : i32
    %c0_i32_0 = arith.constant 0 : i32
    %c0_i32_1 = arith.constant 0 : i32
    return %arg0, %c0_i32, %c0_i32_0 : i32, i32, i32
  }
  func.func @transform_2(%arg0: i32) -> (i32, i32) {
    %c0_i32 = arith.constant 0 : i32
    %c0_i32_0 = arith.constant 0 : i32
    %c0_i32_1 = arith.constant 0 : i32
    return %c0_i32, %c0_i32_0 : i32, i32
  }
  func.func @transform_3(%arg0: i32) -> (i32, i32) {
    %c0_i32 = arith.constant 0 : i32
    %c0_i32_0 = arith.constant 0 : i32
    %c0_i32_1 = arith.constant 0 : i32
    return %c0_i32, %c0_i32_0 : i32, i32
  }
  func.func @transform_4(%arg0: i32) -> (i32, i32) {
    %c0_i32 = arith.constant 0 : i32
    %c0_i32_0 = arith.constant 0 : i32
    %c0_i32_1 = arith.constant 0 : i32
    return %c0_i32, %c0_i32_0 : i32, i32
  }
  func.func @transform_5(%arg0: i32) -> (i32, i32) {
    %c0_i32 = arith.constant 0 : i32
    %c0_i32_0 = arith.constant 0 : i32
    %c0_i32_1 = arith.constant 0 : i32
    return %c0_i32, %c0_i32_0 : i32, i32
  }
  func.func @transform_6(%arg0: i32) -> (i32, i32) {
    %c0_i32 = arith.constant 0 : i32
    %c0_i32_0 = arith.constant 0 : i32
    %c0_i32_1 = arith.constant 0 : i32
    return %c0_i32, %c0_i32_0 : i32, i32
  }
  func.func @transform_7(%arg0: i32) -> (i32, i32) {
    %c0_i32 = arith.constant 0 : i32
    %c0_i32_0 = arith.constant 0 : i32
    %c0_i32_1 = arith.constant 0 : i32
    return %c0_i32, %c0_i32_0 : i32, i32
  }
  func.func @transform_8(%arg0: i32) -> (i32, i32) {
    %c0_i32 = arith.constant 0 : i32
    %c0_i32_0 = arith.constant 0 : i32
    %c0_i32_1 = arith.constant 0 : i32
    return %c0_i32, %c0_i32_0 : i32, i32
  }
  func.func @transform_9(%arg0: i32) -> (i32, i32) {
    %c0_i32 = arith.constant 0 : i32
    %c0_i32_0 = arith.constant 0 : i32
    %c0_i32_1 = arith.constant 0 : i32
    return %c0_i32, %c0_i32_0 : i32, i32
  }
  func.func @transform_10(%arg0: i32) -> (i32, i32) {
    %c0_i32 = arith.constant 0 : i32
    %c0_i32_0 = arith.constant 0 : i32
    %c0_i32_1 = arith.constant 0 : i32
    return %c0_i32, %c0_i32_0 : i32, i32
  }
  func.func @transform_11(%arg0: i32) -> (i32, i32) {
    %c0_i32 = arith.constant 0 : i32
    %c0_i32_0 = arith.constant 0 : i32
    %c0_i32_1 = arith.constant 0 : i32
    return %c0_i32, %c0_i32_0 : i32, i32
  }
  func.func @transform_12(%arg0: i32) -> (i32, i32, i32) {
    %c0_i32 = arith.constant 0 : i32
    %c0_i32_0 = arith.constant 0 : i32
    %c0_i32_1 = arith.constant 0 : i32
    return %arg0, %c0_i32, %c0_i32_0 : i32, i32, i32
  }
}

</mosaic_0001>

<bundles_post_ra>
// kernel: tpu_custom_call.1
= control target key start
LH: loop header
LB: loop body
LE: loop exit
PB: predicated region body
PF: predicated region fallthrough
CT: control target
= control target key end

     0   :  { %s8965_s0 = inlined_call_operand.hbm [shape: f32[2,64,128], index: 0, kind: input, shape index: {}, may-alias: {0,12}]   ;;  %s8966_s1 = inlined_call_operand.hbm [shape: f32[2,1,128], index: 1, kind: input, shape index: {}]   ;;  %s8967_s2 = inlined_call_operand.hbm [shape: bf16[128,768], index: 2, kind: input, shape index: {}]   ;;  %s8968_s3 = inlined_call_operand.vmem [shape: f32[1,768], index: 3, kind: input, shape index: {}]   ;;  %s8969_s4 = inlined_call_operand.hbm [shape: bf16[128,384], index: 4, kind: input, shape index: {}]   ;;  %s8970_s5 = inlined_call_operand.hbm [shape: f32[1,384], index: 5, kind: input, shape index: {}]   ;;  %s8971_s6 = inlined_call_operand.hbm [shape: bf16[128,128], index: 6, kind: input, shape index: {}]   ;;  %s8972_s7 = inlined_call_operand.vmem [shape: f32[1,128], index: 7, kind: input, shape index: {}]   ;;  %s8973_s8 = inlined_call_operand.vmem [shape: bf16[128,512], index: 8, kind: input, shape index: {}]   ;;  %s8974_s9 = inlined_call_operand.hbm [shape: f32[1,512], index: 9, kind: input, shape index: {}]   ;;  %s8975_s10 = inlined_call_operand.hbm [shape: bf16[512,128], index: 10, kind: input, shape index: {}]   ;;  %s8976_s11 = inlined_call_operand.vmem [shape: f32[1,128], index: 11, kind: input, shape index: {}]   ;;  %s8977_s12 = inlined_call_operand.hbm [shape: f32[2,64,128], index: 12, kind: output, shape index: {}, may-alias: {0,12}]  }
   0x1   :  { %8981 = sst [smem:[#allocation27_spill]] %s8967_s2 }
   0x2   :  { %8982 = sst [smem:[#allocation28_spill]] %s8969_s4 }
   0x3   :  { %8983 = sst [smem:[#allocation29_spill]] %s8970_s5 }
   0x4   :  { %8984 = sst [smem:[#allocation30_spill]] %s8971_s6 }
   0x5   :  { %8985 = sst [smem:[#allocation31_spill]] %s8973_s8 }
   0x6   :  { %8986 = sst [smem:[#allocation32_spill]] %s8974_s9 }
   0x7   :  { %8987 = sst [smem:[#allocation33_spill]] %s8975_s10 }
   0x8   :  { %8988 = sst [smem:[#allocation34_spill]] %s8976_s11 }
   0x9   :  { %8989 = sst [smem:[#allocation35_spill]] %s8977_s12 }
   0xa   :  { %17 = vsyncpa [#allocation4], 0 }
   0xb   :  { %19 = vsyncpa [#allocation4 + $0x1], 0 }
   0xc   :  { %20 = vsyncpa [#allocation7], 0 }
   0xd   :  { %22 = vsyncpa [#allocation7 + $0x1], 0 }
   0xe   :  { %23 = vsyncpa [#allocation10], 0 }
   0xf   :  { %24 = vsyncpa [#allocation13], 0 }
  0x10   :  { %25 = vsyncpa [#allocation16], 0 }
  0x11   :  { %26 = vsyncpa [#allocation5], 0 }
  0x12   :  { %28 = vsyncpa [#allocation5 + $0x1], 0  ;;  %s6725_s21 = smov 0   ;;  %s6727_s22 = smov 0  }
  0x13   :  { %s6729_s23 = smov 0   ;;  %s6731_s24 = smov 0  }
  0x14 LB: > { %8990 = sst [smem:[#allocation25_spill]] %s6634_s23  ;;  %s6749_s28 = sadd.s32 4294967295, %s6638_s24   ;;  %s6638_s24 = sphi %s6731_s24, %s9079_s24   ;;  %s6634_s23 = sphi %s6729_s23, %s9076_s23   ;;  %s6630_s22 = sphi %s6727_s22, %s9078_s22   ;;  %s6626_s21 = sphi %s6725_s21, %s9077_s21  }
  0x15   : > { %s8991_s2 = sld [smem:[#allocation27_spill]]  ;;  %p4920_p0 = scmp.ge.s32.totalorder %s6638_s24, 1 }
  0x16   : > { %p55_p1 = scmp.eq.s32.totalorder %s6749_s28, 0  ;;  %p327_p2 = scmp.lt.s32.totalorder %s6638_s24, 3 }
  0x17   : > { %s6640_s30 = smov [#allocation8]   ;;  %s8993_s4 = sld [smem:[#allocation28_spill]] }
  0x18   : > { %p6754_p3 = pnand %p4920_p0, %p327_p2  ;;  %s340_s13 = sshll.u32 %s6640_s30, 4  ;;  %s341_s13 = int_to_ptr.vmem [resolvable:$true] %s340_s13 }
  0x19   : > { %s6641_s18 = smov [#allocation9]   ;;  %s6642_s20 = smov 384  }
  0x1a   : > { %p5790_p4 = pneg %p6754_p3  ;;  %s357_s19 = sshll.u32 %s6641_s18, 4  ;;  %s358_s19 = int_to_ptr.vmem [resolvable:$true] %s357_s19 }
  0x1b   : > { %s338_s27 = sshll.u32 %s8991_s2, 4  ;;  %s6643_s25 = smov 24   ;;  %s339_s27 = int_to_ptr.hbm [resolvable:$true] %s338_s27 }
  0x1c   : > { %p6766_p6 = pnand %p5790_p4, %p55_p1  ;;  %s6644_s26 = smov 192  }
  0x1d   : > { %s355_s16 = sshll.u32 %s8993_s4, 4  ;;  %s6645_s30 = smov 12   ;;  %s356_s16 = int_to_ptr.hbm [resolvable:$true] %s355_s16 }
  0x1e   : > { %5793 = dma.hbm_to_vmem [thread:$0]  (!%p6766_p6), %s339_s27, 6144, %s341_s13, [#allocation7], %s6642_s20, %s6642_s20, %s6643_s25  }
  0x1f   : > { %5796 = dma.hbm_to_vmem [thread:$0]  (!%p6766_p6), %s356_s16, 3072, %s358_s19, [#allocation10], %s6644_s26, %s6644_s26, %s6645_s30  }
  0x20   : > { %s8995_s6 = sld [smem:[#allocation30_spill]]  ;;  %s6646_s4 = smov [#allocation12]  }
  0x21   : > { %s383_s12 = sshll.u32 %s6646_s4, 4  ;;  %s8996_s5 = sld [smem:[#allocation29_spill]]  ;;  %s384_s12 = int_to_ptr.vmem [resolvable:$true] %s383_s12 }
  0x22   : > { %s6647_s27 = smov 64   ;;  %s6648_s13 = smov 4  }
  0x23   : > { %s6649_s16 = smov [#allocation11]   ;;  %s8997_s9 = sld [smem:[#allocation32_spill]] }
  0x24   : > { %s372_s19 = sshll.u32 %s6649_s16, 4  ;;  %s8998_s10 = sld [smem:[#allocation33_spill]]  ;;  %s373_s19 = int_to_ptr.vmem [resolvable:$true] %s372_s19 }
  0x25   : > { %s6651_s14 = smov [#allocation15]   ;;  %s4919_s15 = sadd.s32 4294967294, %s6638_s24  }
  0x26   : > { %s381_s2 = sshll.u32 %s8995_s6, 4  ;;  %s6796_s18 = sadd.s32 1, %s6638_s24   ;;  %s382_s2 = int_to_ptr.hbm [resolvable:$true] %s381_s2 }
  0x27   : > { %s370_s8 = sshll.u32 %s8996_s5, 4  ;;  %s38_s16 = ssub.s32 %s6638_s24, %s6796_s18  ;;  %s371_s8 = int_to_ptr.hbm [resolvable:$true] %s370_s8 }
  0x28   : > { %5802 = dma.hbm_to_vmem [thread:$0]  (!%p6766_p6), %s382_s2, 1024, %s384_s12, [#allocation13], %s6647_s27, %s6647_s27, %s6648_s13  }
  0x29   : > { %s402_s4 = sshll.u32 %s8997_s9, 4  ;;  %s6650_s12 = smov [#allocation14]   ;;  %s403_s4 = int_to_ptr.hbm [resolvable:$true] %s402_s4 }
  0x2a   : > { %5799 = dma.hbm_to_vmem [thread:$0]  (!%p6766_p6), %s371_s8, 48, %s373_s19, [#allocation10]  }
  0x2b   : > { %s413_s2 = sshll.u32 %s8998_s10, 4  ;;  %s404_s30 = sshll.u32 %s6650_s12, 4  ;;  %s414_s2 = int_to_ptr.hbm [resolvable:$true] %s413_s2  ;;  %s405_s30 = int_to_ptr.vmem [resolvable:$true] %s404_s30 }
  0x2c   : > { %5805 = dma.hbm_to_vmem [thread:$0]  (!%p6766_p6), %s403_s4, 64, %s405_s30, [#allocation13]  }
  0x2d   : > { %s415_s8 = sshll.u32 %s6651_s14, 4  ;;  %s41_s19 = sadd.s32 1, %s6634_s23  ;;  %s416_s8 = int_to_ptr.vmem [resolvable:$true] %s415_s8 }
  0x2e   : > { %5808 = dma.hbm_to_vmem [thread:$0]  (!%p6766_p6), %s414_s2, 4096, %s416_s8, [#allocation16], %s6647_s27, %s6647_s27, %s6648_s13  }
  0x2f   : > { %p39_p7 = scmp.eq.s32.totalorder %s38_s16, 0  ;;  %p48_p8 = scmp.ne.s32.totalorder %s6634_s23, %s6630_s22 }
  0x30   : > { %p49_p9 = scmp.eq.s32.totalorder %s6638_s24, 0  ;;  %p54_p10 = scmp.ne.s32.totalorder %s6630_s22, %s6626_s21 }
  0x31   : > { %s6807_s20 = scalar_select %p39_p7, %s6634_s23, %s41_s19  }
  0x32   : > { %p6809_p11 = por %p49_p9, %p48_p8  ;;  %p6815_p12 = por %p55_p1, %p54_p10 }
  0x33   : > { %8999 = sst [smem:[#allocation26_spill]] %s6807_s20  ;;  %p314_p13 = scmp.eq.s32.totalorder %s6749_s28, 1 }
  0x34   : > { %p320_p0 = scmp.eq.s32.totalorder %s4919_s15, 1  ;;  %p5826_p2 = scmp.lt.s32.totalorder %s6638_s24, 2 }
  0x35   : > { %s6822_s27 = sand.u32 1, %s6634_s23   ;;  %p6824_p4 = por %p314_p13, %p48_p8 }
  0x36   : > { %p6828_p6 = por %p320_p0, %p54_p10  ;;  %s4928_s11 = sshll.u32 %s6822_s27, 6 }
  0x37   : > { %s5602_s26 = sshll.u32 %s6638_s24, 6  ;;  %s436_s14 = scalar_lea.vmem [#allocation3], %s4928_s11 }
  0x38   : > { %s441_s30 = scalar_lea.hbm %s8965_s0, %s5602_s26  ;;  %s444_s8 = sshll.u32 %s436_s14, 4  ;;  %s445_s8 = int_to_ptr.vmem [resolvable:$true] %s444_s8 }
  0x39   : > { %s442_s15 = sshll.u32 %s441_s30, 4  ;;  %p6839_p7 = pnand %p5826_p2, %p6809_p11  ;;  %s443_s15 = int_to_ptr.hbm [resolvable:$true] %s442_s15 }
  0x3a   : > { %s454_s19 = sand.u32 1, %s6638_s24   ;;  %s433_s5 = scalar_lea.sflag [#allocation4], %s6822_s27 }
  0x3b   : > { %s6492_s6 = sshra.s32 %s443_s15, 4  ;;  %p6496_p9 = pneg %p6839_p7  ;;  %s6493_s6 = int_to_ptr.hbm [resolvable:$true] %s6492_s6 }
  0x3c   : > { %s6494_s9 = scalar_lea.hbm %s6493_s6, 64  ;;  %s6499_s26 = scalar_lea.hbm %s8965_s0, 128 }
  0x3d   : > { %p6495_p8 = scmp.ne.s32.totalorder %s6493_s6, %s6494_s9  ;;  %p6500_p11 = scmp.lt.s32.totalorder %s6493_s6, %s8965_s0 }
  0x3e   : > { %p6501_p0 = scmp.lt.s32.totalorder %s6499_s26, %s6494_s9 }
  0x3f   : > { %p6497_p10 = pnand %p6496_p9, %p6495_p8 }
  0x40   : > { %p6502_p2 = por %p6501_p0, %p6500_p11 }
  0x41   : > { %p6498_p13 = pneg %p6497_p10 }
  0x43   : > { %p6503_p5 = pnand %p6502_p2, %p6498_p13 }
  0x45   : > { %6506 = shalt.err (!%p6503_p5)
}
  0x46   : > { %s6652_s30 = smov 128   ;;  %s6653_s14 = smov 8  }
  0x47   : > { %5812 = dma.hbm_to_vmem [thread:$0]  (!%p6839_p7), %s443_s15, 1024, %s445_s8, %s433_s5, %s6652_s30, %s6652_s30, %s6653_s14  }
  0x48   : > { %s460_s11 = scalar_lea.hbm %s8966_s1, %s6638_s24  ;;  %s457_s25 = scalar_lea.vmem [#allocation6], %s6822_s27 }
  0x49   : > { %s464_s23 = sshll.u32 %s457_s25, 4  ;;  %s462_s2 = sshll.u32 %s460_s11, 4  ;;  %s465_s23 = int_to_ptr.vmem [resolvable:$true] %s464_s23  ;;  %s463_s2 = int_to_ptr.hbm [resolvable:$true] %s462_s2 }
  0x4a   : > { %s455_s6 = scalar_lea.sflag [#allocation7], %s454_s19  ;;  %s6522_s9 = sshra.s32 %s463_s2, 4  ;;  %s6523_s9 = int_to_ptr.hbm [resolvable:$true] %s6522_s9 }
  0x4b   : > { %s6524_s26 = scalar_lea.hbm %s6523_s9, 1  ;;  %s6529_s8 = scalar_lea.hbm %s8966_s1, 2 }
  0x4c   : > { %p6525_p5 = scmp.ne.s32.totalorder %s6523_s9, %s6524_s26  ;;  %p6530_p13 = scmp.lt.s32.totalorder %s6523_s9, %s8966_s1 }
  0x4d   : > { %p6531_p11 = scmp.lt.s32.totalorder %s6529_s8, %s6524_s26 }
  0x4e   : > { %p6527_p8 = pnand %p6525_p5, %p6496_p9 }
  0x4f   : > { %p6532_p0 = por %p6531_p11, %p6530_p13 }
  0x50   : > { %p6528_p10 = pneg %p6527_p8 }
  0x52   : > { %p6533_p2 = pnand %p6532_p0, %p6528_p10 }
  0x54   : > { %6536 = shalt.err (!%p6533_p2)
}
  0x55   : > { %5815 = dma.hbm_to_vmem [thread:$0]  (!%p6839_p7), %s463_s2, 16, %s465_s23, %s455_s6  }
  0x56   : > { %473 = sbr.rel (%p6754_p3) target bundleno = 2319 (0x90f), region = 68  ;;  %s6877_s27 = sand.u32 (!%p6754_p3), 1, %s6630_s22  }
  0x57   : > { %s4932_s15 = sshll.u32 (!%p6754_p3), %s6877_s27, 6  ;;  %s476_s19 = scalar_lea.sflag (!%p6754_p3), [#allocation4], %s6877_s27 }
  0x58   : > { %s6883_s30 = scalar_lea.vmem (!%p6754_p3), [#allocation3], %s4932_s15 }
  0x5b   : > { %6597 = dma.done.wait (%p6815_p12), %s476_s19, 1024  }
  0x5c   : > { %6599 = vsyncadd (%p6815_p12), %s476_s19, 4294966272  ;;  %s485_s23 = sand.u32 1, %s6749_s28   ;;  %s488_s16 = scalar_lea.vmem [#allocation6], %s6877_s27 }
  0x5d   : > { %s486_s29 = scalar_lea.sflag [#allocation7], %s485_s23 }
  0x5e   : > { %6601 = dma.done.wait (%p6815_p12), %s486_s29, 16  }
  0x5f   : > { %6603 = vsyncadd (%p6815_p12), %s486_s29, 4294967280 }
  0x60   : > { %6605 = dma.done.wait (%p55_p1), [#allocation7], 6144  }
  0x61   : > { %6607 = vsyncadd (%p55_p1), [#allocation7], 4294961152 }
  0x62   : > { %6609 = dma.done.wait (%p55_p1), [#allocation10], 3120  }
  0x63   : > { %6611 = vsyncadd (%p55_p1), [#allocation10], 4294964176 }
  0x64   : > { %6613 = dma.done.wait (%p55_p1), [#allocation13], 1088  }
  0x65   : > { %6615 = vsyncadd (%p55_p1), [#allocation13], 4294966208 }
  0x66   : > { %6617 = dma.done.wait (%p55_p1), [#allocation16], 4096  }
  0x67   : > { %6619 = vsyncadd (%p55_p1), [#allocation16], 4294963200  ;;  %v6912_v0 = vld [vmem:[%s6883_s30 + $0x20] sm:$0xff]  ;;  %v6915_v1 = vld [vmem:[%s6883_s30 + $0x10] sm:$0xff]  ;;  %v6654_v47 = vmov 128.0   ;;  %s6655_s11 = smov 96  }
  0x68   : > { %v6918_v2 = vld [vmem:[%s6883_s30] sm:$0xff]  ;;  %983 = vadd.xlane.f32.xlu2 %v6912_v0  ;;  %979 = vadd.xlane.f32.xlu1 %v6915_v1  ;;  %v5645_v3 = vld [vmem:[#allocation8 + $0x154] sm:$0xf]  ;;  %v5113_v4 = vld [vmem:[#allocation8 + $0x168] sm:$0xf0]  ;;  %s6656_s25 = smov 32  }
  0x69   : > { %975 = vadd.xlane.f32.xlu0 %v6918_v2  ;;  %v5116_v5 = vor.u32 %v5645_v3, %v5113_v4  ;;  %v5111_v6 = vld [vmem:[#allocation8 + $0x150] sm:$0xf]  ;;  %v5648_v7 = vld [vmem:[#allocation8 + $0x164] sm:$0xf0]  ;;  %v5639_v8 = vld [vmem:[#allocation8 + $0x124] sm:$0xf] }
  0x6a   : > { %v5112_v9 = vor.u32 %v5648_v7, %v5111_v6  ;;  %v5089_v10 = vld [vmem:[#allocation8 + $0x138] sm:$0xf0]  ;;  %v5087_v11 = vld [vmem:[#allocation8 + $0x120] sm:$0xf]  ;;  %v5642_v12 = vld [vmem:[#allocation8 + $0x134] sm:$0xf0] }
  0x6b   : > { %910 = vmatpush.bf16.msra.mxu1 %v5116_v5  ;;  %v6924_v13 = vld [vmem:[%s6883_s30 + $0x28] sm:$0xff]  ;;  %v6927_v14 = vld [vmem:[%s6883_s30 + $0x18] sm:$0xff]  ;;  %v5092_v15 = vor.u32 %v5639_v8, %v5089_v10  ;;  %v5088_v17 = vor.u32 %v5642_v12, %v5087_v11  ;;  %v5063_v20 = vld [vmem:[#allocation8 + $0xf0] sm:$0xf]  ;;  %s6657_s2 = smov 64   ;;  %s9007_s10 = sld [smem:[#allocation31_spill]] }
  0x6c   : > { %897 = vmatpush.bf16.msra.mxu0 %v5112_v9  ;;  %v6930_v16 = vld [vmem:[%s6883_s30 + $0x8] sm:$0xff]  ;;  %v5633_v18 = vld [vmem:[#allocation8 + $0xf4] sm:$0xf]  ;;  %v5041_v25 = vld [vmem:[#allocation8 + $0xd8] sm:$0xf0]  ;;  %s8901_s9 = scalar_lea.vmem [#allocation17], %s4932_s15 }
  0x6d   : > { %v5065_v19 = vld [vmem:[#allocation8 + $0x108] sm:$0xf0]  ;;  %v5636_v21 = vld [vmem:[#allocation8 + $0x104] sm:$0xf0]  ;;  %v5627_v24 = vld [vmem:[#allocation8 + $0xc4] sm:$0xf] }
  0x6e   : > { %v5068_v22 = vor.u32 %v5633_v18, %v5065_v19  ;;  %v5064_v23 = vor.u32 %v5636_v21, %v5063_v20  ;;  %v5039_v26 = vld [vmem:[#allocation8 + $0xc0] sm:$0xf]  ;;  %v5630_v27 = vld [vmem:[#allocation8 + $0xd4] sm:$0xf0]  ;;  %v6936_v28 = vld [vmem:[%s6883_s30 + $0x30] sm:$0xff]  ;;  %v5044_v29 = vor.u32 %v5627_v24, %v5041_v25  ;;  %s5751_s15 = sshll.u32 %s6749_s28, 6 }
  0x6f   : > { %911 = vmatpush.bf16.msra.mxu1 %v5092_v15  ;;  %v5040_v30 = vor.u32 %v5630_v27, %v5039_v26  ;;  %v5621_v31 = vld [vmem:[#allocation8 + $0x94] sm:$0xf]  ;;  %v5017_v32 = vld [vmem:[#allocation8 + $0xa8] sm:$0xf0]  ;;  %v573_v34 = vld [vmem:[%s488_s16] sm:$0x1] }
  0x70   : > { %985 = vadd.xlane.f32.xlu2 %v6924_v13  ;;  %981 = vadd.xlane.f32.xlu1 %v6927_v14  ;;  %v5020_v33 = vor.u32 %v5621_v31, %v5017_v32  ;;  %v4940_v35 = vmul.f32 -1.442695, %v573_v34  ;;  %v5015_v39 = vld [vmem:[#allocation8 + $0x90] sm:$0xf]  ;;  %v5624_v40 = vld [vmem:[#allocation8 + $0xa4] sm:$0xf0] }
  0x71   : > { %977 = vadd.xlane.f32.xlu0 %v6930_v16  ;;  %898 = vmatpush.bf16.msra.mxu0 %v5088_v17  ;;  %v5615_v41 = vld [vmem:[#allocation8 + $0x64] sm:$0xf]  ;;  %v5016_v43 = vor.u32 %v5624_v40, %v5015_v39  ;;  %v4993_v44 = vld [vmem:[#allocation8 + $0x78] sm:$0xf0]  ;;  %v4991_v48 = vld [vmem:[#allocation8 + $0x60] sm:$0xf] }
  0x72   : > { %6008 = vpow2.f32 %v4940_v35  ;;  %v4996_v45 = vor.u32 %v5615_v41, %v4993_v44  ;;  %v5618_v49 = vld [vmem:[#allocation8 + $0x74] sm:$0xf0]  ;;  %v5609_v50 = vld [vmem:[#allocation8 + $0x34] sm:$0xf]  ;;  %v4969_v53 = vld [vmem:[#allocation8 + $0x48] sm:$0xf0] }
  0x73   : > { %912 = vmatpush.bf16.msra.mxu1 %v5068_v22  ;;  %v4992_v52 = vor.u32 %v5618_v49, %v4991_v48  ;;  %v4972_v55 = vor.u32 %v5609_v50, %v4969_v53  ;;  %v4967_v59 = vld [vmem:[#allocation8 + $0x30] sm:$0xf]  ;;  %v5612_v60 = vld [vmem:[#allocation8 + $0x44] sm:$0xf0]  ;;  %v5603_v61 = vld [vmem:[#allocation8 + $0x4] sm:$0xf] }
  0x74   : > { %v4968_v63 = vor.u32 %v5612_v60, %v4967_v59  ;;  %v4945_v3 = vld [vmem:[#allocation8 + $0x18] sm:$0xf0]  ;;  %v4943_v8 = vld [vmem:[#allocation8] sm:$0xf]  ;;  %v5606_v9 = vld [vmem:[#allocation8 + $0x14] sm:$0xf0] }
  0x75   : > { %899 = vmatpush.bf16.msra.mxu0 %v5064_v23  ;;  %v4948_v5 = vor.u32 %v5603_v61, %v4945_v3  ;;  %v4944_v12 = vor.u32 %v5606_v9, %v4943_v8  ;;  %v5119_v22 = vld [vmem:[#allocation8 + $0x158] sm:$0xf]  ;;  %v5649_v23 = vld [vmem:[#allocation8 + $0x16c] sm:$0xf0]  ;;  %v5646_v24 = vld [vmem:[#allocation8 + $0x15c] sm:$0xf] }
  0x76   : > { %v5120_v26 = vor.u32 %v5649_v23, %v5119_v22  ;;  %v5121_v27 = vld [vmem:[#allocation8 + $0x170] sm:$0xf0]  ;;  %v5643_v35 = vld [vmem:[#allocation8 + $0x13c] sm:$0xf0]  ;;  %v5103_v39 = vld [vmem:[#allocation8 + $0x130] sm:$0xf] }
  0x77   : > { %913 = vmatpush.bf16.msra.mxu1 %v5044_v29  ;;  %v5127_v29 = vld [vmem:[#allocation8 + $0x160] sm:$0xf]  ;;  %v5124_v32 = vor.u32 %v5646_v24, %v5121_v27  ;;  %v5644_v40 = vld [vmem:[#allocation8 + $0x144] sm:$0xf0]  ;;  %v5637_v44 = vld [vmem:[#allocation8 + $0x10c] sm:$0xf0] }
  0x78   : > { %987 = vadd.xlane.f32.xlu2 %v6936_v28  ;;  %v6009_v36 = vpop.eup %6008  ;;  %923 = vmatpush.bf16.msra.mxu2 %v5120_v26  ;;  %v5079_v49 = vld [vmem:[#allocation8 + $0x100] sm:$0xf]  ;;  %v5638_v50 = vld [vmem:[#allocation8 + $0x114] sm:$0xf0]  ;;  %v5628_v59 = vld [vmem:[#allocation8 + $0xcc] sm:$0xf] }
  0x79   : > { %900 = vmatpush.bf16.msra.mxu0 %v5040_v30  ;;  %v577_v37 = vadd.f32 1.0, %v6009_v36  ;;  %v5650_v30 = vld [vmem:[#allocation8 + $0x174] sm:$0xf0]  ;;  %v5640_v36 = vld [vmem:[#allocation8 + $0x12c] sm:$0xf]  ;;  %936 = vmatpush.bf16.msra.mxu3 %v5124_v32  ;;  %s9073_s5 = sld [smem:[#allocation35_spill]] }
  0x7a   : > { %v5049_v61 = vld [vmem:[#allocation8 + $0xe0] sm:$0xf0]  ;;  %v5023_v8 = vld [vmem:[#allocation8 + $0x98] sm:$0xf]  ;;  %v5625_v9 = vld [vmem:[#allocation8 + $0xac] sm:$0xf0] }
  0x7b   : > { %914 = vmatpush.bf16.msra.mxu1 %v5020_v33  ;;  %6010 = vrcp.f32 %v577_v37  ;;  %v589_v54 = vand.u32 2147483648, %v577_v37  ;;  %vm583_vm0 = vweird.f32 %v577_v37  ;;  %v587_v57 = vand.u32 2147483647, %v577_v37  ;;  %v5626_v22 = vld [vmem:[#allocation8 + $0xb4] sm:$0xf0]  ;;  %s4767_s20 = sshll.u32 %s8901_s9, 4  ;;  %s4768_s20 = int_to_ptr.vmem [resolvable:$true] %s4767_s20 }
  0x7c   : > { %6012 = vrcp.f32 %v6654_v47  ;;  %v5128_v33 = vor.u32 %v5650_v30, %v5127_v29  ;;  %v5073_v47 = vld [vmem:[#allocation8 + $0x110] sm:$0xf0]  ;;  %v4999_v26 = vld [vmem:[#allocation8 + $0x68] sm:$0xf]  ;;  %v5619_v27 = vld [vmem:[#allocation8 + $0x7c] sm:$0xf0] }
  0x7d   : > { %901 = vmatpush.bf16.msra.mxu0 %v5016_v43  ;;  %v590_v58 = vor.u32 1.1754944e-38, %v589_v54  ;;  %vm588_vm3 = vcmp.eq.f32.partialorder %v587_v57, 8.507059e+37  ;;  %v5071_v43 = vld [vmem:[#allocation8 + $0xf8] sm:$0xf]  ;;  %v5047_v54 = vld [vmem:[#allocation8 + $0xc8] sm:$0xf] }
  0x7e   : > { %v5616_v32 = vld [vmem:[#allocation8 + $0x6c] sm:$0xf]  ;;  %s4755_s28 = scalar_lea.sflag [#allocation5], %s6877_s27 }
  0x7f   : > { %915 = vmatpush.bf16.msra.mxu1 %v4996_v45  ;;  %v5104_v45 = vor.u32 %v5644_v40, %v5103_v39  ;;  %s4766_s8 = scalar_lea.hbm %s9073_s5, %s5751_s15  ;;  %s6572_s17 = scalar_lea.hbm %s9073_s5, 128 }
  0x80   : > { %s4769_s19 = sshll.u32 %s4766_s8, 4  ;;  %s4770_s19 = int_to_ptr.hbm [resolvable:$true] %s4769_s19 }
  0x81   : > { %v6011_v38 = vpop.eup %6010  ;;  %902 = vmatpush.bf16.msra.mxu0 %v4992_v52 }
  0x82   : > { %v579_v42 = vmul.f32 %v6011_v38, %v577_v37  ;;  %vm584_vm1 = vweird.f32 %v6011_v38  ;;  %v6013_v4 = vpop.eup %6012 }
  0x83   : > { %vm585_vm2 = vmor %vm583_vm0, %vm584_vm1  ;;  %916 = vmatpush.bf16.msra.mxu1 %v4972_v55  ;;  %v992_v10 = vmul.f32 128.0, %v6013_v4  ;;  %vm996_vm4 = vweird.f32 %v6013_v4  ;;  %v5631_v55 = vld [vmem:[#allocation8 + $0xdc] sm:$0xf0] }
  0x84   : > { %v580_v46 = vsub.f32 1.0, %v579_v42 }
  0x85   : > { %903 = vmatpush.bf16.msra.mxu0 %v4968_v63  ;;  %v993_v15 = vsub.f32 1.0, %v992_v10  ;;  %v5632_v63 = vld [vmem:[#allocation8 + $0xe4] sm:$0xf0] }
  0x86   : > { %v581_v51 = vmul.f32 %v6011_v38, %v580_v46  ;;  %v5634_v46 = vld [vmem:[#allocation8 + $0xfc] sm:$0xf] }
  0x87   : > { %917 = vmatpush.bf16.msra.mxu1 %v4948_v5  ;;  %v994_v17 = vmul.f32 %v6013_v4, %v993_v15 }
  0x88   : > { %v582_v56 = vadd.f32 %v6011_v38, %v581_v51  ;;  %v5072_v51 = vor.u32 %v5637_v44, %v5071_v43  ;;  %v4975_v44 = vld [vmem:[#allocation8 + $0x38] sm:$0xf] }
  0x89   : > { %904 = vmatpush.bf16.msra.mxu0 %v4944_v12  ;;  %v995_v18 = vadd.f32 %v6013_v4, %v994_v17  ;;  %v6966_v12 = vld [vmem:[%s6883_s30 + $0x38] sm:$0xff] }
  0x8a   : > { %v586_v62 = vsel %vm585_vm2, %v6011_v38, %v582_v56  ;;  %v5097_v38 = vld [vmem:[#allocation8 + $0x140] sm:$0xf0]  ;;  %v5622_v17 = vld [vmem:[#allocation8 + $0x9c] sm:$0xf] }
  0x8b   : > { %v591_v6 = vsel %vm588_vm3, %v590_v58, %v586_v62  ;;  %v6945_v19 = vsel %vm996_vm4, %v6013_v4, %v995_v18  ;;  %v5100_v42 = vor.u32 %v5640_v36, %v5097_v38  ;;  %v5080_v58 = vor.u32 %v5638_v50, %v5079_v49  ;;  %v5055_v62 = vld [vmem:[#allocation8 + $0xd0] sm:$0xf]  ;;  %v4983_v49 = vld [vmem:[#allocation8 + $0x40] sm:$0xf]  ;;  %v5614_v50 = vld [vmem:[#allocation8 + $0x54] sm:$0xf0] }
  0x8c   : > { %v593_v7 = vmul.f32 %v591_v6, %v573_v34  ;;  %v5095_v34 = vld [vmem:[#allocation8 + $0x128] sm:$0xf]  ;;  %v5048_v4 = vor.u32 %v5631_v55, %v5047_v54  ;;  %v5056_v15 = vor.u32 %v5632_v63, %v5055_v62  ;;  %v4953_v55 = vld [vmem:[#allocation8 + $0x20] sm:$0xf0]  ;;  %v5672_v62 = vld [vmem:[#allocation9 + $0xac] sm:$0xf] }
  0x8d   : > { %v5096_v37 = vor.u32 %v5643_v35, %v5095_v34  ;;  %949 = vmatpush.bf16.msrb.mxu0 %v5128_v33  ;;  %937 = vmatpush.bf16.msra.mxu3 %v5100_v42  ;;  %v5001_v33 = vld [vmem:[#allocation8 + $0x80] sm:$0xf0]  ;;  %v5007_v34 = vld [vmem:[#allocation8 + $0x70] sm:$0xf]  ;;  %v5620_v35 = vld [vmem:[#allocation8 + $0x84] sm:$0xf0] }
  0x8e   : > { %v6941_v11 = vpack.c.bf16 %v593_v7, %v593_v7  ;;  %v5004_v40 = vor.u32 %v5616_v32, %v5001_v33  ;;  %v5008_v42 = vor.u32 %v5620_v35, %v5007_v34  ;;  %v5668_v32 = vld [vmem:[#allocation9 + $0x88] sm:$0xf0]  ;;  %v5183_v35 = vld [vmem:[#allocation9 + $0x60] sm:$0xf] }
  0x8f   : > { %924 = vmatpush.bf16.msra.mxu2 %v5096_v37 }
  0x90   : > { %918 = vmatmul.bf16.vlgmr.msra.gmra.mxu1 %v6941_v11  ;;  %905 = vmatmul.bf16.vlgmr.msra.gmra.mxu0 %v6941_v11 }
  0x91   : > { %950 = vmatpush.bf16.msrb.mxu0 %v5104_v45  ;;  %v5613_v45 = vld [vmem:[#allocation8 + $0x4c] sm:$0xf0] }
  0x93   : > { %925 = vmatpush.bf16.msra.mxu2 %v5072_v51 }
  0x95   : > { %951 = vmatpush.bf16.msrb.mxu0 %v5080_v58 }
  0x97   : > { %926 = vmatpush.bf16.msra.mxu2 %v5048_v4  ;;  %v5221_v4 = vld [vmem:[#allocation9 + $0xb4] sm:$0xf0] }
  0x99   : > { %952 = vmatpush.bf16.msrb.mxu0 %v5056_v15  ;;  %v5669_v15 = vld [vmem:[#allocation9 + $0x94] sm:$0xf] }
  0xdb   : > { %v984_v20 = vpop.xlane.xlu2 %983  ;;  %v980_v21 = vpop.xlane.xlu1 %979 }
  0xdc   : > { %v976_v25 = vpop.xlane.xlu0 %975  ;;  %v1002_v5 = vmul.f32 %v6945_v19, %v984_v20  ;;  %v1000_v6 = vmul.f32 %v6945_v19, %v980_v21  ;;  %v5025_v20 = vld [vmem:[#allocation8 + $0xb0] sm:$0xf0]  ;;  %v5031_v21 = vld [vmem:[#allocation8 + $0xa0] sm:$0xf] }
  0xdd   : > { %v998_v31 = vmul.f32 %v6945_v19, %v976_v25  ;;  %v5028_v30 = vor.u32 %v5622_v17, %v5025_v20  ;;  %v5215_v20 = vld [vmem:[#allocation9 + $0x98] sm:$0xf] }
  0xde   : > { %v6972_v24 = vsub.f32 %v6912_v0, %v1002_v5  ;;  %v6975_v25 = vsub.f32 %v6915_v1, %v1000_v6  ;;  %v5000_v0 = vor.u32 %v5619_v27, %v4999_v26  ;;  %v5227_v5 = vld [vmem:[#allocation9 + $0xb0] sm:$0xf]  ;;  %v5674_v6 = vld [vmem:[#allocation9 + $0xb8] sm:$0xf0]  ;;  %v5667_v26 = vld [vmem:[#allocation9 + $0x80] sm:$0xf0] }
  0xdf   : > { %v6949_v41 = vsub.f32 %v6918_v2, %v998_v31  ;;  %v5076_v2 = vor.u32 %v5634_v46, %v5073_v47  ;;  %v5032_v31 = vor.u32 %v5626_v22, %v5031_v21  ;;  %v5610_v46 = vld [vmem:[#allocation8 + $0x3c] sm:$0xf]  ;;  %v4976_v47 = vor.u32 %v5613_v45, %v4975_v44  ;;  %v5671_v21 = vld [vmem:[#allocation9 + $0xa0] sm:$0xf0]  ;;  %v5171_v45 = vld [vmem:[#allocation9 + $0x48] sm:$0xf] }
  0xe0   : > { %v1018_v37 = vmul.f32 %v6972_v24, %v6972_v24  ;;  %v1016_v38 = vmul.f32 %v6975_v25, %v6975_v25  ;;  %v5666_v27 = vld [vmem:[#allocation9 + $0x7c] sm:$0xf] }
  0xe1   : > { %v1014_v48 = vmul.f32 %v6949_v41, %v6949_v41  ;;  %938 = vmatpush.bf16.msra.mxu3 %v5076_v2  ;;  %953 = vmatpush.bf16.msrb.mxu0 %v5032_v31  ;;  %v5604_v2 = vld [vmem:[#allocation8 + $0xc] sm:$0xf]  ;;  %v5203_v31 = vld [vmem:[#allocation9 + $0x80] sm:$0xf] }
  0xe2   : > { %v4956_v58 = vor.u32 %v5604_v2, %v4953_v55  ;;  %v5204_v34 = vor.u32 %v5668_v32, %v5203_v31  ;;  %v5159_v2 = vld [vmem:[#allocation9 + $0x30] sm:$0xf]  ;;  %v5653_v31 = vld [vmem:[#allocation9 + $0x10] sm:$0xf0] }
  0xe3   : > { %1022 = vadd.xlane.f32.xlu0 %v1014_v48  ;;  %v986_v52 = vpop.xlane.xlu2 %985  ;;  %v982_v53 = vpop.xlane.xlu1 %981  ;;  %v4977_v48 = vld [vmem:[#allocation8 + $0x50] sm:$0xf0] }
  0xe4   : > { %v1001_v56 = vmul.f32 %v6945_v19, %v982_v53  ;;  %v978_v57 = vpop.xlane.xlu0 %977  ;;  %v1003_v1 = vmul.f32 %v6945_v19, %v986_v52  ;;  %v4980_v51 = vor.u32 %v5610_v46, %v4977_v48  ;;  %v4984_v52 = vor.u32 %v5614_v50, %v4983_v49  ;;  %v5607_v53 = vld [vmem:[#allocation8 + $0x1c] sm:$0xf0]  ;;  %v5661_v46 = vld [vmem:[#allocation9 + $0x50] sm:$0xf0]  ;;  %v5660_v49 = vld [vmem:[#allocation9 + $0x4c] sm:$0xf] }
  0xe5   : > { %v999_v60 = vmul.f32 %v6945_v19, %v978_v57  ;;  %954 = vmatpush.bf16.msrb.mxu0 %v5008_v42  ;;  %v5608_v57 = vld [vmem:[#allocation8 + $0x24] sm:$0xf0]  ;;  %v5172_v48 = vor.u32 %v5661_v46, %v5171_v45  ;;  %v5173_v50 = vld [vmem:[#allocation9 + $0x54] sm:$0xf0]  ;;  %v643_v45 = vld [vmem:[%s8968_s3] sm:$0x3f] }
  0xe6   : > { %v6956_v3 = vsub.f32 %v6927_v14, %v1001_v56  ;;  %v5052_v14 = vor.u32 %v5628_v59, %v5049_v61  ;;  %v4959_v56 = vld [vmem:[#allocation8 + $0x10] sm:$0xf]  ;;  %v5673_v61 = vld [vmem:[#allocation9 + $0xb0] sm:$0xf0] }
  0xe7   : > { %v6961_v7 = vsub.f32 %v6930_v16, %v999_v60  ;;  %v5024_v16 = vor.u32 %v5625_v9, %v5023_v8  ;;  %v4960_v59 = vor.u32 %v5608_v57, %v4959_v56  ;;  %v5219_v60 = vld [vmem:[#allocation9 + $0xa8] sm:$0xf]  ;;  %v5224_v8 = vor.u32 %v5672_v62, %v5221_v4  ;;  %v5657_v56 = vld [vmem:[#allocation9 + $0x34] sm:$0xf]  ;;  %v5161_v57 = vld [vmem:[#allocation9 + $0x3c] sm:$0xf0] }
  0xe8   : > { %v1017_v10 = vmul.f32 %v6956_v3, %v6956_v3  ;;  %939 = vmatpush.bf16.msra.mxu3 %v5052_v14  ;;  %v5220_v63 = vor.u32 %v5673_v61, %v5219_v60  ;;  %v5228_v9 = vor.u32 %v5674_v6, %v5227_v5  ;;  %v5670_v14 = vld [vmem:[#allocation9 + $0x98] sm:$0xf0]  ;;  %v5164_v60 = vor.u32 %v5657_v56, %v5161_v57  ;;  %v5659_v61 = vld [vmem:[#allocation9 + $0x40] sm:$0xf0] }
  0xe9   : > { %v1015_v18 = vmul.f32 %v6961_v7, %v6961_v7  ;;  %927 = vmatpush.bf16.msra.mxu2 %v5024_v16  ;;  %955 = vmatpush.bf16.msrb.mxu0 %v4984_v52  ;;  %v5216_v16 = vor.u32 %v5671_v21, %v5215_v20  ;;  %v5176_v52 = vor.u32 %v5660_v49, %v5173_v50  ;;  %v5655_v4 = vld [vmem:[#allocation9 + $0x20] sm:$0xf0]  ;;  %v5654_v5 = vld [vmem:[#allocation9 + $0x1c] sm:$0xf]  ;;  %v5135_v21 = vld [vmem:[#allocation9] sm:$0xf] }
  0xea   : > { %1028 = vadd.xlane.f32.xlu2 %v1017_v10  ;;  %v5207_v10 = vld [vmem:[#allocation9 + $0x90] sm:$0xf]  ;;  %v886_v49 = vperm.slane %v643_v45, 1 }
  0xeb   : > { %989 = vadd.xlane.f32.xlu0 %v6966_v12  ;;  %1024 = vadd.xlane.f32.xlu1 %v1015_v18  ;;  %v988_v23 = vpop.xlane.xlu2 %987  ;;  %v5208_v17 = vor.u32 %v5670_v14, %v5207_v10  ;;  %v5209_v18 = vld [vmem:[#allocation9 + $0x9c] sm:$0xf0]  ;;  %v5656_v10 = vld [vmem:[#allocation9 + $0x28] sm:$0xf0] }
  0xec   : > { %v1004_v29 = vmul.f32 %v6945_v19, %v988_v23  ;;  %940 = vmatpush.bf16.msra.mxu3 %v5028_v30  ;;  %v5212_v22 = vor.u32 %v5669_v15, %v5209_v18  ;;  %v5195_v23 = vld [vmem:[#allocation9 + $0x78] sm:$0xf]  ;;  %v5197_v30 = vld [vmem:[#allocation9 + $0x84] sm:$0xf0] }
  0xed   : > { %928 = vmatpush.bf16.msra.mxu2 %v5000_v0  ;;  %956 = vmatpush.bf16.msrb.mxu0 %v4960_v59  ;;  %v5200_v33 = vor.u32 %v5666_v27, %v5197_v30  ;;  %v5664_v0 = vld [vmem:[#allocation9 + $0x68] sm:$0xf0]  ;;  %v5137_v27 = vld [vmem:[#allocation9 + $0xc] sm:$0xf0] }
  0xee   : > { %v6979_v36 = vsub.f32 %v6936_v28, %v1004_v29  ;;  %v6989_v28 = vsub.f32 %v6924_v13, %v1003_v1  ;;  %v4951_v13 = vld [vmem:[#allocation8 + $0x8] sm:$0xf]  ;;  %v5196_v29 = vor.u32 %v5667_v26, %v5195_v23 }
  0xef   : > { %v4952_v54 = vor.u32 %v5607_v53, %v4951_v13  ;;  %v5662_v13 = vld [vmem:[#allocation9 + $0x58] sm:$0xf0] }
  0xf0   : > { %v1020_v39 = vmul.f32 %v6979_v36, %v6979_v36  ;;  %941 = vmatpush.bf16.msra.mxu3 %v5004_v40  ;;  %v1019_v43 = vmul.f32 %v6989_v28, %v6989_v28  ;;  %957 = vmatmul.bf16.vlgmr.msrb.gmra.mxu0 %v6941_v11  ;;  %v5191_v40 = vld [vmem:[#allocation9 + $0x68] sm:$0xf] }
  0xf1   : > { %929 = vmatpush.bf16.msra.mxu2 %v4976_v47  ;;  %1391 = vmatpush.bf16.msra.mxu0 %v5228_v9  ;;  %v5155_v9 = vld [vmem:[#allocation9 + $0x20] sm:$0xf] }
  0xf2   : > { %1034 = vadd.xlane.f32.xlu2 %v1020_v39  ;;  %v5185_v39 = vld [vmem:[#allocation9 + $0x6c] sm:$0xf0]  ;;  %v5156_v18 = vor.u32 %v5656_v10, %v5155_v9 }
  0xf3   : > { %1030 = vadd.xlane.f32.xlu0 %v1018_v37  ;;  %1026 = vadd.xlane.f32.xlu1 %v1016_v38  ;;  %v5184_v37 = vor.u32 %v5664_v0, %v5183_v35  ;;  %v5663_v38 = vld [vmem:[#allocation9 + $0x64] sm:$0xf] }
  0xf4   : > { %942 = vmatpush.bf16.msra.mxu3 %v4980_v51  ;;  %v5188_v42 = vor.u32 %v5663_v38, %v5185_v39  ;;  %v5179_v51 = vld [vmem:[#allocation9 + $0x50] sm:$0xf] }
  0xf5   : > { %930 = vmatpush.bf16.msra.mxu2 %v4952_v54  ;;  %1392 = vmatpush.bf16.msra.mxu0 %v5216_v16  ;;  %v5180_v53 = vor.u32 %v5662_v13, %v5179_v51  ;;  %v5658_v54 = vld [vmem:[#allocation9 + $0x38] sm:$0xf0]  ;;  %v5651_v16 = vld [vmem:[#allocation9 + $0x4] sm:$0xf] }
  0xf6   : > { %v5160_v55 = vor.u32 %v5658_v54, %v5159_v2  ;;  %v5140_v30 = vor.u32 %v5651_v16, %v5137_v27 }
  0xf8   : > { %943 = vmatpush.bf16.msra.mxu3 %v4956_v58  ;;  %931 = vmatmul.bf16.vlgmr.msra.gmra.mxu2 %v6941_v11  ;;  %v5167_v58 = vld [vmem:[#allocation9 + $0x38] sm:$0xf] }
  0xf9   : > { %1333 = vmatpush.bf16.msrb.mxu2 %v5220_v63  ;;  %1393 = vmatpush.bf16.msra.mxu0 %v5204_v34  ;;  %v5168_v62 = vor.u32 %v5659_v61, %v5167_v58  ;;  %v5147_v63 = vld [vmem:[#allocation9 + $0x18] sm:$0xf] }
  0xfa   : > { %v5148_v6 = vor.u32 %v5655_v4, %v5147_v63 }
  0xfb   : > { %1032 = vadd.xlane.f32.xlu1 %v1019_v43  ;;  %944 = vmatmul.bf16.vlgmr.msra.gmra.mxu3 %v6941_v11  ;;  %v5665_v43 = vld [vmem:[#allocation9 + $0x70] sm:$0xf0] }
  0xfc   : > { %1362 = vmatpush.bf16.msrb.mxu3 %v5224_v8  ;;  %v5192_v44 = vor.u32 %v5665_v43, %v5191_v40  ;;  %v5149_v8 = vld [vmem:[#allocation9 + $0x24] sm:$0xf0] }
  0xfd   : > { %1334 = vmatpush.bf16.msrb.mxu2 %v5208_v17  ;;  %v5152_v17 = vor.u32 %v5654_v5, %v5149_v8 }
  0xfe   : > { %1394 = vmatpush.bf16.msra.mxu0 %v5192_v44 }
 0x100   : > { %1363 = vmatpush.bf16.msrb.mxu3 %v5212_v22  ;;  %v5652_v22 = vld [vmem:[#allocation9 + $0x8] sm:$0xf0] }
 0x101   : > { %1335 = vmatpush.bf16.msrb.mxu2 %v5196_v29  ;;  %v5136_v26 = vor.u32 %v5652_v22, %v5135_v21  ;;  %v5143_v29 = vld [vmem:[#allocation9 + $0x8] sm:$0xf] }
 0x102   : > { %1395 = vmatpush.bf16.msra.mxu0 %v5180_v53  ;;  %v5144_v32 = vor.u32 %v5653_v31, %v5143_v29 }
 0x104   : > { %1364 = vmatpush.bf16.msrb.mxu3 %v5200_v33 }
 0x105   : > { %1336 = vmatpush.bf16.msrb.mxu2 %v5184_v37 }
 0x106   : > { %1396 = vmatpush.bf16.msra.mxu0 %v5168_v62  ;;  %v885_v62 = vperm.slane %v643_v45, 0 }
 0x108   : > { %1365 = vmatpush.bf16.msrb.mxu3 %v5188_v42 }
 0x109   : > { %1337 = vmatpush.bf16.msrb.mxu2 %v5172_v48 }
 0x10a   : > { %1397 = vmatpush.bf16.msra.mxu0 %v5156_v18 }
 0x10c   : > { %1366 = vmatpush.bf16.msrb.mxu3 %v5176_v52 }
 0x10d   : > { %v6996_v1 = vpop.f32.mrf.mxu1  ;;  %v6998_v47 = vpop.f32.mrf.mxu0  ;;  %1338 = vmatpush.bf16.msrb.mxu2 %v5160_v55 }
 0x10e   : > { %1398 = vmatpush.bf16.msra.mxu0 %v5144_v32  ;;  %v920_v55 = vadd.f32 %v6996_v1, %v886_v49 }
 0x110   : > { %1367 = vmatpush.bf16.msrb.mxu3 %v5164_v60  ;;  %v1142_v61 = vadd.f32 1.0, %v920_v55 }
 0x111   : > { %1339 = vmatpush.bf16.msrb.mxu2 %v5148_v6 }
 0x114   : > { %1368 = vmatpush.bf16.msrb.mxu3 %v5152_v17  ;;  %v907_v17 = vadd.f32 %v6998_v47, %v885_v62 }
 0x115   : > { %v921_v59 = vpop.f32.mrf.mxu1  ;;  %v908_v14 = vpop.f32.mrf.mxu0  ;;  %1340 = vmatpush.bf16.msrb.mxu2 %v5136_v26 }
 0x118   : > { %1369 = vmatpush.bf16.msrb.mxu3 %v5140_v30  ;;  %v7038_v30 = vperm.slane %v907_v17, 0 }
 0x156   : > { %v1023_v15 = vpop.xlane.xlu0 %1022 }
 0x157   : > { %v1038_v20 = vmul.f32 %v1023_v15, %v6945_v19  ;;  %v7032_v15 = vperm.slane %v1142_v61, 0 }
 0x159   : > { %v1046_v23 = vadd.f32 1e-06, %v1038_v20 }
 0x15b   : > { %6014 = vrsqrt.f32 %v1046_v23  ;;  %vm1060_vm6 = vweird.f32 %v1046_v23 }
 0x15d   : > { %v1029_v33 = vpop.xlane.xlu2 %1028 }
 0x15e   : > { %v1041_v34 = vmul.f32 %v1029_v33, %v6945_v19  ;;  %v1025_v35 = vpop.xlane.xlu1 %1024  ;;  %v990_v0 = vpop.xlane.xlu0 %989 }
 0x15f   : > { %v1039_v37 = vmul.f32 %v1025_v35, %v6945_v19  ;;  %v1005_v38 = vmul.f32 %v6945_v19, %v990_v0 }
 0x160   : > { %v7004_v39 = vadd.f32 1e-06, %v1041_v34 }
 0x161   : > { %v6015_v40 = vpop.eup %6014  ;;  %v1047_v42 = vadd.f32 1e-06, %v1039_v37  ;;  %v7007_v43 = vsub.f32 %v6966_v12, %v1005_v38 }
 0x162   : > { %v1055_v44 = vmul.f32 %v6015_v40, %v1046_v23  ;;  %6016 = vrsqrt.f32 %v7004_v39  ;;  %vm1061_vm5 = vweird.f32 %v6015_v40  ;;  %vm1090_vm13 = vweird.f32 %v7004_v39 }
 0x163   : > { %6018 = vrsqrt.f32 %v1047_v42  ;;  %v1021_v46 = vmul.f32 %v7007_v43, %v7007_v43  ;;  %vm7022_vm7 = vmor %vm1060_vm6, %vm1061_vm5  ;;  %vm1070_vm8 = vweird.f32 %v1047_v42 }
 0x164   : > { %v1056_v48 = vmul.f32 %v6015_v40, %v1055_v44 }
 0x165   : > { %1036 = vadd.xlane.f32.xlu0 %v1021_v46 }
 0x166   : > { %v1057_v50 = vmul.f32 0.5, %v1056_v48  ;;  %v1027_v51 = vpop.xlane.xlu1 %1026  ;;  %v1031_v12 = vpop.xlane.xlu0 %1030 }
 0x167   : > { %v1040_v52 = vmul.f32 %v1027_v51, %v6945_v19  ;;  %v1042_v57 = vmul.f32 %v1031_v12, %v6945_v19 }
 0x168   : > { %v7016_v13 = vpop.eup %6016  ;;  %v1058_v53 = vsub.f32 1.5, %v1057_v50 }
 0x169   : > { %v6019_v2 = vpop.eup %6018  ;;  %v1048_v54 = vadd.f32 1e-06, %v1040_v52  ;;  %v1085_v59 = vmul.f32 %v7016_v13, %v7004_v39  ;;  %v7026_v1 = vadd.f32 1e-06, %v1042_v57  ;;  %vm1091_vm14 = vweird.f32 %v7016_v13 }
 0x16a   : > { %v1065_v56 = vmul.f32 %v6019_v2, %v1047_v42  ;;  %v1059_v58 = vmul.f32 %v6015_v40, %v1058_v53  ;;  %vm1071_vm9 = vweird.f32 %v6019_v2  ;;  %vm1092_vm0 = vmor %vm1090_vm13, %vm1091_vm14  ;;  %vm1828_vm13 = vcmask 261120  }
 0x16b   : > { %6020 = vrsqrt.f32 %v1048_v54  ;;  %v1086_v8 = vmul.f32 %v7016_v13, %v1085_v59  ;;  %vm1072_vm10 = vmor %vm1070_vm8, %vm1071_vm9  ;;  %vm1080_vm11 = vweird.f32 %v1048_v54  ;;  %vm1100_vm3 = vweird.f32 %v7026_v1 }
 0x16c   : > { %v1066_v60 = vmul.f32 %v6019_v2, %v1065_v56  ;;  %v1063_v6 = vsel %vm7022_vm7, %v6015_v40, %v1059_v58  ;;  %6022 = vrsqrt.f32 %v7026_v1  ;;  %vm2161_vm14 = vcmask 523264  }
 0x16d   : > { %v1134_v22 = vmul.f32 %v1063_v6, %v6949_v41  ;;  %v1087_v16 = vmul.f32 0.5, %v1086_v8 }
 0x16e   : > { %v1067_v4 = vmul.f32 0.5, %v1066_v60  ;;  %v1033_v5 = vpop.xlane.xlu1 %1032 }
 0x16f   : > { %v1043_v9 = vmul.f32 %v1033_v5, %v6945_v19  ;;  %v1144_v31 = vmul.f32 %v7032_v15, %v1134_v22  ;;  %v1088_v32 = vsub.f32 1.5, %v1087_v16 }
 0x170   : > { %v1068_v10 = vsub.f32 1.5, %v1067_v4 }
 0x171   : > { %v6021_v14 = vpop.eup %6020  ;;  %v1051_v18 = vadd.f32 1e-06, %v1043_v9  ;;  %v1153_v0 = vadd.f32 %v7038_v30, %v1144_v31  ;;  %v1089_v37 = vmul.f32 %v7016_v13, %v1088_v32 }
 0x172   : > { %v1069_v20 = vmul.f32 %v6019_v2, %v1068_v10  ;;  %v1075_v21 = vmul.f32 %v6021_v14, %v1048_v54  ;;  %vm1081_vm12 = vweird.f32 %v6021_v14  ;;  %v6023_v33 = vpop.eup %6022 }
 0x173   : > { %6024 = vrsqrt.f32 %v1051_v18  ;;  %vm1082_vm15 = vmor %vm1080_vm11, %vm1081_vm12  ;;  %v1095_v38 = vmul.f32 %v6023_v33, %v7026_v1  ;;  %v1093_v39 = vsel %vm1092_vm0, %v7016_v13, %v1089_v37  ;;  %vm1110_vm1 = vweird.f32 %v1051_v18  ;;  %v1035_v1 = vpop.xlane.xlu2 %1034 }
 0x174   : > { %v1073_v23 = vsel %vm1072_vm10, %v6019_v2, %v1069_v20  ;;  %v1076_v26 = vmul.f32 %v6021_v14, %v1075_v21  ;;  %v1137_v50 = vmul.f32 %v1093_v39, %v6956_v3  ;;  %vm1101_vm4 = vweird.f32 %v6023_v33 }
 0x175   : > { %v1135_v27 = vmul.f32 %v1073_v23, %v6961_v7  ;;  %v1096_v46 = vmul.f32 %v6023_v33, %v1095_v38  ;;  %vm1102_vm6 = vmor %vm1100_vm3, %vm1101_vm4  ;;  %v1044_v5 = vmul.f32 %v1035_v1, %v6945_v19  ;;  %vm2927_vm0 = vcmask 519424  }
 0x176   : > { %v1077_v29 = vmul.f32 0.5, %v1076_v26  ;;  %v1147_v53 = vmul.f32 %v7032_v15, %v1137_v50 }
 0x177   : > { %v1145_v47 = vmul.f32 %v7032_v15, %v1135_v27  ;;  %v1097_v51 = vmul.f32 0.5, %v1096_v46  ;;  %v1052_v6 = vadd.f32 1e-06, %v1044_v5 }
 0x178   : > { %v1078_v34 = vsub.f32 1.5, %v1077_v29 }
 0x179   : > { %v1154_v41 = vadd.f32 %v7038_v30, %v1145_v47  ;;  %v6025_v35 = vpop.eup %6024  ;;  %v1098_v2 = vsub.f32 1.5, %v1097_v51  ;;  %6026 = vrsqrt.f32 %v1052_v6  ;;  %vm1120_vm7 = vweird.f32 %v1052_v6 }
 0x17a   : > { %v1079_v7 = vmul.f32 %v6021_v14, %v1078_v34  ;;  %v1105_v40 = vmul.f32 %v6025_v35, %v1051_v18  ;;  %vm1111_vm2 = vweird.f32 %v6025_v35 }
 0x17b   : > { %v1161_v42 = vpack.c.bf16 %v1154_v41, %v1153_v0  ;;  %vm1112_vm5 = vmor %vm1110_vm1, %vm1111_vm2  ;;  %v1099_v55 = vmul.f32 %v6023_v33, %v1098_v2  ;;  %vm2984_vm1 = vcmask 781824   ;;  %vm3041_vm2 = vcmask 1044224  }
 0x17c   : > { %v1083_v44 = vsel %vm1082_vm15, %v6021_v14, %v1079_v7  ;;  %v1106_v45 = vmul.f32 %v6025_v35, %v1105_v40  ;;  %vm2870_vm15 = vcmask 257024  }
 0x17d   : > { %1341 = vmatmul.bf16.vlgmr.msrb.gmra.mxu2 %v1161_v42  ;;  %1370 = vmatmul.bf16.vlgmr.msrb.gmra.mxu3 %v1161_v42  ;;  %v1136_v48 = vmul.f32 %v1083_v44, %v6975_v25  ;;  %v1156_v25 = vadd.f32 %v7038_v30, %v1147_v53  ;;  %v1103_v57 = vsel %vm1102_vm6, %v6023_v33, %v1099_v55 }
 0x17e   : > { %1399 = vmatmul.bf16.vlgmr.msra.gmra.mxu0 %v1161_v42  ;;  %v1107_v49 = vmul.f32 0.5, %v1106_v45  ;;  %v1138_v59 = vmul.f32 %v1103_v57, %v6972_v24  ;;  %v7065_v24 = vpop.f32.mrf.mxu2  ;;  %v7067_v8 = vpop.f32.mrf.mxu3 }
 0x17f   : > { %v1146_v52 = vmul.f32 %v7032_v15, %v1136_v48  ;;  %v6027_v9 = vpop.eup %6026 }
 0x180   : > { %v1108_v12 = vsub.f32 1.5, %v1107_v49  ;;  %v1148_v61 = vmul.f32 %v7032_v15, %v1138_v59  ;;  %v1115_v10 = vmul.f32 %v6027_v9, %v1052_v6  ;;  %vm1121_vm8 = vweird.f32 %v6027_v9 }
 0x181   : > { %v1155_v54 = vadd.f32 %v7038_v30, %v1146_v52  ;;  %vm1122_vm9 = vmor %vm1120_vm7, %vm1121_vm8 }
 0x182   : > { %v1109_v13 = vmul.f32 %v6025_v35, %v1108_v12  ;;  %v1157_v63 = vadd.f32 %v7038_v30, %v1148_v61  ;;  %v1116_v20 = vmul.f32 %v6027_v9, %v1115_v10 }
 0x183   : > { %v1162_v3 = vpack.c.bf16 %v1156_v25, %v1155_v54 }
 0x184   : > { %v1113_v56 = vsel %vm1112_vm5, %v6025_v35, %v1109_v13  ;;  %v1117_v23 = vmul.f32 0.5, %v1116_v20 }
 0x185   : > { %v1139_v58 = vmul.f32 %v1113_v56, %v6989_v28  ;;  %v7063_v28 = vpop.f32.mrf.mxu0 }
 0x186   : > { %v934_v17 = vpop.f32.mrf.mxu2  ;;  %v947_v18 = vpop.f32.mrf.mxu3  ;;  %v1118_v26 = vsub.f32 1.5, %v1117_v23 }
 0x187   : > { %v1149_v60 = vmul.f32 %v7032_v15, %v1139_v58 }
 0x188   : > { %v1119_v29 = vmul.f32 %v6027_v9, %v1118_v26 }
 0x189   : > { %v1158_v62 = vadd.f32 %v7038_v30, %v1149_v60 }
 0x18a   : > { %v1123_v47 = vsel %vm1122_vm9, %v6027_v9, %v1119_v29 }
 0x18b   : > { %v1163_v4 = vpack.c.bf16 %v1158_v62, %v1157_v63  ;;  %v1140_v41 = vmul.f32 %v1123_v47, %v6979_v36  ;;  %v1197_v36 = vld [vmem:[#allocation11] sm:$0x7] }
 0x18c   : > { %v7076_v39 = vperm.slane %v1197_v36, 2  ;;  %v7078_v48 = vperm.slane %v1197_v36, 1 }
 0x18d   : > { %1346 = vmatmul.bf16.gmra.mxu2 %v1162_v3  ;;  %1375 = vmatmul.bf16.gmra.mxu3 %v1162_v3  ;;  %v960_v14 = vpop.f32.mrf.mxu0  ;;  %v1150_v37 = vmul.f32 %v7032_v15, %v1140_v41  ;;  %v7146_v41 = vperm.slane %v1197_v36, 0  ;;  %v5635_v36 = vld [vmem:[#allocation8 + $0x104] sm:$0xf] }
 0x18e   : > { %1404 = vmatmul.bf16.gmra.mxu0 %v1162_v3 }
 0x18f   : > { %v1159_v40 = vadd.f32 %v7038_v30, %v1150_v37  ;;  %v5641_v37 = vld [vmem:[#allocation8 + $0x134] sm:$0xf] }
 0x19d   : > { %1351 = vmatmul.bf16.gmra.mxu2 %v1163_v4  ;;  %1380 = vmatmul.bf16.gmra.mxu3 %v1163_v4 }
 0x19e   : > { %1409 = vmatmul.bf16.gmra.mxu0 %v1163_v4 }
 0x1d8   : > { %v1037_v21 = vpop.xlane.xlu0 %1036 }
 0x1d9   : > { %v1045_v22 = vmul.f32 %v1037_v21, %v6945_v19 }
 0x1db   : > { %v1053_v16 = vadd.f32 1e-06, %v1045_v22 }
 0x1dd   : > { %6028 = vrsqrt.f32 %v1053_v16  ;;  %vm1130_vm11 = vweird.f32 %v1053_v16 }
 0x1e3   : > { %v6029_v27 = vpop.eup %6028 }
 0x1e4   : > { %v1125_v31 = vmul.f32 %v6029_v27, %v1053_v16  ;;  %vm1131_vm10 = vweird.f32 %v6029_v27 }
 0x1e5   : > { %vm1132_vm12 = vmor %vm1130_vm11, %vm1131_vm10 }
 0x1e6   : > { %v1126_v32 = vmul.f32 %v6029_v27, %v1125_v31 }
 0x1e8   : > { %v1127_v33 = vmul.f32 0.5, %v1126_v32 }
 0x1ea   : > { %v1128_v34 = vsub.f32 1.5, %v1127_v33 }
 0x1ec   : > { %v1129_v35 = vmul.f32 %v6029_v27, %v1128_v34 }
 0x1ee   : > { %v1133_v7 = vsel %vm1132_vm12, %v6029_v27, %v1129_v35 }
 0x1ef   : > { %v1141_v0 = vmul.f32 %v1133_v7, %v7007_v43  ;;  %v5647_v7 = vld [vmem:[#allocation8 + $0x164] sm:$0xf] }
 0x1f1   : > { %v1151_v38 = vmul.f32 %v7032_v15, %v1141_v0  ;;  %v5129_v0 = vld [vmem:[#allocation8 + $0x178] sm:$0xf0] }
 0x1f3   : > { %v1160_v42 = vadd.f32 %v7038_v30, %v1151_v38  ;;  %v5132_v38 = vor.u32 %v5647_v7, %v5129_v0 }
 0x1f5   : > { %v1164_v44 = vpack.c.bf16 %v1160_v42, %v1159_v40  ;;  %v5105_v40 = vld [vmem:[#allocation8 + $0x148] sm:$0xf0]  ;;  %962 = vmatpush.bf16.msrb.mxu1 %v5132_v38 }
 0x1f7   : > { %1356 = vmatmul.bf16.gmra.mxu2 %v1164_v44  ;;  %1385 = vmatmul.bf16.gmra.mxu3 %v1164_v44 }
 0x1f8   : > { %1414 = vmatmul.bf16.gmra.mxu0 %v1164_v44  ;;  %v5108_v44 = vor.u32 %v5641_v37, %v5105_v40 }
 0x1fa   : > { %963 = vmatpush.bf16.msrb.mxu1 %v5108_v44 }
 0x1fb   : > { %v1400_v45 = vpop.f32.mrf.mxu0 }
 0x1fc   : > { %v7081_v49 = vadd.f32 %v1400_v45, %v7076_v39 }
 0x200   : > { %v1371_v46 = vpop.f32.mrf.mxu3  ;;  %v1342_v33 = vpop.f32.mrf.mxu2 }
 0x201   : > { %v1372_v30 = vadd.f32 %v1371_v46, %v7078_v48  ;;  %v5081_v46 = vld [vmem:[#allocation8 + $0x118] sm:$0xf0] }
 0x203   : > { %v1402_v43 = vpop.f32.mrf.mxu0  ;;  %v1644_v12 = vpack.c.bf16 %v1372_v30, %v1372_v30 }
 0x204   : > { %v7084_v15 = vadd.f32 %v1402_v43, %v7076_v39  ;;  %v5084_v43 = vor.u32 %v5635_v36, %v5081_v46 }
 0x205   : > { %v7094_v13 = vunpack.c.l.b16 %v1644_v12  ;;  %v7161_v12 = vadd.f32 %v1342_v33, %v7146_v41 }
 0x206   : > { %v7089_v50 = vpack.i.bf16 %v7084_v15, %v7081_v49  ;;  %964 = vmatpush.bf16.msrb.mxu1 %v5084_v43 }
 0x208   : > { %v1373_v51 = vpop.f32.mrf.mxu3  ;;  %v1344_v34 = vpop.f32.mrf.mxu2 }
 0x209   : > { %v1374_v52 = vadd.f32 %v1373_v51, %v7078_v48  ;;  %v7149_v35 = vadd.f32 %v1344_v34, %v7146_v41  ;;  %v5057_v51 = vld [vmem:[#allocation8 + $0xe8] sm:$0xf0] }
 0x20b   : > { %v1405_v53 = vpop.f32.mrf.mxu0  ;;  %v7092_v2 = vpack.i.bf16 %v1374_v52, %v1372_v30  ;;  %v1645_v54 = vpack.c.bf16 %v1374_v52, %v1374_v52  ;;  %v5629_v30 = vld [vmem:[#allocation8 + $0xd4] sm:$0xf] }
 0x20c   : > { %v7101_v57 = vadd.f32 %v1405_v53, %v7076_v39  ;;  %v5060_v52 = vor.u32 %v5629_v30, %v5057_v51 }
 0x20d   : > { %v7096_v25 = vunpack.c.l.b16 %v1645_v54  ;;  %v5623_v54 = vld [vmem:[#allocation8 + $0xa4] sm:$0xf] }
 0x20e   : > { %965 = vmatpush.bf16.msrb.mxu1 %v5060_v52 }
 0x20f   : > { %v1824_v55 = vpack.c.b16 %v7096_v25, %v7094_v13 }
 0x210   : > { %v1376_v3 = vpop.f32.mrf.mxu3  ;;  %v1347_v42 = vpop.f32.mrf.mxu2 }
 0x211   : > { %v1377_v59 = vadd.f32 %v1376_v3, %v7078_v48  ;;  %v7156_v45 = vadd.f32 %v1347_v42, %v7146_v41  ;;  %v5033_v3 = vld [vmem:[#allocation8 + $0xb8] sm:$0xf0] }
 0x213   : > { %v1407_v56 = vpop.f32.mrf.mxu0  ;;  %v1646_v63 = vpack.c.bf16 %v1377_v59, %v1377_v59 }
 0x214   : > { %v7104_v58 = vadd.f32 %v1407_v56, %v7076_v39  ;;  %v5036_v56 = vor.u32 %v5623_v54, %v5033_v3 }
 0x215   : > { %v7114_v6 = vunpack.c.l.b16 %v1646_v63 }
 0x216   : > { %v7109_v60 = vpack.i.bf16 %v7104_v58, %v7101_v57  ;;  %966 = vmatpush.bf16.msrb.mxu1 %v5036_v56 }
 0x218   : > { %v1378_v61 = vpop.f32.mrf.mxu3  ;;  %v1349_v53 = vpop.f32.mrf.mxu2 }
 0x219   : > { %v1379_v62 = vadd.f32 %v1378_v61, %v7078_v48  ;;  %v5009_v61 = vld [vmem:[#allocation8 + $0x88] sm:$0xf0]  ;;  %v7166_v63 = vadd.f32 %v1349_v53, %v7146_v41 }
 0x21b   : > { %v1410_v4 = vpop.f32.mrf.mxu0  ;;  %v7112_v1 = vpack.i.bf16 %v1379_v62, %v1377_v59  ;;  %v1647_v5 = vpack.c.bf16 %v1379_v62, %v1379_v62  ;;  %v5617_v59 = vld [vmem:[#allocation8 + $0x74] sm:$0xf] }
 0x21c   : > { %v7121_v18 = vadd.f32 %v1410_v4, %v7076_v39  ;;  %v5012_v62 = vor.u32 %v5617_v59, %v5009_v61  ;;  %v5611_v4 = vld [vmem:[#allocation8 + $0x44] sm:$0xf] }
 0x21d   : > { %v7116_v9 = vunpack.c.l.b16 %v1647_v5  ;;  %v4985_v5 = vld [vmem:[#allocation8 + $0x58] sm:$0xf0] }
 0x21e   : > { %967 = vmatpush.bf16.msrb.mxu1 %v5012_v62  ;;  %v1760_v61 = vpack.c.bf16 %v7121_v18, %v7121_v18 }
 0x21f   : > { %v1825_v10 = vpack.c.b16 %v7116_v9, %v7114_v6 }
 0x220   : > { %v1381_v14 = vpop.f32.mrf.mxu3 }
 0x221   : > { %v1382_v21 = vadd.f32 %v1381_v14, %v7078_v48  ;;  %v1352_v14 = vpop.f32.mrf.mxu2  ;;  %v1845_v59 = vsel %vm1828_vm13, %v1825_v10, 0 }
 0x222   : > { %v7181_v0 = vadd.f32 %v1352_v14, %v7146_v41 }
 0x223   : > { %v1412_v17 = vpop.f32.mrf.mxu0  ;;  %v1648_v26 = vpack.c.bf16 %v1382_v21, %v1382_v21 }
 0x224   : > { %v7124_v20 = vadd.f32 %v1412_v17, %v7076_v39  ;;  %v4988_v17 = vor.u32 %v5611_v4, %v4985_v5  ;;  %v1842_v4 = vsel %vm1828_vm13, %v1824_v55, 0 }
 0x225   : > { %v7136_v31 = vunpack.c.l.b16 %v1648_v26 }
 0x226   : > { %v7129_v22 = vpack.i.bf16 %v7124_v20, %v7121_v18  ;;  %968 = vmatpush.bf16.msrb.mxu1 %v4988_v17  ;;  %v1761_v6 = vpack.c.bf16 %v7124_v20, %v7124_v20  ;;  %v2546_v20 = vunpack.c.l.b16 %v1760_v61  ;;  %v1758_v18 = vpack.c.bf16 %v7101_v57, %v7101_v57 }
 0x228   : > { %v1383_v16 = vpop.f32.mrf.mxu3  ;;  %v2547_v14 = vunpack.c.l.b16 %v1761_v6  ;;  %v2544_v57 = vunpack.c.l.b16 %v1758_v18 }
 0x229   : > { %v1384_v23 = vadd.f32 %v1383_v16, %v7078_v48  ;;  %v4961_v16 = vld [vmem:[#allocation8 + $0x28] sm:$0xf0]  ;;  %v1354_v26 = vpop.f32.mrf.mxu2 }
 0x22a   : > { %v7247_v25 = vpack.c.b16 %v2547_v14, %v2546_v20 }
 0x22b   : > { %v7132_v27 = vpack.i.bf16 %v1384_v23, %v1382_v21  ;;  %v1649_v29 = vpack.c.bf16 %v1384_v23, %v1384_v23  ;;  %v5605_v21 = vld [vmem:[#allocation8 + $0x14] sm:$0xf] }
 0x22c   : > { %v4964_v23 = vor.u32 %v5605_v21, %v4961_v16  ;;  %v1756_v16 = vpack.c.bf16 %v7081_v49, %v7081_v49 }
 0x22d   : > { %5892 = vrot.lane.b32.xlu2 %v7132_v27, %s6655_s11  ;;  %v7138_v32 = vunpack.c.l.b16 %v1649_v29  ;;  %v7174_v29 = vadd.f32 %v1354_v26, %v7146_v41 }
 0x22e   : > { %969 = vmatpush.bf16.msrb.mxu1 %v4964_v23 }
 0x22f   : > { %v1826_v47 = vpack.c.b16 %v7138_v32, %v7136_v31  ;;  %v1501_v31 = vmul.f32 0.17677669, %v7149_v35 }
 0x231   : > { %970 = vmatmul.bf16.vlgmr.msrb.gmra.mxu1 %v6941_v11  ;;  %v1533_v9 = vpack.c.bf16 %v1501_v31, %v1501_v31 }
 0x233   : > { %v1797_v17 = vunpack.c.l.b16 %v1533_v9 }
 0x235   : > { %5897 = vrot.lane.b32.xlu2 %v7112_v1, %s6655_s11 }
 0x23d   : > { %5907 = vrot.lane.b32.xlu2 %v7092_v2, %s6655_s11 }
 0x245   : > { %1430 = vrot.lane.b32.xlu2 %v7149_v35, %s6655_s11 }
 0x24d   : > { %5937 = vrot.lane.b32.xlu2 %v7112_v1, %s6656_s25 }
 0x255   : > { %1432 = vrot.lane.b32.xlu2 %v7156_v45, %s6655_s11 }
 0x25d   : > { %1476 = vrot.lane.b32.xlu2 %v7161_v12, %s6656_s25 }
 0x265   : > { %1458 = vrot.lane.b32.xlu2 %v7166_v63, %s6657_s2 }
 0x26d   : > { %1480 = vrot.lane.b32.xlu2 %v7156_v45, %s6656_s25 }
 0x275   : > { %v1415_v33 = vpop.f32.mrf.mxu0  ;;  %1462 = vrot.lane.b32.xlu2 %v7174_v29, %s6657_s2 }
 0x276   : > { %v1416_v38 = vadd.f32 %v1415_v33, %v7076_v39  ;;  %v1503_v33 = vmul.f32 0.17677669, %v7166_v63 }
 0x278   : > { %v1762_v32 = vpack.c.bf16 %v1416_v38, %v1416_v38 }
 0x27a   : > { %v7178_v34 = vpop.f32.mrf.mxu2  ;;  %v1386_v7 = vpop.f32.mrf.mxu3  ;;  %v2548_v10 = vunpack.c.l.b16 %v1762_v32 }
 0x27b   : > { %v1387_v11 = vadd.f32 %v1386_v7, %v7078_v48  ;;  %v1535_v7 = vpack.c.bf16 %v1503_v33, %v1503_v33 }
 0x27d   : > { %v1417_v37 = vpop.f32.mrf.mxu0  ;;  %1484 = vrot.lane.b32.xlu2 %v7181_v0, %s6656_s25  ;;  %v1650_v30 = vpack.c.bf16 %v1387_v11, %v1387_v11 }
 0x27e   : > { %v1418_v40 = vadd.f32 %v1417_v37, %v7076_v39 }
 0x27f   : > { %v1822_v39 = vunpack.c.l.b16 %v1650_v30 }
 0x280   : > { %v7188_v42 = vpack.i.bf16 %v1418_v40, %v1416_v38  ;;  %v1763_v56 = vpack.c.bf16 %v1418_v40, %v1418_v40  ;;  %v1799_v38 = vunpack.c.l.b16 %v1535_v7 }
 0x282   : > { %v1359_v44 = vpop.f32.mrf.mxu2  ;;  %v1388_v36 = vpop.f32.mrf.mxu3 }
 0x283   : > { %v7191_v46 = vadd.f32 %v1359_v44, %v7146_v41  ;;  %v1389_v43 = vadd.f32 %v1388_v36, %v7078_v48  ;;  %v1848_v48 = vsel %vm1828_vm13, %v1826_v47, 0  ;;  %v1500_v47 = vmul.f32 0.17677669, %v7161_v12 }
 0x284   : > { %v1504_v44 = vmul.f32 0.17677669, %v7181_v0 }
 0x285   : > { %v5916_v51 = vpack.i.bf16 %v1389_v43, %v1387_v11  ;;  %v1651_v52 = vpack.c.bf16 %v1389_v43, %v1389_v43  ;;  %1466 = vrot.lane.b32.xlu2 %v7191_v46, %s6657_s2  ;;  %v1532_v62 = vpack.c.bf16 %v1500_v47, %v1500_v47  ;;  %v1505_v11 = vmul.f32 0.17677669, %v7174_v29 }
 0x287   : > { %5917 = vrot.lane.b32.xlu0 %v5916_v51, %s6657_s2  ;;  %5887 = vrot.lane.b32.xlu1 %v5916_v51, %s6655_s11  ;;  %v1823_v53 = vunpack.c.l.b16 %v1651_v52  ;;  %v1796_v13 = vunpack.c.l.b16 %v1532_v62  ;;  %v5893_v36 = vpop.permute.xlu2 %5892  ;;  %v1537_v43 = vpack.c.bf16 %v1505_v11, %v1505_v11 }
 0x288   : > { %v5894_v32 = vunpack.i.l.bf16 %v5893_v36 }
 0x289   : > { %v1827_v54 = vpack.c.b16 %v1823_v53, %v1822_v39  ;;  %v1804_v21 = vpack.c.b16 %v1797_v17, %v1796_v13  ;;  %v1801_v30 = vunpack.c.l.b16 %v1537_v43  ;;  %v1358_v39 = vadd.f32 %v7178_v34, %v7146_v41 }
 0x28a   : > { %v1507_v53 = vmul.f32 0.17677669, %v7191_v46 }
 0x28b   : > { %v1851_v3 = vsel %vm1828_vm13, %v1827_v54, 0 }
 0x28c   : > { %1857 = vmatpush.bf16.xpose.msra.mxu1 %v1851_v3  ;;  %v1539_v54 = vpack.c.bf16 %v1507_v53, %v1507_v53 }
 0x28d   : > { %5967 = vrot.lane.b32.xlu2 %v7109_v60, %s6655_s11 }
 0x28f   : > { %1428 = vrot.lane.b32.xlu0 %v7161_v12, %s6655_s11  ;;  %5902 = vrot.lane.b32.xlu1 %v7132_v27, %s6657_s2  ;;  %v7284_v52 = vpop.permute.xlu2 %5897 }
 0x294   : > { %1858 = vmatpush.bf16.xpose.msra.mxu1 %v1848_v48  ;;  %v1803_v48 = vunpack.c.l.b16 %v1539_v54 }
 0x295   : > { %5982 = vrot.lane.b32.xlu2 %v7089_v50, %s6655_s11 }
 0x297   : > { %5927 = vrot.lane.b32.xlu0 %v5916_v51, %s6656_s25  ;;  %5912 = vrot.lane.b32.xlu1 %v7112_v1, %s6657_s2  ;;  %v2549_v1 = vunpack.c.l.b16 %v1763_v56 }
 0x299   : > { %v7234_v5 = vpack.c.b16 %v2549_v1, %v2548_v10 }
 0x29c   : > { %1859 = vmatpush.bf16.xpose.msra.mxu1 %v1845_v59 }
 0x29d   : > { %5987 = vrot.lane.b32.xlu2 %v7129_v22, %s6656_s25 }
 0x29f   : > { %5932 = vrot.lane.b32.xlu0 %v7092_v2, %s6657_s2  ;;  %5922 = vrot.lane.b32.xlu1 %v7132_v27, %s6656_s25  ;;  %v1759_v27 = vpack.c.bf16 %v7104_v58, %v7104_v58  ;;  %v1757_v58 = vpack.c.bf16 %v7084_v15, %v7084_v15  ;;  %v1502_v15 = vmul.f32 0.17677669, %v7156_v45 }
 0x2a1   : > { %v2545_v55 = vunpack.c.l.b16 %v1759_v27  ;;  %v2543_v26 = vunpack.c.l.b16 %v1757_v58  ;;  %v1534_v37 = vpack.c.bf16 %v1502_v15, %v1502_v15 }
 0x2a3   : > { %v7255_v23 = vpack.c.b16 %v2545_v55, %v2544_v57  ;;  %v1798_v40 = vunpack.c.l.b16 %v1534_v37 }
 0x2a4   : > { %1860 = vmatpush.bf16.xpose.msra.mxu1 %v1842_v4 }
 0x2a5   : > { %5992 = vrot.lane.b32.xlu2 %v7089_v50, %s6657_s2 }
 0x2a7   : > { %1454 = vrot.lane.b32.xlu0 %v7149_v35, %s6657_s2  ;;  %1452 = vrot.lane.b32.xlu1 %v7161_v12, %s6657_s2  ;;  %v2542_v12 = vunpack.c.l.b16 %v1756_v16 }
 0x2a9   : > { %v7265_v49 = vpack.c.b16 %v2543_v26, %v2542_v12  ;;  %v5900_v26 = vunpack.i.h.bf16 %v7284_v52  ;;  %v5899_v12 = vunpack.i.l.bf16 %v7284_v52 }
 0x2ab   : > { %5229 = vmatmul.msk.bf16.vlgmr.msra.gmra.mxu1 %vm1828_vm13, %v1804_v21 }
 0x2ac   : > { %2574 = vmatpush.bf16.msrb.mxu1 %v7234_v5 }
 0x2ad   : > { %5997 = vrot.lane.b32.xlu2 %v7109_v60, %s6656_s25 }
 0x2ae   : > { %v7316_v31 = vpop.f32.mrf.mxu1 }
 0x2af   : > { %5942 = vrot.lane.b32.xlu0 %v7092_v2, %s6656_s25  ;;  %1434 = vrot.lane.b32.xlu1 %v7166_v63, %s6655_s11  ;;  %v1805_v2 = vpack.c.b16 %v1799_v38, %v1798_v40 }
 0x2b0   : > { %2575 = vmatpush.bf16.msrb.mxu1 %v7247_v25 }
 0x2b4   : > { %2576 = vmatpush.bf16.msrb.mxu1 %v7255_v23 }
 0x2b6   : > { %v973_v58 = vpop.f32.mrf.mxu1 }
 0x2b7   : > { %1456 = vrot.lane.b32.xlu0 %v7156_v45, %s6657_s2  ;;  %1478 = vrot.lane.b32.xlu1 %v7149_v35, %s6656_s25  ;;  %v1536_v45 = vpack.c.bf16 %v1504_v44, %v1504_v44  ;;  %v1655_v44 = vpack.c.bf16 %v5900_v26, %v5900_v26 }
 0x2b8   : > { %2577 = vmatpush.bf16.msrb.mxu1 %v7265_v49 }
 0x2b9   : > { %v1800_v35 = vunpack.c.l.b16 %v1536_v45  ;;  %v1913_v52 = vunpack.c.l.b16 %v1655_v44 }
 0x2bb   : > { %5230 = vmatmul.msk.bf16.gmra.mxu1 %vm1828_vm13, %v1805_v2  ;;  %v1806_v51 = vpack.c.b16 %v1801_v30, %v1800_v35 }
 0x2bf   : > { %1438 = vrot.lane.b32.xlu0 %v7174_v29, %s6655_s11  ;;  %1436 = vrot.lane.b32.xlu1 %v7181_v0, %s6655_s11 }
 0x2c7   : > { %1460 = vrot.lane.b32.xlu0 %v7181_v0, %s6657_s2  ;;  %1482 = vrot.lane.b32.xlu1 %v7166_v63, %s6656_s25  ;;  %v1506_v0 = vmul.f32 0.17677669, %v1358_v39  ;;  %v7293_v63 = vpop.permute.xlu2 %5907 }
 0x2c8   : > { %v5910_v53 = vunpack.i.h.bf16 %v7293_v63 }
 0x2c9   : > { %v1538_v3 = vpack.c.bf16 %v1506_v0, %v1506_v0  ;;  %v5909_v0 = vunpack.i.l.bf16 %v7293_v63 }
 0x2cb   : > { %5231 = vmatmul.msk.bf16.gmra.mxu1 %vm1828_vm13, %v1806_v51  ;;  %v1802_v41 = vunpack.c.l.b16 %v1538_v3 }
 0x2cd   : > { %v1807_v34 = vpack.c.b16 %v1803_v48, %v1802_v41 }
 0x2cf   : > { %1442 = vrot.lane.b32.xlu0 %v7191_v46, %s6655_s11  ;;  %1440 = vrot.lane.b32.xlu1 %v1358_v39, %s6655_s11  ;;  %v7299_v56 = vpop.permute.xlu2 %1430 }
 0x2d0   : > { %v1509_v44 = vmul.f32 0.17677669, %v7299_v56 }
 0x2d7   : > { %1464 = vrot.lane.b32.xlu0 %v1358_v39, %s6657_s2  ;;  %1486 = vrot.lane.b32.xlu1 %v7174_v29, %s6656_s25  ;;  %v7308_v59 = vpop.permute.xlu2 %5937 }
 0x2db   : > { %5232 = vmatmul.msk.bf16.gmra.mxu1 %vm1828_vm13, %v1807_v34 }
 0x2df   : > { %1490 = vrot.lane.b32.xlu0 %v7191_v46, %s6656_s25  ;;  %1488 = vrot.lane.b32.xlu1 %v1358_v39, %s6656_s25  ;;  %v7314_v29 = vpop.permute.xlu2 %1432  ;;  %v5895_v46 = vunpack.i.h.bf16 %v5893_v36  ;;  %v1654_v36 = vpack.c.bf16 %v5899_v12, %v5899_v12 }
 0x2e1   : > { %v1657_v62 = vpack.c.bf16 %v5895_v46, %v5895_v46  ;;  %v1912_v39 = vunpack.c.l.b16 %v1654_v36 }
 0x2e7   : > { %5947 = vrot.lane.b32.xlu0 %v7188_v42, %s6655_s11  ;;  %5957 = vrot.lane.b32.xlu1 %v7129_v22, %s6655_s11  ;;  %v7322_v4 = vpop.permute.xlu2 %1476 }
 0x2ef   : > { %5952 = vrot.lane.b32.xlu0 %v7188_v42, %s6657_s2  ;;  %5972 = vrot.lane.b32.xlu1 %v7188_v42, %s6656_s25  ;;  %v1656_v42 = vpack.c.bf16 %v5894_v32, %v5894_v32  ;;  %v7330_v43 = vpop.permute.xlu2 %1458 }
 0x2f1   : > { %v1914_v21 = vunpack.c.l.b16 %v1656_v42 }
 0x2f7   : > { %5962 = vrot.lane.b32.xlu0 %v7129_v22, %s6657_s2  ;;  %5977 = vrot.lane.b32.xlu1 %v7109_v60, %s6657_s2  ;;  %v1915_v60 = vunpack.c.l.b16 %v1657_v62  ;;  %v1919_v62 = vpack.c.b16 %v1913_v52, %v1912_v39 }
 0x2f9   : > { %v5918_v47 = vpop.permute.xlu0 %5917  ;;  %v5888_v1 = vpop.permute.xlu1 %5887 }
 0x2fa   : > { %v5920_v6 = vunpack.i.h.bf16 %v5918_v47  ;;  %v5919_v9 = vunpack.i.l.bf16 %v5918_v47  ;;  %v5890_v10 = vunpack.i.h.bf16 %v5888_v1  ;;  %v5889_v61 = vunpack.i.l.bf16 %v5888_v1 }
 0x2fc   : > { %v1667_v14 = vpack.c.bf16 %v5920_v6, %v5920_v6  ;;  %v1666_v27 = vpack.c.bf16 %v5919_v9, %v5919_v9  ;;  %v1659_v17 = vpack.c.bf16 %v5890_v10, %v5890_v10  ;;  %v1658_v20 = vpack.c.bf16 %v5889_v61, %v5889_v61 }
 0x2fd   : > { %v1653_v10 = vpack.c.bf16 %v5910_v53, %v5910_v53  ;;  %v1652_v61 = vpack.c.bf16 %v5909_v0, %v5909_v0  ;;  %v1541_v0 = vpack.c.bf16 %v1509_v44, %v1509_v44 }
 0x2fe   : > { %v2010_v18 = vunpack.c.l.b16 %v1667_v14  ;;  %v2009_v13 = vunpack.c.l.b16 %v1666_v27  ;;  %v1917_v22 = vunpack.c.l.b16 %v1659_v17  ;;  %v1916_v55 = vunpack.c.l.b16 %v1658_v20  ;;  %v7336_v17 = vpop.permute.xlu2 %1480 }
 0x2ff   : > { %6002 = vrot.lane.b32.xlu1 %v7089_v50, %s6656_s25  ;;  %v1920_v50 = vpack.c.b16 %v1915_v60, %v1914_v21  ;;  %v1938_v21 = vsel %vm1828_vm13, %v1919_v62, 0 }
 0x300   : > { %v1921_v57 = vpack.c.b16 %v1917_v22, %v1916_v55  ;;  %v2014_v16 = vpack.c.b16 %v2010_v18, %v2009_v13  ;;  %v1911_v13 = vunpack.c.l.b16 %v1653_v10  ;;  %v1910_v22 = vunpack.c.l.b16 %v1652_v61 }
 0x301   : > { %v1429_v33 = vpop.permute.xlu0 %1428  ;;  %v5903_v15 = vpop.permute.xlu1 %5902  ;;  %v1941_v35 = vsel %vm1828_vm13, %v1920_v50, 0  ;;  %v5940_v55 = vunpack.i.h.bf16 %v7308_v59  ;;  %v1891_v61 = vunpack.c.l.b16 %v1541_v0 }
 0x302   : > { %v5905_v7 = vunpack.i.h.bf16 %v5903_v15  ;;  %v5904_v37 = vunpack.i.l.bf16 %v5903_v15  ;;  %v1944_v38 = vsel %vm1828_vm13, %v1921_v57, 0  ;;  %v2037_v40 = vsel %vm1828_vm13, %v2014_v16, 0 }
 0x303   : > { %1950 = vmatpush.bf16.xpose.msra.mxu2 %v1944_v38  ;;  %2043 = vmatpush.bf16.xpose.msra.mxu3 %v2037_v40  ;;  %v5939_v15 = vunpack.i.l.bf16 %v7308_v59  ;;  %v1918_v36 = vpack.c.b16 %v1911_v13, %v1910_v22  ;;  %v1671_v59 = vpack.c.bf16 %v5940_v55, %v5940_v55 }
 0x304   : > { %v1665_v2 = vpack.c.bf16 %v5905_v7, %v5905_v7  ;;  %v1664_v11 = vpack.c.bf16 %v5904_v37, %v5904_v37  ;;  %v1508_v7 = vmul.f32 0.17677669, %v1429_v33 }
 0x305   : > { %v1670_v33 = vpack.c.bf16 %v5939_v15, %v5939_v15 }
 0x306   : > { %v2008_v45 = vunpack.c.l.b16 %v1665_v2  ;;  %v2007_v30 = vunpack.c.l.b16 %v1664_v11  ;;  %v1540_v52 = vpack.c.bf16 %v1508_v7, %v1508_v7 }
 0x308   : > { %v2013_v51 = vpack.c.b16 %v2008_v45, %v2007_v30 }
 0x309   : > { %v5928_v54 = vpop.permute.xlu0 %5927  ;;  %v5913_v3 = vpop.permute.xlu1 %5912 }
 0x30a   : > { %v5930_v48 = vunpack.i.h.bf16 %v5928_v54  ;;  %v5929_v41 = vunpack.i.l.bf16 %v5928_v54  ;;  %v5915_v34 = vunpack.i.h.bf16 %v5913_v3  ;;  %v5914_v46 = vunpack.i.l.bf16 %v5913_v3 }
 0x30b   : > { %1951 = vmatpush.bf16.xpose.msra.mxu2 %v1941_v35  ;;  %v2034_v32 = vsel %vm1828_vm13, %v2013_v51, 0 }
 0x30c   : > { %v1675_v47 = vpack.c.bf16 %v5930_v48, %v5930_v48  ;;  %v1674_v1 = vpack.c.bf16 %v5929_v41, %v5929_v41  ;;  %v1663_v6 = vpack.c.bf16 %v5915_v34, %v5915_v34  ;;  %v1662_v9 = vpack.c.bf16 %v5914_v46, %v5914_v46  ;;  %2044 = vmatpush.bf16.xpose.msra.mxu3 %v2034_v32  ;;  %v7345_v41 = vpop.permute.xlu2 %1462 }
 0x30d   : > { %v1935_v48 = vsel %vm1828_vm13, %v1918_v36, 0 }
 0x30e   : > { %v2103_v42 = vunpack.c.l.b16 %v1675_v47  ;;  %v2102_v14 = vunpack.c.l.b16 %v1674_v1  ;;  %v2006_v63 = vunpack.c.l.b16 %v1663_v6  ;;  %v2005_v27 = vunpack.c.l.b16 %v1662_v9 }
 0x30f   : > { %v2099_v47 = vunpack.c.l.b16 %v1671_v59  ;;  %v2098_v1 = vunpack.c.l.b16 %v1670_v33  ;;  %v1890_v6 = vunpack.c.l.b16 %v1540_v52 }
 0x310   : > { %v2012_v20 = vpack.c.b16 %v2006_v63, %v2005_v27  ;;  %v2107_v18 = vpack.c.b16 %v2103_v42, %v2102_v14 }
 0x311   : > { %v5933_v58 = vpop.permute.xlu0 %5932  ;;  %v5923_v60 = vpop.permute.xlu1 %5922  ;;  %v1898_v14 = vpack.c.b16 %v1891_v61, %v1890_v6  ;;  %v2105_v27 = vpack.c.b16 %v2099_v47, %v2098_v1 }
 0x312   : > { %v5935_v57 = vunpack.i.h.bf16 %v5933_v58  ;;  %v5934_v16 = vunpack.i.l.bf16 %v5933_v58  ;;  %v5925_v26 = vunpack.i.h.bf16 %v5923_v60  ;;  %v5924_v12 = vunpack.i.l.bf16 %v5923_v60 }
 0x313   : > { %1952 = vmatpush.bf16.xpose.msra.mxu2 %v1938_v21  ;;  %v2031_v37 = vsel %vm1828_vm13, %v2012_v20, 0  ;;  %v2130_v38 = vsel %vm1828_vm13, %v2107_v18, 0  ;;  %v2124_v21 = vsel %vm1828_vm13, %v2105_v27, 0 }
 0x314   : > { %v1661_v40 = vpack.c.bf16 %v5935_v57, %v5935_v57  ;;  %v1660_v2 = vpack.c.bf16 %v5934_v16, %v5934_v16  ;;  %v1673_v11 = vpack.c.bf16 %v5925_v26, %v5925_v26  ;;  %v1672_v50 = vpack.c.bf16 %v5924_v12, %v5924_v12  ;;  %2045 = vmatpush.bf16.xpose.msra.mxu3 %v2031_v37  ;;  %v7353_v55 = vpop.permute.xlu2 %1484 }
 0x315   : > { %2136 = vmatpush.bf16.xpose.msrb.mxu0 %v2130_v38  ;;  %v1510_v57 = vmul.f32 0.17677669, %v7314_v29  ;;  %v1519_v16 = vmul.f32 0.17677669, %v7330_v43 }
 0x316   : > { %v2004_v45 = vunpack.c.l.b16 %v1661_v40  ;;  %v2003_v30 = vunpack.c.l.b16 %v1660_v2  ;;  %v2101_v35 = vunpack.c.l.b16 %v1673_v11  ;;  %v2100_v51 = vunpack.c.l.b16 %v1672_v50 }
 0x317   : > { %v1551_v11 = vpack.c.bf16 %v1519_v16, %v1519_v16 }
 0x318   : > { %v2011_v39 = vpack.c.b16 %v2004_v45, %v2003_v30  ;;  %v2106_v53 = vpack.c.b16 %v2101_v35, %v2100_v51 }
 0x319   : > { %v1455_v54 = vpop.permute.xlu0 %1454  ;;  %v1453_v3 = vpop.permute.xlu1 %1452  ;;  %v1986_v51 = vunpack.c.l.b16 %v1551_v11 }
 0x31a   : > { %v1517_v34 = vmul.f32 0.17677669, %v1455_v54  ;;  %v1516_v56 = vmul.f32 0.17677669, %v1453_v3  ;;  %v2028_v46 = vsel %vm1828_vm13, %v2011_v39, 0  ;;  %v2127_v32 = vsel %vm1828_vm13, %v2106_v53, 0 }
 0x31b   : > { %1953 = vmatpush.bf16.xpose.msra.mxu2 %v1935_v48 }
 0x31c   : > { %v1549_v9 = vpack.c.bf16 %v1517_v34, %v1517_v34  ;;  %v1548_v10 = vpack.c.bf16 %v1516_v56, %v1516_v56  ;;  %2046 = vmatpush.bf16.xpose.msra.mxu3 %v2028_v46  ;;  %v1526_v56 = vmul.f32 0.17677669, %v7336_v17  ;;  %v1521_v46 = vmul.f32 0.17677669, %v7345_v41 }
 0x31d   : > { %2137 = vmatpush.bf16.xpose.msrb.mxu0 %v2127_v32 }
 0x31e   : > { %v1984_v62 = vunpack.c.l.b16 %v1549_v9  ;;  %v1983_v42 = vunpack.c.l.b16 %v1548_v10  ;;  %v1558_v61 = vpack.c.bf16 %v1526_v56, %v1526_v56 }
 0x320   : > { %v1991_v63 = vpack.c.b16 %v1984_v62, %v1983_v42  ;;  %v1553_v62 = vpack.c.bf16 %v1521_v46, %v1521_v46 }
 0x321   : > { %v5943_v20 = vpop.permute.xlu0 %5942  ;;  %v1435_v18 = vpop.permute.xlu1 %1434 }
 0x322   : > { %v5945_v13 = vunpack.i.h.bf16 %v5943_v20  ;;  %v5944_v22 = vunpack.i.l.bf16 %v5943_v20  ;;  %5233 = vmatmul.msk.bf16.vlgmr.msra.gmra.mxu2 %vm1828_vm13, %v1898_v14  ;;  %v1511_v60 = vmul.f32 0.17677669, %v1435_v18  ;;  %v1988_v17 = vunpack.c.l.b16 %v1553_v62 }
 0x323   : > { %5752 = vmatpush.bf16.xpose.msrb.mxu2 %v2130_v38  ;;  %5237 = vmatmul.msk.bf16.vlgmr.msra.gmra.mxu3 %vm1828_vm13, %v1991_v63  ;;  %v1542_v38 = vpack.c.bf16 %v1510_v57, %v1510_v57 }
 0x324   : > { %5756 = vmatpush.bf16.msrb.mxu3 %v7234_v5  ;;  %v1669_v58 = vpack.c.bf16 %v5945_v13, %v5945_v13  ;;  %v1668_v5 = vpack.c.bf16 %v5944_v22, %v5944_v22  ;;  %v1543_v15 = vpack.c.bf16 %v1511_v60, %v1511_v60  ;;  %v2078_v13 = vunpack.c.l.b16 %v1558_v61 }
 0x325   : > { %2138 = vmatpush.bf16.xpose.msrb.mxu0 %v2124_v21  ;;  %v1892_v30 = vunpack.c.l.b16 %v1542_v38 }
 0x326   : > { %v2097_v26 = vunpack.c.l.b16 %v1669_v58  ;;  %v2096_v12 = vunpack.c.l.b16 %v1668_v5  ;;  %v1893_v44 = vunpack.c.l.b16 %v1543_v15  ;;  %v1528_v15 = vmul.f32 0.17677669, %v7353_v55 }
 0x328   : > { %5757 = vmatpush.bf16.msrb.mxu3 %v7247_v25  ;;  %v1524_v25 = vmul.f32 0.17677669, %v7322_v4  ;;  %v7360_v7 = vpop.f32.mrf.mxu1  ;;  %v2104_v37 = vpack.c.b16 %v2097_v26, %v2096_v12  ;;  %v1899_v52 = vpack.c.b16 %v1893_v44, %v1892_v30  ;;  %v1560_v11 = vpack.c.bf16 %v1528_v15, %v1528_v15 }
 0x329   : > { %v1457_v2 = vpop.permute.xlu0 %1456  ;;  %v1479_v29 = vpop.permute.xlu1 %1478  ;;  %v2162_v4 = vsel %vm2161_vm14, %v7360_v7, -inf }
 0x32a   : > { %v1556_v40 = vpack.c.bf16 %v1524_v25, %v1524_v25  ;;  %v1525_v50 = vmul.f32 0.17677669, %v1479_v29  ;;  %2163 = vmax.xlane.f32.xlu0 %v2162_v4  ;;  %v2121_v43 = vsel %vm1828_vm13, %v2104_v37, 0 }
 0x32b   : > { %5753 = vmatpush.bf16.xpose.msrb.mxu2 %v2127_v32 }
 0x32c   : > { %5758 = vmatpush.bf16.msrb.mxu3 %v7255_v23  ;;  %v1518_v23 = vmul.f32 0.17677669, %v1457_v2  ;;  %v1557_v45 = vpack.c.bf16 %v1525_v50, %v1525_v50  ;;  %v2076_v35 = vunpack.c.l.b16 %v1556_v40 }
 0x32d   : > { %2139 = vmatpush.bf16.xpose.msrb.mxu0 %v2121_v43 }
 0x32e   : > { %v1550_v36 = vpack.c.bf16 %v1518_v23, %v1518_v23  ;;  %v2077_v33 = vunpack.c.l.b16 %v1557_v45 }
 0x330   : > { %5759 = vmatpush.bf16.msrb.mxu3 %v7265_v49  ;;  %v1467_v49 = vpop.permute.xlu2 %1466  ;;  %v1985_v59 = vunpack.c.l.b16 %v1550_v36  ;;  %v2084_v53 = vpack.c.b16 %v2077_v33, %v2076_v35  ;;  %v7366_v0 = vpop.f32.mrf.mxu1 }
 0x331   : > { %v1439_v54 = vpop.permute.xlu0 %1438  ;;  %v1437_v3 = vpop.permute.xlu1 %1436  ;;  %v1523_v37 = vmul.f32 0.17677669, %v1467_v49 }
 0x332   : > { %v1992_v39 = vpack.c.b16 %v1986_v51, %v1985_v59  ;;  %5234 = vmatmul.msk.bf16.gmra.mxu2 %vm1828_vm13, %v1899_v52  ;;  %v1513_v48 = vmul.f32 0.17677669, %v1439_v54  ;;  %v1512_v34 = vmul.f32 0.17677669, %v1437_v3  ;;  %v2080_v51 = vunpack.c.l.b16 %v1560_v11 }
 0x333   : > { %5754 = vmatpush.bf16.xpose.msrb.mxu2 %v2124_v21  ;;  %v1555_v23 = vpack.c.bf16 %v1523_v37, %v1523_v37 }
 0x334   : > { %5238 = vmatmul.msk.bf16.gmra.mxu3 %vm1828_vm13, %v1992_v39  ;;  %5241 = vmatmul.msk.bf16.vlgmr.msrb.gmra.mxu0 %vm1828_vm13, %v2084_v53  ;;  %v1545_v47 = vpack.c.bf16 %v1513_v48, %v1513_v48  ;;  %v1544_v1 = vpack.c.bf16 %v1512_v34, %v1512_v34 }
 0x335   : > { %v1990_v59 = vunpack.c.l.b16 %v1555_v23 }
 0x336   : > { %v1895_v63 = vunpack.c.l.b16 %v1545_v47  ;;  %v1894_v27 = vunpack.c.l.b16 %v1544_v1 }
 0x338   : > { %v7373_v32 = vpop.permute.xlu2 %5967  ;;  %v7375_v6 = vpop.f32.mrf.mxu1  ;;  %v1900_v58 = vpack.c.b16 %v1895_v63, %v1894_v27 }
 0x339   : > { %v1461_v9 = vpop.permute.xlu0 %1460  ;;  %v1483_v10 = vpop.permute.xlu1 %1482  ;;  %v5970_v46 = vunpack.i.h.bf16 %v7373_v32 }
 0x33a   : > { %v1520_v42 = vmul.f32 0.17677669, %v1461_v9  ;;  %v1527_v14 = vmul.f32 0.17677669, %v1483_v10 }
 0x33b   : > { %5755 = vmatpush.bf16.xpose.msrb.mxu2 %v2121_v43 }
 0x33c   : > { %v1552_v20 = vpack.c.bf16 %v1520_v42, %v1520_v42  ;;  %v1559_v18 = vpack.c.bf16 %v1527_v14, %v1527_v14 }
 0x33e   : > { %v1987_v22 = vunpack.c.l.b16 %v1552_v20  ;;  %v2079_v41 = vunpack.c.l.b16 %v1559_v18  ;;  %v1767_v20 = vpack.c.bf16 %v5970_v46, %v5970_v46  ;;  %v5969_v18 = vunpack.i.l.bf16 %v7373_v32 }
 0x340   : > { %v1993_v5 = vpack.c.b16 %v1988_v17, %v1987_v22  ;;  %v2085_v60 = vpack.c.b16 %v2079_v41, %v2078_v13  ;;  %v7377_v21 = vpop.f32.mrf.mxu1  ;;  %v7379_v16 = vpop.permute.xlu2 %5982  ;;  %v1766_v15 = vpack.c.bf16 %v5969_v18, %v5969_v18 }
 0x341   : > { %v1443_v57 = vpop.permute.xlu0 %1442  ;;  %v1441_v25 = vpop.permute.xlu1 %1440  ;;  %v5985_v37 = vunpack.i.h.bf16 %v7379_v16 }
 0x342   : > { %5235 = vmatmul.msk.bf16.gmra.mxu2 %vm1828_vm13, %v1900_v58  ;;  %v1515_v26 = vmul.f32 0.17677669, %v1443_v57  ;;  %v1514_v12 = vmul.f32 0.17677669, %v1441_v25 }
 0x344   : > { %5239 = vmatmul.msk.bf16.gmra.mxu3 %vm1828_vm13, %v1993_v5  ;;  %5242 = vmatmul.msk.bf16.gmra.mxu0 %vm1828_vm13, %v2085_v60  ;;  %v1547_v38 = vpack.c.bf16 %v1515_v26, %v1515_v26  ;;  %v1546_v40 = vpack.c.bf16 %v1514_v12, %v1514_v12  ;;  %v2630_v12 = vunpack.c.l.b16 %v1767_v20 }
 0x346   : > { %v1897_v36 = vunpack.c.l.b16 %v1547_v38  ;;  %v1896_v45 = vunpack.c.l.b16 %v1546_v40  ;;  %v5984_v38 = vunpack.i.l.bf16 %v7379_v16  ;;  %v2629_v16 = vunpack.c.l.b16 %v1766_v15 }
 0x348   : > { %v7385_v2 = vpop.f32.mrf.mxu1  ;;  %v5988_v44 = vpop.permute.xlu2 %5987  ;;  %v1901_v49 = vpack.c.b16 %v1897_v36, %v1896_v45 }
 0x349   : > { %v1465_v29 = vpop.permute.xlu0 %1464  ;;  %v1487_v4 = vpop.permute.xlu1 %1486  ;;  %v5990_v13 = vunpack.i.h.bf16 %v5988_v44  ;;  %v5989_v5 = vunpack.i.l.bf16 %v5988_v44 }
 0x34a   : > { %v1522_v50 = vmul.f32 0.17677669, %v1465_v29  ;;  %v1529_v43 = vmul.f32 0.17677669, %v1487_v4 }
 0x34b   : > { %v1785_v40 = vpack.c.bf16 %v5990_v13, %v5990_v13  ;;  %v1784_v23 = vpack.c.bf16 %v5989_v5, %v5989_v5 }
 0x34c   : > { %v1554_v30 = vpack.c.bf16 %v1522_v50, %v1522_v50  ;;  %v1561_v35 = vpack.c.bf16 %v1529_v43, %v1529_v43 }
 0x34d   : > { %v2801_v46 = vunpack.c.l.b16 %v1784_v23 }
 0x34e   : > { %v1989_v33 = vunpack.c.l.b16 %v1554_v30  ;;  %v2081_v55 = vunpack.c.l.b16 %v1561_v35 }
 0x350   : > { %v1994_v52 = vpack.c.b16 %v1990_v59, %v1989_v33  ;;  %v2086_v39 = vpack.c.b16 %v2081_v55, %v2080_v51  ;;  %v7387_v53 = vpop.f32.mrf.mxu1  ;;  %v7392_v56 = vpop.permute.xlu2 %5992  ;;  %v1765_v33 = vpack.c.bf16 %v5985_v37, %v5985_v37 }
 0x351   : > { %v1491_v54 = vpop.permute.xlu0 %1490  ;;  %v1489_v3 = vpop.permute.xlu1 %1488 }
 0x352   : > { %5236 = vmatmul.msk.bf16.gmra.mxu2 %vm1828_vm13, %v1901_v49  ;;  %v1531_v48 = vmul.f32 0.17677669, %v1491_v54  ;;  %v1530_v34 = vmul.f32 0.17677669, %v1489_v3  ;;  %v2628_v20 = vunpack.c.l.b16 %v1765_v33 }
 0x354   : > { %5240 = vmatmul.msk.bf16.gmra.mxu3 %vm1828_vm13, %v1994_v52  ;;  %5243 = vmatmul.msk.bf16.gmra.mxu0 %vm1828_vm13, %v2086_v39  ;;  %v1563_v47 = vpack.c.bf16 %v1531_v48, %v1531_v48  ;;  %v1562_v1 = vpack.c.bf16 %v1530_v34, %v1530_v34  ;;  %v1764_v48 = vpack.c.bf16 %v5984_v38, %v5984_v38  ;;  %v2802_v34 = vunpack.c.l.b16 %v1785_v40 }
 0x356   : > { %v2083_v17 = vunpack.c.l.b16 %v1563_v47  ;;  %v2082_v22 = vunpack.c.l.b16 %v1562_v1  ;;  %v2627_v18 = vunpack.c.l.b16 %v1764_v48 }
 0x358   : > { %v7395_v9 = vpop.f32.mrf.mxu1  ;;  %v5998_v29 = vpop.permute.xlu2 %5997  ;;  %v2087_v4 = vpack.c.b16 %v2083_v17, %v2082_v22  ;;  %v2636_v22 = vpack.c.b16 %v2630_v12, %v2629_v16 }
 0x359   : > { %v5948_v10 = vpop.permute.xlu0 %5947  ;;  %v5958_v61 = vpop.permute.xlu1 %5957  ;;  %v2180_v62 = vsel %vm2161_vm14, %v7395_v9, -inf  ;;  %v6000_v55 = vunpack.i.h.bf16 %v5998_v29  ;;  %v5999_v49 = vunpack.i.l.bf16 %v5998_v29 }
 0x35a   : > { %v5950_v42 = vunpack.i.h.bf16 %v5948_v10  ;;  %v5949_v14 = vunpack.i.l.bf16 %v5948_v10  ;;  %v5960_v63 = vunpack.i.h.bf16 %v5958_v61  ;;  %v5959_v27 = vunpack.i.l.bf16 %v5958_v61  ;;  %2181 = vmax.xlane.f32.xlu2 %v2180_v62 }
 0x35c   : > { %v1771_v41 = vpack.c.bf16 %v5950_v42, %v5950_v42  ;;  %v1770_v58 = vpack.c.bf16 %v5949_v14, %v5949_v14  ;;  %v1769_v60 = vpack.c.bf16 %v5960_v63, %v5960_v63  ;;  %v1768_v57 = vpack.c.bf16 %v5959_v27, %v5959_v27 }
 0x35d   : > { %v1783_v42 = vpack.c.bf16 %v6000_v55, %v6000_v55  ;;  %v1782_v14 = vpack.c.bf16 %v5999_v49, %v5999_v49 }
 0x35e   : > { %v2634_v25 = vunpack.c.l.b16 %v1771_v41  ;;  %v2633_v26 = vunpack.c.l.b16 %v1770_v58  ;;  %v2632_v50 = vunpack.c.l.b16 %v1769_v60  ;;  %v2631_v43 = vunpack.c.l.b16 %v1768_v57 }
 0x35f   : > { %v2807_v41 = vpack.c.b16 %v2802_v34, %v2801_v46  ;;  %v2800_v15 = vunpack.c.l.b16 %v1783_v42  ;;  %v2799_v37 = vunpack.c.l.b16 %v1782_v14 }
 0x360   : > { %v2638_v32 = vpack.c.b16 %v2634_v25, %v2633_v26  ;;  %v7402_v11 = vpop.f32.mrf.mxu1  ;;  %v2637_v47 = vpack.c.b16 %v2632_v50, %v2631_v43  ;;  %v5995_v25 = vunpack.i.h.bf16 %v7392_v56  ;;  %v5994_v26 = vunpack.i.l.bf16 %v7392_v56 }
 0x361   : > { %v5953_v44 = vpop.permute.xlu0 %5952  ;;  %v5973_v36 = vpop.permute.xlu1 %5972  ;;  %v2183_v45 = vsel %vm2161_vm14, %v7402_v11, -inf }
 0x362   : > { %v5955_v30 = vunpack.i.h.bf16 %v5953_v44  ;;  %v5954_v35 = vunpack.i.l.bf16 %v5953_v44  ;;  %v5975_v51 = vunpack.i.h.bf16 %v5973_v36  ;;  %v5974_v59 = vunpack.i.l.bf16 %v5973_v36  ;;  %5244 = vmatmul.msk.bf16.vlgmr.msrb.gmra.mxu2 %vm1828_vm13, %v2087_v4  ;;  %2184 = vmax.xlane.f32.xlu1 %v2183_v45 }
 0x363   : > { %2659 = vmatpush.bf16.msra.mxu2 %v2638_v32  ;;  %v2635_v32 = vpack.c.b16 %v2628_v20, %v2627_v18  ;;  %v1773_v50 = vpack.c.bf16 %v5995_v25, %v5995_v25  ;;  %v1772_v43 = vpack.c.bf16 %v5994_v26, %v5994_v26 }
 0x364   : > { %v1779_v52 = vpack.c.bf16 %v5955_v30, %v5955_v30  ;;  %v1778_v39 = vpack.c.bf16 %v5954_v35, %v5954_v35  ;;  %v1787_v54 = vpack.c.bf16 %v5975_v51, %v5975_v51  ;;  %v1786_v3 = vpack.c.bf16 %v5974_v59, %v5974_v59 }
 0x365   : > { %v2806_v30 = vpack.c.b16 %v2800_v15, %v2799_v37  ;;  %v2713_v59 = vunpack.c.l.b16 %v1773_v50  ;;  %v2712_v16 = vunpack.c.l.b16 %v1772_v43 }
 0x366   : > { %v2719_v1 = vunpack.c.l.b16 %v1779_v52  ;;  %v2718_v10 = vunpack.c.l.b16 %v1778_v39  ;;  %v2804_v61 = vunpack.c.l.b16 %v1787_v54  ;;  %v2803_v62 = vunpack.c.l.b16 %v1786_v3 }
 0x367   : > { %2660 = vmatpush.bf16.msra.mxu2 %v2637_v47  ;;  %v2720_v54 = vpack.c.b16 %v2713_v59, %v2712_v16 }
 0x368   : > { %v2723_v63 = vpack.c.b16 %v2719_v1, %v2718_v10  ;;  %v2808_v27 = vpack.c.b16 %v2804_v61, %v2803_v62 }
 0x369   : > { %v5963_v13 = vpop.permute.xlu0 %5962  ;;  %v5978_v17 = vpop.permute.xlu1 %5977 }
 0x36a   : > { %v5965_v58 = vunpack.i.h.bf16 %v5963_v13  ;;  %v5964_v5 = vunpack.i.l.bf16 %v5963_v13  ;;  %v5980_v60 = vunpack.i.h.bf16 %v5978_v17  ;;  %v5979_v57 = vunpack.i.l.bf16 %v5978_v17  ;;  %2744 = vmatpush.bf16.msra.mxu3 %v2723_v63  ;;  %2829 = vmatpush.bf16.msra.mxu0 %v2808_v27 }
 0x36b   : > { %2661 = vmatpush.bf16.msra.mxu2 %v2636_v22 }
 0x36c   : > { %v1777_v38 = vpack.c.bf16 %v5965_v58, %v5965_v58  ;;  %v1776_v40 = vpack.c.bf16 %v5964_v5, %v5964_v5  ;;  %v1775_v29 = vpack.c.bf16 %v5980_v60, %v5980_v60  ;;  %v1774_v4 = vpack.c.bf16 %v5979_v57, %v5979_v57 }
 0x36e   : > { %v2717_v12 = vunpack.c.l.b16 %v1777_v38  ;;  %v2716_v23 = vunpack.c.l.b16 %v1776_v40  ;;  %2830 = vmatpush.bf16.msra.mxu0 %v2807_v41  ;;  %v2715_v44 = vunpack.c.l.b16 %v1775_v29  ;;  %v2714_v36 = vunpack.c.l.b16 %v1774_v4 }
 0x36f   : > { %2662 = vmatpush.bf16.msra.mxu2 %v2635_v32  ;;  %v2171_v29 = vsel %vm2161_vm14, %v7377_v21, -inf }
 0x370   : > { %v2722_v45 = vpack.c.b16 %v2717_v12, %v2716_v23  ;;  %v2721_v49 = vpack.c.b16 %v2715_v44, %v2714_v36 }
 0x371   : > { %v6003_v35 = vpop.permute.xlu1 %6002 }
 0x372   : > { %v6005_v56 = vunpack.i.h.bf16 %v6003_v35  ;;  %v6004_v51 = vunpack.i.l.bf16 %v6003_v35  ;;  %2745 = vmatpush.bf16.msra.mxu3 %v2722_v45  ;;  %2831 = vmatpush.bf16.msra.mxu0 %v2806_v30 }
 0x374   : > { %v1781_v33 = vpack.c.bf16 %v6005_v56, %v6005_v56  ;;  %v1780_v55 = vpack.c.bf16 %v6004_v51, %v6004_v51 }
 0x376   : > { %v2798_v52 = vunpack.c.l.b16 %v1781_v33  ;;  %v2797_v39 = vunpack.c.l.b16 %v1780_v55  ;;  %2746 = vmatpush.bf16.msra.mxu3 %v2721_v49 }
 0x378   : > { %v2805_v3 = vpack.c.b16 %v2798_v52, %v2797_v39 }
 0x37a   : > { %2747 = vmatpush.bf16.msra.mxu3 %v2720_v54  ;;  %2832 = vmatpush.bf16.msra.mxu0 %v2805_v3 }
 0x39d   : > { %v2164_v43 = vpop.xlane.xlu0 %2163 }
 0x39e   : > { %v2258_v30 = vsub.f32 %v7360_v7, %v2164_v43 }
 0x3a0   : > { %v2290_v16 = vmul.f32 1.442695, %v2258_v30 }
 0x3a5   : > { %v7409_v48 = vpop.f32.mrf.mxu2 }
 0x3a6   : > { %v7411_v34 = vpop.f32.mrf.mxu3  ;;  %v2186_v27 = vsel %vm2161_vm14, %v7409_v48, -inf }
 0x3a7   : > { %v2210_v46 = vsel %vm2161_vm14, %v7411_v34, -inf }
 0x3a8   : > { %2211 = vmax.xlane.f32.xlu2 %v2210_v46 }
 0x3ad   : > { %v7415_v47 = vpop.f32.mrf.mxu2 }
 0x3ae   : > { %v2189_v1 = vsel %vm2161_vm14, %v7415_v47, -inf  ;;  %v7423_v62 = vpop.f32.mrf.mxu3 }
 0x3af   : > { %v2213_v14 = vsel %vm2161_vm14, %v7423_v62, -inf }
 0x3b0   : > { %2190 = vmax.xlane.f32.xlu2 %v2189_v1 }
 0x3b1   : > { %v7419_v10 = vpop.f32.mrf.mxu0 }
 0x3b2   : > { %v2234_v61 = vsel %vm2161_vm14, %v7419_v10, -inf }
 0x3b3   : > { %2235 = vmax.xlane.f32.xlu0 %v2234_v61 }
 0x3b5   : > { %v7425_v42 = vpop.f32.mrf.mxu2 }
 0x3b6   : > { %v2192_v13 = vsel %vm2161_vm14, %v7425_v42, -inf }
 0x3b7   : > { %v7445_v58 = vpop.f32.mrf.mxu3 }
 0x3b8   : > { %2214 = vmax.xlane.f32.xlu2 %v2213_v14  ;;  %v2216_v60 = vsel %vm2161_vm14, %v7445_v58, -inf }
 0x3b9   : > { %v7429_v63 = vpop.f32.mrf.mxu0 }
 0x3ba   : > { %v2237_v20 = vsel %vm2161_vm14, %v7429_v63, -inf }
 0x3bb   : > { %2187 = vmax.xlane.f32.xlu0 %v2186_v27  ;;  %2238 = vmax.xlane.f32.xlu1 %v2237_v20 }
 0x3bd   : > { %v7435_v18 = vpop.f32.mrf.mxu2 }
 0x3be   : > { %v2195_v40 = vsel %vm2161_vm14, %v7435_v18, -inf }
 0x3bf   : > { %v7462_v4 = vpop.f32.mrf.mxu3 }
 0x3c0   : > { %2193 = vmax.xlane.f32.xlu2 %v2192_v13  ;;  %v2219_v44 = vsel %vm2161_vm14, %v7462_v4, -inf  ;;  %v2165_v13 = vsel %vm2161_vm14, %v7366_v0, -inf }
 0x3c1   : > { %v7439_v17 = vpop.f32.mrf.mxu0 }
 0x3c2   : > { %v2240_v22 = vsel %vm2161_vm14, %v7439_v17, -inf }
 0x3c3   : > { %2241 = vmax.xlane.f32.xlu0 %v2240_v22 }
 0x3c5   : > { %v7443_v41 = vpop.f32.mrf.mxu2 }
 0x3c6   : > { %v2198_v1 = vsel %vm2161_vm14, %v7443_v41, -inf }
 0x3c7   : > { %v7476_v35 = vpop.f32.mrf.mxu3 }
 0x3c8   : > { %v2222_v20 = vsel %vm2161_vm14, %v7476_v35, -inf }
 0x3c9   : > { %v7447_v5 = vpop.f32.mrf.mxu0 }
 0x3ca   : > { %v2243_v57 = vsel %vm2161_vm14, %v7447_v5, -inf }
 0x3cb   : > { %2217 = vmax.xlane.f32.xlu0 %v2216_v60  ;;  %2244 = vmax.xlane.f32.xlu1 %v2243_v57  ;;  %v2168_v60 = vsel %vm2161_vm14, %v7375_v6, -inf }
 0x3cd   : > { %v7453_v25 = vpop.f32.mrf.mxu2  ;;  %v2182_v26 = vpop.xlane.xlu2 %2181 }
 0x3ce   : > { %v2264_v15 = vsub.f32 %v7395_v9, %v2182_v26  ;;  %v2201_v55 = vsel %vm2161_vm14, %v7453_v25, -inf }
 0x3cf   : > { %v7496_v46 = vpop.f32.mrf.mxu3 }
 0x3d0   : > { %v2302_v38 = vmul.f32 1.442695, %v2264_v15  ;;  %v2225_v61 = vsel %vm2161_vm14, %v7496_v46, -inf }
 0x3d1   : > { %v7456_v37 = vpop.f32.mrf.mxu0 }
 0x3d2   : > { %6030 = vpow2.f32 %v2302_v38  ;;  %v2246_v7 = vsel %vm2161_vm14, %v7456_v37, -inf }
 0x3d3   : > { %2196 = vmax.xlane.f32.xlu0 %v2195_v40  ;;  %2172 = vmax.xlane.f32.xlu1 %v2171_v29 }
 0x3d5   : > { %v7464_v32 = vpop.f32.mrf.mxu2  ;;  %v2185_v12 = vpop.xlane.xlu1 %2184 }
 0x3d6   : > { %v2265_v23 = vsub.f32 %v7402_v11, %v2185_v12  ;;  %v2204_v15 = vsel %vm2161_vm14, %v7464_v32, -inf  ;;  %v2174_v12 = vsel %vm2161_vm14, %v7385_v2, -inf }
 0x3d7   : > { %v7511_v22 = vpop.f32.mrf.mxu3 }
 0x3d8   : > { %v2304_v9 = vmul.f32 1.442695, %v2265_v23  ;;  %v7473_v45 = vpop.eup %6030  ;;  %v2228_v57 = vsel %vm2161_vm14, %v7511_v22, -inf  ;;  %v2177_v23 = vsel %vm2161_vm14, %v7387_v53, -inf }
 0x3d9   : > { %v7467_v50 = vpop.f32.mrf.mxu0  ;;  %v2488_v51 = vpack.c.bf16 %v7473_v45, %v7473_v45 }
 0x3da   : > { %6032 = vpow2.f32 %v2304_v9  ;;  %v2249_v36 = vsel %vm2161_vm14, %v7467_v50, -inf }
 0x3db   : > { %2220 = vmax.xlane.f32.xlu0 %v2219_v44  ;;  %2250 = vmax.xlane.f32.xlu2 %v2249_v36  ;;  %v2528_v49 = vunpack.c.l.b16 %v2488_v51  ;;  %6034 = vpow2.f32 %v2290_v16 }
 0x3dd   : > { %v7478_v11 = vpop.f32.mrf.mxu2 }
 0x3de   : > { %v2207_v56 = vsel %vm2161_vm14, %v7478_v11, -inf }
 0x3df   : > { %2208 = vmax.xlane.f32.xlu1 %v2207_v56  ;;  %v7523_v40 = vpop.f32.mrf.mxu3 }
 0x3e0   : > { %v7484_v59 = vpop.eup %6032  ;;  %v2231_v29 = vsel %vm2161_vm14, %v7523_v40, -inf }
 0x3e1   : > { %v2489_v33 = vpack.c.bf16 %v7484_v59, %v7484_v59  ;;  %v7503_v14 = vpop.eup %6034 }
 0x3e2   : > { %v2354_v27 = vsel %vm2161_vm14, %v7503_v14, 0.0 }
 0x3e3   : > { %v2529_v52 = vunpack.c.l.b16 %v2489_v33  ;;  %2247 = vmax.xlane.f32.xlu0 %v2246_v7  ;;  %2202 = vmax.xlane.f32.xlu2 %v2201_v55 }
 0x3e5   : > { %v2533_v39 = vpack.c.b16 %v2529_v52, %v2528_v49  ;;  %v7492_v54 = vpop.f32.mrf.mxu2 }
 0x3e6   : > { %v2252_v3 = vsel %vm2161_vm14, %v7492_v54, -inf }
 0x3e7   : > { %2253 = vmax.xlane.f32.xlu1 %v2252_v3  ;;  %5248 = vmatmul.msk.bf16.vlgmr.msrb.gmra.mxu3 %vm2161_vm14, %v2533_v39 }
 0x3eb   : > { %2199 = vmax.xlane.f32.xlu0 %v2198_v1  ;;  %2226 = vmax.xlane.f32.xlu2 %v2225_v61 }
 0x3ed   : > { %v7517_v26 = vpop.f32.mrf.mxu2 }
 0x3ee   : > { %v2255_v38 = vsel %vm2161_vm14, %v7517_v26, -inf }
 0x3ef   : > { %2355 = vadd.xlane.f32.xlu1 %v2354_v27 }
 0x3f3   : > { %2223 = vmax.xlane.f32.xlu0 %v2222_v20  ;;  %2166 = vmax.xlane.f32.xlu2 %v2165_v13 }
 0x3fb   : > { %2169 = vmax.xlane.f32.xlu0 %v2168_v60  ;;  %2229 = vmax.xlane.f32.xlu2 %v2228_v57 }
 0x403   : > { %2205 = vmax.xlane.f32.xlu0 %v2204_v15  ;;  %2256 = vmax.xlane.f32.xlu2 %v2255_v38 }
 0x40b   : > { %2232 = vmax.xlane.f32.xlu0 %v2231_v29  ;;  %2175 = vmax.xlane.f32.xlu2 %v2174_v12 }
 0x413   : > { %2178 = vmax.xlane.f32.xlu0 %v2177_v23 }
 0x41b   : > { %v2212_v9 = vpop.xlane.xlu2 %2211 }
 0x41c   : > { %v2274_v44 = vsub.f32 %v7411_v34, %v2212_v9 }
 0x41e   : > { %v2322_v51 = vmul.f32 1.442695, %v2274_v44 }
 0x420   : > { %6036 = vpow2.f32 %v2322_v51 }
 0x423   : > { %v2191_v43 = vpop.xlane.xlu2 %2190 }
 0x424   : > { %v2267_v36 = vsub.f32 %v7415_v47, %v2191_v43 }
 0x426   : > { %v2236_v30 = vpop.xlane.xlu0 %2235  ;;  %v2308_v16 = vmul.f32 1.442695, %v2267_v36 }
 0x427   : > { %v2282_v56 = vsub.f32 %v7419_v10, %v2236_v30  ;;  %v7537_v10 = vpop.eup %6036 }
 0x428   : > { %6038 = vpow2.f32 %v2308_v16 }
 0x429   : > { %v2338_v33 = vmul.f32 1.442695, %v2282_v56 }
 0x42b   : > { %v2215_v7 = vpop.xlane.xlu2 %2214  ;;  %6040 = vpow2.f32 %v2338_v33 }
 0x42c   : > { %v2275_v55 = vsub.f32 %v7423_v62, %v2215_v7  ;;  %v2498_v62 = vpack.c.bf16 %v7537_v10, %v7537_v10 }
 0x42e   : > { %v2324_v49 = vmul.f32 1.442695, %v2275_v55  ;;  %v2188_v52 = vpop.xlane.xlu0 %2187  ;;  %v2239_v39 = vpop.xlane.xlu1 %2238  ;;  %v2692_v15 = vunpack.c.l.b16 %v2498_v62 }
 0x42f   : > { %v2266_v3 = vsub.f32 %v7409_v48, %v2188_v52  ;;  %v2283_v34 = vsub.f32 %v7429_v63, %v2239_v39  ;;  %v7539_v61 = vpop.eup %6038 }
 0x430   : > { %6042 = vpow2.f32 %v2324_v49  ;;  %v2491_v63 = vpack.c.bf16 %v7539_v61, %v7539_v61 }
 0x431   : > { %v2306_v47 = vmul.f32 1.442695, %v2266_v3  ;;  %v2340_v1 = vmul.f32 1.442695, %v2283_v34  ;;  %v7541_v27 = vpop.eup %6040 }
 0x432   : > { %v2506_v38 = vpack.c.bf16 %v7541_v27, %v7541_v27  ;;  %v2608_v44 = vunpack.c.l.b16 %v2491_v63 }
 0x433   : > { %6044 = vpow2.f32 %v2306_v47  ;;  %v2194_v30 = vpop.xlane.xlu2 %2193 }
 0x434   : > { %6046 = vpow2.f32 %v2340_v1  ;;  %v2777_v56 = vunpack.c.l.b16 %v2506_v38  ;;  %v2268_v49 = vsub.f32 %v7425_v42, %v2194_v30 }
 0x436   : > { %v7545_v20 = vpop.eup %6042  ;;  %v2242_v13 = vpop.xlane.xlu0 %2241  ;;  %v2310_v3 = vmul.f32 1.442695, %v2268_v49 }
 0x437   : > { %v2499_v48 = vpack.c.bf16 %v7545_v20, %v7545_v20  ;;  %v2284_v60 = vsub.f32 %v7439_v17, %v2242_v13 }
 0x439   : > { %v7552_v57 = vpop.eup %6044  ;;  %v2693_v29 = vunpack.c.l.b16 %v2499_v48  ;;  %v2342_v17 = vmul.f32 1.442695, %v2284_v60 }
 0x43a   : > { %v7556_v12 = vpop.eup %6046  ;;  %v2490_v23 = vpack.c.bf16 %v7552_v57, %v7552_v57 }
 0x43b   : > { %v2700_v9 = vpack.c.b16 %v2693_v29, %v2692_v15  ;;  %v2507_v43 = vpack.c.bf16 %v7556_v12, %v7556_v12  ;;  %6048 = vpow2.f32 %v2342_v17 }
 0x43c   : > { %v2607_v36 = vunpack.c.l.b16 %v2490_v23 }
 0x43d   : > { %v2778_v51 = vunpack.c.l.b16 %v2507_v43  ;;  %5253 = vmatmul.msk.bf16.vlgmr.msra.gmra.mxu3 %vm2161_vm14, %v2700_v9 }
 0x43e   : > { %v2615_v16 = vpack.c.b16 %v2608_v44, %v2607_v36  ;;  %v2218_v33 = vpop.xlane.xlu0 %2217  ;;  %v2245_v7 = vpop.xlane.xlu1 %2244 }
 0x43f   : > { %v2785_v55 = vpack.c.b16 %v2778_v51, %v2777_v56  ;;  %v2285_v52 = vsub.f32 %v7447_v5, %v2245_v7  ;;  %v2276_v62 = vsub.f32 %v7445_v58, %v2218_v33 }
 0x440   : > { %5249 = vmatmul.msk.bf16.vlgmr.msra.gmra.mxu2 %vm2161_vm14, %v2615_v16 }
 0x441   : > { %v2344_v39 = vmul.f32 1.442695, %v2285_v52  ;;  %5257 = vmatmul.msk.bf16.vlgmr.msra.gmra.mxu0 %vm2161_vm14, %v2785_v55  ;;  %v7567_v34 = vpop.eup %6048  ;;  %v2326_v15 = vmul.f32 1.442695, %v2276_v62 }
 0x442   : > { %v2508_v63 = vpack.c.bf16 %v7567_v34, %v7567_v34 }
 0x443   : > { %6050 = vpow2.f32 %v2344_v39 }
 0x444   : > { %6052 = vpow2.f32 %v2310_v3  ;;  %v2779_v58 = vunpack.c.l.b16 %v2508_v63 }
 0x446   : > { %v2197_v47 = vpop.xlane.xlu0 %2196  ;;  %v2173_v1 = vpop.xlane.xlu1 %2172 }
 0x447   : > { %v2269_v13 = vsub.f32 %v7435_v18, %v2197_v47  ;;  %v2261_v42 = vsub.f32 %v7377_v21, %v2173_v1 }
 0x449   : > { %v2312_v5 = vmul.f32 1.442695, %v2269_v13  ;;  %v2296_v48 = vmul.f32 1.442695, %v2261_v42  ;;  %v7574_v60 = vpop.eup %6050 }
 0x44a   : > { %v2509_v38 = vpack.c.bf16 %v7574_v60, %v7574_v60  ;;  %v7578_v29 = vpop.eup %6052 }
 0x44b   : > { %6054 = vpow2.f32 %v2312_v5  ;;  %v2492_v36 = vpack.c.bf16 %v7578_v29, %v7578_v29 }
 0x44c   : > { %6056 = vpow2.f32 %v2296_v48  ;;  %v2780_v23 = vunpack.c.l.b16 %v2509_v38 }
 0x44d   : > { %6058 = vpow2.f32 %v2326_v15 }
 0x44e   : > { %v2221_v18 = vpop.xlane.xlu0 %2220  ;;  %v2251_v9 = vpop.xlane.xlu2 %2250  ;;  %v2786_v44 = vpack.c.b16 %v2780_v23, %v2779_v58 }
 0x44f   : > { %v2277_v21 = vsub.f32 %v7462_v4, %v2221_v18  ;;  %v2287_v43 = vsub.f32 %v7467_v50, %v2251_v9  ;;  %v2609_v50 = vunpack.c.l.b16 %v2492_v36 }
 0x451   : > { %v7584_v30 = vpop.eup %6054  ;;  %v2328_v17 = vmul.f32 1.442695, %v2277_v21  ;;  %5258 = vmatmul.msk.bf16.gmra.mxu0 %vm2161_vm14, %v2786_v44  ;;  %v2348_v16 = vmul.f32 1.442695, %v2287_v43 }
 0x452   : > { %v7587_v56 = vpop.eup %6056  ;;  %v2493_v51 = vpack.c.bf16 %v7584_v30, %v7584_v30  ;;  %v2209_v43 = vpop.xlane.xlu1 %2208 }
 0x453   : > { %6060 = vpow2.f32 %v2328_v17  ;;  %v2363_v4 = vsel %vm2161_vm14, %v7587_v56, 0.0  ;;  %v7593_v7 = vpop.eup %6058 }
 0x454   : > { %2364 = vadd.xlane.f32.xlu0 %v2363_v4  ;;  %v2610_v33 = vunpack.c.l.b16 %v2493_v51  ;;  %6062 = vpow2.f32 %v2348_v16  ;;  %v2500_v47 = vpack.c.bf16 %v7593_v7, %v7593_v7 }
 0x456   : > { %v2248_v55 = vpop.xlane.xlu0 %2247  ;;  %v2203_v49 = vpop.xlane.xlu2 %2202  ;;  %v2616_v52 = vpack.c.b16 %v2610_v33, %v2609_v50  ;;  %v2694_v5 = vunpack.c.l.b16 %v2500_v47 }
 0x457   : > { %v2286_v39 = vsub.f32 %v7456_v37, %v2248_v55  ;;  %v2271_v3 = vsub.f32 %v7453_v25, %v2203_v49 }
 0x458   : > { %5250 = vmatmul.msk.bf16.gmra.mxu2 %vm2161_vm14, %v2616_v52 }
 0x459   : > { %v7600_v1 = vpop.eup %6060  ;;  %v2346_v62 = vmul.f32 1.442695, %v2286_v39  ;;  %v2316_v42 = vmul.f32 1.442695, %v2271_v3 }
 0x45a   : > { %v2501_v13 = vpack.c.bf16 %v7600_v1, %v7600_v1  ;;  %v7604_v63 = vpop.eup %6062 }
 0x45b   : > { %6064 = vpow2.f32 %v2346_v62  ;;  %v2511_v23 = vpack.c.bf16 %v7604_v63, %v7604_v63 }
 0x45c   : > { %v2695_v48 = vunpack.c.l.b16 %v2501_v13  ;;  %6066 = vpow2.f32 %v2316_v42 }
 0x45d   : > { %v2782_v17 = vunpack.c.l.b16 %v2511_v23 }
 0x45e   : > { %v2200_v37 = vpop.xlane.xlu0 %2199  ;;  %v2227_v15 = vpop.xlane.xlu2 %2226  ;;  %v2701_v25 = vpack.c.b16 %v2695_v48, %v2694_v5 }
 0x45f   : > { %v2270_v38 = vsub.f32 %v7443_v41, %v2200_v37  ;;  %v2279_v58 = vsub.f32 %v7496_v46, %v2227_v15 }
 0x460   : > { %5254 = vmatmul.msk.bf16.gmra.mxu3 %vm2161_vm14, %v2701_v25 }
 0x461   : > { %v7611_v18 = vpop.eup %6064  ;;  %v2314_v9 = vmul.f32 1.442695, %v2270_v38  ;;  %v2332_v44 = vmul.f32 1.442695, %v2279_v58  ;;  %v2482_v38 = vpack.c.bf16 %v7503_v14, %v7503_v14 }
 0x462   : > { %v2510_v21 = vpack.c.bf16 %v7611_v18, %v7611_v18  ;;  %v7615_v51 = vpop.eup %6066 }
 0x463   : > { %6068 = vpow2.f32 %v2314_v9  ;;  %v2495_v33 = vpack.c.bf16 %v7615_v51, %v7615_v51 }
 0x464   : > { %v2781_v36 = vunpack.c.l.b16 %v2510_v21  ;;  %6070 = vpow2.f32 %v2332_v44 }
 0x465   : > { %v2612_v3 = vunpack.c.l.b16 %v2495_v33 }
 0x466   : > { %v2224_v41 = vpop.xlane.xlu0 %2223  ;;  %v2167_v46 = vpop.xlane.xlu2 %2166  ;;  %v2787_v16 = vpack.c.b16 %v2782_v17, %v2781_v36  ;;  %v2522_v36 = vunpack.c.l.b16 %v2482_v38 }
 0x467   : > { %v2278_v4 = vsub.f32 %v7476_v35, %v2224_v41  ;;  %v2259_v50 = vsub.f32 %v7366_v0, %v2167_v46  ;;  %v2254_v35 = vpop.xlane.xlu1 %2253  ;;  %v2273_v0 = vsub.f32 %v7478_v11, %v2209_v43 }
 0x468   : > { %5259 = vmatmul.msk.bf16.gmra.mxu0 %vm2161_vm14, %v2787_v16  ;;  %v2288_v37 = vsub.f32 %v7492_v54, %v2254_v35 }
 0x469   : > { %v7622_v55 = vpop.eup %6068  ;;  %v2330_v49 = vmul.f32 1.442695, %v2278_v4  ;;  %v2292_v52 = vmul.f32 1.442695, %v2259_v50  ;;  %v2320_v11 = vmul.f32 1.442695, %v2273_v0 }
 0x46a   : > { %v2494_v39 = vpack.c.bf16 %v7622_v55, %v7622_v55  ;;  %v7626_v62 = vpop.eup %6070  ;;  %v2350_v54 = vmul.f32 1.442695, %v2288_v37 }
 0x46b   : > { %6072 = vpow2.f32 %v2330_v49  ;;  %v2503_v15 = vpack.c.bf16 %v7626_v62, %v7626_v62 }
 0x46c   : > { %v2611_v47 = vunpack.c.l.b16 %v2494_v39  ;;  %6074 = vpow2.f32 %v2292_v52 }
 0x46d   : > { %v2697_v43 = vunpack.c.l.b16 %v2503_v15 }
 0x46e   : > { %v2170_v13 = vpop.xlane.xlu0 %2169  ;;  %v2230_v42 = vpop.xlane.xlu2 %2229  ;;  %v2617_v5 = vpack.c.b16 %v2612_v3, %v2611_v47 }
 0x46f   : > { %v2260_v48 = vsub.f32 %v7375_v6, %v2170_v13  ;;  %v2280_v4 = vsub.f32 %v7511_v22, %v2230_v42 }
 0x470   : > { %5251 = vmatmul.msk.bf16.gmra.mxu2 %vm2161_vm14, %v2617_v5 }
 0x471   : > { %v7634_v25 = vpop.eup %6072  ;;  %v2294_v58 = vmul.f32 1.442695, %v2260_v48  ;;  %v2334_v47 = vmul.f32 1.442695, %v2280_v4 }
 0x472   : > { %v6075_v23 = vpop.eup %6074  ;;  %v2502_v9 = vpack.c.bf16 %v7634_v25, %v7634_v25 }
 0x473   : > { %v2483_v21 = vpack.c.bf16 %v6075_v23, %v6075_v23  ;;  %6076 = vpow2.f32 %v2294_v58  ;;  %v2357_v6 = vsel %vm2161_vm14, %v6075_v23, 0.0  ;;  %v2485_v58 = vpack.c.bf16 %v7587_v56, %v7587_v56 }
 0x474   : > { %v2696_v44 = vunpack.c.l.b16 %v2502_v9  ;;  %2358 = vadd.xlane.f32.xlu2 %v2357_v6  ;;  %6078 = vpow2.f32 %v2320_v11  ;;  %v2426_v11 = vsel %vm2161_vm14, %v7541_v27, 0.0 }
 0x475   : > { %v2523_v17 = vunpack.c.l.b16 %v2483_v21  ;;  %6080 = vpow2.f32 %v2350_v54 }
 0x476   : > { %v2206_v41 = vpop.xlane.xlu0 %2205  ;;  %v2257_v46 = vpop.xlane.xlu2 %2256  ;;  %v2702_v14 = vpack.c.b16 %v2697_v43, %v2696_v44  ;;  %v2525_v44 = vunpack.c.l.b16 %v2485_v58  ;;  %v2438_v58 = vsel %vm2161_vm14, %v7611_v18, 0.0 }
 0x477   : > { %v2530_v16 = vpack.c.b16 %v2523_v17, %v2522_v36  ;;  %v2272_v50 = vsub.f32 %v7464_v32, %v2206_v41  ;;  %v2289_v33 = vsub.f32 %v7517_v26, %v2257_v46 }
 0x478   : > { %5255 = vmatmul.msk.bf16.gmra.mxu3 %vm2161_vm14, %v2702_v14 }
 0x479   : > { %v6077_v49 = vpop.eup %6076  ;;  %v2318_v52 = vmul.f32 1.442695, %v2272_v50  ;;  %v2352_v39 = vmul.f32 1.442695, %v2289_v33  ;;  %5245 = vmatmul.msk.bf16.vlgmr.msrb.gmra.mxu1 %vm2161_vm14, %v2530_v16 }
 0x47a   : > { %v2360_v3 = vsel %vm2161_vm14, %v6077_v49, 0.0  ;;  %v7647_v35 = vpop.eup %6078  ;;  %v2484_v42 = vpack.c.bf16 %v6077_v49, %v6077_v49 }
 0x47b   : > { %6082 = vpow2.f32 %v2318_v52  ;;  %v7649_v22 = vpop.eup %6080  ;;  %v2497_v5 = vpack.c.bf16 %v7647_v35, %v7647_v35 }
 0x47c   : > { %6084 = vpow2.f32 %v2352_v39  ;;  %2361 = vadd.xlane.f32.xlu2 %v2360_v3  ;;  %v2512_v37 = vpack.c.bf16 %v7649_v22, %v7649_v22  ;;  %v2524_v9 = vunpack.c.l.b16 %v2484_v42 }
 0x47d   : > { %6086 = vpow2.f32 %v2334_v47  ;;  %v2614_v21 = vunpack.c.l.b16 %v2497_v5 }
 0x47e   : > { %v2233_v32 = vpop.xlane.xlu0 %2232  ;;  %v2176_v26 = vpop.xlane.xlu2 %2175  ;;  %v2783_v43 = vunpack.c.l.b16 %v2512_v37  ;;  %v2531_v46 = vpack.c.b16 %v2525_v44, %v2524_v9 }
 0x47f   : > { %v2281_v0 = vsub.f32 %v7523_v40, %v2233_v32  ;;  %v2262_v13 = vsub.f32 %v7385_v2, %v2176_v26 }
 0x481   : > { %v7655_v48 = vpop.eup %6082  ;;  %v2336_v15 = vmul.f32 1.442695, %v2281_v0  ;;  %v2298_v38 = vmul.f32 1.442695, %v2262_v13  ;;  %v2432_v13 = vsel %vm2161_vm14, %v7567_v34, 0.0  ;;  %v2429_v34 = vsel %vm2161_vm14, %v7556_v12, 0.0 }
 0x482   : > { %v7661_v23 = vpop.eup %6084  ;;  %v2496_v40 = vpack.c.bf16 %v7655_v48, %v7655_v48  ;;  %v2393_v12 = vsel %vm2161_vm14, %v7615_v51, 0.0 }
 0x483   : > { %v2513_v2 = vpack.c.bf16 %v7661_v23, %v7661_v23  ;;  %6088 = vpow2.f32 %v2336_v15  ;;  %v6087_v54 = vpop.eup %6086  ;;  %v2378_v15 = vsel %vm2161_vm14, %v7552_v57, 0.0  ;;  %v2384_v57 = vsel %vm2161_vm14, %v7578_v29, 0.0 }
 0x484   : > { %v2613_v6 = vunpack.c.l.b16 %v2496_v40  ;;  %6090 = vpow2.f32 %v2298_v38  ;;  %2427 = vadd.xlane.f32.xlu2 %v2426_v11  ;;  %v2504_v16 = vpack.c.bf16 %v6087_v54, %v6087_v54  ;;  %v2387_v38 = vsel %vm2161_vm14, %v7584_v30, 0.0  ;;  %v2356_v11 = vpop.xlane.xlu1 %2355 }
 0x485   : > { %v2784_v56 = vunpack.c.l.b16 %v2513_v2  ;;  %v2408_v40 = vsel %vm2161_vm14, %v7593_v7, 0.0  ;;  %v2435_v30 = vsel %vm2161_vm14, %v7574_v60, 0.0  ;;  %v2420_v18 = vsel %vm2161_vm14, %v6087_v54, 0.0 }
 0x486   : > { %v2179_v36 = vpop.xlane.xlu0 %2178  ;;  %v2618_v17 = vpack.c.b16 %v2614_v21, %v2613_v6  ;;  %v2698_v52 = vunpack.c.l.b16 %v2504_v16  ;;  %v2414_v7 = vsel %vm2161_vm14, %v7634_v25, 0.0  ;;  %v2390_v29 = vsel %vm2161_vm14, %v7622_v55, 0.0 }
 0x487   : > { %v2263_v41 = vsub.f32 %v7387_v53, %v2179_v36  ;;  %v2788_v14 = vpack.c.b16 %v2784_v56, %v2783_v43  ;;  %v2381_v53 = vsel %vm2161_vm14, %v7539_v61, 0.0  ;;  %v2402_v61 = vsel %vm2161_vm14, %v7537_v10, 0.0  ;;  %v7727_v43 = vpop.f32.mrf.mxu3 }
 0x488   : > { %5252 = vmatmul.msk.bf16.gmra.mxu2 %vm2161_vm14, %v2618_v17  ;;  %v2405_v10 = vsel %vm2161_vm14, %v7545_v20, 0.0  ;;  %v2411_v20 = vsel %vm2161_vm14, %v7600_v1, 0.0  ;;  %v2447_v51 = vsel %vm2161_vm14, %v7661_v23, 0.0  ;;  %v2441_v60 = vsel %vm2161_vm14, %v7604_v63, 0.0 }
 0x489   : > { %v7671_v4 = vpop.eup %6088  ;;  %v2300_v27 = vmul.f32 1.442695, %v2263_v41  ;;  %5246 = vmatmul.msk.bf16.gmra.mxu1 %vm2161_vm14, %v2531_v46  ;;  %5260 = vmatmul.msk.bf16.gmra.mxu0 %vm2161_vm14, %v2788_v14  ;;  %v2417_v1 = vsel %vm2161_vm14, %v7626_v62, 0.0  ;;  %v2396_v25 = vsel %vm2161_vm14, %v7655_v48, 0.0  ;;  %v2399_v55 = vsel %vm2161_vm14, %v7647_v35, 0.0 }
 0x48a   : > { %v6091_v50 = vpop.eup %6090  ;;  %v2505_v33 = vpack.c.bf16 %v7671_v4, %v7671_v4  ;;  %v2423_v23 = vsel %vm2161_vm14, %v7671_v4, 0.0  ;;  %v2444_v63 = vsel %vm2161_vm14, %v7649_v22, 0.0 }
 0x48b   : > { %6092 = vpow2.f32 %v2300_v27  ;;  %v2366_v49 = vsel %vm2161_vm14, %v6091_v50, 0.0  ;;  %v2486_v47 = vpack.c.bf16 %v6091_v50, %v6091_v50 }
 0x48c   : > { %v2699_v39 = vunpack.c.l.b16 %v2505_v33  ;;  %2382 = vadd.xlane.f32.xlu2 %v2381_v53  ;;  %2367 = vadd.xlane.f32.xlu0 %v2366_v49  ;;  %6094 = vrcp.f32 %v2356_v11 }
 0x48d   : > { %v2526_v42 = vunpack.c.l.b16 %v2486_v47 }
 0x48e   : > { %v2703_v3 = vpack.c.b16 %v2699_v39, %v2698_v52 }
 0x48f   : > { %v7731_v50 = vpop.f32.mrf.mxu3 }
 0x490   : > { %5256 = vmatmul.msk.bf16.gmra.mxu3 %vm2161_vm14, %v2703_v3 }
 0x491   : > { %v6093_v32 = vpop.eup %6092 }
 0x492   : > { %v2369_v26 = vsel %vm2161_vm14, %v6093_v32, 0.0  ;;  %v2487_v0 = vpack.c.bf16 %v6093_v32, %v6093_v32  ;;  %v6095_v9 = vpop.eup %6094 }
 0x493   : > { %2370 = vadd.xlane.f32.xlu1 %v2369_v26 }
 0x494   : > { %2433 = vadd.xlane.f32.xlu2 %v2432_v13  ;;  %2403 = vadd.xlane.f32.xlu0 %v2402_v61  ;;  %v2527_v5 = vunpack.c.l.b16 %v2487_v0 }
 0x496   : > { %v2532_v37 = vpack.c.b16 %v2527_v5, %v2526_v42 }
 0x499   : > { %5247 = vmatmul.msk.bf16.gmra.mxu1 %vm2161_vm14, %v2532_v37 }
 0x49b   : > { %2379 = vadd.xlane.f32.xlu1 %v2378_v15 }
 0x49c   : > { %2388 = vadd.xlane.f32.xlu2 %v2387_v38  ;;  %2430 = vadd.xlane.f32.xlu0 %v2429_v34 }
 0x4a3   : > { %2406 = vadd.xlane.f32.xlu1 %v2405_v10 }
 0x4a4   : > { %2439 = vadd.xlane.f32.xlu2 %v2438_v58  ;;  %2409 = vadd.xlane.f32.xlu0 %v2408_v40 }
 0x4ab   : > { %2385 = vadd.xlane.f32.xlu1 %v2384_v57 }
 0x4ac   : > { %2394 = vadd.xlane.f32.xlu2 %v2393_v12  ;;  %2436 = vadd.xlane.f32.xlu0 %v2435_v30 }
 0x4b3   : > { %2412 = vadd.xlane.f32.xlu1 %v2411_v20 }
 0x4b4   : > { %2421 = vadd.xlane.f32.xlu2 %v2420_v18  ;;  %2415 = vadd.xlane.f32.xlu0 %v2414_v7 }
 0x4bb   : > { %2391 = vadd.xlane.f32.xlu1 %v2390_v29 }
 0x4bc   : > { %2448 = vadd.xlane.f32.xlu2 %v2447_v51  ;;  %2442 = vadd.xlane.f32.xlu0 %v2441_v60 }
 0x4be   : > { %v2834_v44 = vpop.f32.mrf.mxu0 }
 0x4c0   : > { %v2749_v32 = vpop.f32.mrf.mxu3 }
 0x4c3   : > { %2418 = vadd.xlane.f32.xlu1 %v2417_v1  ;;  %v2664_v13 = vpop.f32.mrf.mxu2 }
 0x4c4   : > { %2397 = vadd.xlane.f32.xlu0 %v2396_v25 }
 0x4c6   : > { %v2836_v15 = vpop.f32.mrf.mxu0 }
 0x4c7   : > { %v2365_v48 = vpop.xlane.xlu0 %2364 }
 0x4cb   : > { %2400 = vadd.xlane.f32.xlu1 %v2399_v55  ;;  %v2666_v29 = vpop.f32.mrf.mxu2  ;;  %v2751_v55 = vpop.f32.mrf.mxu3 }
 0x4cc   : > { %2424 = vadd.xlane.f32.xlu0 %v2423_v23 }
 0x4ce   : > { %v2839_v23 = vpop.f32.mrf.mxu0 }
 0x4d3   : > { %2445 = vadd.xlane.f32.xlu1 %v2444_v63 }
 0x4e7   : > { %v2359_v2 = vpop.xlane.xlu2 %2358 }
 0x4e8   : > { %6096 = vrcp.f32 %v2359_v2 }
 0x4ee   : > { %v6097_v56 = vpop.eup %6096 }
 0x4ef   : > { %v2362_v62 = vpop.xlane.xlu2 %2361 }
 0x4f6   : > { %v2579_v21 = vpop.f32.mrf.mxu1 }
 0x4f7   : > { %v2854_v6 = vmul.f32 %v6095_v9, %v2579_v21  ;;  %v2428_v54 = vpop.xlane.xlu2 %2427 }
 0x4f8   : > { %6098 = vrcp.f32 %v2428_v54  ;;  %v2669_v54 = vpop.f32.mrf.mxu2 }
 0x4f9   : > { %v2862_v35 = vpack.c.bf16 %v2854_v6, %v2854_v6  ;;  %6100 = vrcp.f32 %v2362_v62 }
 0x4fa   : > { %6102 = vrcp.f32 %v2365_v48 }
 0x4fb   : > { %2871 = vst.msk [vmem:[#allocation2] sm:$0xf] %vm2870_vm15, %v2862_v35 }
 0x4fe   : > { %v6099_v22 = vpop.eup %6098  ;;  %v2581_v36 = vpop.f32.mrf.mxu1 }
 0x4ff   : > { %v2855_v17 = vmul.f32 %v6097_v56, %v2581_v36  ;;  %v2368_v41 = vpop.xlane.xlu0 %2367  ;;  %v2993_v46 = vmul.f32 %v6099_v22, %v2834_v44  ;;  %v2383_v4 = vpop.xlane.xlu2 %2382 }
 0x500   : > { %v6101_v27 = vpop.eup %6100 }
 0x501   : > { %v2863_v14 = vpack.c.bf16 %v2855_v17, %v2855_v17  ;;  %v3001_v16 = vpack.c.bf16 %v2993_v46, %v2993_v46  ;;  %v6103_v47 = vpop.eup %6102  ;;  %v2754_v17 = vpop.f32.mrf.mxu3 }
 0x502   : > { %v2841_v46 = vpop.f32.mrf.mxu0 }
 0x503   : > { %2872 = vst.msk [vmem:[#allocation2 + $0x4] sm:$0xf] %vm2870_vm15, %v2863_v14  ;;  %3017 = vrot.lane.b32.xlu0 %v3001_v16, %s6655_s11 }
 0x506   : > { %v2584_v33 = vpop.f32.mrf.mxu1  ;;  %v2371_v52 = vpop.xlane.xlu1 %2370 }
 0x507   : > { %v2856_v53 = vmul.f32 %v6101_v27, %v2584_v33  ;;  %v2404_v49 = vpop.xlane.xlu0 %2403  ;;  %v2434_v3 = vpop.xlane.xlu2 %2433 }
 0x508   : > { %6104 = vrcp.f32 %v2404_v49 }
 0x509   : > { %v2864_v39 = vpack.c.bf16 %v2856_v53, %v2856_v53  ;;  %6106 = vrcp.f32 %v2368_v41 }
 0x50b   : > { %2873 = vst.msk [vmem:[#allocation2 + $0x8] sm:$0xf] %vm2870_vm15, %v2864_v39 }
 0x50e   : > { %v2586_v26 = vpop.f32.mrf.mxu1  ;;  %v6105_v0 = vpop.eup %6104 }
 0x50f   : > { %v2857_v61 = vmul.f32 %v6103_v47, %v2586_v26  ;;  %v2431_v42 = vpop.xlane.xlu0 %2430  ;;  %v2380_v5 = vpop.xlane.xlu1 %2379  ;;  %v2936_v37 = vmul.f32 %v6105_v0, %v2749_v32 }
 0x510   : > { %6108 = vrcp.f32 %v2431_v42  ;;  %v6107_v10 = vpop.eup %6106  ;;  %v7736_v57 = vpop.xlane.xlu2 %2388 }
 0x511   : > { %v2865_v38 = vpack.c.bf16 %v2857_v61, %v2857_v61  ;;  %6110 = vrcp.f32 %v2380_v5  ;;  %v2944_v34 = vpack.c.bf16 %v2936_v37, %v2936_v37  ;;  %v2844_v47 = vpop.f32.mrf.mxu0  ;;  %v2756_v32 = vpop.f32.mrf.mxu3 }
 0x512   : > { %6112 = vrcp.f32 %v2434_v3  ;;  %v2671_v3 = vpop.f32.mrf.mxu2 }
 0x513   : > { %2874 = vst.msk [vmem:[#allocation2 + $0xc] sm:$0xf] %vm2870_vm15, %v2865_v38  ;;  %2960 = vrot.lane.b32.xlu2 %v2944_v34, %s6657_s2  ;;  %6114 = vrcp.f32 %v2371_v52 }
 0x516   : > { %v2589_v58 = vpop.f32.mrf.mxu1  ;;  %v6109_v40 = vpop.eup %6108 }
 0x517   : > { %v2858_v12 = vmul.f32 %v6107_v10, %v2589_v58  ;;  %v2410_v30 = vpop.xlane.xlu0 %2409  ;;  %v6111_v20 = vpop.eup %6110  ;;  %v2994_v7 = vmul.f32 %v6109_v40, %v2836_v15 }
 0x518   : > { %v2407_v18 = vpop.xlane.xlu1 %2406  ;;  %v2879_v60 = vmul.f32 %v6111_v20, %v2664_v13  ;;  %v6113_v25 = vpop.eup %6112 }
 0x519   : > { %v2866_v51 = vpack.c.bf16 %v2858_v12, %v2858_v12  ;;  %6116 = vrcp.f32 %v2407_v18  ;;  %v3002_v1 = vpack.c.bf16 %v2994_v7, %v2994_v7  ;;  %v6115_v2 = vpop.eup %6114  ;;  %v2995_v62 = vmul.f32 %v6113_v25, %v2839_v23  ;;  %v2440_v35 = vpop.xlane.xlu2 %2439 }
 0x51a   : > { %v2887_v63 = vpack.c.bf16 %v2879_v60, %v2879_v60  ;;  %6118 = vrcp.f32 %v2383_v4  ;;  %v2674_v38 = vpop.f32.mrf.mxu2  ;;  %v2759_v10 = vpop.f32.mrf.mxu3 }
 0x51b   : > { %2875 = vst.msk [vmem:[#allocation2 + $0x10] sm:$0xf] %vm2870_vm15, %v2866_v51  ;;  %3019 = vrot.lane.b32.xlu1 %v3002_v1, %s6655_s11  ;;  %v3003_v44 = vpack.c.bf16 %v2995_v62, %v2995_v62  ;;  %v2846_v12 = vpop.f32.mrf.mxu0 }
 0x51c   : > { %2903 = vrot.lane.b32.xlu0 %v2887_v63, %s6656_s25 }
 0x51e   : > { %v2591_v11 = vpop.f32.mrf.mxu1 }
 0x51f   : > { %v2859_v9 = vmul.f32 %v6115_v2, %v2591_v11  ;;  %v2437_v21 = vpop.xlane.xlu0 %2436  ;;  %v6117_v48 = vpop.eup %6116 }
 0x520   : > { %v2386_v6 = vpop.xlane.xlu1 %2385  ;;  %6120 = vrcp.f32 %v2437_v21  ;;  %v2937_v22 = vmul.f32 %v6117_v48, %v2751_v55  ;;  %v6119_v36 = vpop.eup %6118 }
 0x521   : > { %v2867_v56 = vpack.c.bf16 %v2859_v9, %v2859_v9  ;;  %6122 = vrcp.f32 %v2440_v35  ;;  %v2880_v14 = vmul.f32 %v6119_v36, %v2666_v29  ;;  %v2395_v42 = vpop.xlane.xlu2 %2394 }
 0x522   : > { %v2945_v41 = vpack.c.bf16 %v2937_v22, %v2937_v22  ;;  %6124 = vrcp.f32 %v2386_v6  ;;  %v2676_v55 = vpop.f32.mrf.mxu2  ;;  %v2761_v6 = vpop.f32.mrf.mxu3 }
 0x523   : > { %2876 = vst.msk [vmem:[#allocation2 + $0x14] sm:$0xf] %vm2870_vm15, %v2867_v56  ;;  %3021 = vrot.lane.b32.xlu1 %v3003_v44, %s6655_s11  ;;  %v2888_v52 = vpack.c.bf16 %v2880_v14, %v2880_v14 }
 0x524   : > { %2962 = vrot.lane.b32.xlu0 %v2945_v41, %s6657_s2 }
 0x526   : > { %v6121_v16 = vpop.eup %6120 }
 0x527   : > { %v2416_v4 = vpop.xlane.xlu0 %2415  ;;  %v2996_v33 = vmul.f32 %v6121_v16, %v2841_v46  ;;  %v6123_v53 = vpop.eup %6122 }
 0x528   : > { %v2413_v27 = vpop.xlane.xlu1 %2412  ;;  %v6125_v39 = vpop.eup %6124  ;;  %6126 = vrcp.f32 %v2416_v4  ;;  %v2997_v26 = vmul.f32 %v6123_v53, %v2844_v47 }
 0x529   : > { %v3004_v49 = vpack.c.bf16 %v2996_v33, %v2996_v33  ;;  %6128 = vrcp.f32 %v2410_v30  ;;  %v2881_v0 = vmul.f32 %v6125_v39, %v2669_v54  ;;  %v2422_v56 = vpop.xlane.xlu2 %2421 }
 0x52a   : > { %v3005_v5 = vpack.c.bf16 %v2997_v26, %v2997_v26  ;;  %v2849_v26 = vpop.f32.mrf.mxu0 }
 0x52b   : > { %3023 = vrot.lane.b32.xlu2 %v3004_v49, %s6655_s11  ;;  %2905 = vrot.lane.b32.xlu1 %v2888_v52, %s6656_s25  ;;  %v2889_v37 = vpack.c.bf16 %v2881_v0, %v2881_v0 }
 0x52e   : > { %v6127_v15 = vpop.eup %6126 }
 0x52f   : > { %v2443_v13 = vpop.xlane.xlu0 %2442  ;;  %v6129_v34 = vpop.eup %6128  ;;  %v2940_v58 = vmul.f32 %v6127_v15, %v2759_v10  ;;  %v5682_v10 = vld [vmem:[#allocation12 + $0x18] sm:$0xff] }
 0x530   : > { %v2392_v61 = vpop.xlane.xlu1 %2391  ;;  %6130 = vrcp.f32 %v2443_v13  ;;  %v2938_v30 = vmul.f32 %v6129_v34, %v2754_v17  ;;  %v2679_v17 = vpop.f32.mrf.mxu2  ;;  %v5686_v13 = vld [vmem:[#allocation12 + $0x38] sm:$0xff]  ;;  %v5683_v34 = vld [vmem:[#allocation12 + $0x20] sm:$0xff] }
 0x531   : > { %6132 = vrcp.f32 %v2395_v42  ;;  %v2948_v29 = vpack.c.bf16 %v2940_v58, %v2940_v58  ;;  %3150 = vmatpush.bf16.msra.mxu1 %v5686_v13  ;;  %v2372_v42 = vsel %vm2161_vm14, %v7473_v45, 0.0  ;;  %v2449_v15 = vpop.xlane.xlu2 %2448  ;;  %v6006_v13 = vld [vmem:[%s8972_s7] ss:$0 sm:$0xff] }
 0x532   : > { %6134 = vrcp.f32 %v2392_v61  ;;  %v2946_v1 = vpack.c.bf16 %v2938_v30, %v2938_v30  ;;  %v5679_v30 = vld [vmem:[#allocation12] sm:$0xff] }
 0x533   : > { %3025 = vrot.lane.b32.xlu2 %v3005_v5, %s6655_s11  ;;  %2907 = vrot.lane.b32.xlu1 %v2889_v37, %s6656_s25  ;;  %6136 = vrcp.f32 %v7736_v57  ;;  %v5685_v5 = vld [vmem:[#allocation12 + $0x30] sm:$0xff]  ;;  %v5684_v37 = vld [vmem:[#allocation12 + $0x28] sm:$0xff] }
 0x535   : > { %3151 = vmatpush.bf16.msra.mxu1 %v5685_v5 }
 0x536   : > { %v6131_v40 = vpop.eup %6130 }
 0x537   : > { %v2998_v20 = vmul.f32 %v6131_v40, %v2846_v12  ;;  %v6133_v18 = vpop.eup %6132  ;;  %v2398_v2 = vpop.xlane.xlu0 %2397  ;;  %v5681_v40 = vld [vmem:[#allocation12 + $0x10] sm:$0xff]  ;;  %v5680_v12 = vld [vmem:[#allocation12 + $0x8] sm:$0xff] }
 0x538   : > { %v2419_v7 = vpop.xlane.xlu1 %2418  ;;  %v6135_v60 = vpop.eup %6134  ;;  %v2884_v23 = vmul.f32 %v6133_v18, %v2676_v55 }
 0x539   : > { %v3006_v51 = vpack.c.bf16 %v2998_v20, %v2998_v20  ;;  %v6137_v25 = vpop.eup %6136  ;;  %6138 = vrcp.f32 %v2419_v7  ;;  %v2883_v57 = vmul.f32 %v6135_v60, %v2674_v38  ;;  %3152 = vmatpush.bf16.msra.mxu1 %v5684_v37  ;;  %v2375_v38 = vsel %vm2161_vm14, %v7484_v59, 0.0  ;;  %v2681_v7 = vpop.f32.mrf.mxu2 }
 0x53a   : > { %6140 = vrcp.f32 %v2413_v27  ;;  %v2882_v63 = vmul.f32 %v6137_v25, %v2671_v3  ;;  %v2892_v11 = vpack.c.bf16 %v2884_v23, %v2884_v23  ;;  %v2764_v27 = vpop.f32.mrf.mxu3  ;;  %v2851_v55 = vpop.f32.mrf.mxu0 }
 0x53b   : > { %2968 = vrot.lane.b32.xlu2 %v2948_v29, %s6657_s2  ;;  %3027 = vrot.lane.b32.xlu0 %v3006_v51, %s6655_s11  ;;  %v2891_v62 = vpack.c.bf16 %v2883_v57, %v2883_v57  ;;  %6142 = vrcp.f32 %v2398_v2 }
 0x53c   : > { %2964 = vrot.lane.b32.xlu1 %v2946_v1, %s6657_s2  ;;  %v2890_v21 = vpack.c.bf16 %v2882_v63, %v2882_v63  ;;  %6144 = vrcp.f32 %v2422_v56 }
 0x53d   : > { %3153 = vmatpush.bf16.msra.mxu1 %v5683_v34 }
 0x53f   : > { %v6139_v9 = vpop.eup %6138  ;;  %v2425_v14 = vpop.xlane.xlu0 %2424 }
 0x540   : > { %v6141_v48 = vpop.eup %6140  ;;  %v2941_v54 = vmul.f32 %v6139_v9, %v2761_v6  ;;  %v2401_v46 = vpop.xlane.xlu1 %2400  ;;  %6146 = vrcp.f32 %v2425_v14 }
 0x541   : > { %v2939_v35 = vmul.f32 %v6141_v48, %v2756_v32  ;;  %v6143_v44 = vpop.eup %6142  ;;  %3154 = vmatpush.bf16.msra.mxu1 %v5682_v10 }
 0x542   : > { %v2949_v22 = vpack.c.bf16 %v2941_v54, %v2941_v54  ;;  %v2885_v41 = vmul.f32 %v6143_v44, %v2679_v17  ;;  %v6145_v4 = vpop.eup %6144  ;;  %v2766_v39 = vpop.f32.mrf.mxu3 }
 0x543   : > { %2913 = vrot.lane.b32.xlu2 %v2892_v11, %s6656_s25  ;;  %2911 = vrot.lane.b32.xlu0 %v2891_v62, %s6656_s25  ;;  %v2947_v36 = vpack.c.bf16 %v2939_v35, %v2939_v35  ;;  %v2942_v33 = vmul.f32 %v6145_v4, %v2764_v27 }
 0x544   : > { %2909 = vrot.lane.b32.xlu1 %v2890_v21, %s6656_s25  ;;  %v2893_v16 = vpack.c.bf16 %v2885_v41, %v2885_v41 }
 0x545   : > { %v2950_v49 = vpack.c.bf16 %v2942_v33, %v2942_v33  ;;  %3155 = vmatpush.bf16.msra.mxu1 %v5681_v40  ;;  %v6304_v40 = vld [vmem:[%s6883_s30 + $0x8] sm:$0xff] }
 0x546   : > { %v6147_v52 = vpop.eup %6146 }
 0x547   : > { %v2943_v3 = vmul.f32 %v6147_v52, %v2766_v39 }
 0x548   : > { %v2446_v53 = vpop.xlane.xlu1 %2445 }
 0x549   : > { %6148 = vrcp.f32 %v2446_v53  ;;  %v2951_v47 = vpack.c.bf16 %v2943_v3, %v2943_v3  ;;  %3156 = vmatpush.bf16.msra.mxu1 %v5680_v12 }
 0x54a   : > { %6150 = vrcp.f32 %v2401_v46 }
 0x54b   : > { %2970 = vrot.lane.b32.xlu0 %v2949_v22, %s6657_s2  ;;  %6152 = vrcp.f32 %v2449_v15  ;;  %v6303_v15 = vld [vmem:[%s6883_s30] sm:$0xff] }
 0x54c   : > { %2966 = vrot.lane.b32.xlu1 %v2947_v36, %s6657_s2 }
 0x54d   : > { %3157 = vmatpush.bf16.msra.mxu1 %v5679_v30 }
 0x54f   : > { %v6149_v32 = vpop.eup %6148 }
 0x550   : > { %v2999_v0 = vmul.f32 %v6149_v32, %v2849_v26  ;;  %v6151_v20 = vpop.eup %6150  ;;  %v7798_v26 = vld [vmem:[%s8968_s3] sm:$0x3f] }
 0x551   : > { %v2886_v29 = vmul.f32 %v6151_v20, %v2681_v7  ;;  %v6153_v1 = vpop.eup %6152  ;;  %v6305_v20 = vld [vmem:[%s6883_s30 + $0x10] sm:$0xff] }
 0x552   : > { %v3007_v61 = vpack.c.bf16 %v2999_v0, %v2999_v0  ;;  %v3000_v57 = vmul.f32 %v6153_v1, %v2851_v55 }
 0x553   : > { %2915 = vrot.lane.b32.xlu0 %v2893_v16, %s6656_s25  ;;  %v2894_v60 = vpack.c.bf16 %v2886_v29, %v2886_v29 }
 0x554   : > { %v3008_v2 = vpack.c.bf16 %v3000_v57, %v3000_v57  ;;  %v6307_v57 = vld [vmem:[%s6883_s30 + $0x20] sm:$0xff] }
 0x55b   : > { %2972 = vrot.lane.b32.xlu0 %v2950_v49, %s6657_s2 }
 0x563   : > { %2974 = vrot.lane.b32.xlu0 %v2951_v47, %s6657_s2 }
 0x56b   : > { %3029 = vrot.lane.b32.xlu0 %v3007_v61, %s6655_s11 }
 0x56c   : > { %2373 = vadd.xlane.f32.xlu2 %v2372_v42 }
 0x56d   : > { %v2961_v58 = vpop.permute.xlu2 %2960 }
 0x575   : > { %v3018_v18 = vpop.permute.xlu0 %3017 }
 0x576   : > { %2376 = vadd.xlane.f32.xlu1 %v2375_v38 }
 0x585   : > { %v3024_v45 = vpop.permute.xlu2 %3023 }
 0x58d   : > { %v3026_v59 = vpop.permute.xlu2 %3025  ;;  %v3020_v51 = vpop.permute.xlu1 %3019 }
 0x58e   : > { %v2904_v25 = vpop.permute.xlu0 %2903 }
 0x58f   : > { %2928 = vst.msk [vmem:[#allocation2] sm:$0xf] %vm2927_vm0, %v2904_v25  ;;  %2917 = vrot.lane.b32.xlu1 %v2894_v60, %s6656_s25  ;;  %s9072_s25 = sld [smem:[#allocation34_spill]] }
 0x590   : > { %2985 = vst.msk [vmem:[#allocation2] sm:$0xf] %vm2984_vm1, %v2961_v58 }
 0x591   : > { %3042 = vst.msk [vmem:[#allocation2] sm:$0xf] %vm3041_vm2, %v3018_v18 }
 0x595   : > { %v2969_v23 = vpop.permute.xlu2 %2968  ;;  %v3022_v63 = vpop.permute.xlu1 %3021 }
 0x596   : > { %v2963_v9 = vpop.permute.xlu0 %2962 }
 0x597   : > { %3031 = vrot.lane.b32.xlu1 %v3008_v2, %s6655_s11 }
 0x59d   : > { %v2914_v11 = vpop.permute.xlu2 %2913  ;;  %v2906_v62 = vpop.permute.xlu1 %2905 }
 0x59e   : > { %2933 = vst.msk [vmem:[#allocation2 + $0x14] sm:$0xf] %vm2927_vm0, %v2914_v11 }
 0x59f   : > { %2929 = vst.msk [vmem:[#allocation2 + $0x4] sm:$0xf] %vm2927_vm0, %v2906_v62  ;;  %v6308_v62 = vld [vmem:[%s6883_s30 + $0x28] sm:$0xff] }
 0x5a0   : > { %2986 = vst.msk [vmem:[#allocation2 + $0x4] sm:$0xf] %vm2984_vm1, %v2963_v9 }
 0x5a1   : > { %3043 = vst.msk [vmem:[#allocation2 + $0x4] sm:$0xf] %vm3041_vm2, %v3020_v51  ;;  %v6306_v51 = vld [vmem:[%s6883_s30 + $0x18] sm:$0xff] }
 0x5a5   : > { %v2908_v21 = vpop.permute.xlu1 %2907 }
 0x5a6   : > { %2930 = vst.msk [vmem:[#allocation2 + $0x8] sm:$0xf] %vm2927_vm0, %v2908_v21 }
 0x5a8   : > { %v5675_v48 = vld [vmem:[#allocation2] sm:$0xff] }
 0x5a9   : > { %3158 = vmatmul.bf16.vlgmr.msra.gmra.mxu1 %v5675_v48 }
 0x5ad   : > { %v3028_v6 = vpop.permute.xlu0 %3027 }
 0x5ae   : > { %v2965_v54 = vpop.permute.xlu1 %2964 }
 0x5af   : > { %2987 = vst.msk [vmem:[#allocation2 + $0x8] sm:$0xf] %vm2984_vm1, %v2965_v54 }
 0x5b0   : > { %3044 = vst.msk [vmem:[#allocation2 + $0x8] sm:$0xf] %vm3041_vm2, %v3022_v63 }
 0x5b5   : > { %v2912_v35 = vpop.permute.xlu0 %2911 }
 0x5b6   : > { %2932 = vst.msk [vmem:[#allocation2 + $0x10] sm:$0xf] %vm2927_vm0, %v2912_v35  ;;  %v2910_v56 = vpop.permute.xlu1 %2909  ;;  %v6309_v35 = vld [vmem:[%s6883_s30 + $0x38] sm:$0xff] }
 0x5b7   : > { %2989 = vst.msk [vmem:[#allocation2 + $0x10] sm:$0xf] %vm2984_vm1, %v2969_v23 }
 0x5b8   : > { %3046 = vst.msk [vmem:[#allocation2 + $0x10] sm:$0xf] %vm3041_vm2, %v3026_v59 }
 0x5b9   : > { %2931 = vst.msk [vmem:[#allocation2 + $0xc] sm:$0xf] %vm2927_vm0, %v2910_v56 }
 0x5bd   : > { %v2971_v22 = vpop.permute.xlu0 %2970 }
 0x5be   : > { %2990 = vst.msk [vmem:[#allocation2 + $0x14] sm:$0xf] %vm2984_vm1, %v2971_v22  ;;  %v2967_v44 = vpop.permute.xlu1 %2966 }
 0x5bf   : > { %3047 = vst.msk [vmem:[#allocation2 + $0x14] sm:$0xf] %vm3041_vm2, %v3028_v6 }
 0x5c0   : > { %2988 = vst.msk [vmem:[#allocation2 + $0xc] sm:$0xf] %vm2984_vm1, %v2967_v44 }
 0x5c1   : > { %3045 = vst.msk [vmem:[#allocation2 + $0xc] sm:$0xf] %vm3041_vm2, %v3024_v45 }
 0x5c5   : > { %v2916_v17 = vpop.permute.xlu0 %2915 }
 0x5c6   : > { %v5677_v41 = vld [vmem:[#allocation2 + $0x10] sm:$0xff] }
 0x5c8   : > { %v5676_v36 = vld [vmem:[#allocation2 + $0x8] sm:$0xff] }
 0x5c9   : > { %3163 = vmatmul.bf16.gmra.mxu1 %v5676_v36 }
 0x5cd   : > { %v2973_v46 = vpop.permute.xlu0 %2972 }
 0x5d5   : > { %v2975_v16 = vpop.permute.xlu0 %2974 }
 0x5d9   : > { %3168 = vmatmul.bf16.gmra.mxu1 %v5677_v41 }
 0x5dd   : > { %v3030_v49 = vpop.permute.xlu0 %3029 }
 0x5df   : > { %v2374_v14 = vpop.xlane.xlu2 %2373 }
 0x5e0   : > { %6154 = vrcp.f32 %v2374_v14 }
 0x5e6   : > { %v6155_v4 = vpop.eup %6154 }
 0x5e7   : > { %v2860_v27 = vmul.f32 %v6155_v4, %v7727_v43 }
 0x5e9   : > { %v2868_v33 = vpack.c.bf16 %v2860_v27, %v2860_v27  ;;  %v2377_v53 = vpop.xlane.xlu1 %2376 }
 0x5ea   : > { %6156 = vrcp.f32 %v2377_v53 }
 0x5eb   : > { %2877 = vst.msk [vmem:[#allocation2 + $0x18] sm:$0xf] %vm2870_vm15, %v2868_v33  ;;  %v6310_v33 = vld [vmem:[%s6883_s30 + $0x30] sm:$0xff]  ;;  %s6566_s30 = sshra.s32 %s4770_s19, 4  ;;  %s6567_s30 = int_to_ptr.hbm [resolvable:$true] %s6566_s30 }
 0x5ec   : > { %2934 = vst.msk [vmem:[#allocation2 + $0x18] sm:$0xf] %vm2927_vm0, %v2916_v17  ;;  %s6568_s23 = scalar_lea.hbm %s6567_s30, 64  ;;  %p6573_p7 = scmp.lt.s32.totalorder %s6567_s30, %s9073_s5 }
 0x5ed   : > { %2991 = vst.msk [vmem:[#allocation2 + $0x18] sm:$0xf] %vm2984_vm1, %v2973_v46  ;;  %p6569_p1 = scmp.ne.s32.totalorder %s6567_s30, %s6568_s23  ;;  %p6574_p9 = scmp.lt.s32.totalorder %s6572_s17, %s6568_s23 }
 0x5ee   : > { %3048 = vst.msk [vmem:[#allocation2 + $0x18] sm:$0xf] %vm3041_vm2, %v3030_v49 }
 0x5ef   : > { %p6570_p3 = pnand %p6569_p1, %p6824_p4  ;;  %p6575_p5 = por %p6574_p9, %p6573_p7 }
 0x5f0   : > { %v6157_v52 = vpop.eup %6156 }
 0x5f1   : > { %v2861_v39 = vmul.f32 %v6157_v52, %v7731_v50  ;;  %v887_v50 = vperm.slane %v7798_v26, 2  ;;  %p6571_p12 = pneg %p6570_p3 }
 0x5f3   : > { %v2869_v3 = vpack.c.bf16 %v2861_v39, %v2861_v39  ;;  %v933_v0 = vadd.f32 %v7065_v24, %v887_v50  ;;  %p6576_p8 = pnand %p6575_p5, %p6571_p12 }
 0x5f5   : > { %2878 = vst.msk [vmem:[#allocation2 + $0x1c] sm:$0xf] %vm2870_vm15, %v2869_v3  ;;  %v3179_v42 = vperm.slane %v933_v0, 0 }
 0x601   : > { %v2918_v43 = vpop.permute.xlu1 %2917 }
 0x602   : > { %2935 = vst.msk [vmem:[#allocation2 + $0x1c] sm:$0xf] %vm2927_vm0, %v2918_v43 }
 0x603   : > { %2992 = vst.msk [vmem:[#allocation2 + $0x1c] sm:$0xf] %vm2984_vm1, %v2975_v16 }
 0x609   : > { %v3032_v47 = vpop.permute.xlu1 %3031 }
 0x60a   : > { %3049 = vst.msk [vmem:[#allocation2 + $0x1c] sm:$0xf] %vm3041_vm2, %v3032_v47 }
 0x611   : > { %v5678_v32 = vld [vmem:[#allocation2 + $0x18] sm:$0xff] }
 0x612   : > { %3173 = vmatmul.bf16.gmra.mxu1 %v5678_v32 }
 0x626   : > { %v3159_v61 = vpop.f32.mrf.mxu1 }
 0x627   : > { %v3160_v5 = vadd.f32 %v6006_v13, %v3159_v61 }
 0x629   : > { %v3180_v37 = vmul.f32 %v3179_v42, %v3160_v5 }
 0x62b   : > { %v7806_v38 = vadd.f32 %v6303_v15, %v3180_v37 }
 0x62d   : > { %3196 = vadd.xlane.f32.xlu0 %v7806_v38 }
 0x62e   : > { %v3161_v34 = vpop.f32.mrf.mxu1 }
 0x62f   : > { %v3162_v10 = vadd.f32 %v6006_v13, %v3161_v34 }
 0x631   : > { %v3181_v58 = vmul.f32 %v3179_v42, %v3162_v10  ;;  %v5423_v10 = vld [vmem:[%s9007_s10 + $0xe0] sm:$0xf] }
 0x633   : > { %v7810_v24 = vadd.f32 %v6304_v40, %v3181_v58  ;;  %v5717_v58 = vld [vmem:[%s9007_s10 + $0xec] sm:$0xf0]  ;;  %v5715_v40 = vld [vmem:[%s9007_s10 + $0xe4] sm:$0xf] }
 0x635   : > { %3198 = vadd.xlane.f32.xlu2 %v7810_v24 }
 0x646   : > { %v3164_v12 = vpop.f32.mrf.mxu1 }
 0x647   : > { %v3165_v45 = vadd.f32 %v6006_v13, %v3164_v12  ;;  %v5424_v12 = vor.u32 %v5717_v58, %v5423_v10  ;;  %v5704_v10 = vld [vmem:[%s9007_s10 + $0x8c] sm:$0xf]  ;;  %v5385_v58 = vld [vmem:[%s9007_s10 + $0x98] sm:$0xf0] }
 0x649   : > { %v3182_v30 = vmul.f32 %v3179_v42, %v3165_v45  ;;  %v5425_v45 = vld [vmem:[%s9007_s10 + $0xf0] sm:$0xf0]  ;;  %3581 = vmatpush.bf16.msrb.mxu2 %v5424_v12 }
 0x64b   : > { %v7814_v18 = vadd.f32 %v6305_v20, %v3182_v30  ;;  %v5431_v30 = vld [vmem:[%s9007_s10 + $0xe8] sm:$0xf]  ;;  %v5718_v20 = vld [vmem:[%s9007_s10 + $0xf4] sm:$0xf0] }
 0x64d   : > { %3200 = vadd.xlane.f32.xlu1 %v7814_v18 }
 0x64e   : > { %v3166_v7 = vpop.f32.mrf.mxu1 }
 0x64f   : > { %v3167_v29 = vadd.f32 %v6006_v13, %v3166_v7  ;;  %v5428_v7 = vor.u32 %v5715_v40, %v5425_v45  ;;  %v5388_v40 = vor.u32 %v5704_v10, %v5385_v58  ;;  %v5359_v45 = vld [vmem:[%s9007_s10 + $0x60] sm:$0xf] }
 0x650   : > { %v5311_v58 = vld [vmem:[%s9007_s10] sm:$0xf] }
 0x651   : > { %v3183_v59 = vmul.f32 %v3179_v42, %v3167_v29  ;;  %v5432_v29 = vor.u32 %v5718_v20, %v5431_v30  ;;  %3610 = vmatpush.bf16.msrb.mxu3 %v5428_v7  ;;  %v5701_v30 = vld [vmem:[%s9007_s10 + $0x6c] sm:$0xf0]  ;;  %v5699_v20 = vld [vmem:[%s9007_s10 + $0x64] sm:$0xf] }
 0x653   : > { %v7818_v60 = vadd.f32 %v6306_v51, %v3183_v59  ;;  %v5716_v59 = vld [vmem:[%s9007_s10 + $0xec] sm:$0xf]  ;;  %v5433_v51 = vld [vmem:[%s9007_s10 + $0xf8] sm:$0xf0]  ;;  %3639 = vmatpush.bf16.msrb.mxu0 %v5432_v29  ;;  %v5360_v29 = vor.u32 %v5701_v30, %v5359_v45  ;;  %v5687_v45 = vld [vmem:[%s9007_s10 + $0x4] sm:$0xf] }
 0x654   : > { %v5313_v30 = vld [vmem:[%s9007_s10 + $0x10] sm:$0xf0] }
 0x655   : > { %3202 = vadd.xlane.f32.xlu2 %v7818_v60 }
 0x656   : > { %v3169_v1 = vpop.f32.mrf.mxu1 }
 0x657   : > { %v3170_v25 = vadd.f32 %v6006_v13, %v3169_v1  ;;  %v5436_v1 = vor.u32 %v5716_v59, %v5433_v51  ;;  %v5361_v59 = vld [vmem:[%s9007_s10 + $0x70] sm:$0xf0]  ;;  %v5367_v51 = vld [vmem:[%s9007_s10 + $0x68] sm:$0xf] }
 0x659   : > { %v3184_v55 = vmul.f32 %v3179_v42, %v3170_v25  ;;  %v5407_v25 = vld [vmem:[%s9007_s10 + $0xc0] sm:$0xf]  ;;  %3668 = vmatpush.bf16.msrb.mxu1 %v5436_v1  ;;  %v5702_v1 = vld [vmem:[%s9007_s10 + $0x74] sm:$0xf0] }
 0x65b   : > { %v7822_v23 = vadd.f32 %v6307_v57, %v3184_v55  ;;  %v5713_v55 = vld [vmem:[%s9007_s10 + $0xcc] sm:$0xf0]  ;;  %v5711_v57 = vld [vmem:[%s9007_s10 + $0xc4] sm:$0xf] }
 0x65d   : > { %3204 = vadd.xlane.f32.xlu2 %v7822_v23 }
 0x65e   : > { %v3171_v63 = vpop.f32.mrf.mxu1 }
 0x65f   : > { %v3172_v2 = vadd.f32 %v6006_v13, %v3171_v63  ;;  %v5408_v63 = vor.u32 %v5713_v55, %v5407_v25  ;;  %v5364_v25 = vor.u32 %v5699_v20, %v5361_v59  ;;  %v5368_v55 = vor.u32 %v5702_v1, %v5367_v51  ;;  %v5319_v20 = vld [vmem:[%s9007_s10 + $0x8] sm:$0xf]  ;;  %v5688_v59 = vld [vmem:[%s9007_s10 + $0xc] sm:$0xf]  ;;  %v5321_v51 = vld [vmem:[%s9007_s10 + $0x18] sm:$0xf0] }
 0x661   : > { %v3185_v11 = vmul.f32 %v3179_v42, %v3172_v2  ;;  %v5409_v2 = vld [vmem:[%s9007_s10 + $0xd0] sm:$0xf0]  ;;  %3582 = vmatpush.bf16.msrb.mxu2 %v5408_v63  ;;  %v5369_v63 = vld [vmem:[%s9007_s10 + $0x78] sm:$0xf0] }
 0x663   : > { %v7826_v9 = vadd.f32 %v6308_v62, %v3185_v11  ;;  %v5415_v11 = vld [vmem:[%s9007_s10 + $0xc8] sm:$0xf]  ;;  %v5714_v62 = vld [vmem:[%s9007_s10 + $0xd4] sm:$0xf0] }
 0x665   : > { %3206 = vadd.xlane.f32.xlu2 %v7826_v9 }
 0x68f   : > { %v3174_v21 = vpop.f32.mrf.mxu1 }
 0x690   : > { %v3175_v17 = vadd.f32 %v6006_v13, %v3174_v21  ;;  %v5412_v21 = vor.u32 %v5711_v57, %v5409_v2  ;;  %v5700_v57 = vld [vmem:[%s9007_s10 + $0x6c] sm:$0xf] }
 0x692   : > { %v3186_v14 = vmul.f32 %v3179_v42, %v3175_v17  ;;  %3611 = vmatpush.bf16.msrb.mxu3 %v5412_v21  ;;  %v5707_v17 = vld [vmem:[%s9007_s10 + $0xa4] sm:$0xf]  ;;  %v5697_v21 = vld [vmem:[%s9007_s10 + $0x4c] sm:$0xf0] }
 0x694   : > { %v7846_v53 = vadd.f32 %v6310_v33, %v3186_v14  ;;  %v5399_v14 = vld [vmem:[%s9007_s10 + $0xa8] sm:$0xf] }
 0x697   : > { %v3176_v48 = vpop.f32.mrf.mxu1 }
 0x698   : > { %v3177_v6 = vadd.f32 %v6006_v13, %v3176_v48  ;;  %v5416_v48 = vor.u32 %v5714_v62, %v5415_v11  ;;  %v5372_v11 = vor.u32 %v5700_v57, %v5369_v63  ;;  %v5343_v62 = vld [vmem:[%s9007_s10 + $0x40] sm:$0xf] }
 0x69a   : > { %v3187_v54 = vmul.f32 %v3179_v42, %v3177_v6  ;;  %v5712_v6 = vld [vmem:[%s9007_s10 + $0xcc] sm:$0xf]  ;;  %3640 = vmatpush.bf16.msrb.mxu0 %v5416_v48  ;;  %v5695_v48 = vld [vmem:[%s9007_s10 + $0x44] sm:$0xf] }
 0x69c   : > { %v7830_v56 = vadd.f32 %v6309_v35, %v3187_v54  ;;  %v5417_v54 = vld [vmem:[%s9007_s10 + $0xd8] sm:$0xf0] }
 0x69d   : > { %v5420_v35 = vor.u32 %v5712_v6, %v5417_v54  ;;  %v5344_v54 = vor.u32 %v5697_v21, %v5343_v62 }
 0x69e   : > { %3210 = vadd.xlane.f32.xlu1 %v7830_v56 }
 0x69f   : > { %3669 = vmatpush.bf16.msrb.mxu1 %v5420_v35  ;;  %v5345_v35 = vld [vmem:[%s9007_s10 + $0x50] sm:$0xf0] }
 0x6a0   : > { %v3197_v22 = vpop.xlane.xlu0 %3196 }
 0x6a1   : > { %v3212_v44 = vmul.f32 %v3197_v22, %v6945_v19  ;;  %v5391_v22 = vld [vmem:[%s9007_s10 + $0xa0] sm:$0xf] }
 0x6a3   : > { %v7835_v36 = vsub.f32 %v7806_v38, %v3212_v44  ;;  %v5709_v44 = vld [vmem:[%s9007_s10 + $0xac] sm:$0xf0] }
 0x6a5   : > { %v3228_v41 = vmul.f32 %v7835_v36, %v7835_v36 }
 0x6a7   : > { %3236 = vadd.xlane.f32.xlu2 %v3228_v41  ;;  %v5392_v41 = vor.u32 %v5709_v44, %v5391_v22  ;;  %v5351_v22 = vld [vmem:[%s9007_s10 + $0x48] sm:$0xf]  ;;  %v5698_v44 = vld [vmem:[%s9007_s10 + $0x54] sm:$0xf0] }
 0x6a8   : > { %v3199_v46 = vpop.xlane.xlu2 %3198 }
 0x6a9   : > { %v3213_v16 = vmul.f32 %v3199_v46, %v6945_v19  ;;  %v5393_v46 = vld [vmem:[%s9007_s10 + $0xb0] sm:$0xf0]  ;;  %3583 = vmatpush.bf16.msrb.mxu2 %v5392_v41  ;;  %v5352_v41 = vor.u32 %v5698_v44, %v5351_v22  ;;  %v889_v44 = vperm.slane %v7798_v26, 4 }
 0x6ab   : > { %v7841_v4 = vsub.f32 %v7810_v24, %v3213_v16  ;;  %v5710_v16 = vld [vmem:[%s9007_s10 + $0xb4] sm:$0xf0] }
 0x6ac   : > { %v5400_v33 = vor.u32 %v5710_v16, %v5399_v14  ;;  %v5353_v14 = vld [vmem:[%s9007_s10 + $0x58] sm:$0xf0] }
 0x6ad   : > { %v3229_v27 = vmul.f32 %v7841_v4, %v7841_v4 }
 0x6ae   : > { %3641 = vmatpush.bf16.msrb.mxu0 %v5400_v33  ;;  %v5693_v33 = vld [vmem:[%s9007_s10 + $0x2c] sm:$0xf0] }
 0x6af   : > { %3238 = vadd.xlane.f32.xlu0 %v3229_v27  ;;  %3208 = vadd.xlane.f32.xlu2 %v7846_v53  ;;  %v5396_v27 = vor.u32 %v5707_v17, %v5393_v46  ;;  %v5348_v17 = vor.u32 %v5695_v48, %v5345_v35  ;;  %v5696_v46 = vld [vmem:[%s9007_s10 + $0x4c] sm:$0xf] }
 0x6b0   : > { %v5356_v16 = vor.u32 %v5696_v46, %v5353_v14 }
 0x6b1   : > { %3612 = vmatpush.bf16.msrb.mxu3 %v5396_v27  ;;  %v5327_v27 = vld [vmem:[%s9007_s10 + $0x20] sm:$0xf] }
 0x6c0   : > { %v3201_v49 = vpop.xlane.xlu1 %3200 }
 0x6c1   : > { %v3214_v52 = vmul.f32 %v3201_v49, %v6945_v19  ;;  %v5708_v49 = vld [vmem:[%s9007_s10 + $0xac] sm:$0xf] }
 0x6c3   : > { %v7851_v39 = vsub.f32 %v7814_v18, %v3214_v52  ;;  %v5401_v52 = vld [vmem:[%s9007_s10 + $0xb8] sm:$0xf0] }
 0x6c5   : > { %v3230_v3 = vmul.f32 %v7851_v39, %v7851_v39 }
 0x6c7   : > { %3240 = vadd.xlane.f32.xlu0 %v3230_v3  ;;  %v5404_v3 = vor.u32 %v5708_v49, %v5401_v52  ;;  %v5691_v49 = vld [vmem:[%s9007_s10 + $0x24] sm:$0xf] }
 0x6c8   : > { %v3203_v43 = vpop.xlane.xlu2 %3202 }
 0x6c9   : > { %v3215_v47 = vmul.f32 %v3203_v43, %v6945_v19  ;;  %v5375_v43 = vld [vmem:[%s9007_s10 + $0x80] sm:$0xf]  ;;  %3670 = vmatpush.bf16.msrb.mxu1 %v5404_v3  ;;  %v5328_v3 = vor.u32 %v5693_v33, %v5327_v27 }
 0x6cb   : > { %v7857_v32 = vsub.f32 %v7818_v60, %v3215_v47  ;;  %v5705_v47 = vld [vmem:[%s9007_s10 + $0x8c] sm:$0xf0] }
 0x6cd   : > { %v3231_v50 = vmul.f32 %v7857_v32, %v7857_v32  ;;  %3671 = vmatpush.bf16.msrb.mxu1 %v5388_v40  ;;  %v5689_v40 = vld [vmem:[%s9007_s10 + $0xc] sm:$0xf0] }
 0x6cf   : > { %3242 = vadd.xlane.f32.xlu2 %v3231_v50  ;;  %v5703_v50 = vld [vmem:[%s9007_s10 + $0x84] sm:$0xf] }
 0x6d0   : > { %v3205_v0 = vpop.xlane.xlu2 %3204 }
 0x6d1   : > { %v3216_v13 = vmul.f32 %v3205_v0, %v6945_v19  ;;  %v5376_v0 = vor.u32 %v5705_v47, %v5375_v43  ;;  %3672 = vmatpush.bf16.msrb.mxu1 %v5372_v11  ;;  %v5329_v43 = vld [vmem:[%s9007_s10 + $0x30] sm:$0xf0]  ;;  %v5335_v47 = vld [vmem:[%s9007_s10 + $0x28] sm:$0xf] }
 0x6d3   : > { %v7863_v61 = vsub.f32 %v7822_v23, %v3216_v13  ;;  %v5377_v13 = vld [vmem:[%s9007_s10 + $0x90] sm:$0xf0]  ;;  %3584 = vmatpush.bf16.msrb.mxu2 %v5376_v0 }
 0x6d5   : > { %v3232_v42 = vmul.f32 %v7863_v61, %v7863_v61  ;;  %3673 = vmatpush.bf16.msrb.mxu1 %v5356_v16  ;;  %v959_v16 = vadd.f32 %v7063_v28, %v889_v44 }
 0x6d7   : > { %3244 = vadd.xlane.f32.xlu1 %v3232_v42  ;;  %v5383_v42 = vld [vmem:[%s9007_s10 + $0x88] sm:$0xf]  ;;  %3585 = vmatpush.bf16.msrb.mxu2 %v5360_v29  ;;  %v5690_v29 = vld [vmem:[%s9007_s10 + $0x14] sm:$0xf0] }
 0x6d8   : > { %v3207_v5 = vpop.xlane.xlu2 %3206  ;;  %v5320_v1 = vor.u32 %v5690_v29, %v5319_v20 }
 0x6d9   : > { %v3217_v37 = vmul.f32 %v3207_v5, %v6945_v19  ;;  %v5706_v5 = vld [vmem:[%s9007_s10 + $0x94] sm:$0xf0] }
 0x6db   : > { %v7869_v15 = vsub.f32 %v7826_v9, %v3217_v37  ;;  %v5380_v37 = vor.u32 %v5703_v50, %v5377_v13  ;;  %3586 = vmatpush.bf16.msrb.mxu2 %v5344_v54  ;;  %v5694_v50 = vld [vmem:[%s9007_s10 + $0x34] sm:$0xf0]  ;;  %v5332_v13 = vor.u32 %v5691_v49, %v5329_v43 }
 0x6dd   : > { %v3233_v34 = vmul.f32 %v7869_v15, %v7869_v15  ;;  %3613 = vmatpush.bf16.msrb.mxu3 %v5380_v37  ;;  %v5337_v37 = vld [vmem:[%s9007_s10 + $0x38] sm:$0xf0] }
 0x6df   : > { %3246 = vadd.xlane.f32.xlu0 %v3233_v34  ;;  %v5384_v34 = vor.u32 %v5706_v5, %v5383_v42  ;;  %v5336_v42 = vor.u32 %v5694_v50, %v5335_v47  ;;  %v5692_v5 = vld [vmem:[%s9007_s10 + $0x2c] sm:$0xf]  ;;  %3587 = vmatpush.bf16.msrb.mxu2 %v5328_v3  ;;  %v888_v3 = vperm.slane %v7798_v26, 3 }
 0x6e1   : > { %3642 = vmatpush.bf16.msrb.mxu0 %v5384_v34  ;;  %3614 = vmatpush.bf16.msrb.mxu3 %v5364_v25  ;;  %v5340_v34 = vor.u32 %v5692_v5, %v5337_v37  ;;  %v5324_v25 = vor.u32 %v5688_v59, %v5321_v51 }
 0x6e3   : > { %3674 = vmatpush.bf16.msrb.mxu1 %v5340_v34 }
 0x6e5   : > { %3643 = vmatpush.bf16.msrb.mxu0 %v5368_v55  ;;  %3615 = vmatpush.bf16.msrb.mxu3 %v5348_v17 }
 0x6e7   : > { %3675 = vmatpush.bf16.msrb.mxu1 %v5324_v25 }
 0x6e9   : > { %3644 = vmatpush.bf16.msrb.mxu0 %v5352_v41  ;;  %3616 = vmatpush.bf16.msrb.mxu3 %v5332_v13  ;;  %v946_v13 = vadd.f32 %v7067_v8, %v888_v3 }
 0x6eb   : > { %v8088_v34 = vperm.slane %v946_v13, 0 }
 0x6ed   : > { %3645 = vmatpush.bf16.msrb.mxu0 %v5336_v42 }
 0x6f1   : > { %3646 = vmatpush.bf16.msrb.mxu0 %v5320_v1 }
 0x711   : > { %v3211_v12 = vpop.xlane.xlu1 %3210 }
 0x712   : > { %v3219_v7 = vmul.f32 %v3211_v12, %v6945_v19  ;;  %v5312_v12 = vor.u32 %v5689_v40, %v5311_v58 }
 0x714   : > { %v7995_v2 = vsub.f32 %v7830_v56, %v3219_v7  ;;  %v5316_v7 = vor.u32 %v5687_v45, %v5313_v30  ;;  %3588 = vmatpush.bf16.msrb.mxu2 %v5312_v12 }
 0x716   : > { %v3235_v6 = vmul.f32 %v7995_v2, %v7995_v2  ;;  %3617 = vmatpush.bf16.msrb.mxu3 %v5316_v7 }
 0x718   : > { %3250 = vadd.xlane.f32.xlu1 %v3235_v6 }
 0x71a   : > { %v3237_v52 = vpop.xlane.xlu2 %3236 }
 0x71b   : > { %v3252_v0 = vmul.f32 %v3237_v52, %v6945_v19  ;;  %v3356_v52 = vadd.f32 1.0, %v959_v16 }
 0x71d   : > { %v3260_v10 = vadd.f32 1e-06, %v3252_v0  ;;  %v8083_v0 = vperm.slane %v3356_v52, 0 }
 0x71f   : > { %6158 = vrsqrt.f32 %v3260_v10  ;;  %vm3274_vm4 = vweird.f32 %v3260_v10 }
 0x722   : > { %v3239_v55 = vpop.xlane.xlu0 %3238  ;;  %v3209_v57 = vpop.xlane.xlu2 %3208 }
 0x723   : > { %v3253_v63 = vmul.f32 %v3239_v55, %v6945_v19  ;;  %v3218_v11 = vmul.f32 %v3209_v57, %v6945_v19 }
 0x725   : > { %v6159_v62 = vpop.eup %6158  ;;  %v3261_v21 = vadd.f32 1e-06, %v3253_v63  ;;  %v8075_v48 = vsub.f32 %v7846_v53, %v3218_v11 }
 0x726   : > { %v3269_v6 = vmul.f32 %v6159_v62, %v3260_v10  ;;  %vm3275_vm3 = vweird.f32 %v6159_v62 }
 0x727   : > { %6160 = vrsqrt.f32 %v3261_v21  ;;  %v3234_v54 = vmul.f32 %v8075_v48, %v8075_v48  ;;  %vm3276_vm5 = vmor %vm3274_vm4, %vm3275_vm3  ;;  %vm3284_vm7 = vweird.f32 %v3261_v21 }
 0x728   : > { %v3270_v35 = vmul.f32 %v6159_v62, %v3269_v6 }
 0x729   : > { %3248 = vadd.xlane.f32.xlu2 %v3234_v54 }
 0x72a   : > { %v3271_v22 = vmul.f32 0.5, %v3270_v35 }
 0x72c   : > { %v3272_v17 = vsub.f32 1.5, %v3271_v22 }
 0x72d   : > { %v6161_v41 = vpop.eup %6160 }
 0x72e   : > { %v3273_v46 = vmul.f32 %v6159_v62, %v3272_v17  ;;  %v3279_v14 = vmul.f32 %v6161_v41, %v3261_v21  ;;  %vm3285_vm6 = vweird.f32 %v6161_v41 }
 0x72f   : > { %vm3286_vm8 = vmor %vm3284_vm7, %vm3285_vm6 }
 0x730   : > { %v3280_v27 = vmul.f32 %v6161_v41, %v3279_v14  ;;  %v3277_v33 = vsel %vm3276_vm5, %v6159_v62, %v3273_v46 }
 0x731   : > { %v3348_v47 = vmul.f32 %v3277_v33, %v7835_v36 }
 0x732   : > { %v3281_v49 = vmul.f32 0.5, %v3280_v27 }
 0x733   : > { %v3358_v42 = vmul.f32 %v8083_v0, %v3348_v47 }
 0x734   : > { %v3282_v43 = vsub.f32 1.5, %v3281_v49 }
 0x735   : > { %v3367_v36 = vadd.f32 %v8088_v34, %v3358_v42 }
 0x736   : > { %v3283_v50 = vmul.f32 %v6161_v41, %v3282_v43 }
 0x738   : > { %v3287_v28 = vsel %vm3286_vm8, %v6161_v41, %v3283_v50 }
 0x739   : > { %v3349_v5 = vmul.f32 %v3287_v28, %v7841_v4 }
 0x73a   : > { %v3241_v37 = vpop.xlane.xlu0 %3240 }
 0x73b   : > { %v3359_v26 = vmul.f32 %v8083_v0, %v3349_v5  ;;  %v3254_v10 = vmul.f32 %v3241_v37, %v6945_v19 }
 0x73d   : > { %v3368_v58 = vadd.f32 %v8088_v34, %v3359_v26  ;;  %v3262_v40 = vadd.f32 1e-06, %v3254_v10 }
 0x73f   : > { %6162 = vrsqrt.f32 %v3262_v40  ;;  %v3375_v8 = vpack.c.bf16 %v3368_v58, %v3367_v36  ;;  %vm3294_vm10 = vweird.f32 %v3262_v40 }
 0x741   : > { %3589 = vmatmul.bf16.vlgmr.msrb.gmra.mxu2 %v3375_v8  ;;  %3618 = vmatmul.bf16.vlgmr.msrb.gmra.mxu3 %v3375_v8 }
 0x742   : > { %3647 = vmatmul.bf16.vlgmr.msrb.gmra.mxu0 %v3375_v8  ;;  %3676 = vmatmul.bf16.vlgmr.msrb.gmra.mxu1 %v3375_v8  ;;  %v3243_v12 = vpop.xlane.xlu2 %3242 }
 0x743   : > { %v3255_v4 = vmul.f32 %v3243_v12, %v6945_v19 }
 0x745   : > { %v6163_v45 = vpop.eup %6162  ;;  %v3263_v30 = vadd.f32 1e-06, %v3255_v4 }
 0x746   : > { %v3289_v20 = vmul.f32 %v6163_v45, %v3262_v40  ;;  %vm3295_vm9 = vweird.f32 %v6163_v45 }
 0x747   : > { %6164 = vrsqrt.f32 %v3263_v30  ;;  %vm3296_vm11 = vmor %vm3294_vm10, %vm3295_vm9  ;;  %vm3304_vm13 = vweird.f32 %v3263_v30 }
 0x748   : > { %v3290_v7 = vmul.f32 %v6163_v45, %v3289_v20 }
 0x74a   : > { %v3291_v29 = vmul.f32 0.5, %v3290_v7  ;;  %v3245_v59 = vpop.xlane.xlu1 %3244 }
 0x74b   : > { %v3256_v51 = vmul.f32 %v3245_v59, %v6945_v19 }
 0x74c   : > { %v3292_v1 = vsub.f32 1.5, %v3291_v29 }
 0x74d   : > { %v6165_v25 = vpop.eup %6164  ;;  %v3264_v55 = vadd.f32 1e-06, %v3256_v51 }
 0x74e   : > { %v3293_v57 = vmul.f32 %v6163_v45, %v3292_v1  ;;  %v3299_v63 = vmul.f32 %v6165_v25, %v3263_v30  ;;  %vm3305_vm12 = vweird.f32 %v6165_v25 }
 0x74f   : > { %6166 = vrsqrt.f32 %v3264_v55  ;;  %vm3306_vm14 = vmor %vm3304_vm13, %vm3305_vm12  ;;  %vm3314_vm0 = vweird.f32 %v3264_v55 }
 0x750   : > { %v3300_v11 = vmul.f32 %v6165_v25, %v3299_v63  ;;  %v3297_v62 = vsel %vm3296_vm11, %v6163_v45, %v3293_v57 }
 0x751   : > { %v3350_v44 = vmul.f32 %v3297_v62, %v7851_v39 }
 0x752   : > { %v3301_v21 = vmul.f32 0.5, %v3300_v11  ;;  %v3247_v6 = vpop.xlane.xlu0 %3246 }
 0x753   : > { %v3257_v54 = vmul.f32 %v3247_v6, %v6945_v19  ;;  %v3360_v33 = vmul.f32 %v8083_v0, %v3350_v44  ;;  %v5742_v44 = vld [vmem:[#allocation15 + $0xb8] sm:$0xff] }
 0x754   : > { %v3302_v35 = vsub.f32 1.5, %v3301_v21  ;;  %4671 = vmatpush.bf16.msra.mxu0 %v5742_v44  ;;  %v5730_v44 = vld [vmem:[#allocation15 + $0x58] sm:$0xff] }
 0x755   : > { %v6167_v22 = vpop.eup %6166  ;;  %v3265_v17 = vadd.f32 1e-06, %v3257_v54  ;;  %v3369_v47 = vadd.f32 %v8088_v34, %v3360_v33 }
 0x756   : > { %v3303_v41 = vmul.f32 %v6165_v25, %v3302_v35  ;;  %v3309_v46 = vmul.f32 %v6167_v22, %v3264_v55  ;;  %vm3315_vm15 = vweird.f32 %v6167_v22 }
 0x757   : > { %6168 = vrsqrt.f32 %v3265_v17  ;;  %vm3316_vm1 = vmor %vm3314_vm0, %vm3315_vm15  ;;  %vm3324_vm3 = vweird.f32 %v3265_v17 }
 0x758   : > { %v3307_v14 = vsel %vm3306_vm14, %v6165_v25, %v3303_v41  ;;  %v3310_v16 = vmul.f32 %v6167_v22, %v3309_v46 }
 0x759   : > { %v3351_v27 = vmul.f32 %v3307_v14, %v7857_v32 }
 0x75a   : > { %v3311_v49 = vmul.f32 0.5, %v3310_v16 }
 0x75b   : > { %v3361_v52 = vmul.f32 %v8083_v0, %v3351_v27 }
 0x75c   : > { %v3312_v3 = vsub.f32 1.5, %v3311_v49 }
 0x75d   : > { %v6169_v43 = vpop.eup %6168  ;;  %v3370_v39 = vadd.f32 %v8088_v34, %v3361_v52 }
 0x75e   : > { %v3313_v50 = vmul.f32 %v6167_v22, %v3312_v3  ;;  %v3319_v13 = vmul.f32 %v6169_v43, %v3265_v17  ;;  %vm3325_vm2 = vweird.f32 %v6169_v43  ;;  %v5750_v17 = vld [vmem:[#allocation15 + $0xf8] sm:$0xff]  ;;  %v5749_v3 = vld [vmem:[#allocation15 + $0xf0] sm:$0xff] }
 0x75f   : > { %v3376_v28 = vpack.c.bf16 %v3370_v39, %v3369_v47  ;;  %vm3326_vm4 = vmor %vm3324_vm3, %vm3325_vm2  ;;  %4700 = vmatpush.bf16.msra.mxu1 %v5750_v17 }
 0x760   : > { %v3320_v42 = vmul.f32 %v6169_v43, %v3319_v13  ;;  %v3317_v32 = vsel %vm3316_vm1, %v6167_v22, %v3313_v50  ;;  %v5740_v13 = vld [vmem:[#allocation15 + $0xa8] sm:$0xff] }
 0x761   : > { %3594 = vmatmul.bf16.gmra.mxu2 %v3376_v28  ;;  %3623 = vmatmul.bf16.gmra.mxu3 %v3376_v28  ;;  %v3352_v26 = vmul.f32 %v3317_v32, %v7863_v61 }
 0x762   : > { %v3321_v5 = vmul.f32 0.5, %v3320_v42  ;;  %3652 = vmatmul.bf16.gmra.mxu0 %v3376_v28  ;;  %3681 = vmatmul.bf16.gmra.mxu1 %v3376_v28  ;;  %v5748_v28 = vld [vmem:[#allocation15 + $0xe8] sm:$0xff] }
 0x763   : > { %v3362_v40 = vmul.f32 %v8083_v0, %v3352_v26  ;;  %4701 = vmatpush.bf16.msra.mxu1 %v5749_v3  ;;  %v5725_v26 = vld [vmem:[#allocation15 + $0x30] sm:$0xff] }
 0x764   : > { %v3322_v37 = vsub.f32 1.5, %v3321_v5  ;;  %v5729_v3 = vld [vmem:[#allocation15 + $0x50] sm:$0xff] }
 0x765   : > { %v3371_v12 = vadd.f32 %v8088_v34, %v3362_v40  ;;  %v5739_v40 = vld [vmem:[#allocation15 + $0xa0] sm:$0xff] }
 0x766   : > { %v3323_v10 = vmul.f32 %v6169_v43, %v3322_v37 }
 0x767   : > { %4702 = vmatpush.bf16.msra.mxu1 %v5748_v28 }
 0x768   : > { %v3327_v36 = vsel %vm3326_vm4, %v6169_v43, %v3323_v10  ;;  %v5726_v43 = vld [vmem:[#allocation15 + $0x38] sm:$0xff]  ;;  %v5733_v10 = vld [vmem:[#allocation15 + $0x70] sm:$0xff] }
 0x769   : > { %v3353_v58 = vmul.f32 %v3327_v36, %v7869_v15  ;;  %4613 = vmatpush.bf16.msra.mxu2 %v5726_v43 }
 0x76b   : > { %v3363_v8 = vmul.f32 %v8083_v0, %v3353_v58 }
 0x76d   : > { %v3372_v4 = vadd.f32 %v8088_v34, %v3363_v8  ;;  %4614 = vmatpush.bf16.msra.mxu2 %v5725_v26  ;;  %v5747_v8 = vld [vmem:[#allocation15 + $0xe0] sm:$0xff] }
 0x76e   : > { %4703 = vmatpush.bf16.msra.mxu1 %v5747_v8  ;;  %v5743_v26 = vld [vmem:[#allocation15 + $0xc0] sm:$0xff] }
 0x76f   : > { %v3377_v45 = vpack.c.bf16 %v3372_v4, %v3371_v12 }
 0x771   : > { %3599 = vmatmul.bf16.gmra.mxu2 %v3377_v45  ;;  %3628 = vmatmul.bf16.gmra.mxu3 %v3377_v45 }
 0x772   : > { %3657 = vmatmul.bf16.gmra.mxu0 %v3377_v45  ;;  %3686 = vmatmul.bf16.gmra.mxu1 %v3377_v45  ;;  %v5724_v45 = vld [vmem:[#allocation15 + $0x28] sm:$0xff] }
 0x773   : > { %4615 = vmatpush.bf16.msra.mxu2 %v5724_v45  ;;  %v5720_v45 = vld [vmem:[#allocation15 + $0x8] sm:$0xff] }
 0x78b   : > { %v3251_v61 = vpop.xlane.xlu1 %3250 }
 0x78c   : > { %v3259_v30 = vmul.f32 %v3251_v61, %v6945_v19  ;;  %v5732_v61 = vld [vmem:[#allocation15 + $0x68] sm:$0xff] }
 0x78e   : > { %v3267_v20 = vadd.f32 1e-06, %v3259_v30 }
 0x790   : > { %6170 = vrsqrt.f32 %v3267_v20  ;;  %vm3344_vm6 = vweird.f32 %v3267_v20 }
 0x796   : > { %v6171_v7 = vpop.eup %6170 }
 0x797   : > { %v3339_v15 = vmul.f32 %v6171_v7, %v3267_v20  ;;  %vm3345_vm5 = vweird.f32 %v6171_v7 }
 0x798   : > { %vm3346_vm7 = vmor %vm3344_vm6, %vm3345_vm5 }
 0x799   : > { %v3340_v29 = vmul.f32 %v6171_v7, %v3339_v15 }
 0x79b   : > { %v3341_v25 = vmul.f32 0.5, %v3340_v29 }
 0x79c   : > { %v3249_v59 = vpop.xlane.xlu2 %3248 }
 0x79d   : > { %v3258_v51 = vmul.f32 %v3249_v59, %v6945_v19  ;;  %v3342_v55 = vsub.f32 1.5, %v3341_v25 }
 0x79f   : > { %v3266_v1 = vadd.f32 1e-06, %v3258_v51  ;;  %v3343_v63 = vmul.f32 %v6171_v7, %v3342_v55  ;;  %v5738_v51 = vld [vmem:[#allocation15 + $0x98] sm:$0xff] }
 0x7a1   : > { %6172 = vrsqrt.f32 %v3266_v1  ;;  %v3347_v21 = vsel %vm3346_vm7, %v6171_v7, %v3343_v63  ;;  %vm3334_vm9 = vweird.f32 %v3266_v1  ;;  %v5731_v63 = vld [vmem:[#allocation15 + $0x60] sm:$0xff] }
 0x7a2   : > { %v3355_v35 = vmul.f32 %v3347_v21, %v7995_v2  ;;  %v3411_v2 = vld [vmem:[#allocation14] sm:$0xf] }
 0x7a3   : > { %v8117_v49 = vperm.slane %v3411_v2, 2  ;;  %v8119_v52 = vperm.slane %v3411_v2, 3  ;;  %v8127_v42 = vperm.slane %v3411_v2, 0  ;;  %v8129_v32 = vperm.slane %v3411_v2, 1 }
 0x7a4   : > { %v3365_v46 = vmul.f32 %v8083_v0, %v3355_v35  ;;  %v5737_v35 = vld [vmem:[#allocation15 + $0x90] sm:$0xff] }
 0x7a6   : > { %v3374_v27 = vadd.f32 %v8088_v34, %v3365_v46 }
 0x7a7   : > { %v6173_v57 = vpop.eup %6172 }
 0x7a8   : > { %v3329_v11 = vmul.f32 %v6173_v57, %v3266_v1  ;;  %vm3335_vm8 = vweird.f32 %v6173_v57  ;;  %v5746_v1 = vld [vmem:[#allocation15 + $0xd8] sm:$0xff] }
 0x7a9   : > { %vm3336_vm10 = vmor %vm3334_vm9, %vm3335_vm8  ;;  %4704 = vmatpush.bf16.msra.mxu1 %v5746_v1 }
 0x7aa   : > { %v3330_v62 = vmul.f32 %v6173_v57, %v3329_v11 }
 0x7ac   : > { %v3331_v6 = vmul.f32 0.5, %v3330_v62 }
 0x7ae   : > { %v3332_v54 = vsub.f32 1.5, %v3331_v6 }
 0x7b0   : > { %v3333_v22 = vmul.f32 %v6173_v57, %v3332_v54 }
 0x7b2   : > { %v3337_v19 = vsel %vm3336_vm10, %v6173_v57, %v3333_v22  ;;  %v5723_v57 = vld [vmem:[#allocation15 + $0x20] sm:$0xff]  ;;  %v5745_v22 = vld [vmem:[#allocation15 + $0xd0] sm:$0xff] }
 0x7b3   : > { %v3354_v41 = vmul.f32 %v3337_v19, %v8075_v48  ;;  %v5741_v48 = vld [vmem:[#allocation15 + $0xb0] sm:$0xff]  ;;  %4616 = vmatpush.bf16.msra.mxu2 %v5723_v57  ;;  %4705 = vmatpush.bf16.msra.mxu1 %v5745_v22  ;;  %v5722_v19 = vld [vmem:[#allocation15 + $0x18] sm:$0xff] }
 0x7b4   : > { %4672 = vmatpush.bf16.msra.mxu0 %v5741_v48  ;;  %v5721_v48 = vld [vmem:[#allocation15 + $0x10] sm:$0xff] }
 0x7b5   : > { %v3364_v14 = vmul.f32 %v8083_v0, %v3354_v41  ;;  %v5734_v0 = vld [vmem:[#allocation15 + $0x78] sm:$0xff] }
 0x7b6   : > { %4642 = vmatpush.bf16.msra.mxu3 %v5734_v0 }
 0x7b7   : > { %v3373_v16 = vadd.f32 %v8088_v34, %v3364_v14  ;;  %4617 = vmatpush.bf16.msra.mxu2 %v5722_v19 }
 0x7b8   : > { %4673 = vmatpush.bf16.msra.mxu0 %v5740_v13 }
 0x7b9   : > { %v3378_v33 = vpack.c.bf16 %v3374_v27, %v3373_v16  ;;  %v5736_v16 = vld [vmem:[#allocation15 + $0x88] sm:$0xff] }
 0x7ba   : > { %4643 = vmatpush.bf16.msra.mxu3 %v5733_v10  ;;  %v5744_v27 = vld [vmem:[#allocation15 + $0xc8] sm:$0xff] }
 0x7bb   : > { %3604 = vmatmul.bf16.gmra.mxu2 %v3378_v33  ;;  %3633 = vmatmul.bf16.gmra.mxu3 %v3378_v33 }
 0x7bc   : > { %3662 = vmatmul.bf16.gmra.mxu0 %v3378_v33  ;;  %3691 = vmatmul.bf16.gmra.mxu1 %v3378_v33 }
 0x7bd   : > { %4674 = vmatpush.bf16.msra.mxu0 %v5739_v40  ;;  %4706 = vmatpush.bf16.msra.mxu1 %v5744_v27 }
 0x7be   : > { %4644 = vmatpush.bf16.msra.mxu3 %v5732_v61  ;;  %4618 = vmatpush.bf16.msra.mxu2 %v5721_v48  ;;  %v5728_v61 = vld [vmem:[#allocation15 + $0x48] sm:$0xff] }
 0x7bf   : > { %v3648_v47 = vpop.f32.mrf.mxu0  ;;  %v3677_v39 = vpop.f32.mrf.mxu1 }
 0x7c0   : > { %v8122_v34 = vadd.f32 %v3648_v47, %v8117_v49  ;;  %v8125_v50 = vadd.f32 %v3677_v39, %v8119_v52 }
 0x7c1   : > { %4675 = vmatpush.bf16.msra.mxu0 %v5738_v51  ;;  %4707 = vmatpush.bf16.msra.mxu1 %v5743_v26  ;;  %v5719_v26 = vld [vmem:[#allocation15] sm:$0xff] }
 0x7c2   : > { %v5439_v5 = vmul.f32 -1.442695, %v8122_v34  ;;  %v5440_v37 = vmul.f32 -1.442695, %v8125_v50  ;;  %4645 = vmatpush.bf16.msra.mxu3 %v5731_v63  ;;  %4619 = vmatpush.bf16.msra.mxu2 %v5720_v45 }
 0x7c4   : > { %6174 = vpow2.f32 %v5439_v5  ;;  %v3590_v36 = vpop.f32.mrf.mxu2  ;;  %v3619_v58 = vpop.f32.mrf.mxu3 }
 0x7c5   : > { %6176 = vpow2.f32 %v5440_v37  ;;  %v8134_v12 = vadd.f32 %v3590_v36, %v8127_v42  ;;  %v8137_v4 = vadd.f32 %v3619_v58, %v8129_v32  ;;  %4676 = vmatpush.bf16.msra.mxu0 %v5737_v35  ;;  %v5735_v37 = vld [vmem:[#allocation15 + $0x80] sm:$0xff] }
 0x7c6   : > { %4646 = vmatpush.bf16.msra.mxu3 %v5730_v44  ;;  %4620 = vmatpush.bf16.msra.mxu2 %v5719_v26 }
 0x7c7   : > { %v5437_v30 = vmul.f32 -1.442695, %v8134_v12  ;;  %v5438_v20 = vmul.f32 -1.442695, %v8137_v4  ;;  %v3650_v7 = vpop.f32.mrf.mxu0  ;;  %v3679_v15 = vpop.f32.mrf.mxu1 }
 0x7c8   : > { %v8142_v29 = vadd.f32 %v3650_v7, %v8117_v49  ;;  %v8145_v59 = vadd.f32 %v3679_v15, %v8119_v52 }
 0x7c9   : > { %6178 = vpow2.f32 %v5437_v30  ;;  %4677 = vmatpush.bf16.msra.mxu0 %v5736_v16 }
 0x7ca   : > { %v6175_v25 = vpop.eup %6174  ;;  %6180 = vpow2.f32 %v5438_v20  ;;  %v5443_v55 = vmul.f32 -1.442695, %v8142_v29  ;;  %v5444_v21 = vmul.f32 -1.442695, %v8145_v59  ;;  %4647 = vmatpush.bf16.msra.mxu3 %v5729_v3 }
 0x7cb   : > { %v6177_v11 = vpop.eup %6176  ;;  %v8148_v62 = vadd.f32 1.0, %v6175_v25 }
 0x7cc   : > { %v8151_v6 = vadd.f32 1.0, %v6177_v11  ;;  %6182 = vpow2.f32 %v5443_v55  ;;  %v3592_v54 = vpop.f32.mrf.mxu2  ;;  %v3621_v5 = vpop.f32.mrf.mxu3 }
 0x7cd   : > { %6184 = vrcp.f32 %v8148_v62  ;;  %v8156_v41 = vadd.f32 %v3592_v54, %v8127_v42  ;;  %v3864_v36 = vand.u32 2147483647, %v8148_v62  ;;  %4678 = vmatpush.bf16.msra.mxu0 %v5735_v37  ;;  %v3866_v20 = vand.u32 2147483648, %v8148_v62 }
 0x7ce   : > { %6186 = vrcp.f32 %v8151_v6  ;;  %v8182_v7 = vadd.f32 %v3621_v5, %v8129_v32  ;;  %v3879_v51 = vand.u32 2147483647, %v8151_v6  ;;  %v3881_v1 = vand.u32 2147483648, %v8151_v6  ;;  %4648 = vmatpush.bf16.msra.mxu3 %v5728_v61 }
 0x7cf   : > { %v6179_v17 = vpop.eup %6178  ;;  %6188 = vpow2.f32 %v5444_v21  ;;  %v5441_v0 = vmul.f32 -1.442695, %v8156_v41  ;;  %vm3860_vm11 = vweird.f32 %v8148_v62  ;;  %vm8189_vm12 = vcmp.eq.f32.partialorder %v3864_v36, 8.507059e+37 }
 0x7d0   : > { %v6181_v46 = vpop.eup %6180  ;;  %v8158_v14 = vadd.f32 1.0, %v6179_v17  ;;  %vm3875_vm13 = vweird.f32 %v8151_v6  ;;  %v3867_v21 = vor.u32 1.1754944e-38, %v3866_v20  ;;  %v5442_v22 = vmul.f32 -1.442695, %v8182_v7 }
 0x7d1   : > { %v8160_v33 = vadd.f32 1.0, %v6181_v46  ;;  %vm8205_vm15 = vcmp.eq.f32.partialorder %v3879_v51, 8.507059e+37  ;;  %v3882_v17 = vor.u32 1.1754944e-38, %v3881_v1 }
 0x7d2   : > { %v6183_v2 = vpop.eup %6182  ;;  %6190 = vrcp.f32 %v8158_v14  ;;  %v3836_v55 = vand.u32 2147483648, %v8158_v14  ;;  %v3834_v46 = vand.u32 2147483647, %v8158_v14  ;;  %vm3830_vm6 = vweird.f32 %v8158_v14 }
 0x7d3   : > { %v8162_v43 = vpop.eup %6184  ;;  %6192 = vrcp.f32 %v8160_v33  ;;  %v8174_v58 = vadd.f32 1.0, %v6183_v2  ;;  %v3849_v16 = vand.u32 2147483647, %v8160_v33 }
 0x7d4   : > { %v8166_v47 = vpop.eup %6186  ;;  %v3856_v39 = vmul.f32 %v8162_v43, %v8148_v62  ;;  %6194 = vpow2.f32 %v5441_v0  ;;  %vm3861_vm14 = vweird.f32 %v8162_v43  ;;  %v8219_v3 = vor.u32 1.1754944e-38, %v3836_v55 }
 0x7d5   : > { %v6189_v13 = vpop.eup %6188  ;;  %v3871_v28 = vmul.f32 %v8166_v47, %v8151_v6  ;;  %6196 = vrcp.f32 %v8174_v58  ;;  %v3924_v35 = vand.u32 2147483647, %v8174_v58  ;;  %v3926_v27 = vand.u32 2147483648, %v8174_v58  ;;  %vm8214_vm0 = vmor %vm3860_vm11, %vm3861_vm14 }
 0x7d6   : > { %v3857_v10 = vsub.f32 1.0, %v3856_v39  ;;  %v8176_v8 = vadd.f32 1.0, %v6189_v13  ;;  %vm3876_vm1 = vweird.f32 %v8166_v47  ;;  %v3851_v39 = vand.u32 2147483648, %v8160_v33 }
 0x7d7   : > { %v3872_v40 = vsub.f32 1.0, %v3871_v28  ;;  %vm3920_vm2 = vweird.f32 %v8174_v58  ;;  %vm8231_vm4 = vcmp.eq.f32.partialorder %v3924_v35, 8.507059e+37  ;;  %vm8249_vm5 = vmor %vm3875_vm13, %vm3876_vm1  ;;  %vm8268_vm9 = vcmp.eq.f32.partialorder %v3834_v46, 8.507059e+37 }
 0x7d8   : > { %v3858_v30 = vmul.f32 %v8162_v43, %v3857_v10  ;;  %v8184_v15 = vpop.eup %6190  ;;  %6198 = vrcp.f32 %v8176_v8  ;;  %v5727_v10 = vld [vmem:[#allocation15 + $0x40] sm:$0xff]  ;;  %vm3935_vm7 = vweird.f32 %v8176_v8  ;;  %v3939_v35 = vand.u32 2147483647, %v8176_v8 }
 0x7d9   : > { %v8195_v57 = vpop.eup %6192  ;;  %v3873_v11 = vmul.f32 %v8166_v47, %v3872_v40  ;;  %v3826_v54 = vmul.f32 %v8184_v15, %v8158_v14  ;;  %vm3831_vm3 = vweird.f32 %v8184_v15  ;;  %6200 = vpow2.f32 %v5442_v22  ;;  %4649 = vmatpush.bf16.msra.mxu3 %v5727_v10 }
 0x7da   : > { %v3859_v63 = vadd.f32 %v8162_v43, %v3858_v30  ;;  %v6195_v19 = vpop.eup %6194  ;;  %v3841_v0 = vmul.f32 %v8195_v57, %v8160_v33  ;;  %v3927_v30 = vor.u32 1.1754944e-38, %v3926_v27  ;;  %v3941_v22 = vand.u32 2147483648, %v8176_v8 }
 0x7db   : > { %v6197_v2 = vpop.eup %6196  ;;  %v3874_v28 = vadd.f32 %v8166_v47, %v3873_v11  ;;  %v3827_v36 = vsub.f32 1.0, %v3826_v54  ;;  %v8235_v45 = vadd.f32 1.0, %v6195_v19  ;;  %vm3846_vm14 = vweird.f32 %v8195_v57 }
 0x7dc   : > { %v3863_v13 = vsel %vm8214_vm0, %v8162_v43, %v3859_v63  ;;  %v3916_v62 = vmul.f32 %v6197_v2, %v8174_v58  ;;  %v3842_v63 = vsub.f32 1.0, %v3841_v0  ;;  %vm3921_vm8 = vweird.f32 %v6197_v2  ;;  %vm8296_vm0 = vmor %vm3830_vm6, %vm3831_vm3 }
 0x7dd   : > { %v3868_v1 = vsel %vm8189_vm12, %v3867_v21, %v3863_v13  ;;  %v3878_v25 = vsel %vm8249_vm5, %v8166_v47, %v3874_v28  ;;  %6202 = vrcp.f32 %v8235_v45  ;;  %v3828_v6 = vmul.f32 %v8184_v15, %v3827_v36  ;;  %vm3922_vm10 = vmor %vm3920_vm2, %vm3921_vm8 }
 0x7de   : > { %v6199_v43 = vpop.eup %6198  ;;  %v3917_v61 = vsub.f32 1.0, %v3916_v62  ;;  %v4307_v27 = vmul.f32 %v3868_v1, %v8122_v34  ;;  %v3883_v28 = vsel %vm8205_vm15, %v3882_v17, %v3878_v25  ;;  %vm3845_vm12 = vweird.f32 %v8160_v33 }
 0x7df   : > { %v3653_v5 = vpop.f32.mrf.mxu0  ;;  %v3682_v37 = vpop.f32.mrf.mxu1  ;;  %v3931_v11 = vmul.f32 %v6199_v43, %v8176_v8  ;;  %vm3936_vm11 = vweird.f32 %v6199_v43  ;;  %v3829_v44 = vadd.f32 %v8184_v15, %v3828_v6  ;;  %v3942_v1 = vor.u32 1.1754944e-38, %v3941_v22  ;;  %vm8333_vm3 = vmor %vm3845_vm12, %vm3846_vm14 }
 0x7e0   : > { %v8238_v20 = vadd.f32 %v3653_v5, %v8117_v49  ;;  %v8241_v51 = vadd.f32 %v3682_v37, %v8119_v52  ;;  %v3918_v21 = vmul.f32 %v6197_v2, %v3917_v61  ;;  %v6201_v47 = vpop.eup %6200  ;;  %v3843_v37 = vmul.f32 %v8195_v57, %v3842_v63  ;;  %vm3937_vm13 = vmor %vm3935_vm7, %vm3936_vm11 }
 0x7e1   : > { %v3932_v54 = vsub.f32 1.0, %v3931_v11  ;;  %v8279_v10 = vadd.f32 1.0, %v6201_v47  ;;  %vm3940_vm15 = vcmp.eq.f32.partialorder %v3939_v35, 8.507059e+37  ;;  %v4308_v63 = vmul.f32 %v3883_v28, %v8125_v50 }
 0x7e2   : > { %v3919_v48 = vadd.f32 %v6197_v2, %v3918_v21  ;;  %v5447_v0 = vmul.f32 -1.442695, %v8238_v20  ;;  %v5448_v13 = vmul.f32 -1.442695, %v8241_v51  ;;  %v3844_v21 = vadd.f32 %v8195_v57, %v3843_v37 }
 0x7e3   : > { %v3933_v5 = vmul.f32 %v6199_v43, %v3932_v54  ;;  %v6203_v36 = vpop.eup %6202  ;;  %vm8309_vm1 = vcmp.eq.f32.partialorder %v3849_v16, 8.507059e+37  ;;  %v3894_v35 = vand.u32 2147483647, %v8235_v45  ;;  %v3896_v22 = vand.u32 2147483648, %v8235_v45 }
 0x7e4   : > { %v3595_v19 = vpop.f32.mrf.mxu2  ;;  %v3923_v26 = vsel %vm3922_vm10, %v6197_v2, %v3919_v48  ;;  %6204 = vpow2.f32 %v5447_v0  ;;  %v3624_v46 = vpop.f32.mrf.mxu3  ;;  %v3886_v40 = vmul.f32 %v6203_v36, %v8235_v45  ;;  %vm3891_vm2 = vweird.f32 %v6203_v36 }
 0x7e5   : > { %v8275_v34 = vadd.f32 %v3595_v19, %v8127_v42  ;;  %v3928_v17 = vsel %vm8231_vm4, %v3927_v30, %v3923_v26  ;;  %v3934_v58 = vadd.f32 %v6199_v43, %v3933_v5  ;;  %6206 = vpow2.f32 %v5448_v13 }
 0x7e6   : > { %v4311_v61 = vmul.f32 %v3928_v17, %v8142_v29  ;;  %6208 = vrcp.f32 %v8279_v10  ;;  %v8301_v25 = vadd.f32 %v3624_v46, %v8129_v32  ;;  %v3887_v6 = vsub.f32 1.0, %v3886_v40 }
 0x7e7   : > { %v5445_v2 = vmul.f32 -1.442695, %v8275_v34  ;;  %v3938_v55 = vsel %vm3937_vm13, %v6199_v43, %v3934_v58  ;;  %v3655_v30 = vpop.f32.mrf.mxu0  ;;  %v3833_v43 = vsel %vm8296_vm0, %v8184_v15, %v3829_v44  ;;  %v3852_v13 = vor.u32 1.1754944e-38, %v3851_v39  ;;  %v3684_v39 = vpop.f32.mrf.mxu1 }
 0x7e8   : > { %v4339_v8 = vpack.c.bf16 %v4311_v61, %v4307_v27  ;;  %v3943_v11 = vsel %vm3940_vm15, %v3942_v1, %v3938_v55  ;;  %v8317_v19 = vadd.f32 %v3655_v30, %v8117_v49  ;;  %v3888_v48 = vmul.f32 %v6203_v36, %v3887_v6 }
 0x7e9   : > { %v4312_v14 = vmul.f32 %v3943_v11, %v8145_v59  ;;  %6210 = vpow2.f32 %v5445_v2  ;;  %v3838_v59 = vsel %vm8268_vm9, %v8219_v3, %v3833_v43  ;;  %v5446_v28 = vmul.f32 -1.442695, %v8301_v25 }
 0x7ea   : > { %v6205_v54 = vpop.eup %6204  ;;  %4679 = vmatmul.bf16.vlgmr.msra.gmra.mxu0 %v4339_v8  ;;  %v3889_v37 = vadd.f32 %v6203_v36, %v3888_v48  ;;  %vm3890_vm4 = vweird.f32 %v8235_v45  ;;  %v3848_v62 = vsel %vm8333_vm3, %v8195_v57, %v3844_v21  ;;  %v3897_v33 = vor.u32 1.1754944e-38, %v3896_v22 }
 0x7eb   : > { %v6207_v15 = vpop.eup %6206  ;;  %v4340_v27 = vpack.c.bf16 %v4312_v14, %v4308_v63  ;;  %v8319_v16 = vadd.f32 1.0, %v6205_v54  ;;  %vm3892_vm5 = vmor %vm3890_vm4, %vm3891_vm2  ;;  %v5451_v26 = vmul.f32 -1.442695, %v8317_v19  ;;  %v4305_v44 = vmul.f32 %v3838_v59, %v8134_v12 }
 0x7ec   : > { %v6209_v0 = vpop.eup %6208  ;;  %v8326_v47 = vadd.f32 1.0, %v6207_v15  ;;  %v3893_v45 = vsel %vm3892_vm5, %v6203_v36, %v3889_v37  ;;  %vm3895_vm6 = vcmp.eq.f32.partialorder %v3894_v35, 8.507059e+37  ;;  %v3911_v61 = vand.u32 2147483648, %v8279_v10  ;;  %v3597_v43 = vpop.f32.mrf.mxu2 }
 0x7ed   : > { %v3901_v3 = vmul.f32 %v6209_v0, %v8279_v10  ;;  %6212 = vrcp.f32 %v8319_v16  ;;  %4708 = vmatmul.bf16.vlgmr.msra.gmra.mxu1 %v4340_v27  ;;  %v3898_v46 = vsel %vm3895_vm6, %v3897_v33, %v3893_v45  ;;  %v8349_v1 = vadd.f32 %v3684_v39, %v8119_v52  ;;  %v3626_v50 = vpop.f32.mrf.mxu3 }
 0x7ee   : > { %6214 = vrcp.f32 %v8326_v47  ;;  %v4309_v57 = vmul.f32 %v3898_v46, %v8156_v41  ;;  %vm3906_vm7 = vweird.f32 %v6209_v0  ;;  %v3909_v55 = vand.u32 2147483647, %v8279_v10 }
 0x7ef   : > { %v3902_v17 = vsub.f32 1.0, %v3901_v3  ;;  %v6211_v58 = vpop.eup %6210  ;;  %6216 = vpow2.f32 %v5446_v28  ;;  %v3853_v12 = vsel %vm8309_vm1, %v3852_v13, %v3848_v62  ;;  %vm3905_vm8 = vweird.f32 %v8279_v10  ;;  %v3658_v62 = vpop.f32.mrf.mxu0 }
 0x7f0   : > { %6218 = vpow2.f32 %v5451_v26  ;;  %v4337_v40 = vpack.c.bf16 %v4309_v57, %v4305_v44  ;;  %v8358_v63 = vadd.f32 1.0, %v6211_v58  ;;  %vm3907_vm9 = vmor %vm3905_vm8, %vm3906_vm7  ;;  %v3912_v41 = vor.u32 1.1754944e-38, %v3911_v61 }
 0x7f1   : > { %v3903_v2 = vmul.f32 %v6209_v0, %v3902_v17  ;;  %v5452_v11 = vmul.f32 -1.442695, %v8349_v1  ;;  %vm3910_vm10 = vcmp.eq.f32.partialorder %v3909_v55, 8.507059e+37  ;;  %v4306_v6 = vmul.f32 %v3853_v12, %v8137_v4 }
 0x7f2   : > { %4621 = vmatmul.bf16.vlgmr.msra.gmra.mxu2 %v4337_v40  ;;  %6220 = vrcp.f32 %v8358_v63  ;;  %v8371_v22 = vadd.f32 %v3597_v43, %v8127_v42  ;;  %v8374_v48 = vadd.f32 %v3626_v50, %v8129_v32  ;;  %v3984_v3 = vand.u32 2147483647, %v8319_v16 }
 0x7f3   : > { %v8355_v36 = vpop.eup %6212  ;;  %v3904_v30 = vadd.f32 %v6209_v0, %v3903_v2  ;;  %6222 = vpow2.f32 %v5452_v11  ;;  %v3986_v39 = vand.u32 2147483648, %v8319_v16  ;;  %vm3980_vm11 = vweird.f32 %v8319_v16  ;;  %v3687_v11 = vpop.f32.mrf.mxu1 }
 0x7f4   : > { %v8360_v29 = vpop.eup %6214  ;;  %v3976_v8 = vmul.f32 %v8355_v36, %v8319_v16  ;;  %v5449_v13 = vmul.f32 -1.442695, %v8371_v22  ;;  %v5450_v5 = vmul.f32 -1.442695, %v8374_v48  ;;  %vm3995_vm12 = vweird.f32 %v8326_v47 }
 0x7f5   : > { %v3908_v21 = vsel %vm3907_vm9, %v6209_v0, %v3904_v30  ;;  %v6217_v14 = vpop.eup %6216  ;;  %v3991_v35 = vmul.f32 %v8360_v29, %v8326_v47  ;;  %v3999_v26 = vand.u32 2147483647, %v8326_v47  ;;  %v4001_v44 = vand.u32 2147483648, %v8326_v47 }
 0x7f6   : > { %v3913_v10 = vsel %vm3910_vm10, %v3912_v41, %v3908_v21  ;;  %v6219_v15 = vpop.eup %6218  ;;  %v3977_v27 = vsub.f32 1.0, %v3976_v8  ;;  %v8376_v59 = vadd.f32 1.0, %v6217_v14  ;;  %v3956_v17 = vand.u32 2147483648, %v8358_v63 }
 0x7f7   : > { %v4310_v54 = vmul.f32 %v3913_v10, %v8182_v7  ;;  %v8378_v4 = vadd.f32 1.0, %v6219_v15  ;;  %v3992_v7 = vsub.f32 1.0, %v3991_v35  ;;  %vm3981_vm13 = vweird.f32 %v8355_v36  ;;  %v3600_v35 = vpop.f32.mrf.mxu2 }
 0x7f8   : > { %v3978_v28 = vmul.f32 %v8355_v36, %v3977_v27  ;;  %v8384_v37 = vpop.eup %6220  ;;  %v8400_v61 = vadd.f32 %v3658_v62, %v8117_v49  ;;  %vm8402_vm14 = vcmp.eq.f32.partialorder %v3984_v3, 8.507059e+37  ;;  %v3987_v55 = vor.u32 1.1754944e-38, %v3986_v39  ;;  %vm8421_vm0 = vmor %vm3980_vm11, %vm3981_vm13  ;;  %v3629_v39 = vpop.f32.mrf.mxu3 }
 0x7f9   : > { %v4338_v0 = vpack.c.bf16 %v4310_v54, %v4306_v6  ;;  %6224 = vrcp.f32 %v8378_v4  ;;  %v6223_v33 = vpop.eup %6222  ;;  %v3993_v45 = vmul.f32 %v8360_v29, %v3992_v7  ;;  %v8408_v12 = vmul.f32 %v8384_v37, %v8358_v63 }
 0x7fa   : > { %6226 = vrcp.f32 %v8376_v59  ;;  %v8395_v58 = vadd.f32 1.0, %v6223_v33  ;;  %v3979_v46 = vadd.f32 %v8355_v36, %v3978_v28  ;;  %vm8411_vm15 = vcmp.eq.f32.partialorder %v3999_v26, 8.507059e+37 }
 0x7fb   : > { %4650 = vmatmul.bf16.vlgmr.msra.gmra.mxu3 %v4338_v0  ;;  %6228 = vpow2.f32 %v5449_v13  ;;  %v4002_v30 = vor.u32 1.1754944e-38, %v4001_v44  ;;  %v3954_v41 = vand.u32 2147483647, %v8358_v63  ;;  %v3994_v50 = vadd.f32 %v8360_v29, %v3993_v45 }
 0x7fc   : > { %6230 = vpow2.f32 %v5450_v5  ;;  %vm3996_vm1 = vweird.f32 %v8360_v29  ;;  %v8427_v14 = vor.u32 1.1754944e-38, %v3956_v17  ;;  %v5455_v6 = vmul.f32 -1.442695, %v8400_v61 }
 0x7fd   : > { %6232 = vrcp.f32 %v8395_v58  ;;  %v3983_v10 = vsel %vm8421_vm0, %v8355_v36, %v3979_v46  ;;  %vm4040_vm2 = vweird.f32 %v8378_v4  ;;  %v4044_v16 = vand.u32 2147483647, %v8378_v4  ;;  %vm8442_vm3 = vmor %vm3995_vm12, %vm3996_vm1  ;;  %v3660_v46 = vpop.f32.mrf.mxu0 }
 0x7fe   : > { %v3947_v27 = vsub.f32 1.0, %v8408_v12  ;;  %v4046_v0 = vand.u32 2147483648, %v8378_v4  ;;  %6234 = vpow2.f32 %v5455_v6  ;;  %v8438_v7 = vadd.f32 %v3687_v11, %v8119_v52 }
 0x7ff   : > { %v6225_v57 = vpop.eup %6224  ;;  %v3988_v33 = vsel %vm8402_vm14, %v3987_v55, %v3983_v10  ;;  %v3998_v47 = vsel %vm8442_vm3, %v8360_v29, %v3994_v50  ;;  %v8458_v44 = vadd.f32 %v3600_v35, %v8127_v42  ;;  %vm4045_vm5 = vcmp.eq.f32.partialorder %v4044_v16, 8.507059e+37 }
 0x800   : > { %v4036_v8 = vmul.f32 %v6225_v57, %v8378_v4  ;;  %v8417_v43 = vpop.eup %6226  ;;  %vm4041_vm4 = vweird.f32 %v6225_v57  ;;  %v4047_v2 = vor.u32 1.1754944e-38, %v4046_v0  ;;  %v5456_v29 = vmul.f32 -1.442695, %v8438_v7 }
 0x801   : > { %v6229_v15 = vpop.eup %6228  ;;  %v3961_v28 = vmul.f32 %v8417_v43, %v8376_v59  ;;  %vm4042_vm6 = vmor %vm4040_vm2, %vm4041_vm4  ;;  %v8467_v55 = vadd.f32 %v3629_v39, %v8129_v32  ;;  %v4315_v12 = vmul.f32 %v3988_v33, %v8238_v20  ;;  %v4061_v21 = vand.u32 2147483648, %v8395_v58  ;;  %v3689_v20 = vpop.f32.mrf.mxu1 }
 0x802   : > { %v4037_v54 = vsub.f32 1.0, %v4036_v8  ;;  %v6231_v13 = vpop.eup %6230  ;;  %v8448_v3 = vadd.f32 1.0, %v6229_v15  ;;  %v4003_v6 = vsel %vm8411_vm15, %v4002_v30, %v3998_v47  ;;  %v5453_v10 = vmul.f32 -1.442695, %v8458_v44 }
 0x803   : > { %v6233_v62 = vpop.eup %6232  ;;  %v8455_v26 = vadd.f32 1.0, %v6231_v13  ;;  %v4059_v35 = vand.u32 2147483647, %v8395_v58  ;;  %vm4055_vm8 = vweird.f32 %v8395_v58  ;;  %v5454_v40 = vmul.f32 -1.442695, %v8467_v55 }
 0x804   : > { %v4038_v5 = vmul.f32 %v6225_v57, %v4037_v54  ;;  %v4051_v17 = vmul.f32 %v6233_v62, %v8395_v58  ;;  %6236 = vrcp.f32 %v8448_v3  ;;  %v6235_v50 = vpop.eup %6234  ;;  %v8475_v54 = vadd.f32 %v3660_v46, %v8117_v49 }
 0x805   : > { %6238 = vrcp.f32 %v8455_v26  ;;  %vm4056_vm7 = vweird.f32 %v6233_v62  ;;  %v8478_v15 = vadd.f32 1.0, %v6235_v50  ;;  %vm3950_vm9 = vweird.f32 %v8358_v63 }
 0x806   : > { %v4039_v45 = vadd.f32 %v6225_v57, %v4038_v5  ;;  %v4052_v11 = vsub.f32 1.0, %v4051_v17  ;;  %6240 = vpow2.f32 %v5456_v29  ;;  %v4062_v36 = vor.u32 1.1754944e-38, %v4061_v21  ;;  %vm4057_vm10 = vmor %vm4055_vm8, %vm4056_vm7 }
 0x807   : > { %6242 = vrcp.f32 %v8478_v15  ;;  %v8494_v39 = vadd.f32 %v3689_v20, %v8119_v52  ;;  %v3948_v33 = vmul.f32 %v8384_v37, %v3947_v27  ;;  %vm4060_vm11 = vcmp.eq.f32.partialorder %v4059_v35, 8.507059e+37  ;;  %v3602_v35 = vpop.f32.mrf.mxu2 }
 0x808   : > { %v4043_v8 = vsel %vm4042_vm6, %v6225_v57, %v4039_v45  ;;  %v4053_v16 = vmul.f32 %v6233_v62, %v4052_v11  ;;  %v3962_v57 = vsub.f32 1.0, %v3961_v28  ;;  %6244 = vpow2.f32 %v5453_v10 }
 0x809   : > { %v4048_v4 = vsel %vm4045_vm5, %v4047_v2, %v4043_v8  ;;  %v5459_v28 = vmul.f32 -1.442695, %v8475_v54  ;;  %6246 = vpow2.f32 %v5454_v40  ;;  %v4316_v2 = vmul.f32 %v4003_v6, %v8241_v51 }
 0x80a   : > { %v8482_v30 = vpop.eup %6236  ;;  %v4319_v0 = vmul.f32 %v4048_v4, %v8317_v19  ;;  %v4054_v13 = vadd.f32 %v6233_v62, %v4053_v16  ;;  %v3963_v45 = vmul.f32 %v8417_v43, %v3962_v57  ;;  %vm3965_vm12 = vweird.f32 %v8376_v59 }
 0x80b   : > { %v8487_v5 = vpop.eup %6238  ;;  %v4006_v58 = vmul.f32 %v8482_v30, %v8448_v3  ;;  %6248 = vpow2.f32 %v5459_v28  ;;  %vm3951_vm13 = vweird.f32 %v8384_v37  ;;  %v3969_v4 = vand.u32 2147483647, %v8376_v59 }
 0x80c   : > { %v4058_v19 = vsel %vm4057_vm10, %v6233_v62, %v4054_v13  ;;  %v4021_v47 = vmul.f32 %v8487_v5, %v8455_v26  ;;  %v6241_v11 = vpop.eup %6240  ;;  %v5460_v62 = vmul.f32 -1.442695, %v8494_v39  ;;  %v4343_v21 = vpack.c.bf16 %v4319_v0, %v4315_v12  ;;  %vm8530_vm1 = vmor %vm3950_vm9, %vm3951_vm13 }
 0x80d   : > { %v4063_v17 = vsel %vm4060_vm11, %v4062_v36, %v4058_v19  ;;  %v4007_v46 = vsub.f32 1.0, %v4006_v58  ;;  %v8505_v50 = vpop.eup %6242  ;;  %v8509_v10 = vadd.f32 1.0, %v6241_v11  ;;  %vm8514_vm14 = vcmp.eq.f32.partialorder %v3954_v41, 8.507059e+37 }
 0x80e   : > { %v4320_v29 = vmul.f32 %v4063_v17, %v8349_v1  ;;  %v4022_v8 = vsub.f32 1.0, %v4021_v47  ;;  %v6245_v6 = vpop.eup %6244  ;;  %v3949_v1 = vadd.f32 %v8384_v37, %v3948_v33  ;;  %v3964_v12 = vadd.f32 %v8417_v43, %v3963_v45  ;;  %4684 = vmatmul.bf16.gmra.mxu0 %v4343_v21 }
 0x80f   : > { %v4008_v27 = vmul.f32 %v8482_v30, %v4007_v46  ;;  %vm3966_vm15 = vweird.f32 %v8417_v43  ;;  %vm4011_vm0 = vweird.f32 %v8482_v30  ;;  %v4096_v40 = vmul.f32 %v8505_v50, %v8478_v15  ;;  %v6247_v41 = vpop.eup %6246  ;;  %v3631_v46 = vpop.f32.mrf.mxu3 }
 0x810   : > { %v4344_v51 = vpack.c.bf16 %v4320_v29, %v4316_v2  ;;  %v4023_v57 = vmul.f32 %v8487_v5, %v4022_v8  ;;  %6250 = vrcp.f32 %v8509_v10  ;;  %v3971_v13 = vand.u32 2147483648, %v8376_v59  ;;  %vm8542_vm2 = vmor %vm3965_vm12, %vm3966_vm15 }
 0x811   : > { %v4009_v20 = vadd.f32 %v8482_v30, %v4008_v27  ;;  %v4016_v36 = vand.u32 2147483648, %v8448_v3  ;;  %v8536_v58 = vadd.f32 1.0, %v6245_v6  ;;  %6252 = vpow2.f32 %v5460_v62  ;;  %v6249_v47 = vpop.eup %6248 }
 0x812   : > { %4713 = vmatmul.bf16.gmra.mxu1 %v4344_v51  ;;  %vm8546_vm3 = vcmp.eq.f32.partialorder %v3969_v4, 8.507059e+37  ;;  %vm4010_vm4 = vweird.f32 %v8448_v3  ;;  %v4014_v33 = vand.u32 2147483647, %v8448_v3  ;;  %v8553_v19 = vadd.f32 %v3602_v35, %v8127_v42 }
 0x813   : > { %v3953_v59 = vsel %vm8530_vm1, %v8384_v37, %v3949_v1  ;;  %v3968_v45 = vsel %vm8542_vm2, %v8417_v43, %v3964_v12  ;;  %vm8563_vm5 = vmor %vm4010_vm4, %vm4011_vm0  ;;  %vm4026_vm6 = vweird.f32 %v8487_v5  ;;  %v8568_v3 = vadd.f32 1.0, %v6247_v41 }
 0x814   : > { %v4013_v2 = vsel %vm8563_vm5, %v8482_v30, %v4009_v20  ;;  %v4024_v37 = vadd.f32 %v8487_v5, %v4023_v57  ;;  %v4097_v29 = vsub.f32 1.0, %v4096_v40  ;;  %6254 = vrcp.f32 %v8536_v58 }
 0x815   : > { %v4017_v43 = vor.u32 1.1754944e-38, %v4016_v36  ;;  %vm4025_vm7 = vweird.f32 %v8455_v26  ;;  %v4029_v8 = vand.u32 2147483647, %v8455_v26  ;;  %v4031_v11 = vand.u32 2147483648, %v8455_v26 }
 0x816   : > { %v8578_v27 = vpop.eup %6250  ;;  %vm4015_vm8 = vcmp.eq.f32.partialorder %v4014_v33, 8.507059e+37  ;;  %v8580_v62 = vadd.f32 1.0, %v6249_v47  ;;  %v5457_v21 = vmul.f32 -1.442695, %v8553_v19  ;;  %v8584_v30 = vadd.f32 %v3631_v46, %v8129_v32  ;;  %vm8588_vm9 = vmor %vm4025_vm7, %vm4026_vm6 }
 0x817   : > { %v6253_v4 = vpop.eup %6252  ;;  %v3972_v51 = vor.u32 1.1754944e-38, %v3971_v13  ;;  %v4018_v6 = vsel %vm4015_vm8, %v4017_v43, %v4013_v2  ;;  %v4111_v26 = vmul.f32 %v8578_v27, %v8509_v10  ;;  %6256 = vrcp.f32 %v8568_v3 }
 0x818   : > { %v3958_v12 = vsel %vm8514_vm14, %v8427_v14, %v3953_v59  ;;  %v4028_v35 = vsel %vm8588_vm9, %v8487_v5, %v4024_v37  ;;  %v4098_v20 = vmul.f32 %v8505_v50, %v4097_v29  ;;  %6258 = vrcp.f32 %v8580_v62 }
 0x819   : > { %v3973_v57 = vsel %vm8546_vm3, %v3972_v51, %v3968_v45  ;;  %vm4030_vm10 = vcmp.eq.f32.partialorder %v4029_v8, 8.507059e+37  ;;  %v4032_v40 = vor.u32 1.1754944e-38, %v4031_v11  ;;  %v4104_v41 = vand.u32 2147483647, %v8478_v15 }
 0x81a   : > { %v8606_v0 = vpop.eup %6254  ;;  %v4317_v16 = vmul.f32 %v4018_v6, %v8371_v22  ;;  %v8609_v14 = vadd.f32 1.0, %v6253_v4  ;;  %6260 = vpow2.f32 %v5457_v21  ;;  %v5458_v5 = vmul.f32 -1.442695, %v8584_v30 }
 0x81b   : > { %v4313_v13 = vmul.f32 %v3958_v12, %v8275_v34  ;;  %v4033_v36 = vsel %vm4030_vm10, %v4032_v40, %v4028_v35  ;;  %v4106_v28 = vand.u32 2147483648, %v8478_v15  ;;  %v4112_v63 = vsub.f32 1.0, %v4111_v26 }
 0x81c   : > { %v4099_v33 = vadd.f32 %v8505_v50, %v4098_v20  ;;  %vm4101_vm11 = vweird.f32 %v8505_v50  ;;  %v4121_v47 = vand.u32 2147483648, %v8509_v10  ;;  %6262 = vrcp.f32 %v8609_v14 }
 0x81d   : > { %v8618_v22 = vpop.eup %6256  ;;  %v4314_v59 = vmul.f32 %v3973_v57, %v8301_v25  ;;  %vm4100_vm12 = vweird.f32 %v8478_v15  ;;  %v4119_v34 = vand.u32 2147483647, %v8509_v10  ;;  %v4066_v45 = vmul.f32 %v8606_v0, %v8536_v58 }
 0x81e   : > { %v6259_v17 = vpop.eup %6258  ;;  %v4318_v46 = vmul.f32 %v4033_v36, %v8374_v48  ;;  %vm8626_vm13 = vcmp.eq.f32.partialorder %v4104_v41, 8.507059e+37  ;;  %6264 = vpow2.f32 %v5458_v5  ;;  %v4341_v37 = vpack.c.bf16 %v4317_v16, %v4313_v13  ;;  %vm8630_vm14 = vmor %vm4100_vm12, %vm4101_vm11 }
 0x81f   : > { %v4107_v25 = vor.u32 1.1754944e-38, %v4106_v28  ;;  %v4113_v15 = vmul.f32 %v8578_v27, %v4112_v63  ;;  %vm4115_vm15 = vweird.f32 %v8509_v10  ;;  %v4156_v43 = vmul.f32 %v6259_v17, %v8580_v62 }
 0x820   : > { %v6261_v8 = vpop.eup %6260  ;;  %v4103_v48 = vsel %vm8630_vm14, %v8505_v50, %v4099_v33  ;;  %v4122_v11 = vor.u32 1.1754944e-38, %v4121_v47  ;;  %v4074_v21 = vand.u32 2147483647, %v8536_v58  ;;  %v4081_v4 = vmul.f32 %v8618_v22, %v8568_v3  ;;  %4626 = vmatmul.bf16.gmra.mxu2 %v4341_v37 }
 0x821   : > { %vm8643_vm0 = vcmp.eq.f32.partialorder %v4119_v34, 8.507059e+37  ;;  %v4067_v6 = vsub.f32 1.0, %v4066_v45  ;;  %v4157_v1 = vsub.f32 1.0, %v4156_v43  ;;  %v4164_v26 = vand.u32 2147483647, %v8580_v62 }
 0x822   : > { %v8648_v12 = vadd.f32 1.0, %v6261_v8  ;;  %v6263_v35 = vpop.eup %6262  ;;  %vm4116_vm1 = vweird.f32 %v8578_v27  ;;  %v4076_v50 = vand.u32 2147483648, %v8536_v58  ;;  %v4166_v20 = vand.u32 2147483648, %v8580_v62 }
 0x823   : > { %v4342_v57 = vpack.c.bf16 %v4318_v46, %v4314_v59  ;;  %v4114_v40 = vadd.f32 %v8578_v27, %v4113_v15  ;;  %vm4070_vm2 = vweird.f32 %v8536_v58  ;;  %v4158_v41 = vmul.f32 %v6259_v17, %v4157_v1  ;;  %vm8664_vm5 = vmor %vm4115_vm15, %vm4116_vm1 }
 0x824   : > { %vm4161_vm3 = vweird.f32 %v6259_v17  ;;  %v4171_v16 = vmul.f32 %v6263_v35, %v8609_v14  ;;  %v6265_v5 = vpop.eup %6264  ;;  %v4108_v13 = vsel %vm8626_vm13, %v4107_v25, %v4103_v48  ;;  %v4082_v36 = vsub.f32 1.0, %v4081_v4 }
 0x825   : > { %vm4160_vm4 = vweird.f32 %v8580_v62  ;;  %6266 = vrcp.f32 %v8648_v12  ;;  %4655 = vmatmul.bf16.gmra.mxu3 %v4342_v57  ;;  %v4068_v63 = vmul.f32 %v8606_v0, %v4067_v6  ;;  %v4159_v33 = vadd.f32 %v6259_v17, %v4158_v41 }
 0x826   : > { %vm4165_vm6 = vcmp.eq.f32.partialorder %v4164_v26, 8.507059e+37  ;;  %v4172_v47 = vsub.f32 1.0, %v4171_v16  ;;  %vm4085_vm7 = vweird.f32 %v8568_v3  ;;  %vm4162_vm8 = vmor %vm4160_vm4, %vm4161_vm3  ;;  %v4167_v62 = vor.u32 1.1754944e-38, %v4166_v20 }
 0x827   : > { %v4179_v59 = vand.u32 2147483647, %v8609_v14  ;;  %v4181_v34 = vand.u32 2147483648, %v8609_v14  ;;  %v8672_v45 = vadd.f32 1.0, %v6265_v5  ;;  %v4118_v10 = vsel %vm8664_vm5, %v8578_v27, %v4114_v40 }
 0x828   : > { %v4163_v46 = vsel %vm4162_vm8, %v6259_v17, %v4159_v33  ;;  %v4173_v2 = vmul.f32 %v6263_v35, %v4172_v47  ;;  %vm4176_vm9 = vweird.f32 %v6263_v35  ;;  %vm4071_vm10 = vweird.f32 %v8606_v0 }
 0x829   : > { %v4083_v37 = vmul.f32 %v8618_v22, %v4082_v36  ;;  %v4168_v29 = vsel %vm4165_vm6, %v4167_v62, %v4163_v46  ;;  %6268 = vrcp.f32 %v8672_v45  ;;  %v4069_v25 = vadd.f32 %v8606_v0, %v4068_v63  ;;  %vm8696_vm1 = vmor %vm4070_vm2, %vm4071_vm10 }
 0x82a   : > { %v4327_v15 = vmul.f32 %v4168_v29, %v8475_v54  ;;  %v4174_v43 = vadd.f32 %v6263_v35, %v4173_v2  ;;  %vm4175_vm11 = vweird.f32 %v8609_v14  ;;  %v4323_v27 = vmul.f32 %v4108_v13, %v8400_v61 }
 0x82b   : > { %v6267_v8 = vpop.eup %6266  ;;  %v4123_v17 = vsel %vm8643_vm0, %v4122_v11, %v4118_v10  ;;  %vm8686_vm12 = vcmp.eq.f32.partialorder %v4074_v21, 8.507059e+37  ;;  %vm4177_vm13 = vmor %vm4175_vm11, %vm4176_vm9  ;;  %v4182_v4 = vor.u32 1.1754944e-38, %v4181_v34  ;;  %vm4086_vm14 = vweird.f32 %v8618_v22 }
 0x82c   : > { %v4178_v6 = vsel %vm4177_vm13, %v6263_v35, %v4174_v43  ;;  %vm4180_vm15 = vcmp.eq.f32.partialorder %v4179_v59, 8.507059e+37  ;;  %v4126_v54 = vmul.f32 %v6267_v8, %v8648_v12  ;;  %v4084_v14 = vadd.f32 %v8618_v22, %v4083_v37  ;;  %vm8714_vm0 = vmor %vm4085_vm7, %vm4086_vm14 }
 0x82d   : > { %v4183_v11 = vsel %vm4180_vm15, %v4182_v4, %v4178_v6  ;;  %v4134_v21 = vand.u32 2147483647, %v8648_v12  ;;  %v4347_v51 = vpack.c.bf16 %v4327_v15, %v4323_v27  ;;  %v4324_v1 = vmul.f32 %v4123_v17, %v8438_v7 }
 0x82e   : > { %v4073_v26 = vsel %vm8696_vm1, %v8606_v0, %v4069_v25  ;;  %v4328_v35 = vmul.f32 %v4183_v11, %v8494_v39  ;;  %v4127_v20 = vsub.f32 1.0, %v4126_v54  ;;  %v4077_v57 = vor.u32 1.1754944e-38, %v4076_v50 }
 0x82f   : > { %v6269_v58 = vpop.eup %6268  ;;  %v4089_v40 = vand.u32 2147483647, %v8568_v3  ;;  %v4091_v41 = vand.u32 2147483648, %v8568_v3  ;;  %v4136_v16 = vand.u32 2147483648, %v8648_v12  ;;  %4689 = vmatmul.bf16.gmra.mxu0 %v4347_v51  ;;  %vm4131_vm2 = vweird.f32 %v6267_v8 }
 0x830   : > { %v4128_v0 = vmul.f32 %v6267_v8, %v4127_v20  ;;  %v4141_v39 = vmul.f32 %v6269_v58, %v8672_v45  ;;  %v4348_v50 = vpack.c.bf16 %v4328_v35, %v4324_v1  ;;  %v4078_v5 = vsel %vm8686_vm12, %v4077_v57, %v4073_v26 }
 0x831   : > { %v4088_v13 = vsel %vm8714_vm0, %v8618_v22, %v4084_v14  ;;  %vm4130_vm3 = vweird.f32 %v8648_v12  ;;  %vm8725_vm4 = vcmp.eq.f32.partialorder %v4134_v21, 8.507059e+37  ;;  %v4137_v59 = vor.u32 1.1754944e-38, %v4136_v16 }
 0x832   : > { %v4129_v63 = vadd.f32 %v6267_v8, %v4128_v0  ;;  %v4142_v33 = vsub.f32 1.0, %v4141_v39  ;;  %4718 = vmatmul.bf16.gmra.mxu1 %v4348_v50  ;;  %vm4132_vm5 = vmor %vm4130_vm3, %vm4131_vm2  ;;  %vm4146_vm6 = vweird.f32 %v6269_v58  ;;  %v4149_v22 = vand.u32 2147483647, %v8672_v45 }
 0x833   : > { %v4151_v12 = vand.u32 2147483648, %v8672_v45  ;;  %v4321_v37 = vmul.f32 %v4078_v5, %v8458_v44  ;;  %vm4090_vm7 = vcmp.eq.f32.partialorder %v4089_v40, 8.507059e+37  ;;  %v4092_v29 = vor.u32 1.1754944e-38, %v4091_v41 }
 0x834   : > { %v4133_v34 = vsel %vm4132_vm5, %v6267_v8, %v4129_v63  ;;  %v4143_v10 = vmul.f32 %v6269_v58, %v4142_v33  ;;  %vm4145_vm8 = vweird.f32 %v8672_v45  ;;  %vm4150_vm10 = vcmp.eq.f32.partialorder %v4149_v22, 8.507059e+37 }
 0x835   : > { %v4138_v25 = vsel %vm8725_vm4, %v4137_v59, %v4133_v34  ;;  %v4093_v8 = vsel %vm4090_vm7, %v4092_v29, %v4088_v13  ;;  %vm4147_vm9 = vmor %vm4145_vm8, %vm4146_vm6  ;;  %v4152_v17 = vor.u32 1.1754944e-38, %v4151_v12 }
 0x836   : > { %v4325_v15 = vmul.f32 %v4138_v25, %v8553_v19  ;;  %v4144_v43 = vadd.f32 %v6269_v58, %v4143_v10  ;;  %v4322_v45 = vmul.f32 %v4093_v8, %v8467_v55 }
 0x838   : > { %v4148_v44 = vsel %vm4147_vm9, %v6269_v58, %v4144_v43  ;;  %v4345_v4 = vpack.c.bf16 %v4325_v15, %v4321_v37 }
 0x839   : > { %v3663_v36 = vpop.f32.mrf.mxu0  ;;  %v3692_v28 = vpop.f32.mrf.mxu1  ;;  %v4153_v6 = vsel %vm4150_vm10, %v4152_v17, %v4148_v44 }
 0x83a   : > { %v8730_v47 = vadd.f32 %v3663_v36, %v8117_v49  ;;  %v8733_v62 = vadd.f32 %v3692_v28, %v8119_v52  ;;  %v4326_v14 = vmul.f32 %v4153_v6, %v8584_v30  ;;  %4631 = vmatmul.bf16.gmra.mxu2 %v4345_v4 }
 0x83c   : > { %v5463_v46 = vmul.f32 -1.442695, %v8730_v47  ;;  %v5464_v2 = vmul.f32 -1.442695, %v8733_v62  ;;  %v4346_v1 = vpack.c.bf16 %v4326_v14, %v4322_v45 }
 0x83e   : > { %6270 = vpow2.f32 %v5463_v46  ;;  %v3605_v27 = vpop.f32.mrf.mxu2  ;;  %v3634_v19 = vpop.f32.mrf.mxu3  ;;  %4660 = vmatmul.bf16.gmra.mxu3 %v4346_v1 }
 0x83f   : > { %6272 = vpow2.f32 %v5464_v2  ;;  %v8746_v48 = vadd.f32 %v3605_v27, %v8127_v42  ;;  %v8755_v26 = vadd.f32 %v3634_v19, %v8129_v32 }
 0x841   : > { %v5461_v54 = vmul.f32 -1.442695, %v8746_v48  ;;  %v3665_v61 = vpop.f32.mrf.mxu0  ;;  %v3694_v21 = vpop.f32.mrf.mxu1  ;;  %v5462_v40 = vmul.f32 -1.442695, %v8755_v26 }
 0x842   : > { %v8752_v11 = vadd.f32 %v3665_v61, %v8117_v49  ;;  %v8759_v20 = vadd.f32 %v3694_v21, %v8119_v52 }
 0x843   : > { %6274 = vpow2.f32 %v5461_v54 }
 0x844   : > { %v6271_v51 = vpop.eup %6270  ;;  %v5467_v35 = vmul.f32 -1.442695, %v8752_v11  ;;  %v5468_v49 = vmul.f32 -1.442695, %v8759_v20 }
 0x845   : > { %v6273_v58 = vpop.eup %6272  ;;  %v3819_v55 = vadd.f32 1.0, %v6271_v51 }
 0x846   : > { %v8761_v30 = vadd.f32 1.0, %v6273_v58  ;;  %6276 = vpow2.f32 %v5467_v35  ;;  %v3607_v57 = vpop.f32.mrf.mxu2  ;;  %v3636_v22 = vpop.f32.mrf.mxu3 }
 0x847   : > { %6278 = vrcp.f32 %v3819_v55  ;;  %v8767_v16 = vadd.f32 %v3607_v57, %v8127_v42  ;;  %v4224_v10 = vand.u32 2147483647, %v3819_v55  ;;  %v4226_v46 = vand.u32 2147483648, %v3819_v55 }
 0x848   : > { %6280 = vrcp.f32 %v8761_v30  ;;  %v4239_v37 = vand.u32 2147483647, %v8761_v30  ;;  %v8795_v25 = vadd.f32 %v3636_v22, %v8129_v32  ;;  %vm4220_vm11 = vweird.f32 %v3819_v55 }
 0x849   : > { %v6275_v41 = vpop.eup %6274  ;;  %6282 = vpow2.f32 %v5468_v49  ;;  %v5465_v39 = vmul.f32 -1.442695, %v8767_v16  ;;  %vm4235_vm12 = vweird.f32 %v8761_v30  ;;  %v4241_v27 = vand.u32 2147483648, %v8761_v30 }
 0x84a   : > { %v8769_v52 = vadd.f32 1.0, %v6275_v41  ;;  %6284 = vpow2.f32 %v5462_v40  ;;  %vm8804_vm14 = vcmp.eq.f32.partialorder %v4224_v10, 8.507059e+37  ;;  %v4227_v32 = vor.u32 1.1754944e-38, %v4226_v46 }
 0x84b   : > { %vm8811_vm15 = vcmp.eq.f32.partialorder %v4239_v37, 8.507059e+37  ;;  %v5466_v14 = vmul.f32 -1.442695, %v8795_v25 }
 0x84c   : > { %v6277_v7 = vpop.eup %6276  ;;  %6286 = vrcp.f32 %v8769_v52 }
 0x84d   : > { %v8771_v0 = vpop.eup %6278  ;;  %v8780_v42 = vadd.f32 1.0, %v6277_v7  ;;  %6288 = vpow2.f32 %v5465_v39 }
 0x84e   : > { %v8774_v50 = vpop.eup %6280  ;;  %v4216_v5 = vmul.f32 %v8771_v0, %v3819_v55  ;;  %vm4221_vm13 = vweird.f32 %v8771_v0  ;;  %v4242_v55 = vor.u32 1.1754944e-38, %v4241_v27 }
 0x84f   : > { %v6283_v13 = vpop.eup %6282  ;;  %v4231_v3 = vmul.f32 %v8774_v50, %v8761_v30  ;;  %6290 = vrcp.f32 %v8780_v42  ;;  %v4286_v4 = vand.u32 2147483648, %v8780_v42  ;;  %vm8817_vm1 = vmor %vm4220_vm11, %vm4221_vm13  ;;  %vm4236_vm0 = vweird.f32 %v8774_v50 }
 0x850   : > { %v4217_v36 = vsub.f32 1.0, %v4216_v5  ;;  %v8782_v28 = vadd.f32 1.0, %v6283_v13  ;;  %v6285_v63 = vpop.eup %6284  ;;  %v4284_v1 = vand.u32 2147483647, %v8780_v42  ;;  %vm4280_vm3 = vweird.f32 %v8780_v42  ;;  %vm8834_vm4 = vmor %vm4235_vm12, %vm4236_vm0 }
 0x851   : > { %v4232_v59 = vsub.f32 1.0, %v4231_v3  ;;  %v8788_v34 = vadd.f32 1.0, %v6285_v63  ;;  %v4287_v57 = vor.u32 1.1754944e-38, %v4286_v4  ;;  %vm4190_vm12 = vweird.f32 %v8769_v52 }
 0x852   : > { %v8785_v33 = vpop.eup %6286  ;;  %v4218_v12 = vmul.f32 %v8771_v0, %v4217_v36  ;;  %6292 = vrcp.f32 %v8782_v28  ;;  %v4301_v5 = vand.u32 2147483648, %v8782_v28  ;;  %vm4285_vm8 = vcmp.eq.f32.partialorder %v4284_v1, 8.507059e+37 }
 0x853   : > { %v6289_v2 = vpop.eup %6288  ;;  %v4186_v29 = vmul.f32 %v8785_v33, %v8769_v52  ;;  %v4233_v43 = vmul.f32 %v8774_v50, %v4232_v59  ;;  %6294 = vrcp.f32 %v8788_v34  ;;  %vm4191_vm7 = vweird.f32 %v8785_v33 }
 0x854   : > { %v4219_v8 = vadd.f32 %v8771_v0, %v4218_v12  ;;  %v8809_v6 = vadd.f32 1.0, %v6289_v2  ;;  %vm4295_vm9 = vweird.f32 %v8782_v28  ;;  %vm8860_vm13 = vmor %vm4190_vm12, %vm4191_vm7 }
 0x855   : > { %v6291_v15 = vpop.eup %6290  ;;  %v4187_v61 = vsub.f32 1.0, %v4186_v29  ;;  %v4234_v51 = vadd.f32 %v8774_v50, %v4233_v43 }
 0x856   : > { %v4276_v17 = vmul.f32 %v6291_v15, %v8780_v42  ;;  %v4223_v58 = vsel %vm8817_vm1, %v8771_v0, %v4219_v8  ;;  %vm4281_vm2 = vweird.f32 %v6291_v15  ;;  %6296 = vrcp.f32 %v8809_v6 }
 0x857   : > { %v4188_v39 = vmul.f32 %v8785_v33, %v4187_v61  ;;  %6298 = vpow2.f32 %v5466_v14  ;;  %v4228_v13 = vsel %vm8804_vm14, %v4227_v32, %v4223_v58  ;;  %vm4282_vm5 = vmor %vm4280_vm3, %vm4281_vm2  ;;  %v4299_v42 = vand.u32 2147483647, %v8782_v28 }
 0x858   : > { %v6293_v54 = vpop.eup %6292  ;;  %v4277_v45 = vsub.f32 1.0, %v4276_v17  ;;  %v4238_v30 = vsel %vm8834_vm4, %v8774_v50, %v4234_v51  ;;  %v4331_v10 = vmul.f32 %v4228_v13, %v8730_v47  ;;  %v4302_v50 = vor.u32 1.1754944e-38, %v4301_v5 }
 0x859   : > { %v4291_v35 = vmul.f32 %v6293_v54, %v8782_v28  ;;  %v8830_v41 = vpop.eup %6294  ;;  %vm4296_vm6 = vweird.f32 %v6293_v54  ;;  %v4189_v46 = vadd.f32 %v8785_v33, %v4188_v39  ;;  %v4243_v37 = vsel %vm8811_vm15, %v4242_v55, %v4238_v30 }
 0x85a   : > { %v4278_v49 = vmul.f32 %v6291_v15, %v4277_v45  ;;  %v4201_v63 = vmul.f32 %v8830_v41, %v8788_v34  ;;  %vm4297_vm10 = vmor %vm4295_vm9, %vm4296_vm6  ;;  %vm4300_vm11 = vcmp.eq.f32.partialorder %v4299_v42, 8.507059e+37  ;;  %v4196_v28 = vand.u32 2147483648, %v8769_v52 }
 0x85b   : > { %v4292_v40 = vsub.f32 1.0, %v4291_v35  ;;  %v4194_v8 = vand.u32 2147483647, %v8769_v52  ;;  %v4332_v4 = vmul.f32 %v4243_v37, %v8733_v62  ;;  %v4256_v61 = vand.u32 2147483648, %v8809_v6 }
 0x85c   : > { %v4279_v0 = vadd.f32 %v6291_v15, %v4278_v49  ;;  %v6297_v12 = vpop.eup %6296  ;;  %v4202_v19 = vsub.f32 1.0, %v4201_v63  ;;  %v4254_v14 = vand.u32 2147483647, %v8809_v6  ;;  %v4197_v52 = vor.u32 1.1754944e-38, %v4196_v28 }
 0x85d   : > { %v4293_v3 = vmul.f32 %v6293_v54, %v4292_v40  ;;  %v6299_v43 = vpop.eup %6298  ;;  %vm4251_vm14 = vweird.f32 %v6297_v12  ;;  %vm4195_vm15 = vcmp.eq.f32.partialorder %v4194_v8, 8.507059e+37  ;;  %vm4250_vm1 = vweird.f32 %v8809_v6 }
 0x85e   : > { %v4283_v36 = vsel %vm4282_vm5, %v6291_v15, %v4279_v0  ;;  %v4246_v15 = vmul.f32 %v6297_v12, %v8809_v6  ;;  %v3822_v32 = vadd.f32 1.0, %v6299_v43  ;;  %v4203_v51 = vmul.f32 %v8830_v41, %v4202_v19  ;;  %vm4252_vm0 = vmor %vm4250_vm1, %vm4251_vm14 }
 0x85f   : > { %v4288_v59 = vsel %vm4285_vm8, %v4287_v57, %v4283_v36  ;;  %v4294_v22 = vadd.f32 %v6293_v54, %v4293_v3  ;;  %vm4255_vm2 = vcmp.eq.f32.partialorder %v4254_v14, 8.507059e+37  ;;  %vm4206_vm3 = vweird.f32 %v8830_v41 }
 0x860   : > { %v4335_v2 = vmul.f32 %v4288_v59, %v8752_v11  ;;  %v4247_v44 = vsub.f32 1.0, %v4246_v15  ;;  %6300 = vrcp.f32 %v3822_v32  ;;  %v4204_v57 = vadd.f32 %v8830_v41, %v4203_v51 }
 0x861   : > { %v4298_v29 = vsel %vm4297_vm10, %v6293_v54, %v4294_v22  ;;  %v4193_v54 = vsel %vm8860_vm13, %v8785_v33, %v4189_v46  ;;  %v4257_v33 = vor.u32 1.1754944e-38, %v4256_v61  ;;  %v4211_v6 = vand.u32 2147483648, %v8788_v34  ;;  %v6311_v46 = vld [vmem:[%s8968_s3] sm:$0x3f] }
 0x862   : > { %v4303_v27 = vsel %vm4300_vm11, %v4302_v50, %v4298_v29  ;;  %v4351_v47 = vpack.c.bf16 %v4335_v2, %v4331_v10  ;;  %v4248_v45 = vmul.f32 %v6297_v12, %v4247_v44  ;;  %v4198_v62 = vsel %vm4195_vm15, %v4197_v52, %v4193_v54 }
 0x863   : > { %v4336_v17 = vmul.f32 %v4303_v27, %v8759_v20  ;;  %v4329_v49 = vmul.f32 %v4198_v62, %v8746_v48  ;;  %vm4205_vm4 = vweird.f32 %v8788_v34  ;;  %v4209_v39 = vand.u32 2147483647, %v8788_v34 }
 0x864   : > { %4694 = vmatmul.bf16.gmra.mxu0 %v4351_v47  ;;  %v4249_v20 = vadd.f32 %v6297_v12, %v4248_v45  ;;  %vm4207_vm5 = vmor %vm4205_vm4, %vm4206_vm3  ;;  %v4271_v5 = vand.u32 2147483648, %v3822_v32  ;;  %v4212_v3 = vor.u32 1.1754944e-38, %v4211_v6  ;;  %vm4265_vm8 = vweird.f32 %v3822_v32 }
 0x865   : > { %v4352_v21 = vpack.c.bf16 %v4336_v17, %v4332_v4  ;;  %v4208_v48 = vsel %vm4207_vm5, %v8830_v41, %v4204_v57  ;;  %vm4210_vm7 = vcmp.eq.f32.partialorder %v4209_v39, 8.507059e+37  ;;  %v8887_v41 = vld [vmem:[%s9072_s25] ss:$0 sm:$0xff]  ;;  %v890_v2 = vperm.slane %v6311_v46, 5 }
 0x866   : > { %v4253_v1 = vsel %vm4252_vm0, %v6297_v12, %v4249_v20  ;;  %v6301_v58 = vpop.eup %6300  ;;  %v4213_v30 = vsel %vm4210_vm7, %v4212_v3, %v4208_v48  ;;  %v4272_v36 = vor.u32 1.1754944e-38, %v4271_v5 }
 0x867   : > { %4723 = vmatmul.bf16.gmra.mxu1 %v4352_v21  ;;  %v4258_v35 = vsel %vm4255_vm2, %v4257_v33, %v4253_v1  ;;  %v4261_v40 = vmul.f32 %v6301_v58, %v3822_v32  ;;  %vm4266_vm6 = vweird.f32 %v6301_v58  ;;  %v4330_v34 = vmul.f32 %v4213_v30, %v8755_v26  ;;  %v4680_v37 = vpop.f32.mrf.mxu0 }
 0x868   : > { %v4333_v55 = vmul.f32 %v4258_v35, %v8767_v16  ;;  %v4269_v16 = vand.u32 2147483647, %v3822_v32  ;;  %vm4267_vm9 = vmor %vm4265_vm8, %vm4266_vm6 }
 0x869   : > { %v4262_v0 = vsub.f32 1.0, %v4261_v40 }
 0x86a   : > { %v4349_v7 = vpack.c.bf16 %v4333_v55, %v4329_v49  ;;  %vm4270_vm10 = vcmp.eq.f32.partialorder %v4269_v16, 8.507059e+37  ;;  %v4709_v15 = vpop.f32.mrf.mxu1 }
 0x86b   : > { %v4263_v13 = vmul.f32 %v6301_v58, %v4262_v0 }
 0x86c   : > { %4636 = vmatmul.bf16.gmra.mxu2 %v4349_v7 }
 0x86d   : > { %v4264_v42 = vadd.f32 %v6301_v58, %v4263_v13 }
 0x86f   : > { %v4268_v63 = vsel %vm4267_vm9, %v6301_v58, %v4264_v42  ;;  %v4682_v4 = vpop.f32.mrf.mxu0 }
 0x870   : > { %v4273_v59 = vsel %vm4270_vm10, %v4272_v36, %v4268_v63 }
 0x871   : > { %v4334_v22 = vmul.f32 %v4273_v59, %v8795_v25  ;;  %v972_v25 = vadd.f32 %v7316_v31, %v890_v2 }
 0x872   : > { %v4711_v54 = vpop.f32.mrf.mxu1 }
 0x873   : > { %v4350_v12 = vpack.c.bf16 %v4334_v22, %v4330_v34  ;;  %v8894_v27 = vperm.slane %v972_v25, 0 }
 0x875   : > { %v4622_v10 = vpop.f32.mrf.mxu2  ;;  %4665 = vmatmul.bf16.gmra.mxu3 %v4350_v12 }
 0x876   : > { %v4623_v50 = vadd.f32 %v8887_v41, %v4622_v10 }
 0x87d   : > { %v4624_v43 = vpop.f32.mrf.mxu2 }
 0x87e   : > { %v4651_v26 = vpop.f32.mrf.mxu3  ;;  %v4625_v11 = vadd.f32 %v8887_v41, %v4624_v43 }
 0x87f   : > { %v4652_v29 = vadd.f32 %v4651_v26, %v4623_v50 }
 0x881   : > { %v4681_v28 = vadd.f32 %v4680_v37, %v4652_v29 }
 0x883   : > { %v4710_v47 = vadd.f32 %v4709_v15, %v4681_v28 }
 0x885   : > { %v4730_v8 = vmul.f32 %v8894_v27, %v4710_v47 }
 0x886   : > { %v4653_v17 = vpop.f32.mrf.mxu3 }
 0x887   : > { %v4738_v44 = vadd.f32 %v4730_v8, %v7806_v38  ;;  %v4654_v32 = vadd.f32 %v4653_v17, %v4625_v11 }
 0x889   : > { %4746 = vst [vmem:[%s8901_s9] sm:$0xff] %v4738_v44  ;;  %v4683_v31 = vadd.f32 %v4682_v4, %v4654_v32 }
 0x88b   : > { %v4712_v19 = vadd.f32 %v4711_v54, %v4683_v31  ;;  %v4685_v52 = vpop.f32.mrf.mxu0 }
 0x88d   : > { %v4731_v61 = vmul.f32 %v8894_v27, %v4712_v19 }
 0x88f   : > { %v4739_v45 = vadd.f32 %v4731_v61, %v7810_v24  ;;  %v4714_v62 = vpop.f32.mrf.mxu1 }
 0x891   : > { %4747 = vst [vmem:[%s8901_s9 + $0x8] sm:$0xff] %v4739_v45 }
 0x893   : > { %v4687_v57 = vpop.f32.mrf.mxu0 }
 0x897   : > { %v4716_v6 = vpop.f32.mrf.mxu1 }
 0x8a3   : > { %v4627_v14 = vpop.f32.mrf.mxu2 }
 0x8a4   : > { %v4628_v38 = vadd.f32 %v8887_v41, %v4627_v14 }
 0x8a8   : > { %v4656_v21 = vpop.f32.mrf.mxu3 }
 0x8a9   : > { %v4657_v20 = vadd.f32 %v4656_v21, %v4628_v38 }
 0x8ab   : > { %v4686_v51 = vadd.f32 %v4685_v52, %v4657_v20  ;;  %v4629_v33 = vpop.f32.mrf.mxu2 }
 0x8ac   : > { %v4630_v35 = vadd.f32 %v8887_v41, %v4629_v33  ;;  %v4690_v13 = vpop.f32.mrf.mxu0 }
 0x8ad   : > { %v4715_v1 = vadd.f32 %v4714_v62, %v4686_v51 }
 0x8af   : > { %v4732_v58 = vmul.f32 %v8894_v27, %v4715_v1  ;;  %v4719_v42 = vpop.f32.mrf.mxu1 }
 0x8b0   : > { %v4658_v49 = vpop.f32.mrf.mxu3 }
 0x8b1   : > { %v4740_v24 = vadd.f32 %v4732_v58, %v7814_v18  ;;  %v4659_v55 = vadd.f32 %v4658_v49, %v4630_v35 }
 0x8b3   : > { %4748 = vst [vmem:[%s8901_s9 + $0x10] sm:$0xff] %v4740_v24  ;;  %v4688_v40 = vadd.f32 %v4687_v57, %v4659_v55 }
 0x8b4   : > { %v4692_v12 = vpop.f32.mrf.mxu0 }
 0x8b5   : > { %v4717_v7 = vadd.f32 %v4716_v6, %v4688_v40 }
 0x8b7   : > { %v4733_v39 = vmul.f32 %v8894_v27, %v4717_v7  ;;  %v4721_v46 = vpop.f32.mrf.mxu1 }
 0x8b9   : > { %v4741_v0 = vadd.f32 %v4733_v39, %v7818_v60 }
 0x8bb   : > { %4749 = vst [vmem:[%s8901_s9 + $0x18] sm:$0xff] %v4741_v0 }
 0x8bd   : > { %v4632_v5 = vpop.f32.mrf.mxu2 }
 0x8be   : > { %v4633_v48 = vadd.f32 %v8887_v41, %v4632_v5 }
 0x8c1   : > { %v4661_v16 = vpop.f32.mrf.mxu3 }
 0x8c2   : > { %v4662_v3 = vadd.f32 %v4661_v16, %v4633_v48 }
 0x8c4   : > { %v4691_v18 = vadd.f32 %v4690_v13, %v4662_v3 }
 0x8c5   : > { %v4634_v30 = vpop.f32.mrf.mxu2 }
 0x8c6   : > { %v4720_v36 = vadd.f32 %v4719_v42, %v4691_v18  ;;  %v4635_v63 = vadd.f32 %v8887_v41, %v4634_v30 }
 0x8c8   : > { %v4734_v59 = vmul.f32 %v8894_v27, %v4720_v36 }
 0x8c9   : > { %v4663_v34 = vpop.f32.mrf.mxu3 }
 0x8ca   : > { %v4742_v60 = vadd.f32 %v4734_v59, %v7822_v23  ;;  %v4664_v22 = vadd.f32 %v4663_v34, %v4635_v63 }
 0x8cc   : > { %4750 = vst [vmem:[%s8901_s9 + $0x20] sm:$0xff] %v4742_v60  ;;  %v4693_v10 = vadd.f32 %v4692_v12, %v4664_v22 }
 0x8ce   : > { %v4722_v2 = vadd.f32 %v4721_v46, %v4693_v10 }
 0x8d0   : > { %v4735_v50 = vmul.f32 %v8894_v27, %v4722_v2 }
 0x8d2   : > { %v4743_v37 = vadd.f32 %v4735_v50, %v7826_v9 }
 0x8d4   : > { %4751 = vst [vmem:[%s8901_s9 + $0x28] sm:$0xff] %v4743_v37 }
 0x8e1   : > { %v4695_v29 = vpop.f32.mrf.mxu0 }
 0x8e4   : > { %v4724_v23 = vpop.f32.mrf.mxu1 }
 0x8e9   : > { %v4697_v4 = vpop.f32.mrf.mxu0 }
 0x8ec   : > { %v4726_v54 = vpop.f32.mrf.mxu1 }
 0x8ef   : > { %v4637_v26 = vpop.f32.mrf.mxu2 }
 0x8f0   : > { %v4638_v25 = vadd.f32 %v8887_v41, %v4637_v26 }
 0x8f7   : > { %v4639_v28 = vpop.f32.mrf.mxu2 }
 0x8f8   : > { %v4666_v15 = vpop.f32.mrf.mxu3  ;;  %v4640_v8 = vadd.f32 %v8887_v41, %v4639_v28 }
 0x8f9   : > { %v4667_v43 = vadd.f32 %v4666_v15, %v4638_v25 }
 0x8fb   : > { %v4696_v47 = vadd.f32 %v4695_v29, %v4667_v43 }
 0x8fd   : > { %v4725_v11 = vadd.f32 %v4724_v23, %v4696_v47 }
 0x8ff   : > { %v4736_v17 = vmul.f32 %v8894_v27, %v4725_v11 }
 0x900   : > { %v4668_v9 = vpop.f32.mrf.mxu3 }
 0x901   : > { %v4744_v44 = vadd.f32 %v4736_v17, %v7846_v53  ;;  %v4669_v32 = vadd.f32 %v4668_v9, %v4640_v8 }
 0x903   : > { %4752 = vst [vmem:[%s8901_s9 + $0x30] sm:$0xff] %v4744_v44  ;;  %v4698_v31 = vadd.f32 %v4697_v4, %v4669_v32 }
 0x905   : > { %v4727_v19 = vadd.f32 %v4726_v54, %v4698_v31 }
 0x907   : > { %v4737_v41 = vmul.f32 %v8894_v27, %v4727_v19 }
 0x909   : > { %v4745_v61 = vadd.f32 %v4737_v41, %v7830_v56 }
 0x90b   : > { %4753 = vst [vmem:[%s8901_s9 + $0x38] sm:$0xff] %v4745_v61 }
 0x90c   : > { %6579 = shalt.err (!%p6576_p8)
}
 0x90d   : > { %s6658_s27 = smov 128   ;;  %s6659_s25 = smov 8  }
 0x90e   : > { %5788 = dma.vmem_to_hbm [thread:$0]  (%p6824_p4), %s4768_s20, 1024, %s4770_s19, %s4755_s28, %s6658_s27, %s6658_s27, %s6659_s25  }
 0x90f PF: > { %s4784_s2 = sand.u32 1, %s6626_s21   ;;  %p9074_p10 = scmp.ge.s32.totalorder %s6638_s24, 2 }
 0x910   : > { %s4785_s6 = scalar_lea.sflag [#allocation5], %s4784_s2 }
 0x911   : > { %p5817_p13 = pnand %p9074_p10, %p6828_p6 }
 0x913   : > { %p5818_p11 = pneg %p5817_p13 }
 0x915   : > { %6621 = dma.done.wait (%p5818_p11), %s4785_s6, 1024  }
 0x916   : > { %6623 = vsyncadd (%p5818_p11), %s4785_s6, 4294966272  ;;  %s9075_s9 = sld [smem:[#allocation25_spill]]  ;;  %p31_p0 = scmp.ge.s32.totalorder %s6796_s18, 4  }
 0x917   : > { %s9076_s23 = sld [smem:[#allocation26_spill]]  ;;  %s9077_s21 = smov %s6630_s22 }
 0x918   : > { %s9079_s24 = smov %s6796_s18  ;;  %33 = sbr.rel (!%p31_p0) target bundleno = 20 (0x14), region = 150 }
 0x91c   : > { %s9078_s22 = smov %s9075_s9 }
 0x91d   :  { %4791 = vsyncpa [#allocation4], 1 }
 0x91e   :  { %4793 = vsyncpa [#allocation4 + $0x1], 1 }
 0x91f   :  { %4794 = vsyncpa [#allocation7], 1 }
 0x920   :  { %4796 = vsyncpa [#allocation7 + $0x1], 1 }
 0x921   :  { %4797 = vsyncpa [#allocation10], 1 }
 0x922   :  { %4798 = vsyncpa [#allocation13], 1 }
 0x923   :  { %4799 = vsyncpa [#allocation16], 1 }
 0x924   :  { %4800 = vsyncpa [#allocation5], 1 }
 0x925   :  { %4802 = vsyncpa [#allocation5 + $0x1], 1 }

// kernel: tpu_custom_call.1
= control target key start
LH: loop header
LB: loop body
LE: loop exit
PB: predicated region body
PF: predicated region fallthrough
CT: control target
= control target key end

     0   :  { %s8965_s0 = inlined_call_operand.hbm [shape: f32[2,64,128], index: 0, kind: input, shape index: {}, may-alias: {0,12}]   ;;  %s8966_s1 = inlined_call_operand.hbm [shape: f32[2,1,128], index: 1, kind: input, shape index: {}]   ;;  %s8967_s2 = inlined_call_operand.hbm [shape: bf16[128,768], index: 2, kind: input, shape index: {}]   ;;  %s8968_s3 = inlined_call_operand.vmem [shape: f32[1,768], index: 3, kind: input, shape index: {}]   ;;  %s8969_s4 = inlined_call_operand.hbm [shape: bf16[128,384], index: 4, kind: input, shape index: {}]   ;;  %s8970_s5 = inlined_call_operand.hbm [shape: f32[1,384], index: 5, kind: input, shape index: {}]   ;;  %s8971_s6 = inlined_call_operand.hbm [shape: bf16[128,128], index: 6, kind: input, shape index: {}]   ;;  %s8972_s7 = inlined_call_operand.vmem [shape: f32[1,128], index: 7, kind: input, shape index: {}]   ;;  %s8973_s8 = inlined_call_operand.vmem [shape: bf16[128,512], index: 8, kind: input, shape index: {}]   ;;  %s8974_s9 = inlined_call_operand.hbm [shape: f32[1,512], index: 9, kind: input, shape index: {}]   ;;  %s8975_s10 = inlined_call_operand.hbm [shape: bf16[512,128], index: 10, kind: input, shape index: {}]   ;;  %s8976_s11 = inlined_call_operand.vmem [shape: f32[1,128], index: 11, kind: input, shape index: {}]   ;;  %s8977_s12 = inlined_call_operand.hbm [shape: f32[2,64,128], index: 12, kind: output, shape index: {}, may-alias: {0,12}]  }
   0x1   :  { %8981 = sst [smem:[#allocation27_spill]] %s8967_s2 }
   0x2   :  { %8982 = sst [smem:[#allocation28_spill]] %s8969_s4 }
   0x3   :  { %8983 = sst [smem:[#allocation29_spill]] %s8970_s5 }
   0x4   :  { %8984 = sst [smem:[#allocation30_spill]] %s8971_s6 }
   0x5   :  { %8985 = sst [smem:[#allocation31_spill]] %s8973_s8 }
   0x6   :  { %8986 = sst [smem:[#allocation32_spill]] %s8974_s9 }
   0x7   :  { %8987 = sst [smem:[#allocation33_spill]] %s8975_s10 }
   0x8   :  { %8988 = sst [smem:[#allocation34_spill]] %s8976_s11 }
   0x9   :  { %8989 = sst [smem:[#allocation35_spill]] %s8977_s12 }
   0xa   :  { %17 = vsyncpa [#allocation4], 0 }
   0xb   :  { %19 = vsyncpa [#allocation4 + $0x1], 0 }
   0xc   :  { %20 = vsyncpa [#allocation7], 0 }
   0xd   :  { %22 = vsyncpa [#allocation7 + $0x1], 0 }
   0xe   :  { %23 = vsyncpa [#allocation10], 0 }
   0xf   :  { %24 = vsyncpa [#allocation13], 0 }
  0x10   :  { %25 = vsyncpa [#allocation16], 0 }
  0x11   :  { %26 = vsyncpa [#allocation5], 0 }
  0x12   :  { %28 = vsyncpa [#allocation5 + $0x1], 0  ;;  %s6725_s21 = smov 0   ;;  %s6727_s22 = smov 0  }
  0x13   :  { %s6729_s23 = smov 0   ;;  %s6731_s24 = smov 0  }
  0x14 LB: > { %8990 = sst [smem:[#allocation25_spill]] %s6634_s23  ;;  %s6749_s28 = sadd.s32 4294967295, %s6638_s24   ;;  %s6638_s24 = sphi %s6731_s24, %s9079_s24   ;;  %s6634_s23 = sphi %s6729_s23, %s9076_s23   ;;  %s6630_s22 = sphi %s6727_s22, %s9078_s22   ;;  %s6626_s21 = sphi %s6725_s21, %s9077_s21  }
  0x15   : > { %s8991_s2 = sld [smem:[#allocation27_spill]]  ;;  %p4920_p0 = scmp.ge.s32.totalorder %s6638_s24, 1 }
  0x16   : > { %p55_p1 = scmp.eq.s32.totalorder %s6749_s28, 0  ;;  %p327_p2 = scmp.lt.s32.totalorder %s6638_s24, 3 }
  0x17   : > { %s6640_s30 = smov [#allocation8]   ;;  %s8993_s4 = sld [smem:[#allocation28_spill]] }
  0x18   : > { %p6754_p3 = pnand %p4920_p0, %p327_p2  ;;  %s340_s13 = sshll.u32 %s6640_s30, 4  ;;  %s341_s13 = int_to_ptr.vmem [resolvable:$true] %s340_s13 }
  0x19   : > { %s6641_s18 = smov [#allocation9]   ;;  %s6642_s20 = smov 384  }
  0x1a   : > { %p5790_p4 = pneg %p6754_p3  ;;  %s357_s19 = sshll.u32 %s6641_s18, 4  ;;  %s358_s19 = int_to_ptr.vmem [resolvable:$true] %s357_s19 }
  0x1b   : > { %s338_s27 = sshll.u32 %s8991_s2, 4  ;;  %s6643_s25 = smov 24   ;;  %s339_s27 = int_to_ptr.hbm [resolvable:$true] %s338_s27 }
  0x1c   : > { %p6766_p6 = pnand %p5790_p4, %p55_p1  ;;  %s6644_s26 = smov 192  }
  0x1d   : > { %s355_s16 = sshll.u32 %s8993_s4, 4  ;;  %s6645_s30 = smov 12   ;;  %s356_s16 = int_to_ptr.hbm [resolvable:$true] %s355_s16 }
  0x1e   : > { %5793 = dma.hbm_to_vmem [thread:$0]  (!%p6766_p6), %s339_s27, 6144, %s341_s13, [#allocation7], %s6642_s20, %s6642_s20, %s6643_s25  }
  0x1f   : > { %5796 = dma.hbm_to_vmem [thread:$0]  (!%p6766_p6), %s356_s16, 3072, %s358_s19, [#allocation10], %s6644_s26, %s6644_s26, %s6645_s30  }
  0x20   : > { %s8995_s6 = sld [smem:[#allocation30_spill]]  ;;  %s6646_s4 = smov [#allocation12]  }
  0x21   : > { %s383_s12 = sshll.u32 %s6646_s4, 4  ;;  %s8996_s5 = sld [smem:[#allocation29_spill]]  ;;  %s384_s12 = int_to_ptr.vmem [resolvable:$true] %s383_s12 }
  0x22   : > { %s6647_s27 = smov 64   ;;  %s6648_s13 = smov 4  }
  0x23   : > { %s6649_s16 = smov [#allocation11]   ;;  %s8997_s9 = sld [smem:[#allocation32_spill]] }
  0x24   : > { %s372_s19 = sshll.u32 %s6649_s16, 4  ;;  %s8998_s10 = sld [smem:[#allocation33_spill]]  ;;  %s373_s19 = int_to_ptr.vmem [resolvable:$true] %s372_s19 }
  0x25   : > { %s6651_s14 = smov [#allocation15]   ;;  %s4919_s15 = sadd.s32 4294967294, %s6638_s24  }
  0x26   : > { %s381_s2 = sshll.u32 %s8995_s6, 4  ;;  %s6796_s18 = sadd.s32 1, %s6638_s24   ;;  %s382_s2 = int_to_ptr.hbm [resolvable:$true] %s381_s2 }
  0x27   : > { %s370_s8 = sshll.u32 %s8996_s5, 4  ;;  %s38_s16 = ssub.s32 %s6638_s24, %s6796_s18  ;;  %s371_s8 = int_to_ptr.hbm [resolvable:$true] %s370_s8 }
  0x28   : > { %5802 = dma.hbm_to_vmem [thread:$0]  (!%p6766_p6), %s382_s2, 1024, %s384_s12, [#allocation13], %s6647_s27, %s6647_s27, %s6648_s13  }
  0x29   : > { %s402_s4 = sshll.u32 %s8997_s9, 4  ;;  %s6650_s12 = smov [#allocation14]   ;;  %s403_s4 = int_to_ptr.hbm [resolvable:$true] %s402_s4 }
  0x2a   : > { %5799 = dma.hbm_to_vmem [thread:$0]  (!%p6766_p6), %s371_s8, 48, %s373_s19, [#allocation10]  }
  0x2b   : > { %s413_s2 = sshll.u32 %s8998_s10, 4  ;;  %s404_s30 = sshll.u32 %s6650_s12, 4  ;;  %s414_s2 = int_to_ptr.hbm [resolvable:$true] %s413_s2  ;;  %s405_s30 = int_to_ptr.vmem [resolvable:$true] %s404_s30 }
  0x2c   : > { %5805 = dma.hbm_to_vmem [thread:$0]  (!%p6766_p6), %s403_s4, 64, %s405_s30, [#allocation13]  }
  0x2d   : > { %s415_s8 = sshll.u32 %s6651_s14, 4  ;;  %s41_s19 = sadd.s32 1, %s6634_s23  ;;  %s416_s8 = int_to_ptr.vmem [resolvable:$true] %s415_s8 }
  0x2e   : > { %5808 = dma.hbm_to_vmem [thread:$0]  (!%p6766_p6), %s414_s2, 4096, %s416_s8, [#allocation16], %s6647_s27, %s6647_s27, %s6648_s13  }
  0x2f   : > { %p39_p7 = scmp.eq.s32.totalorder %s38_s16, 0  ;;  %p48_p8 = scmp.ne.s32.totalorder %s6634_s23, %s6630_s22 }
  0x30   : > { %p49_p9 = scmp.eq.s32.totalorder %s6638_s24, 0  ;;  %p54_p10 = scmp.ne.s32.totalorder %s6630_s22, %s6626_s21 }
  0x31   : > { %s6807_s20 = scalar_select %p39_p7, %s6634_s23, %s41_s19  }
  0x32   : > { %p6809_p11 = por %p49_p9, %p48_p8  ;;  %p6815_p12 = por %p55_p1, %p54_p10 }
  0x33   : > { %8999 = sst [smem:[#allocation26_spill]] %s6807_s20  ;;  %p314_p13 = scmp.eq.s32.totalorder %s6749_s28, 1 }
  0x34   : > { %p320_p0 = scmp.eq.s32.totalorder %s4919_s15, 1  ;;  %p5826_p2 = scmp.lt.s32.totalorder %s6638_s24, 2 }
  0x35   : > { %s6822_s27 = sand.u32 1, %s6634_s23   ;;  %p6824_p4 = por %p314_p13, %p48_p8 }
  0x36   : > { %p6828_p6 = por %p320_p0, %p54_p10  ;;  %s4928_s11 = sshll.u32 %s6822_s27, 6 }
  0x37   : > { %s5602_s26 = sshll.u32 %s6638_s24, 6  ;;  %s436_s14 = scalar_lea.vmem [#allocation3], %s4928_s11 }
  0x38   : > { %s441_s30 = scalar_lea.hbm %s8965_s0, %s5602_s26  ;;  %s444_s8 = sshll.u32 %s436_s14, 4  ;;  %s445_s8 = int_to_ptr.vmem [resolvable:$true] %s444_s8 }
  0x39   : > { %s442_s15 = sshll.u32 %s441_s30, 4  ;;  %p6839_p7 = pnand %p5826_p2, %p6809_p11  ;;  %s443_s15 = int_to_ptr.hbm [resolvable:$true] %s442_s15 }
  0x3a   : > { %s454_s19 = sand.u32 1, %s6638_s24   ;;  %s433_s5 = scalar_lea.sflag [#allocation4], %s6822_s27 }
  0x3b   : > { %s6492_s6 = sshra.s32 %s443_s15, 4  ;;  %p6496_p9 = pneg %p6839_p7  ;;  %s6493_s6 = int_to_ptr.hbm [resolvable:$true] %s6492_s6 }
  0x3c   : > { %s6494_s9 = scalar_lea.hbm %s6493_s6, 64  ;;  %s6499_s26 = scalar_lea.hbm %s8965_s0, 128 }
  0x3d   : > { %p6495_p8 = scmp.ne.s32.totalorder %s6493_s6, %s6494_s9  ;;  %p6500_p11 = scmp.lt.s32.totalorder %s6493_s6, %s8965_s0 }
  0x3e   : > { %p6501_p0 = scmp.lt.s32.totalorder %s6499_s26, %s6494_s9 }
  0x3f   : > { %p6497_p10 = pnand %p6496_p9, %p6495_p8 }
  0x40   : > { %p6502_p2 = por %p6501_p0, %p6500_p11 }
  0x41   : > { %p6498_p13 = pneg %p6497_p10 }
  0x43   : > { %p6503_p5 = pnand %p6502_p2, %p6498_p13 }
  0x45   : > { %6506 = shalt.err (!%p6503_p5)
}
  0x46   : > { %s6652_s30 = smov 128   ;;  %s6653_s14 = smov 8  }
  0x47   : > { %5812 = dma.hbm_to_vmem [thread:$0]  (!%p6839_p7), %s443_s15, 1024, %s445_s8, %s433_s5, %s6652_s30, %s6652_s30, %s6653_s14  }
  0x48   : > { %s460_s11 = scalar_lea.hbm %s8966_s1, %s6638_s24  ;;  %s457_s25 = scalar_lea.vmem [#allocation6], %s6822_s27 }
  0x49   : > { %s464_s23 = sshll.u32 %s457_s25, 4  ;;  %s462_s2 = sshll.u32 %s460_s11, 4  ;;  %s465_s23 = int_to_ptr.vmem [resolvable:$true] %s464_s23  ;;  %s463_s2 = int_to_ptr.hbm [resolvable:$true] %s462_s2 }
  0x4a   : > { %s455_s6 = scalar_lea.sflag [#allocation7], %s454_s19  ;;  %s6522_s9 = sshra.s32 %s463_s2, 4  ;;  %s6523_s9 = int_to_ptr.hbm [resolvable:$true] %s6522_s9 }
  0x4b   : > { %s6524_s26 = scalar_lea.hbm %s6523_s9, 1  ;;  %s6529_s8 = scalar_lea.hbm %s8966_s1, 2 }
  0x4c   : > { %p6525_p5 = scmp.ne.s32.totalorder %s6523_s9, %s6524_s26  ;;  %p6530_p13 = scmp.lt.s32.totalorder %s6523_s9, %s8966_s1 }
  0x4d   : > { %p6531_p11 = scmp.lt.s32.totalorder %s6529_s8, %s6524_s26 }
  0x4e   : > { %p6527_p8 = pnand %p6525_p5, %p6496_p9 }
  0x4f   : > { %p6532_p0 = por %p6531_p11, %p6530_p13 }
  0x50   : > { %p6528_p10 = pneg %p6527_p8 }
  0x52   : > { %p6533_p2 = pnand %p6532_p0, %p6528_p10 }
  0x54   : > { %6536 = shalt.err (!%p6533_p2)
}
  0x55   : > { %5815 = dma.hbm_to_vmem [thread:$0]  (!%p6839_p7), %s463_s2, 16, %s465_s23, %s455_s6  }
  0x56   : > { %473 = sbr.rel (%p6754_p3) target bundleno = 2319 (0x90f), region = 68  ;;  %s6877_s27 = sand.u32 (!%p6754_p3), 1, %s6630_s22  }
  0x57   : > { %s4932_s15 = sshll.u32 (!%p6754_p3), %s6877_s27, 6  ;;  %s476_s19 = scalar_lea.sflag (!%p6754_p3), [#allocation4], %s6877_s27 }
  0x58   : > { %s6883_s30 = scalar_lea.vmem (!%p6754_p3), [#allocation3], %s4932_s15 }
  0x5b   : > { %6597 = dma.done.wait (%p6815_p12), %s476_s19, 1024  }
  0x5c   : > { %6599 = vsyncadd (%p6815_p12), %s476_s19, 4294966272  ;;  %s485_s23 = sand.u32 1, %s6749_s28   ;;  %s488_s16 = scalar_lea.vmem [#allocation6], %s6877_s27 }
  0x5d   : > { %s486_s29 = scalar_lea.sflag [#allocation7], %s485_s23 }
  0x5e   : > { %6601 = dma.done.wait (%p6815_p12), %s486_s29, 16  }
  0x5f   : > { %6603 = vsyncadd (%p6815_p12), %s486_s29, 4294967280 }
  0x60   : > { %6605 = dma.done.wait (%p55_p1), [#allocation7], 6144  }
  0x61   : > { %6607 = vsyncadd (%p55_p1), [#allocation7], 4294961152 }
  0x62   : > { %6609 = dma.done.wait (%p55_p1), [#allocation10], 3120  }
  0x63   : > { %6611 = vsyncadd (%p55_p1), [#allocation10], 4294964176 }
  0x64   : > { %6613 = dma.done.wait (%p55_p1), [#allocation13], 1088  }
  0x65   : > { %6615 = vsyncadd (%p55_p1), [#allocation13], 4294966208 }
  0x66   : > { %6617 = dma.done.wait (%p55_p1), [#allocation16], 4096  }
  0x67   : > { %6619 = vsyncadd (%p55_p1), [#allocation16], 4294963200  ;;  %v6912_v0 = vld [vmem:[%s6883_s30 + $0x20] sm:$0xff]  ;;  %v6915_v1 = vld [vmem:[%s6883_s30 + $0x10] sm:$0xff]  ;;  %v6654_v47 = vmov 128.0   ;;  %s6655_s11 = smov 96  }
  0x68   : > { %v6918_v2 = vld [vmem:[%s6883_s30] sm:$0xff]  ;;  %983 = vadd.xlane.f32.xlu2 %v6912_v0  ;;  %979 = vadd.xlane.f32.xlu1 %v6915_v1  ;;  %v5645_v3 = vld [vmem:[#allocation8 + $0x154] sm:$0xf]  ;;  %v5113_v4 = vld [vmem:[#allocation8 + $0x168] sm:$0xf0]  ;;  %s6656_s25 = smov 32  }
  0x69   : > { %975 = vadd.xlane.f32.xlu0 %v6918_v2  ;;  %v5116_v5 = vor.u32 %v5645_v3, %v5113_v4  ;;  %v5111_v6 = vld [vmem:[#allocation8 + $0x150] sm:$0xf]  ;;  %v5648_v7 = vld [vmem:[#allocation8 + $0x164] sm:$0xf0]  ;;  %v5639_v8 = vld [vmem:[#allocation8 + $0x124] sm:$0xf] }
  0x6a   : > { %v5112_v9 = vor.u32 %v5648_v7, %v5111_v6  ;;  %v5089_v10 = vld [vmem:[#allocation8 + $0x138] sm:$0xf0]  ;;  %v5087_v11 = vld [vmem:[#allocation8 + $0x120] sm:$0xf]  ;;  %v5642_v12 = vld [vmem:[#allocation8 + $0x134] sm:$0xf0] }
  0x6b   : > { %910 = vmatpush.bf16.msra.mxu1 %v5116_v5  ;;  %v6924_v13 = vld [vmem:[%s6883_s30 + $0x28] sm:$0xff]  ;;  %v6927_v14 = vld [vmem:[%s6883_s30 + $0x18] sm:$0xff]  ;;  %v5092_v15 = vor.u32 %v5639_v8, %v5089_v10  ;;  %v5088_v17 = vor.u32 %v5642_v12, %v5087_v11  ;;  %v5063_v20 = vld [vmem:[#allocation8 + $0xf0] sm:$0xf]  ;;  %s6657_s2 = smov 64   ;;  %s9007_s10 = sld [smem:[#allocation31_spill]] }
  0x6c   : > { %897 = vmatpush.bf16.msra.mxu0 %v5112_v9  ;;  %v6930_v16 = vld [vmem:[%s6883_s30 + $0x8] sm:$0xff]  ;;  %v5633_v18 = vld [vmem:[#allocation8 + $0xf4] sm:$0xf]  ;;  %v5041_v25 = vld [vmem:[#allocation8 + $0xd8] sm:$0xf0]  ;;  %s8901_s9 = scalar_lea.vmem [#allocation17], %s4932_s15 }
  0x6d   : > { %v5065_v19 = vld [vmem:[#allocation8 + $0x108] sm:$0xf0]  ;;  %v5636_v21 = vld [vmem:[#allocation8 + $0x104] sm:$0xf0]  ;;  %v5627_v24 = vld [vmem:[#allocation8 + $0xc4] sm:$0xf] }
  0x6e   : > { %v5068_v22 = vor.u32 %v5633_v18, %v5065_v19  ;;  %v5064_v23 = vor.u32 %v5636_v21, %v5063_v20  ;;  %v5039_v26 = vld [vmem:[#allocation8 + $0xc0] sm:$0xf]  ;;  %v5630_v27 = vld [vmem:[#allocation8 + $0xd4] sm:$0xf0]  ;;  %v6936_v28 = vld [vmem:[%s6883_s30 + $0x30] sm:$0xff]  ;;  %v5044_v29 = vor.u32 %v5627_v24, %v5041_v25  ;;  %s5751_s15 = sshll.u32 %s6749_s28, 6 }
  0x6f   : > { %911 = vmatpush.bf16.msra.mxu1 %v5092_v15  ;;  %v5040_v30 = vor.u32 %v5630_v27, %v5039_v26  ;;  %v5621_v31 = vld [vmem:[#allocation8 + $0x94] sm:$0xf]  ;;  %v5017_v32 = vld [vmem:[#allocation8 + $0xa8] sm:$0xf0]  ;;  %v573_v34 = vld [vmem:[%s488_s16] sm:$0x1] }
  0x70   : > { %985 = vadd.xlane.f32.xlu2 %v6924_v13  ;;  %981 = vadd.xlane.f32.xlu1 %v6927_v14  ;;  %v5020_v33 = vor.u32 %v5621_v31, %v5017_v32  ;;  %v4940_v35 = vmul.f32 -1.442695, %v573_v34  ;;  %v5015_v39 = vld [vmem:[#allocation8 + $0x90] sm:$0xf]  ;;  %v5624_v40 = vld [vmem:[#allocation8 + $0xa4] sm:$0xf0] }
  0x71   : > { %977 = vadd.xlane.f32.xlu0 %v6930_v16  ;;  %898 = vmatpush.bf16.msra.mxu0 %v5088_v17  ;;  %v5615_v41 = vld [vmem:[#allocation8 + $0x64] sm:$0xf]  ;;  %v5016_v43 = vor.u32 %v5624_v40, %v5015_v39  ;;  %v4993_v44 = vld [vmem:[#allocation8 + $0x78] sm:$0xf0]  ;;  %v4991_v48 = vld [vmem:[#allocation8 + $0x60] sm:$0xf] }
  0x72   : > { %6008 = vpow2.f32 %v4940_v35  ;;  %v4996_v45 = vor.u32 %v5615_v41, %v4993_v44  ;;  %v5618_v49 = vld [vmem:[#allocation8 + $0x74] sm:$0xf0]  ;;  %v5609_v50 = vld [vmem:[#allocation8 + $0x34] sm:$0xf]  ;;  %v4969_v53 = vld [vmem:[#allocation8 + $0x48] sm:$0xf0] }
  0x73   : > { %912 = vmatpush.bf16.msra.mxu1 %v5068_v22  ;;  %v4992_v52 = vor.u32 %v5618_v49, %v4991_v48  ;;  %v4972_v55 = vor.u32 %v5609_v50, %v4969_v53  ;;  %v4967_v59 = vld [vmem:[#allocation8 + $0x30] sm:$0xf]  ;;  %v5612_v60 = vld [vmem:[#allocation8 + $0x44] sm:$0xf0]  ;;  %v5603_v61 = vld [vmem:[#allocation8 + $0x4] sm:$0xf] }
  0x74   : > { %v4968_v63 = vor.u32 %v5612_v60, %v4967_v59  ;;  %v4945_v3 = vld [vmem:[#allocation8 + $0x18] sm:$0xf0]  ;;  %v4943_v8 = vld [vmem:[#allocation8] sm:$0xf]  ;;  %v5606_v9 = vld [vmem:[#allocation8 + $0x14] sm:$0xf0] }
  0x75   : > { %899 = vmatpush.bf16.msra.mxu0 %v5064_v23  ;;  %v4948_v5 = vor.u32 %v5603_v61, %v4945_v3  ;;  %v4944_v12 = vor.u32 %v5606_v9, %v4943_v8  ;;  %v5119_v22 = vld [vmem:[#allocation8 + $0x158] sm:$0xf]  ;;  %v5649_v23 = vld [vmem:[#allocation8 + $0x16c] sm:$0xf0]  ;;  %v5646_v24 = vld [vmem:[#allocation8 + $0x15c] sm:$0xf] }
  0x76   : > { %v5120_v26 = vor.u32 %v5649_v23, %v5119_v22  ;;  %v5121_v27 = vld [vmem:[#allocation8 + $0x170] sm:$0xf0]  ;;  %v5643_v35 = vld [vmem:[#allocation8 + $0x13c] sm:$0xf0]  ;;  %v5103_v39 = vld [vmem:[#allocation8 + $0x130] sm:$0xf] }
  0x77   : > { %913 = vmatpush.bf16.msra.mxu1 %v5044_v29  ;;  %v5127_v29 = vld [vmem:[#allocation8 + $0x160] sm:$0xf]  ;;  %v5124_v32 = vor.u32 %v5646_v24, %v5121_v27  ;;  %v5644_v40 = vld [vmem:[#allocation8 + $0x144] sm:$0xf0]  ;;  %v5637_v44 = vld [vmem:[#allocation8 + $0x10c] sm:$0xf0] }
  0x78   : > { %987 = vadd.xlane.f32.xlu2 %v6936_v28  ;;  %v6009_v36 = vpop.eup %6008  ;;  %923 = vmatpush.bf16.msra.mxu2 %v5120_v26  ;;  %v5079_v49 = vld [vmem:[#allocation8 + $0x100] sm:$0xf]  ;;  %v5638_v50 = vld [vmem:[#allocation8 + $0x114] sm:$0xf0]  ;;  %v5628_v59 = vld [vmem:[#allocation8 + $0xcc] sm:$0xf] }
  0x79   : > { %900 = vmatpush.bf16.msra.mxu0 %v5040_v30  ;;  %v577_v37 = vadd.f32 1.0, %v6009_v36  ;;  %v5650_v30 = vld [vmem:[#allocation8 + $0x174] sm:$0xf0]  ;;  %v5640_v36 = vld [vmem:[#allocation8 + $0x12c] sm:$0xf]  ;;  %936 = vmatpush.bf16.msra.mxu3 %v5124_v32  ;;  %s9073_s5 = sld [smem:[#allocation35_spill]] }
  0x7a   : > { %v5049_v61 = vld [vmem:[#allocation8 + $0xe0] sm:$0xf0]  ;;  %v5023_v8 = vld [vmem:[#allocation8 + $0x98] sm:$0xf]  ;;  %v5625_v9 = vld [vmem:[#allocation8 + $0xac] sm:$0xf0] }
  0x7b   : > { %914 = vmatpush.bf16.msra.mxu1 %v5020_v33  ;;  %6010 = vrcp.f32 %v577_v37  ;;  %v589_v54 = vand.u32 2147483648, %v577_v37  ;;  %vm583_vm0 = vweird.f32 %v577_v37  ;;  %v587_v57 = vand.u32 2147483647, %v577_v37  ;;  %v5626_v22 = vld [vmem:[#allocation8 + $0xb4] sm:$0xf0]  ;;  %s4767_s20 = sshll.u32 %s8901_s9, 4  ;;  %s4768_s20 = int_to_ptr.vmem [resolvable:$true] %s4767_s20 }
  0x7c   : > { %6012 = vrcp.f32 %v6654_v47  ;;  %v5128_v33 = vor.u32 %v5650_v30, %v5127_v29  ;;  %v5073_v47 = vld [vmem:[#allocation8 + $0x110] sm:$0xf0]  ;;  %v4999_v26 = vld [vmem:[#allocation8 + $0x68] sm:$0xf]  ;;  %v5619_v27 = vld [vmem:[#allocation8 + $0x7c] sm:$0xf0] }
  0x7d   : > { %901 = vmatpush.bf16.msra.mxu0 %v5016_v43  ;;  %v590_v58 = vor.u32 1.1754944e-38, %v589_v54  ;;  %vm588_vm3 = vcmp.eq.f32.partialorder %v587_v57, 8.507059e+37  ;;  %v5071_v43 = vld [vmem:[#allocation8 + $0xf8] sm:$0xf]  ;;  %v5047_v54 = vld [vmem:[#allocation8 + $0xc8] sm:$0xf] }
  0x7e   : > { %v5616_v32 = vld [vmem:[#allocation8 + $0x6c] sm:$0xf]  ;;  %s4755_s28 = scalar_lea.sflag [#allocation5], %s6877_s27 }
  0x7f   : > { %915 = vmatpush.bf16.msra.mxu1 %v4996_v45  ;;  %v5104_v45 = vor.u32 %v5644_v40, %v5103_v39  ;;  %s4766_s8 = scalar_lea.hbm %s9073_s5, %s5751_s15  ;;  %s6572_s17 = scalar_lea.hbm %s9073_s5, 128 }
  0x80   : > { %s4769_s19 = sshll.u32 %s4766_s8, 4  ;;  %s4770_s19 = int_to_ptr.hbm [resolvable:$true] %s4769_s19 }
  0x81   : > { %v6011_v38 = vpop.eup %6010  ;;  %902 = vmatpush.bf16.msra.mxu0 %v4992_v52 }
  0x82   : > { %v579_v42 = vmul.f32 %v6011_v38, %v577_v37  ;;  %vm584_vm1 = vweird.f32 %v6011_v38  ;;  %v6013_v4 = vpop.eup %6012 }
  0x83   : > { %vm585_vm2 = vmor %vm583_vm0, %vm584_vm1  ;;  %916 = vmatpush.bf16.msra.mxu1 %v4972_v55  ;;  %v992_v10 = vmul.f32 128.0, %v6013_v4  ;;  %vm996_vm4 = vweird.f32 %v6013_v4  ;;  %v5631_v55 = vld [vmem:[#allocation8 + $0xdc] sm:$0xf0] }
  0x84   : > { %v580_v46 = vsub.f32 1.0, %v579_v42 }
  0x85   : > { %903 = vmatpush.bf16.msra.mxu0 %v4968_v63  ;;  %v993_v15 = vsub.f32 1.0, %v992_v10  ;;  %v5632_v63 = vld [vmem:[#allocation8 + $0xe4] sm:$0xf0] }
  0x86   : > { %v581_v51 = vmul.f32 %v6011_v38, %v580_v46  ;;  %v5634_v46 = vld [vmem:[#allocation8 + $0xfc] sm:$0xf] }
  0x87   : > { %917 = vmatpush.bf16.msra.mxu1 %v4948_v5  ;;  %v994_v17 = vmul.f32 %v6013_v4, %v993_v15 }
  0x88   : > { %v582_v56 = vadd.f32 %v6011_v38, %v581_v51  ;;  %v5072_v51 = vor.u32 %v5637_v44, %v5071_v43  ;;  %v4975_v44 = vld [vmem:[#allocation8 + $0x38] sm:$0xf] }
  0x89   : > { %904 = vmatpush.bf16.msra.mxu0 %v4944_v12  ;;  %v995_v18 = vadd.f32 %v6013_v4, %v994_v17  ;;  %v6966_v12 = vld [vmem:[%s6883_s30 + $0x38] sm:$0xff] }
  0x8a   : > { %v586_v62 = vsel %vm585_vm2, %v6011_v38, %v582_v56  ;;  %v5097_v38 = vld [vmem:[#allocation8 + $0x140] sm:$0xf0]  ;;  %v5622_v17 = vld [vmem:[#allocation8 + $0x9c] sm:$0xf] }
  0x8b   : > { %v591_v6 = vsel %vm588_vm3, %v590_v58, %v586_v62  ;;  %v6945_v19 = vsel %vm996_vm4, %v6013_v4, %v995_v18  ;;  %v5100_v42 = vor.u32 %v5640_v36, %v5097_v38  ;;  %v5080_v58 = vor.u32 %v5638_v50, %v5079_v49  ;;  %v5055_v62 = vld [vmem:[#allocation8 + $0xd0] sm:$0xf]  ;;  %v4983_v49 = vld [vmem:[#allocation8 + $0x40] sm:$0xf]  ;;  %v5614_v50 = vld [vmem:[#allocation8 + $0x54] sm:$0xf0] }
  0x8c   : > { %v593_v7 = vmul.f32 %v591_v6, %v573_v34  ;;  %v5095_v34 = vld [vmem:[#allocation8 + $0x128] sm:$0xf]  ;;  %v5048_v4 = vor.u32 %v5631_v55, %v5047_v54  ;;  %v5056_v15 = vor.u32 %v5632_v63, %v5055_v62  ;;  %v4953_v55 = vld [vmem:[#allocation8 + $0x20] sm:$0xf0]  ;;  %v5672_v62 = vld [vmem:[#allocation9 + $0xac] sm:$0xf] }
  0x8d   : > { %v5096_v37 = vor.u32 %v5643_v35, %v5095_v34  ;;  %949 = vmatpush.bf16.msrb.mxu0 %v5128_v33  ;;  %937 = vmatpush.bf16.msra.mxu3 %v5100_v42  ;;  %v5001_v33 = vld [vmem:[#allocation8 + $0x80] sm:$0xf0]  ;;  %v5007_v34 = vld [vmem:[#allocation8 + $0x70] sm:$0xf]  ;;  %v5620_v35 = vld [vmem:[#allocation8 + $0x84] sm:$0xf0] }
  0x8e   : > { %v6941_v11 = vpack.c.bf16 %v593_v7, %v593_v7  ;;  %v5004_v40 = vor.u32 %v5616_v32, %v5001_v33  ;;  %v5008_v42 = vor.u32 %v5620_v35, %v5007_v34  ;;  %v5668_v32 = vld [vmem:[#allocation9 + $0x88] sm:$0xf0]  ;;  %v5183_v35 = vld [vmem:[#allocation9 + $0x60] sm:$0xf] }
  0x8f   : > { %924 = vmatpush.bf16.msra.mxu2 %v5096_v37 }
  0x90   : > { %918 = vmatmul.bf16.vlgmr.msra.gmra.mxu1 %v6941_v11  ;;  %905 = vmatmul.bf16.vlgmr.msra.gmra.mxu0 %v6941_v11 }
  0x91   : > { %950 = vmatpush.bf16.msrb.mxu0 %v5104_v45  ;;  %v5613_v45 = vld [vmem:[#allocation8 + $0x4c] sm:$0xf0] }
  0x93   : > { %925 = vmatpush.bf16.msra.mxu2 %v5072_v51 }
  0x95   : > { %951 = vmatpush.bf16.msrb.mxu0 %v5080_v58 }
  0x97   : > { %926 = vmatpush.bf16.msra.mxu2 %v5048_v4  ;;  %v5221_v4 = vld [vmem:[#allocation9 + $0xb4] sm:$0xf0] }
  0x99   : > { %952 = vmatpush.bf16.msrb.mxu0 %v5056_v15  ;;  %v5669_v15 = vld [vmem:[#allocation9 + $0x94] sm:$0xf] }
  0xdb   : > { %v984_v20 = vpop.xlane.xlu2 %983  ;;  %v980_v21 = vpop.xlane.xlu1 %979 }
  0xdc   : > { %v976_v25 = vpop.xlane.xlu0 %975  ;;  %v1002_v5 = vmul.f32 %v6945_v19, %v984_v20  ;;  %v1000_v6 = vmul.f32 %v6945_v19, %v980_v21  ;;  %v5025_v20 = vld [vmem:[#allocation8 + $0xb0] sm:$0xf0]  ;;  %v5031_v21 = vld [vmem:[#allocation8 + $0xa0] sm:$0xf] }
  0xdd   : > { %v998_v31 = vmul.f32 %v6945_v19, %v976_v25  ;;  %v5028_v30 = vor.u32 %v5622_v17, %v5025_v20  ;;  %v5215_v20 = vld [vmem:[#allocation9 + $0x98] sm:$0xf] }
  0xde   : > { %v6972_v24 = vsub.f32 %v6912_v0, %v1002_v5  ;;  %v6975_v25 = vsub.f32 %v6915_v1, %v1000_v6  ;;  %v5000_v0 = vor.u32 %v5619_v27, %v4999_v26  ;;  %v5227_v5 = vld [vmem:[#allocation9 + $0xb0] sm:$0xf]  ;;  %v5674_v6 = vld [vmem:[#allocation9 + $0xb8] sm:$0xf0]  ;;  %v5667_v26 = vld [vmem:[#allocation9 + $0x80] sm:$0xf0] }
  0xdf   : > { %v6949_v41 = vsub.f32 %v6918_v2, %v998_v31  ;;  %v5076_v2 = vor.u32 %v5634_v46, %v5073_v47  ;;  %v5032_v31 = vor.u32 %v5626_v22, %v5031_v21  ;;  %v5610_v46 = vld [vmem:[#allocation8 + $0x3c] sm:$0xf]  ;;  %v4976_v47 = vor.u32 %v5613_v45, %v4975_v44  ;;  %v5671_v21 = vld [vmem:[#allocation9 + $0xa0] sm:$0xf0]  ;;  %v5171_v45 = vld [vmem:[#allocation9 + $0x48] sm:$0xf] }
  0xe0   : > { %v1018_v37 = vmul.f32 %v6972_v24, %v6972_v24  ;;  %v1016_v38 = vmul.f32 %v6975_v25, %v6975_v25  ;;  %v5666_v27 = vld [vmem:[#allocation9 + $0x7c] sm:$0xf] }
  0xe1   : > { %v1014_v48 = vmul.f32 %v6949_v41, %v6949_v41  ;;  %938 = vmatpush.bf16.msra.mxu3 %v5076_v2  ;;  %953 = vmatpush.bf16.msrb.mxu0 %v5032_v31  ;;  %v5604_v2 = vld [vmem:[#allocation8 + $0xc] sm:$0xf]  ;;  %v5203_v31 = vld [vmem:[#allocation9 + $0x80] sm:$0xf] }
  0xe2   : > { %v4956_v58 = vor.u32 %v5604_v2, %v4953_v55  ;;  %v5204_v34 = vor.u32 %v5668_v32, %v5203_v31  ;;  %v5159_v2 = vld [vmem:[#allocation9 + $0x30] sm:$0xf]  ;;  %v5653_v31 = vld [vmem:[#allocation9 + $0x10] sm:$0xf0] }
  0xe3   : > { %1022 = vadd.xlane.f32.xlu0 %v1014_v48  ;;  %v986_v52 = vpop.xlane.xlu2 %985  ;;  %v982_v53 = vpop.xlane.xlu1 %981  ;;  %v4977_v48 = vld [vmem:[#allocation8 + $0x50] sm:$0xf0] }
  0xe4   : > { %v1001_v56 = vmul.f32 %v6945_v19, %v982_v53  ;;  %v978_v57 = vpop.xlane.xlu0 %977  ;;  %v1003_v1 = vmul.f32 %v6945_v19, %v986_v52  ;;  %v4980_v51 = vor.u32 %v5610_v46, %v4977_v48  ;;  %v4984_v52 = vor.u32 %v5614_v50, %v4983_v49  ;;  %v5607_v53 = vld [vmem:[#allocation8 + $0x1c] sm:$0xf0]  ;;  %v5661_v46 = vld [vmem:[#allocation9 + $0x50] sm:$0xf0]  ;;  %v5660_v49 = vld [vmem:[#allocation9 + $0x4c] sm:$0xf] }
  0xe5   : > { %v999_v60 = vmul.f32 %v6945_v19, %v978_v57  ;;  %954 = vmatpush.bf16.msrb.mxu0 %v5008_v42  ;;  %v5608_v57 = vld [vmem:[#allocation8 + $0x24] sm:$0xf0]  ;;  %v5172_v48 = vor.u32 %v5661_v46, %v5171_v45  ;;  %v5173_v50 = vld [vmem:[#allocation9 + $0x54] sm:$0xf0]  ;;  %v643_v45 = vld [vmem:[%s8968_s3] sm:$0x3f] }
  0xe6   : > { %v6956_v3 = vsub.f32 %v6927_v14, %v1001_v56  ;;  %v5052_v14 = vor.u32 %v5628_v59, %v5049_v61  ;;  %v4959_v56 = vld [vmem:[#allocation8 + $0x10] sm:$0xf]  ;;  %v5673_v61 = vld [vmem:[#allocation9 + $0xb0] sm:$0xf0] }
  0xe7   : > { %v6961_v7 = vsub.f32 %v6930_v16, %v999_v60  ;;  %v5024_v16 = vor.u32 %v5625_v9, %v5023_v8  ;;  %v4960_v59 = vor.u32 %v5608_v57, %v4959_v56  ;;  %v5219_v60 = vld [vmem:[#allocation9 + $0xa8] sm:$0xf]  ;;  %v5224_v8 = vor.u32 %v5672_v62, %v5221_v4  ;;  %v5657_v56 = vld [vmem:[#allocation9 + $0x34] sm:$0xf]  ;;  %v5161_v57 = vld [vmem:[#allocation9 + $0x3c] sm:$0xf0] }
  0xe8   : > { %v1017_v10 = vmul.f32 %v6956_v3, %v6956_v3  ;;  %939 = vmatpush.bf16.msra.mxu3 %v5052_v14  ;;  %v5220_v63 = vor.u32 %v5673_v61, %v5219_v60  ;;  %v5228_v9 = vor.u32 %v5674_v6, %v5227_v5  ;;  %v5670_v14 = vld [vmem:[#allocation9 + $0x98] sm:$0xf0]  ;;  %v5164_v60 = vor.u32 %v5657_v56, %v5161_v57  ;;  %v5659_v61 = vld [vmem:[#allocation9 + $0x40] sm:$0xf0] }
  0xe9   : > { %v1015_v18 = vmul.f32 %v6961_v7, %v6961_v7  ;;  %927 = vmatpush.bf16.msra.mxu2 %v5024_v16  ;;  %955 = vmatpush.bf16.msrb.mxu0 %v4984_v52  ;;  %v5216_v16 = vor.u32 %v5671_v21, %v5215_v20  ;;  %v5176_v52 = vor.u32 %v5660_v49, %v5173_v50  ;;  %v5655_v4 = vld [vmem:[#allocation9 + $0x20] sm:$0xf0]  ;;  %v5654_v5 = vld [vmem:[#allocation9 + $0x1c] sm:$0xf]  ;;  %v5135_v21 = vld [vmem:[#allocation9] sm:$0xf] }
  0xea   : > { %1028 = vadd.xlane.f32.xlu2 %v1017_v10  ;;  %v5207_v10 = vld [vmem:[#allocation9 + $0x90] sm:$0xf]  ;;  %v886_v49 = vperm.slane %v643_v45, 1 }
  0xeb   : > { %989 = vadd.xlane.f32.xlu0 %v6966_v12  ;;  %1024 = vadd.xlane.f32.xlu1 %v1015_v18  ;;  %v988_v23 = vpop.xlane.xlu2 %987  ;;  %v5208_v17 = vor.u32 %v5670_v14, %v5207_v10  ;;  %v5209_v18 = vld [vmem:[#allocation9 + $0x9c] sm:$0xf0]  ;;  %v5656_v10 = vld [vmem:[#allocation9 + $0x28] sm:$0xf0] }
  0xec   : > { %v1004_v29 = vmul.f32 %v6945_v19, %v988_v23  ;;  %940 = vmatpush.bf16.msra.mxu3 %v5028_v30  ;;  %v5212_v22 = vor.u32 %v5669_v15, %v5209_v18  ;;  %v5195_v23 = vld [vmem:[#allocation9 + $0x78] sm:$0xf]  ;;  %v5197_v30 = vld [vmem:[#allocation9 + $0x84] sm:$0xf0] }
  0xed   : > { %928 = vmatpush.bf16.msra.mxu2 %v5000_v0  ;;  %956 = vmatpush.bf16.msrb.mxu0 %v4960_v59  ;;  %v5200_v33 = vor.u32 %v5666_v27, %v5197_v30  ;;  %v5664_v0 = vld [vmem:[#allocation9 + $0x68] sm:$0xf0]  ;;  %v5137_v27 = vld [vmem:[#allocation9 + $0xc] sm:$0xf0] }
  0xee   : > { %v6979_v36 = vsub.f32 %v6936_v28, %v1004_v29  ;;  %v6989_v28 = vsub.f32 %v6924_v13, %v1003_v1  ;;  %v4951_v13 = vld [vmem:[#allocation8 + $0x8] sm:$0xf]  ;;  %v5196_v29 = vor.u32 %v5667_v26, %v5195_v23 }
  0xef   : > { %v4952_v54 = vor.u32 %v5607_v53, %v4951_v13  ;;  %v5662_v13 = vld [vmem:[#allocation9 + $0x58] sm:$0xf0] }
  0xf0   : > { %v1020_v39 = vmul.f32 %v6979_v36, %v6979_v36  ;;  %941 = vmatpush.bf16.msra.mxu3 %v5004_v40  ;;  %v1019_v43 = vmul.f32 %v6989_v28, %v6989_v28  ;;  %957 = vmatmul.bf16.vlgmr.msrb.gmra.mxu0 %v6941_v11  ;;  %v5191_v40 = vld [vmem:[#allocation9 + $0x68] sm:$0xf] }
  0xf1   : > { %929 = vmatpush.bf16.msra.mxu2 %v4976_v47  ;;  %1391 = vmatpush.bf16.msra.mxu0 %v5228_v9  ;;  %v5155_v9 = vld [vmem:[#allocation9 + $0x20] sm:$0xf] }
  0xf2   : > { %1034 = vadd.xlane.f32.xlu2 %v1020_v39  ;;  %v5185_v39 = vld [vmem:[#allocation9 + $0x6c] sm:$0xf0]  ;;  %v5156_v18 = vor.u32 %v5656_v10, %v5155_v9 }
  0xf3   : > { %1030 = vadd.xlane.f32.xlu0 %v1018_v37  ;;  %1026 = vadd.xlane.f32.xlu1 %v1016_v38  ;;  %v5184_v37 = vor.u32 %v5664_v0, %v5183_v35  ;;  %v5663_v38 = vld [vmem:[#allocation9 + $0x64] sm:$0xf] }
  0xf4   : > { %942 = vmatpush.bf16.msra.mxu3 %v4980_v51  ;;  %v5188_v42 = vor.u32 %v5663_v38, %v5185_v39  ;;  %v5179_v51 = vld [vmem:[#allocation9 + $0x50] sm:$0xf] }
  0xf5   : > { %930 = vmatpush.bf16.msra.mxu2 %v4952_v54  ;;  %1392 = vmatpush.bf16.msra.mxu0 %v5216_v16  ;;  %v5180_v53 = vor.u32 %v5662_v13, %v5179_v51  ;;  %v5658_v54 = vld [vmem:[#allocation9 + $0x38] sm:$0xf0]  ;;  %v5651_v16 = vld [vmem:[#allocation9 + $0x4] sm:$0xf] }
  0xf6   : > { %v5160_v55 = vor.u32 %v5658_v54, %v5159_v2  ;;  %v5140_v30 = vor.u32 %v5651_v16, %v5137_v27 }
  0xf8   : > { %943 = vmatpush.bf16.msra.mxu3 %v4956_v58  ;;  %931 = vmatmul.bf16.vlgmr.msra.gmra.mxu2 %v6941_v11  ;;  %v5167_v58 = vld [vmem:[#allocation9 + $0x38] sm:$0xf] }
  0xf9   : > { %1333 = vmatpush.bf16.msrb.mxu2 %v5220_v63  ;;  %1393 = vmatpush.bf16.msra.mxu0 %v5204_v34  ;;  %v5168_v62 = vor.u32 %v5659_v61, %v5167_v58  ;;  %v5147_v63 = vld [vmem:[#allocation9 + $0x18] sm:$0xf] }
  0xfa   : > { %v5148_v6 = vor.u32 %v5655_v4, %v5147_v63 }
  0xfb   : > { %1032 = vadd.xlane.f32.xlu1 %v1019_v43  ;;  %944 = vmatmul.bf16.vlgmr.msra.gmra.mxu3 %v6941_v11  ;;  %v5665_v43 = vld [vmem:[#allocation9 + $0x70] sm:$0xf0] }
  0xfc   : > { %1362 = vmatpush.bf16.msrb.mxu3 %v5224_v8  ;;  %v5192_v44 = vor.u32 %v5665_v43, %v5191_v40  ;;  %v5149_v8 = vld [vmem:[#allocation9 + $0x24] sm:$0xf0] }
  0xfd   : > { %1334 = vmatpush.bf16.msrb.mxu2 %v5208_v17  ;;  %v5152_v17 = vor.u32 %v5654_v5, %v5149_v8 }
  0xfe   : > { %1394 = vmatpush.bf16.msra.mxu0 %v5192_v44 }
 0x100   : > { %1363 = vmatpush.bf16.msrb.mxu3 %v5212_v22  ;;  %v5652_v22 = vld [vmem:[#allocation9 + $0x8] sm:$0xf0] }
 0x101   : > { %1335 = vmatpush.bf16.msrb.mxu2 %v5196_v29  ;;  %v5136_v26 = vor.u32 %v5652_v22, %v5135_v21  ;;  %v5143_v29 = vld [vmem:[#allocation9 + $0x8] sm:$0xf] }
 0x102   : > { %1395 = vmatpush.bf16.msra.mxu0 %v5180_v53  ;;  %v5144_v32 = vor.u32 %v5653_v31, %v5143_v29 }
 0x104   : > { %1364 = vmatpush.bf16.msrb.mxu3 %v5200_v33 }
 0x105   : > { %1336 = vmatpush.bf16.msrb.mxu2 %v5184_v37 }
 0x106   : > { %1396 = vmatpush.bf16.msra.mxu0 %v5168_v62  ;;  %v885_v62 = vperm.slane %v643_v45, 0 }
 0x108   : > { %1365 = vmatpush.bf16.msrb.mxu3 %v5188_v42 }
 0x109   : > { %1337 = vmatpush.bf16.msrb.mxu2 %v5172_v48 }
 0x10a   : > { %1397 = vmatpush.bf16.msra.mxu0 %v5156_v18 }
 0x10c   : > { %1366 = vmatpush.bf16.msrb.mxu3 %v5176_v52 }
 0x10d   : > { %v6996_v1 = vpop.f32.mrf.mxu1  ;;  %v6998_v47 = vpop.f32.mrf.mxu0  ;;  %1338 = vmatpush.bf16.msrb.mxu2 %v5160_v55 }
 0x10e   : > { %1398 = vmatpush.bf16.msra.mxu0 %v5144_v32  ;;  %v920_v55 = vadd.f32 %v6996_v1, %v886_v49 }
 0x110   : > { %1367 = vmatpush.bf16.msrb.mxu3 %v5164_v60  ;;  %v1142_v61 = vadd.f32 1.0, %v920_v55 }
 0x111   : > { %1339 = vmatpush.bf16.msrb.mxu2 %v5148_v6 }
 0x114   : > { %1368 = vmatpush.bf16.msrb.mxu3 %v5152_v17  ;;  %v907_v17 = vadd.f32 %v6998_v47, %v885_v62 }
 0x115   : > { %v921_v59 = vpop.f32.mrf.mxu1  ;;  %v908_v14 = vpop.f32.mrf.mxu0  ;;  %1340 = vmatpush.bf16.msrb.mxu2 %v5136_v26 }
 0x118   : > { %1369 = vmatpush.bf16.msrb.mxu3 %v5140_v30  ;;  %v7038_v30 = vperm.slane %v907_v17, 0 }
 0x156   : > { %v1023_v15 = vpop.xlane.xlu0 %1022 }
 0x157   : > { %v1038_v20 = vmul.f32 %v1023_v15, %v6945_v19  ;;  %v7032_v15 = vperm.slane %v1142_v61, 0 }
 0x159   : > { %v1046_v23 = vadd.f32 1e-06, %v1038_v20 }
 0x15b   : > { %6014 = vrsqrt.f32 %v1046_v23  ;;  %vm1060_vm6 = vweird.f32 %v1046_v23 }
 0x15d   : > { %v1029_v33 = vpop.xlane.xlu2 %1028 }
 0x15e   : > { %v1041_v34 = vmul.f32 %v1029_v33, %v6945_v19  ;;  %v1025_v35 = vpop.xlane.xlu1 %1024  ;;  %v990_v0 = vpop.xlane.xlu0 %989 }
 0x15f   : > { %v1039_v37 = vmul.f32 %v1025_v35, %v6945_v19  ;;  %v1005_v38 = vmul.f32 %v6945_v19, %v990_v0 }
 0x160   : > { %v7004_v39 = vadd.f32 1e-06, %v1041_v34 }
 0x161   : > { %v6015_v40 = vpop.eup %6014  ;;  %v1047_v42 = vadd.f32 1e-06, %v1039_v37  ;;  %v7007_v43 = vsub.f32 %v6966_v12, %v1005_v38 }
 0x162   : > { %v1055_v44 = vmul.f32 %v6015_v40, %v1046_v23  ;;  %6016 = vrsqrt.f32 %v7004_v39  ;;  %vm1061_vm5 = vweird.f32 %v6015_v40  ;;  %vm1090_vm13 = vweird.f32 %v7004_v39 }
 0x163   : > { %6018 = vrsqrt.f32 %v1047_v42  ;;  %v1021_v46 = vmul.f32 %v7007_v43, %v7007_v43  ;;  %vm7022_vm7 = vmor %vm1060_vm6, %vm1061_vm5  ;;  %vm1070_vm8 = vweird.f32 %v1047_v42 }
 0x164   : > { %v1056_v48 = vmul.f32 %v6015_v40, %v1055_v44 }
 0x165   : > { %1036 = vadd.xlane.f32.xlu0 %v1021_v46 }
 0x166   : > { %v1057_v50 = vmul.f32 0.5, %v1056_v48  ;;  %v1027_v51 = vpop.xlane.xlu1 %1026  ;;  %v1031_v12 = vpop.xlane.xlu0 %1030 }
 0x167   : > { %v1040_v52 = vmul.f32 %v1027_v51, %v6945_v19  ;;  %v1042_v57 = vmul.f32 %v1031_v12, %v6945_v19 }
 0x168   : > { %v7016_v13 = vpop.eup %6016  ;;  %v1058_v53 = vsub.f32 1.5, %v1057_v50 }
 0x169   : > { %v6019_v2 = vpop.eup %6018  ;;  %v1048_v54 = vadd.f32 1e-06, %v1040_v52  ;;  %v1085_v59 = vmul.f32 %v7016_v13, %v7004_v39  ;;  %v7026_v1 = vadd.f32 1e-06, %v1042_v57  ;;  %vm1091_vm14 = vweird.f32 %v7016_v13 }
 0x16a   : > { %v1065_v56 = vmul.f32 %v6019_v2, %v1047_v42  ;;  %v1059_v58 = vmul.f32 %v6015_v40, %v1058_v53  ;;  %vm1071_vm9 = vweird.f32 %v6019_v2  ;;  %vm1092_vm0 = vmor %vm1090_vm13, %vm1091_vm14  ;;  %vm1828_vm13 = vcmask 261120  }
 0x16b   : > { %6020 = vrsqrt.f32 %v1048_v54  ;;  %v1086_v8 = vmul.f32 %v7016_v13, %v1085_v59  ;;  %vm1072_vm10 = vmor %vm1070_vm8, %vm1071_vm9  ;;  %vm1080_vm11 = vweird.f32 %v1048_v54  ;;  %vm1100_vm3 = vweird.f32 %v7026_v1 }
 0x16c   : > { %v1066_v60 = vmul.f32 %v6019_v2, %v1065_v56  ;;  %v1063_v6 = vsel %vm7022_vm7, %v6015_v40, %v1059_v58  ;;  %6022 = vrsqrt.f32 %v7026_v1  ;;  %vm2161_vm14 = vcmask 523264  }
 0x16d   : > { %v1134_v22 = vmul.f32 %v1063_v6, %v6949_v41  ;;  %v1087_v16 = vmul.f32 0.5, %v1086_v8 }
 0x16e   : > { %v1067_v4 = vmul.f32 0.5, %v1066_v60  ;;  %v1033_v5 = vpop.xlane.xlu1 %1032 }
 0x16f   : > { %v1043_v9 = vmul.f32 %v1033_v5, %v6945_v19  ;;  %v1144_v31 = vmul.f32 %v7032_v15, %v1134_v22  ;;  %v1088_v32 = vsub.f32 1.5, %v1087_v16 }
 0x170   : > { %v1068_v10 = vsub.f32 1.5, %v1067_v4 }
 0x171   : > { %v6021_v14 = vpop.eup %6020  ;;  %v1051_v18 = vadd.f32 1e-06, %v1043_v9  ;;  %v1153_v0 = vadd.f32 %v7038_v30, %v1144_v31  ;;  %v1089_v37 = vmul.f32 %v7016_v13, %v1088_v32 }
 0x172   : > { %v1069_v20 = vmul.f32 %v6019_v2, %v1068_v10  ;;  %v1075_v21 = vmul.f32 %v6021_v14, %v1048_v54  ;;  %vm1081_vm12 = vweird.f32 %v6021_v14  ;;  %v6023_v33 = vpop.eup %6022 }
 0x173   : > { %6024 = vrsqrt.f32 %v1051_v18  ;;  %vm1082_vm15 = vmor %vm1080_vm11, %vm1081_vm12  ;;  %v1095_v38 = vmul.f32 %v6023_v33, %v7026_v1  ;;  %v1093_v39 = vsel %vm1092_vm0, %v7016_v13, %v1089_v37  ;;  %vm1110_vm1 = vweird.f32 %v1051_v18  ;;  %v1035_v1 = vpop.xlane.xlu2 %1034 }
 0x174   : > { %v1073_v23 = vsel %vm1072_vm10, %v6019_v2, %v1069_v20  ;;  %v1076_v26 = vmul.f32 %v6021_v14, %v1075_v21  ;;  %v1137_v50 = vmul.f32 %v1093_v39, %v6956_v3  ;;  %vm1101_vm4 = vweird.f32 %v6023_v33 }
 0x175   : > { %v1135_v27 = vmul.f32 %v1073_v23, %v6961_v7  ;;  %v1096_v46 = vmul.f32 %v6023_v33, %v1095_v38  ;;  %vm1102_vm6 = vmor %vm1100_vm3, %vm1101_vm4  ;;  %v1044_v5 = vmul.f32 %v1035_v1, %v6945_v19  ;;  %vm2927_vm0 = vcmask 519424  }
 0x176   : > { %v1077_v29 = vmul.f32 0.5, %v1076_v26  ;;  %v1147_v53 = vmul.f32 %v7032_v15, %v1137_v50 }
 0x177   : > { %v1145_v47 = vmul.f32 %v7032_v15, %v1135_v27  ;;  %v1097_v51 = vmul.f32 0.5, %v1096_v46  ;;  %v1052_v6 = vadd.f32 1e-06, %v1044_v5 }
 0x178   : > { %v1078_v34 = vsub.f32 1.5, %v1077_v29 }
 0x179   : > { %v1154_v41 = vadd.f32 %v7038_v30, %v1145_v47  ;;  %v6025_v35 = vpop.eup %6024  ;;  %v1098_v2 = vsub.f32 1.5, %v1097_v51  ;;  %6026 = vrsqrt.f32 %v1052_v6  ;;  %vm1120_vm7 = vweird.f32 %v1052_v6 }
 0x17a   : > { %v1079_v7 = vmul.f32 %v6021_v14, %v1078_v34  ;;  %v1105_v40 = vmul.f32 %v6025_v35, %v1051_v18  ;;  %vm1111_vm2 = vweird.f32 %v6025_v35 }
 0x17b   : > { %v1161_v42 = vpack.c.bf16 %v1154_v41, %v1153_v0  ;;  %vm1112_vm5 = vmor %vm1110_vm1, %vm1111_vm2  ;;  %v1099_v55 = vmul.f32 %v6023_v33, %v1098_v2  ;;  %vm2984_vm1 = vcmask 781824   ;;  %vm3041_vm2 = vcmask 1044224  }
 0x17c   : > { %v1083_v44 = vsel %vm1082_vm15, %v6021_v14, %v1079_v7  ;;  %v1106_v45 = vmul.f32 %v6025_v35, %v1105_v40  ;;  %vm2870_vm15 = vcmask 257024  }
 0x17d   : > { %1341 = vmatmul.bf16.vlgmr.msrb.gmra.mxu2 %v1161_v42  ;;  %1370 = vmatmul.bf16.vlgmr.msrb.gmra.mxu3 %v1161_v42  ;;  %v1136_v48 = vmul.f32 %v1083_v44, %v6975_v25  ;;  %v1156_v25 = vadd.f32 %v7038_v30, %v1147_v53  ;;  %v1103_v57 = vsel %vm1102_vm6, %v6023_v33, %v1099_v55 }
 0x17e   : > { %1399 = vmatmul.bf16.vlgmr.msra.gmra.mxu0 %v1161_v42  ;;  %v1107_v49 = vmul.f32 0.5, %v1106_v45  ;;  %v1138_v59 = vmul.f32 %v1103_v57, %v6972_v24  ;;  %v7065_v24 = vpop.f32.mrf.mxu2  ;;  %v7067_v8 = vpop.f32.mrf.mxu3 }
 0x17f   : > { %v1146_v52 = vmul.f32 %v7032_v15, %v1136_v48  ;;  %v6027_v9 = vpop.eup %6026 }
 0x180   : > { %v1108_v12 = vsub.f32 1.5, %v1107_v49  ;;  %v1148_v61 = vmul.f32 %v7032_v15, %v1138_v59  ;;  %v1115_v10 = vmul.f32 %v6027_v9, %v1052_v6  ;;  %vm1121_vm8 = vweird.f32 %v6027_v9 }
 0x181   : > { %v1155_v54 = vadd.f32 %v7038_v30, %v1146_v52  ;;  %vm1122_vm9 = vmor %vm1120_vm7, %vm1121_vm8 }
 0x182   : > { %v1109_v13 = vmul.f32 %v6025_v35, %v1108_v12  ;;  %v1157_v63 = vadd.f32 %v7038_v30, %v1148_v61  ;;  %v1116_v20 = vmul.f32 %v6027_v9, %v1115_v10 }
 0x183   : > { %v1162_v3 = vpack.c.bf16 %v1156_v25, %v1155_v54 }
 0x184   : > { %v1113_v56 = vsel %vm1112_vm5, %v6025_v35, %v1109_v13  ;;  %v1117_v23 = vmul.f32 0.5, %v1116_v20 }
 0x185   : > { %v1139_v58 = vmul.f32 %v1113_v56, %v6989_v28  ;;  %v7063_v28 = vpop.f32.mrf.mxu0 }
 0x186   : > { %v934_v17 = vpop.f32.mrf.mxu2  ;;  %v947_v18 = vpop.f32.mrf.mxu3  ;;  %v1118_v26 = vsub.f32 1.5, %v1117_v23 }
 0x187   : > { %v1149_v60 = vmul.f32 %v7032_v15, %v1139_v58 }
 0x188   : > { %v1119_v29 = vmul.f32 %v6027_v9, %v1118_v26 }
 0x189   : > { %v1158_v62 = vadd.f32 %v7038_v30, %v1149_v60 }
 0x18a   : > { %v1123_v47 = vsel %vm1122_vm9, %v6027_v9, %v1119_v29 }
 0x18b   : > { %v1163_v4 = vpack.c.bf16 %v1158_v62, %v1157_v63  ;;  %v1140_v41 = vmul.f32 %v1123_v47, %v6979_v36  ;;  %v1197_v36 = vld [vmem:[#allocation11] sm:$0x7] }
 0x18c   : > { %v7076_v39 = vperm.slane %v1197_v36, 2  ;;  %v7078_v48 = vperm.slane %v1197_v36, 1 }
 0x18d   : > { %1346 = vmatmul.bf16.gmra.mxu2 %v1162_v3  ;;  %1375 = vmatmul.bf16.gmra.mxu3 %v1162_v3  ;;  %v960_v14 = vpop.f32.mrf.mxu0  ;;  %v1150_v37 = vmul.f32 %v7032_v15, %v1140_v41  ;;  %v7146_v41 = vperm.slane %v1197_v36, 0  ;;  %v5635_v36 = vld [vmem:[#allocation8 + $0x104] sm:$0xf] }
 0x18e   : > { %1404 = vmatmul.bf16.gmra.mxu0 %v1162_v3 }
 0x18f   : > { %v1159_v40 = vadd.f32 %v7038_v30, %v1150_v37  ;;  %v5641_v37 = vld [vmem:[#allocation8 + $0x134] sm:$0xf] }
 0x19d   : > { %1351 = vmatmul.bf16.gmra.mxu2 %v1163_v4  ;;  %1380 = vmatmul.bf16.gmra.mxu3 %v1163_v4 }
 0x19e   : > { %1409 = vmatmul.bf16.gmra.mxu0 %v1163_v4 }
 0x1d8   : > { %v1037_v21 = vpop.xlane.xlu0 %1036 }
 0x1d9   : > { %v1045_v22 = vmul.f32 %v1037_v21, %v6945_v19 }
 0x1db   : > { %v1053_v16 = vadd.f32 1e-06, %v1045_v22 }
 0x1dd   : > { %6028 = vrsqrt.f32 %v1053_v16  ;;  %vm1130_vm11 = vweird.f32 %v1053_v16 }
 0x1e3   : > { %v6029_v27 = vpop.eup %6028 }
 0x1e4   : > { %v1125_v31 = vmul.f32 %v6029_v27, %v1053_v16  ;;  %vm1131_vm10 = vweird.f32 %v6029_v27 }
 0x1e5   : > { %vm1132_vm12 = vmor %vm1130_vm11, %vm1131_vm10 }
 0x1e6   : > { %v1126_v32 = vmul.f32 %v6029_v27, %v1125_v31 }
 0x1e8   : > { %v1127_v33 = vmul.f32 0.5, %v1126_v32 }
 0x1ea   : > { %v1128_v34 = vsub.f32 1.5, %v1127_v33 }
 0x1ec   : > { %v1129_v35 = vmul.f32 %v6029_v27, %v1128_v34 }
 0x1ee   : > { %v1133_v7 = vsel %vm1132_vm12, %v6029_v27, %v1129_v35 }
 0x1ef   : > { %v1141_v0 = vmul.f32 %v1133_v7, %v7007_v43  ;;  %v5647_v7 = vld [vmem:[#allocation8 + $0x164] sm:$0xf] }
 0x1f1   : > { %v1151_v38 = vmul.f32 %v7032_v15, %v1141_v0  ;;  %v5129_v0 = vld [vmem:[#allocation8 + $0x178] sm:$0xf0] }
 0x1f3   : > { %v1160_v42 = vadd.f32 %v7038_v30, %v1151_v38  ;;  %v5132_v38 = vor.u32 %v5647_v7, %v5129_v0 }
 0x1f5   : > { %v1164_v44 = vpack.c.bf16 %v1160_v42, %v1159_v40  ;;  %v5105_v40 = vld [vmem:[#allocation8 + $0x148] sm:$0xf0]  ;;  %962 = vmatpush.bf16.msrb.mxu1 %v5132_v38 }
 0x1f7   : > { %1356 = vmatmul.bf16.gmra.mxu2 %v1164_v44  ;;  %1385 = vmatmul.bf16.gmra.mxu3 %v1164_v44 }
 0x1f8   : > { %1414 = vmatmul.bf16.gmra.mxu0 %v1164_v44  ;;  %v5108_v44 = vor.u32 %v5641_v37, %v5105_v40 }
 0x1fa   : > { %963 = vmatpush.bf16.msrb.mxu1 %v5108_v44 }
 0x1fb   : > { %v1400_v45 = vpop.f32.mrf.mxu0 }
 0x1fc   : > { %v7081_v49 = vadd.f32 %v1400_v45, %v7076_v39 }
 0x200   : > { %v1371_v46 = vpop.f32.mrf.mxu3  ;;  %v1342_v33 = vpop.f32.mrf.mxu2 }
 0x201   : > { %v1372_v30 = vadd.f32 %v1371_v46, %v7078_v48  ;;  %v5081_v46 = vld [vmem:[#allocation8 + $0x118] sm:$0xf0] }
 0x203   : > { %v1402_v43 = vpop.f32.mrf.mxu0  ;;  %v1644_v12 = vpack.c.bf16 %v1372_v30, %v1372_v30 }
 0x204   : > { %v7084_v15 = vadd.f32 %v1402_v43, %v7076_v39  ;;  %v5084_v43 = vor.u32 %v5635_v36, %v5081_v46 }
 0x205   : > { %v7094_v13 = vunpack.c.l.b16 %v1644_v12  ;;  %v7161_v12 = vadd.f32 %v1342_v33, %v7146_v41 }
 0x206   : > { %v7089_v50 = vpack.i.bf16 %v7084_v15, %v7081_v49  ;;  %964 = vmatpush.bf16.msrb.mxu1 %v5084_v43 }
 0x208   : > { %v1373_v51 = vpop.f32.mrf.mxu3  ;;  %v1344_v34 = vpop.f32.mrf.mxu2 }
 0x209   : > { %v1374_v52 = vadd.f32 %v1373_v51, %v7078_v48  ;;  %v7149_v35 = vadd.f32 %v1344_v34, %v7146_v41  ;;  %v5057_v51 = vld [vmem:[#allocation8 + $0xe8] sm:$0xf0] }
 0x20b   : > { %v1405_v53 = vpop.f32.mrf.mxu0  ;;  %v7092_v2 = vpack.i.bf16 %v1374_v52, %v1372_v30  ;;  %v1645_v54 = vpack.c.bf16 %v1374_v52, %v1374_v52  ;;  %v5629_v30 = vld [vmem:[#allocation8 + $0xd4] sm:$0xf] }
 0x20c   : > { %v7101_v57 = vadd.f32 %v1405_v53, %v7076_v39  ;;  %v5060_v52 = vor.u32 %v5629_v30, %v5057_v51 }
 0x20d   : > { %v7096_v25 = vunpack.c.l.b16 %v1645_v54  ;;  %v5623_v54 = vld [vmem:[#allocation8 + $0xa4] sm:$0xf] }
 0x20e   : > { %965 = vmatpush.bf16.msrb.mxu1 %v5060_v52 }
 0x20f   : > { %v1824_v55 = vpack.c.b16 %v7096_v25, %v7094_v13 }
 0x210   : > { %v1376_v3 = vpop.f32.mrf.mxu3  ;;  %v1347_v42 = vpop.f32.mrf.mxu2 }
 0x211   : > { %v1377_v59 = vadd.f32 %v1376_v3, %v7078_v48  ;;  %v7156_v45 = vadd.f32 %v1347_v42, %v7146_v41  ;;  %v5033_v3 = vld [vmem:[#allocation8 + $0xb8] sm:$0xf0] }
 0x213   : > { %v1407_v56 = vpop.f32.mrf.mxu0  ;;  %v1646_v63 = vpack.c.bf16 %v1377_v59, %v1377_v59 }
 0x214   : > { %v7104_v58 = vadd.f32 %v1407_v56, %v7076_v39  ;;  %v5036_v56 = vor.u32 %v5623_v54, %v5033_v3 }
 0x215   : > { %v7114_v6 = vunpack.c.l.b16 %v1646_v63 }
 0x216   : > { %v7109_v60 = vpack.i.bf16 %v7104_v58, %v7101_v57  ;;  %966 = vmatpush.bf16.msrb.mxu1 %v5036_v56 }
 0x218   : > { %v1378_v61 = vpop.f32.mrf.mxu3  ;;  %v1349_v53 = vpop.f32.mrf.mxu2 }
 0x219   : > { %v1379_v62 = vadd.f32 %v1378_v61, %v7078_v48  ;;  %v5009_v61 = vld [vmem:[#allocation8 + $0x88] sm:$0xf0]  ;;  %v7166_v63 = vadd.f32 %v1349_v53, %v7146_v41 }
 0x21b   : > { %v1410_v4 = vpop.f32.mrf.mxu0  ;;  %v7112_v1 = vpack.i.bf16 %v1379_v62, %v1377_v59  ;;  %v1647_v5 = vpack.c.bf16 %v1379_v62, %v1379_v62  ;;  %v5617_v59 = vld [vmem:[#allocation8 + $0x74] sm:$0xf] }
 0x21c   : > { %v7121_v18 = vadd.f32 %v1410_v4, %v7076_v39  ;;  %v5012_v62 = vor.u32 %v5617_v59, %v5009_v61  ;;  %v5611_v4 = vld [vmem:[#allocation8 + $0x44] sm:$0xf] }
 0x21d   : > { %v7116_v9 = vunpack.c.l.b16 %v1647_v5  ;;  %v4985_v5 = vld [vmem:[#allocation8 + $0x58] sm:$0xf0] }
 0x21e   : > { %967 = vmatpush.bf16.msrb.mxu1 %v5012_v62  ;;  %v1760_v61 = vpack.c.bf16 %v7121_v18, %v7121_v18 }
 0x21f   : > { %v1825_v10 = vpack.c.b16 %v7116_v9, %v7114_v6 }
 0x220   : > { %v1381_v14 = vpop.f32.mrf.mxu3 }
 0x221   : > { %v1382_v21 = vadd.f32 %v1381_v14, %v7078_v48  ;;  %v1352_v14 = vpop.f32.mrf.mxu2  ;;  %v1845_v59 = vsel %vm1828_vm13, %v1825_v10, 0 }
 0x222   : > { %v7181_v0 = vadd.f32 %v1352_v14, %v7146_v41 }
 0x223   : > { %v1412_v17 = vpop.f32.mrf.mxu0  ;;  %v1648_v26 = vpack.c.bf16 %v1382_v21, %v1382_v21 }
 0x224   : > { %v7124_v20 = vadd.f32 %v1412_v17, %v7076_v39  ;;  %v4988_v17 = vor.u32 %v5611_v4, %v4985_v5  ;;  %v1842_v4 = vsel %vm1828_vm13, %v1824_v55, 0 }
 0x225   : > { %v7136_v31 = vunpack.c.l.b16 %v1648_v26 }
 0x226   : > { %v7129_v22 = vpack.i.bf16 %v7124_v20, %v7121_v18  ;;  %968 = vmatpush.bf16.msrb.mxu1 %v4988_v17  ;;  %v1761_v6 = vpack.c.bf16 %v7124_v20, %v7124_v20  ;;  %v2546_v20 = vunpack.c.l.b16 %v1760_v61  ;;  %v1758_v18 = vpack.c.bf16 %v7101_v57, %v7101_v57 }
 0x228   : > { %v1383_v16 = vpop.f32.mrf.mxu3  ;;  %v2547_v14 = vunpack.c.l.b16 %v1761_v6  ;;  %v2544_v57 = vunpack.c.l.b16 %v1758_v18 }
 0x229   : > { %v1384_v23 = vadd.f32 %v1383_v16, %v7078_v48  ;;  %v4961_v16 = vld [vmem:[#allocation8 + $0x28] sm:$0xf0]  ;;  %v1354_v26 = vpop.f32.mrf.mxu2 }
 0x22a   : > { %v7247_v25 = vpack.c.b16 %v2547_v14, %v2546_v20 }
 0x22b   : > { %v7132_v27 = vpack.i.bf16 %v1384_v23, %v1382_v21  ;;  %v1649_v29 = vpack.c.bf16 %v1384_v23, %v1384_v23  ;;  %v5605_v21 = vld [vmem:[#allocation8 + $0x14] sm:$0xf] }
 0x22c   : > { %v4964_v23 = vor.u32 %v5605_v21, %v4961_v16  ;;  %v1756_v16 = vpack.c.bf16 %v7081_v49, %v7081_v49 }
 0x22d   : > { %5892 = vrot.lane.b32.xlu2 %v7132_v27, %s6655_s11  ;;  %v7138_v32 = vunpack.c.l.b16 %v1649_v29  ;;  %v7174_v29 = vadd.f32 %v1354_v26, %v7146_v41 }
 0x22e   : > { %969 = vmatpush.bf16.msrb.mxu1 %v4964_v23 }
 0x22f   : > { %v1826_v47 = vpack.c.b16 %v7138_v32, %v7136_v31  ;;  %v1501_v31 = vmul.f32 0.17677669, %v7149_v35 }
 0x231   : > { %970 = vmatmul.bf16.vlgmr.msrb.gmra.mxu1 %v6941_v11  ;;  %v1533_v9 = vpack.c.bf16 %v1501_v31, %v1501_v31 }
 0x233   : > { %v1797_v17 = vunpack.c.l.b16 %v1533_v9 }
 0x235   : > { %5897 = vrot.lane.b32.xlu2 %v7112_v1, %s6655_s11 }
 0x23d   : > { %5907 = vrot.lane.b32.xlu2 %v7092_v2, %s6655_s11 }
 0x245   : > { %1430 = vrot.lane.b32.xlu2 %v7149_v35, %s6655_s11 }
 0x24d   : > { %5937 = vrot.lane.b32.xlu2 %v7112_v1, %s6656_s25 }
 0x255   : > { %1432 = vrot.lane.b32.xlu2 %v7156_v45, %s6655_s11 }
 0x25d   : > { %1476 = vrot.lane.b32.xlu2 %v7161_v12, %s6656_s25 }
 0x265   : > { %1458 = vrot.lane.b32.xlu2 %v7166_v63, %s6657_s2 }
 0x26d   : > { %1480 = vrot.lane.b32.xlu2 %v7156_v45, %s6656_s25 }
 0x275   : > { %v1415_v33 = vpop.f32.mrf.mxu0  ;;  %1462 = vrot.lane.b32.xlu2 %v7174_v29, %s6657_s2 }
 0x276   : > { %v1416_v38 = vadd.f32 %v1415_v33, %v7076_v39  ;;  %v1503_v33 = vmul.f32 0.17677669, %v7166_v63 }
 0x278   : > { %v1762_v32 = vpack.c.bf16 %v1416_v38, %v1416_v38 }
 0x27a   : > { %v7178_v34 = vpop.f32.mrf.mxu2  ;;  %v1386_v7 = vpop.f32.mrf.mxu3  ;;  %v2548_v10 = vunpack.c.l.b16 %v1762_v32 }
 0x27b   : > { %v1387_v11 = vadd.f32 %v1386_v7, %v7078_v48  ;;  %v1535_v7 = vpack.c.bf16 %v1503_v33, %v1503_v33 }
 0x27d   : > { %v1417_v37 = vpop.f32.mrf.mxu0  ;;  %1484 = vrot.lane.b32.xlu2 %v7181_v0, %s6656_s25  ;;  %v1650_v30 = vpack.c.bf16 %v1387_v11, %v1387_v11 }
 0x27e   : > { %v1418_v40 = vadd.f32 %v1417_v37, %v7076_v39 }
 0x27f   : > { %v1822_v39 = vunpack.c.l.b16 %v1650_v30 }
 0x280   : > { %v7188_v42 = vpack.i.bf16 %v1418_v40, %v1416_v38  ;;  %v1763_v56 = vpack.c.bf16 %v1418_v40, %v1418_v40  ;;  %v1799_v38 = vunpack.c.l.b16 %v1535_v7 }
 0x282   : > { %v1359_v44 = vpop.f32.mrf.mxu2  ;;  %v1388_v36 = vpop.f32.mrf.mxu3 }
 0x283   : > { %v7191_v46 = vadd.f32 %v1359_v44, %v7146_v41  ;;  %v1389_v43 = vadd.f32 %v1388_v36, %v7078_v48  ;;  %v1848_v48 = vsel %vm1828_vm13, %v1826_v47, 0  ;;  %v1500_v47 = vmul.f32 0.17677669, %v7161_v12 }
 0x284   : > { %v1504_v44 = vmul.f32 0.17677669, %v7181_v0 }
 0x285   : > { %v5916_v51 = vpack.i.bf16 %v1389_v43, %v1387_v11  ;;  %v1651_v52 = vpack.c.bf16 %v1389_v43, %v1389_v43  ;;  %1466 = vrot.lane.b32.xlu2 %v7191_v46, %s6657_s2  ;;  %v1532_v62 = vpack.c.bf16 %v1500_v47, %v1500_v47  ;;  %v1505_v11 = vmul.f32 0.17677669, %v7174_v29 }
 0x287   : > { %5917 = vrot.lane.b32.xlu0 %v5916_v51, %s6657_s2  ;;  %5887 = vrot.lane.b32.xlu1 %v5916_v51, %s6655_s11  ;;  %v1823_v53 = vunpack.c.l.b16 %v1651_v52  ;;  %v1796_v13 = vunpack.c.l.b16 %v1532_v62  ;;  %v5893_v36 = vpop.permute.xlu2 %5892  ;;  %v1537_v43 = vpack.c.bf16 %v1505_v11, %v1505_v11 }
 0x288   : > { %v5894_v32 = vunpack.i.l.bf16 %v5893_v36 }
 0x289   : > { %v1827_v54 = vpack.c.b16 %v1823_v53, %v1822_v39  ;;  %v1804_v21 = vpack.c.b16 %v1797_v17, %v1796_v13  ;;  %v1801_v30 = vunpack.c.l.b16 %v1537_v43  ;;  %v1358_v39 = vadd.f32 %v7178_v34, %v7146_v41 }
 0x28a   : > { %v1507_v53 = vmul.f32 0.17677669, %v7191_v46 }
 0x28b   : > { %v1851_v3 = vsel %vm1828_vm13, %v1827_v54, 0 }
 0x28c   : > { %1857 = vmatpush.bf16.xpose.msra.mxu1 %v1851_v3  ;;  %v1539_v54 = vpack.c.bf16 %v1507_v53, %v1507_v53 }
 0x28d   : > { %5967 = vrot.lane.b32.xlu2 %v7109_v60, %s6655_s11 }
 0x28f   : > { %1428 = vrot.lane.b32.xlu0 %v7161_v12, %s6655_s11  ;;  %5902 = vrot.lane.b32.xlu1 %v7132_v27, %s6657_s2  ;;  %v7284_v52 = vpop.permute.xlu2 %5897 }
 0x294   : > { %1858 = vmatpush.bf16.xpose.msra.mxu1 %v1848_v48  ;;  %v1803_v48 = vunpack.c.l.b16 %v1539_v54 }
 0x295   : > { %5982 = vrot.lane.b32.xlu2 %v7089_v50, %s6655_s11 }
 0x297   : > { %5927 = vrot.lane.b32.xlu0 %v5916_v51, %s6656_s25  ;;  %5912 = vrot.lane.b32.xlu1 %v7112_v1, %s6657_s2  ;;  %v2549_v1 = vunpack.c.l.b16 %v1763_v56 }
 0x299   : > { %v7234_v5 = vpack.c.b16 %v2549_v1, %v2548_v10 }
 0x29c   : > { %1859 = vmatpush.bf16.xpose.msra.mxu1 %v1845_v59 }
 0x29d   : > { %5987 = vrot.lane.b32.xlu2 %v7129_v22, %s6656_s25 }
 0x29f   : > { %5932 = vrot.lane.b32.xlu0 %v7092_v2, %s6657_s2  ;;  %5922 = vrot.lane.b32.xlu1 %v7132_v27, %s6656_s25  ;;  %v1759_v27 = vpack.c.bf16 %v7104_v58, %v7104_v58  ;;  %v1757_v58 = vpack.c.bf16 %v7084_v15, %v7084_v15  ;;  %v1502_v15 = vmul.f32 0.17677669, %v7156_v45 }
 0x2a1   : > { %v2545_v55 = vunpack.c.l.b16 %v1759_v27  ;;  %v2543_v26 = vunpack.c.l.b16 %v1757_v58  ;;  %v1534_v37 = vpack.c.bf16 %v1502_v15, %v1502_v15 }
 0x2a3   : > { %v7255_v23 = vpack.c.b16 %v2545_v55, %v2544_v57  ;;  %v1798_v40 = vunpack.c.l.b16 %v1534_v37 }
 0x2a4   : > { %1860 = vmatpush.bf16.xpose.msra.mxu1 %v1842_v4 }
 0x2a5   : > { %5992 = vrot.lane.b32.xlu2 %v7089_v50, %s6657_s2 }
 0x2a7   : > { %1454 = vrot.lane.b32.xlu0 %v7149_v35, %s6657_s2  ;;  %1452 = vrot.lane.b32.xlu1 %v7161_v12, %s6657_s2  ;;  %v2542_v12 = vunpack.c.l.b16 %v1756_v16 }
 0x2a9   : > { %v7265_v49 = vpack.c.b16 %v2543_v26, %v2542_v12  ;;  %v5900_v26 = vunpack.i.h.bf16 %v7284_v52  ;;  %v5899_v12 = vunpack.i.l.bf16 %v7284_v52 }
 0x2ab   : > { %5229 = vmatmul.msk.bf16.vlgmr.msra.gmra.mxu1 %vm1828_vm13, %v1804_v21 }
 0x2ac   : > { %2574 = vmatpush.bf16.msrb.mxu1 %v7234_v5 }
 0x2ad   : > { %5997 = vrot.lane.b32.xlu2 %v7109_v60, %s6656_s25 }
 0x2ae   : > { %v7316_v31 = vpop.f32.mrf.mxu1 }
 0x2af   : > { %5942 = vrot.lane.b32.xlu0 %v7092_v2, %s6656_s25  ;;  %1434 = vrot.lane.b32.xlu1 %v7166_v63, %s6655_s11  ;;  %v1805_v2 = vpack.c.b16 %v1799_v38, %v1798_v40 }
 0x2b0   : > { %2575 = vmatpush.bf16.msrb.mxu1 %v7247_v25 }
 0x2b4   : > { %2576 = vmatpush.bf16.msrb.mxu1 %v7255_v23 }
 0x2b6   : > { %v973_v58 = vpop.f32.mrf.mxu1 }
 0x2b7   : > { %1456 = vrot.lane.b32.xlu0 %v7156_v45, %s6657_s2  ;;  %1478 = vrot.lane.b32.xlu1 %v7149_v35, %s6656_s25  ;;  %v1536_v45 = vpack.c.bf16 %v1504_v44, %v1504_v44  ;;  %v1655_v44 = vpack.c.bf16 %v5900_v26, %v5900_v26 }
 0x2b8   : > { %2577 = vmatpush.bf16.msrb.mxu1 %v7265_v49 }
 0x2b9   : > { %v1800_v35 = vunpack.c.l.b16 %v1536_v45  ;;  %v1913_v52 = vunpack.c.l.b16 %v1655_v44 }
 0x2bb   : > { %5230 = vmatmul.msk.bf16.gmra.mxu1 %vm1828_vm13, %v1805_v2  ;;  %v1806_v51 = vpack.c.b16 %v1801_v30, %v1800_v35 }
 0x2bf   : > { %1438 = vrot.lane.b32.xlu0 %v7174_v29, %s6655_s11  ;;  %1436 = vrot.lane.b32.xlu1 %v7181_v0, %s6655_s11 }
 0x2c7   : > { %1460 = vrot.lane.b32.xlu0 %v7181_v0, %s6657_s2  ;;  %1482 = vrot.lane.b32.xlu1 %v7166_v63, %s6656_s25  ;;  %v1506_v0 = vmul.f32 0.17677669, %v1358_v39  ;;  %v7293_v63 = vpop.permute.xlu2 %5907 }
 0x2c8   : > { %v5910_v53 = vunpack.i.h.bf16 %v7293_v63 }
 0x2c9   : > { %v1538_v3 = vpack.c.bf16 %v1506_v0, %v1506_v0  ;;  %v5909_v0 = vunpack.i.l.bf16 %v7293_v63 }
 0x2cb   : > { %5231 = vmatmul.msk.bf16.gmra.mxu1 %vm1828_vm13, %v1806_v51  ;;  %v1802_v41 = vunpack.c.l.b16 %v1538_v3 }
 0x2cd   : > { %v1807_v34 = vpack.c.b16 %v1803_v48, %v1802_v41 }
 0x2cf   : > { %1442 = vrot.lane.b32.xlu0 %v7191_v46, %s6655_s11  ;;  %1440 = vrot.lane.b32.xlu1 %v1358_v39, %s6655_s11  ;;  %v7299_v56 = vpop.permute.xlu2 %1430 }
 0x2d0   : > { %v1509_v44 = vmul.f32 0.17677669, %v7299_v56 }
 0x2d7   : > { %1464 = vrot.lane.b32.xlu0 %v1358_v39, %s6657_s2  ;;  %1486 = vrot.lane.b32.xlu1 %v7174_v29, %s6656_s25  ;;  %v7308_v59 = vpop.permute.xlu2 %5937 }
 0x2db   : > { %5232 = vmatmul.msk.bf16.gmra.mxu1 %vm1828_vm13, %v1807_v34 }
 0x2df   : > { %1490 = vrot.lane.b32.xlu0 %v7191_v46, %s6656_s25  ;;  %1488 = vrot.lane.b32.xlu1 %v1358_v39, %s6656_s25  ;;  %v7314_v29 = vpop.permute.xlu2 %1432  ;;  %v5895_v46 = vunpack.i.h.bf16 %v5893_v36  ;;  %v1654_v36 = vpack.c.bf16 %v5899_v12, %v5899_v12 }
 0x2e1   : > { %v1657_v62 = vpack.c.bf16 %v5895_v46, %v5895_v46  ;;  %v1912_v39 = vunpack.c.l.b16 %v1654_v36 }
 0x2e7   : > { %5947 = vrot.lane.b32.xlu0 %v7188_v42, %s6655_s11  ;;  %5957 = vrot.lane.b32.xlu1 %v7129_v22, %s6655_s11  ;;  %v7322_v4 = vpop.permute.xlu2 %1476 }
 0x2ef   : > { %5952 = vrot.lane.b32.xlu0 %v7188_v42, %s6657_s2  ;;  %5972 = vrot.lane.b32.xlu1 %v7188_v42, %s6656_s25  ;;  %v1656_v42 = vpack.c.bf16 %v5894_v32, %v5894_v32  ;;  %v7330_v43 = vpop.permute.xlu2 %1458 }
 0x2f1   : > { %v1914_v21 = vunpack.c.l.b16 %v1656_v42 }
 0x2f7   : > { %5962 = vrot.lane.b32.xlu0 %v7129_v22, %s6657_s2  ;;  %5977 = vrot.lane.b32.xlu1 %v7109_v60, %s6657_s2  ;;  %v1915_v60 = vunpack.c.l.b16 %v1657_v62  ;;  %v1919_v62 = vpack.c.b16 %v1913_v52, %v1912_v39 }
 0x2f9   : > { %v5918_v47 = vpop.permute.xlu0 %5917  ;;  %v5888_v1 = vpop.permute.xlu1 %5887 }
 0x2fa   : > { %v5920_v6 = vunpack.i.h.bf16 %v5918_v47  ;;  %v5919_v9 = vunpack.i.l.bf16 %v5918_v47  ;;  %v5890_v10 = vunpack.i.h.bf16 %v5888_v1  ;;  %v5889_v61 = vunpack.i.l.bf16 %v5888_v1 }
 0x2fc   : > { %v1667_v14 = vpack.c.bf16 %v5920_v6, %v5920_v6  ;;  %v1666_v27 = vpack.c.bf16 %v5919_v9, %v5919_v9  ;;  %v1659_v17 = vpack.c.bf16 %v5890_v10, %v5890_v10  ;;  %v1658_v20 = vpack.c.bf16 %v5889_v61, %v5889_v61 }
 0x2fd   : > { %v1653_v10 = vpack.c.bf16 %v5910_v53, %v5910_v53  ;;  %v1652_v61 = vpack.c.bf16 %v5909_v0, %v5909_v0  ;;  %v1541_v0 = vpack.c.bf16 %v1509_v44, %v1509_v44 }
 0x2fe   : > { %v2010_v18 = vunpack.c.l.b16 %v1667_v14  ;;  %v2009_v13 = vunpack.c.l.b16 %v1666_v27  ;;  %v1917_v22 = vunpack.c.l.b16 %v1659_v17  ;;  %v1916_v55 = vunpack.c.l.b16 %v1658_v20  ;;  %v7336_v17 = vpop.permute.xlu2 %1480 }
 0x2ff   : > { %6002 = vrot.lane.b32.xlu1 %v7089_v50, %s6656_s25  ;;  %v1920_v50 = vpack.c.b16 %v1915_v60, %v1914_v21  ;;  %v1938_v21 = vsel %vm1828_vm13, %v1919_v62, 0 }
 0x300   : > { %v1921_v57 = vpack.c.b16 %v1917_v22, %v1916_v55  ;;  %v2014_v16 = vpack.c.b16 %v2010_v18, %v2009_v13  ;;  %v1911_v13 = vunpack.c.l.b16 %v1653_v10  ;;  %v1910_v22 = vunpack.c.l.b16 %v1652_v61 }
 0x301   : > { %v1429_v33 = vpop.permute.xlu0 %1428  ;;  %v5903_v15 = vpop.permute.xlu1 %5902  ;;  %v1941_v35 = vsel %vm1828_vm13, %v1920_v50, 0  ;;  %v5940_v55 = vunpack.i.h.bf16 %v7308_v59  ;;  %v1891_v61 = vunpack.c.l.b16 %v1541_v0 }
 0x302   : > { %v5905_v7 = vunpack.i.h.bf16 %v5903_v15  ;;  %v5904_v37 = vunpack.i.l.bf16 %v5903_v15  ;;  %v1944_v38 = vsel %vm1828_vm13, %v1921_v57, 0  ;;  %v2037_v40 = vsel %vm1828_vm13, %v2014_v16, 0 }
 0x303   : > { %1950 = vmatpush.bf16.xpose.msra.mxu2 %v1944_v38  ;;  %2043 = vmatpush.bf16.xpose.msra.mxu3 %v2037_v40  ;;  %v5939_v15 = vunpack.i.l.bf16 %v7308_v59  ;;  %v1918_v36 = vpack.c.b16 %v1911_v13, %v1910_v22  ;;  %v1671_v59 = vpack.c.bf16 %v5940_v55, %v5940_v55 }
 0x304   : > { %v1665_v2 = vpack.c.bf16 %v5905_v7, %v5905_v7  ;;  %v1664_v11 = vpack.c.bf16 %v5904_v37, %v5904_v37  ;;  %v1508_v7 = vmul.f32 0.17677669, %v1429_v33 }
 0x305   : > { %v1670_v33 = vpack.c.bf16 %v5939_v15, %v5939_v15 }
 0x306   : > { %v2008_v45 = vunpack.c.l.b16 %v1665_v2  ;;  %v2007_v30 = vunpack.c.l.b16 %v1664_v11  ;;  %v1540_v52 = vpack.c.bf16 %v1508_v7, %v1508_v7 }
 0x308   : > { %v2013_v51 = vpack.c.b16 %v2008_v45, %v2007_v30 }
 0x309   : > { %v5928_v54 = vpop.permute.xlu0 %5927  ;;  %v5913_v3 = vpop.permute.xlu1 %5912 }
 0x30a   : > { %v5930_v48 = vunpack.i.h.bf16 %v5928_v54  ;;  %v5929_v41 = vunpack.i.l.bf16 %v5928_v54  ;;  %v5915_v34 = vunpack.i.h.bf16 %v5913_v3  ;;  %v5914_v46 = vunpack.i.l.bf16 %v5913_v3 }
 0x30b   : > { %1951 = vmatpush.bf16.xpose.msra.mxu2 %v1941_v35  ;;  %v2034_v32 = vsel %vm1828_vm13, %v2013_v51, 0 }
 0x30c   : > { %v1675_v47 = vpack.c.bf16 %v5930_v48, %v5930_v48  ;;  %v1674_v1 = vpack.c.bf16 %v5929_v41, %v5929_v41  ;;  %v1663_v6 = vpack.c.bf16 %v5915_v34, %v5915_v34  ;;  %v1662_v9 = vpack.c.bf16 %v5914_v46, %v5914_v46  ;;  %2044 = vmatpush.bf16.xpose.msra.mxu3 %v2034_v32  ;;  %v7345_v41 = vpop.permute.xlu2 %1462 }
 0x30d   : > { %v1935_v48 = vsel %vm1828_vm13, %v1918_v36, 0 }
 0x30e   : > { %v2103_v42 = vunpack.c.l.b16 %v1675_v47  ;;  %v2102_v14 = vunpack.c.l.b16 %v1674_v1  ;;  %v2006_v63 = vunpack.c.l.b16 %v1663_v6  ;;  %v2005_v27 = vunpack.c.l.b16 %v1662_v9 }
 0x30f   : > { %v2099_v47 = vunpack.c.l.b16 %v1671_v59  ;;  %v2098_v1 = vunpack.c.l.b16 %v1670_v33  ;;  %v1890_v6 = vunpack.c.l.b16 %v1540_v52 }
 0x310   : > { %v2012_v20 = vpack.c.b16 %v2006_v63, %v2005_v27  ;;  %v2107_v18 = vpack.c.b16 %v2103_v42, %v2102_v14 }
 0x311   : > { %v5933_v58 = vpop.permute.xlu0 %5932  ;;  %v5923_v60 = vpop.permute.xlu1 %5922  ;;  %v1898_v14 = vpack.c.b16 %v1891_v61, %v1890_v6  ;;  %v2105_v27 = vpack.c.b16 %v2099_v47, %v2098_v1 }
 0x312   : > { %v5935_v57 = vunpack.i.h.bf16 %v5933_v58  ;;  %v5934_v16 = vunpack.i.l.bf16 %v5933_v58  ;;  %v5925_v26 = vunpack.i.h.bf16 %v5923_v60  ;;  %v5924_v12 = vunpack.i.l.bf16 %v5923_v60 }
 0x313   : > { %1952 = vmatpush.bf16.xpose.msra.mxu2 %v1938_v21  ;;  %v2031_v37 = vsel %vm1828_vm13, %v2012_v20, 0  ;;  %v2130_v38 = vsel %vm1828_vm13, %v2107_v18, 0  ;;  %v2124_v21 = vsel %vm1828_vm13, %v2105_v27, 0 }
 0x314   : > { %v1661_v40 = vpack.c.bf16 %v5935_v57, %v5935_v57  ;;  %v1660_v2 = vpack.c.bf16 %v5934_v16, %v5934_v16  ;;  %v1673_v11 = vpack.c.bf16 %v5925_v26, %v5925_v26  ;;  %v1672_v50 = vpack.c.bf16 %v5924_v12, %v5924_v12  ;;  %2045 = vmatpush.bf16.xpose.msra.mxu3 %v2031_v37  ;;  %v7353_v55 = vpop.permute.xlu2 %1484 }
 0x315   : > { %2136 = vmatpush.bf16.xpose.msrb.mxu0 %v2130_v38  ;;  %v1510_v57 = vmul.f32 0.17677669, %v7314_v29  ;;  %v1519_v16 = vmul.f32 0.17677669, %v7330_v43 }
 0x316   : > { %v2004_v45 = vunpack.c.l.b16 %v1661_v40  ;;  %v2003_v30 = vunpack.c.l.b16 %v1660_v2  ;;  %v2101_v35 = vunpack.c.l.b16 %v1673_v11  ;;  %v2100_v51 = vunpack.c.l.b16 %v1672_v50 }
 0x317   : > { %v1551_v11 = vpack.c.bf16 %v1519_v16, %v1519_v16 }
 0x318   : > { %v2011_v39 = vpack.c.b16 %v2004_v45, %v2003_v30  ;;  %v2106_v53 = vpack.c.b16 %v2101_v35, %v2100_v51 }
 0x319   : > { %v1455_v54 = vpop.permute.xlu0 %1454  ;;  %v1453_v3 = vpop.permute.xlu1 %1452  ;;  %v1986_v51 = vunpack.c.l.b16 %v1551_v11 }
 0x31a   : > { %v1517_v34 = vmul.f32 0.17677669, %v1455_v54  ;;  %v1516_v56 = vmul.f32 0.17677669, %v1453_v3  ;;  %v2028_v46 = vsel %vm1828_vm13, %v2011_v39, 0  ;;  %v2127_v32 = vsel %vm1828_vm13, %v2106_v53, 0 }
 0x31b   : > { %1953 = vmatpush.bf16.xpose.msra.mxu2 %v1935_v48 }
 0x31c   : > { %v1549_v9 = vpack.c.bf16 %v1517_v34, %v1517_v34  ;;  %v1548_v10 = vpack.c.bf16 %v1516_v56, %v1516_v56  ;;  %2046 = vmatpush.bf16.xpose.msra.mxu3 %v2028_v46  ;;  %v1526_v56 = vmul.f32 0.17677669, %v7336_v17  ;;  %v1521_v46 = vmul.f32 0.17677669, %v7345_v41 }
 0x31d   : > { %2137 = vmatpush.bf16.xpose.msrb.mxu0 %v2127_v32 }
 0x31e   : > { %v1984_v62 = vunpack.c.l.b16 %v1549_v9  ;;  %v1983_v42 = vunpack.c.l.b16 %v1548_v10  ;;  %v1558_v61 = vpack.c.bf16 %v1526_v56, %v1526_v56 }
 0x320   : > { %v1991_v63 = vpack.c.b16 %v1984_v62, %v1983_v42  ;;  %v1553_v62 = vpack.c.bf16 %v1521_v46, %v1521_v46 }
 0x321   : > { %v5943_v20 = vpop.permute.xlu0 %5942  ;;  %v1435_v18 = vpop.permute.xlu1 %1434 }
 0x322   : > { %v5945_v13 = vunpack.i.h.bf16 %v5943_v20  ;;  %v5944_v22 = vunpack.i.l.bf16 %v5943_v20  ;;  %5233 = vmatmul.msk.bf16.vlgmr.msra.gmra.mxu2 %vm1828_vm13, %v1898_v14  ;;  %v1511_v60 = vmul.f32 0.17677669, %v1435_v18  ;;  %v1988_v17 = vunpack.c.l.b16 %v1553_v62 }
 0x323   : > { %5752 = vmatpush.bf16.xpose.msrb.mxu2 %v2130_v38  ;;  %5237 = vmatmul.msk.bf16.vlgmr.msra.gmra.mxu3 %vm1828_vm13, %v1991_v63  ;;  %v1542_v38 = vpack.c.bf16 %v1510_v57, %v1510_v57 }
 0x324   : > { %5756 = vmatpush.bf16.msrb.mxu3 %v7234_v5  ;;  %v1669_v58 = vpack.c.bf16 %v5945_v13, %v5945_v13  ;;  %v1668_v5 = vpack.c.bf16 %v5944_v22, %v5944_v22  ;;  %v1543_v15 = vpack.c.bf16 %v1511_v60, %v1511_v60  ;;  %v2078_v13 = vunpack.c.l.b16 %v1558_v61 }
 0x325   : > { %2138 = vmatpush.bf16.xpose.msrb.mxu0 %v2124_v21  ;;  %v1892_v30 = vunpack.c.l.b16 %v1542_v38 }
 0x326   : > { %v2097_v26 = vunpack.c.l.b16 %v1669_v58  ;;  %v2096_v12 = vunpack.c.l.b16 %v1668_v5  ;;  %v1893_v44 = vunpack.c.l.b16 %v1543_v15  ;;  %v1528_v15 = vmul.f32 0.17677669, %v7353_v55 }
 0x328   : > { %5757 = vmatpush.bf16.msrb.mxu3 %v7247_v25  ;;  %v1524_v25 = vmul.f32 0.17677669, %v7322_v4  ;;  %v7360_v7 = vpop.f32.mrf.mxu1  ;;  %v2104_v37 = vpack.c.b16 %v2097_v26, %v2096_v12  ;;  %v1899_v52 = vpack.c.b16 %v1893_v44, %v1892_v30  ;;  %v1560_v11 = vpack.c.bf16 %v1528_v15, %v1528_v15 }
 0x329   : > { %v1457_v2 = vpop.permute.xlu0 %1456  ;;  %v1479_v29 = vpop.permute.xlu1 %1478  ;;  %v2162_v4 = vsel %vm2161_vm14, %v7360_v7, -inf }
 0x32a   : > { %v1556_v40 = vpack.c.bf16 %v1524_v25, %v1524_v25  ;;  %v1525_v50 = vmul.f32 0.17677669, %v1479_v29  ;;  %2163 = vmax.xlane.f32.xlu0 %v2162_v4  ;;  %v2121_v43 = vsel %vm1828_vm13, %v2104_v37, 0 }
 0x32b   : > { %5753 = vmatpush.bf16.xpose.msrb.mxu2 %v2127_v32 }
 0x32c   : > { %5758 = vmatpush.bf16.msrb.mxu3 %v7255_v23  ;;  %v1518_v23 = vmul.f32 0.17677669, %v1457_v2  ;;  %v1557_v45 = vpack.c.bf16 %v1525_v50, %v1525_v50  ;;  %v2076_v35 = vunpack.c.l.b16 %v1556_v40 }
 0x32d   : > { %2139 = vmatpush.bf16.xpose.msrb.mxu0 %v2121_v43 }
 0x32e   : > { %v1550_v36 = vpack.c.bf16 %v1518_v23, %v1518_v23  ;;  %v2077_v33 = vunpack.c.l.b16 %v1557_v45 }
 0x330   : > { %5759 = vmatpush.bf16.msrb.mxu3 %v7265_v49  ;;  %v1467_v49 = vpop.permute.xlu2 %1466  ;;  %v1985_v59 = vunpack.c.l.b16 %v1550_v36  ;;  %v2084_v53 = vpack.c.b16 %v2077_v33, %v2076_v35  ;;  %v7366_v0 = vpop.f32.mrf.mxu1 }
 0x331   : > { %v1439_v54 = vpop.permute.xlu0 %1438  ;;  %v1437_v3 = vpop.permute.xlu1 %1436  ;;  %v1523_v37 = vmul.f32 0.17677669, %v1467_v49 }
 0x332   : > { %v1992_v39 = vpack.c.b16 %v1986_v51, %v1985_v59  ;;  %5234 = vmatmul.msk.bf16.gmra.mxu2 %vm1828_vm13, %v1899_v52  ;;  %v1513_v48 = vmul.f32 0.17677669, %v1439_v54  ;;  %v1512_v34 = vmul.f32 0.17677669, %v1437_v3  ;;  %v2080_v51 = vunpack.c.l.b16 %v1560_v11 }
 0x333   : > { %5754 = vmatpush.bf16.xpose.msrb.mxu2 %v2124_v21  ;;  %v1555_v23 = vpack.c.bf16 %v1523_v37, %v1523_v37 }
 0x334   : > { %5238 = vmatmul.msk.bf16.gmra.mxu3 %vm1828_vm13, %v1992_v39  ;;  %5241 = vmatmul.msk.bf16.vlgmr.msrb.gmra.mxu0 %vm1828_vm13, %v2084_v53  ;;  %v1545_v47 = vpack.c.bf16 %v1513_v48, %v1513_v48  ;;  %v1544_v1 = vpack.c.bf16 %v1512_v34, %v1512_v34 }
 0x335   : > { %v1990_v59 = vunpack.c.l.b16 %v1555_v23 }
 0x336   : > { %v1895_v63 = vunpack.c.l.b16 %v1545_v47  ;;  %v1894_v27 = vunpack.c.l.b16 %v1544_v1 }
 0x338   : > { %v7373_v32 = vpop.permute.xlu2 %5967  ;;  %v7375_v6 = vpop.f32.mrf.mxu1  ;;  %v1900_v58 = vpack.c.b16 %v1895_v63, %v1894_v27 }
 0x339   : > { %v1461_v9 = vpop.permute.xlu0 %1460  ;;  %v1483_v10 = vpop.permute.xlu1 %1482  ;;  %v5970_v46 = vunpack.i.h.bf16 %v7373_v32 }
 0x33a   : > { %v1520_v42 = vmul.f32 0.17677669, %v1461_v9  ;;  %v1527_v14 = vmul.f32 0.17677669, %v1483_v10 }
 0x33b   : > { %5755 = vmatpush.bf16.xpose.msrb.mxu2 %v2121_v43 }
 0x33c   : > { %v1552_v20 = vpack.c.bf16 %v1520_v42, %v1520_v42  ;;  %v1559_v18 = vpack.c.bf16 %v1527_v14, %v1527_v14 }
 0x33e   : > { %v1987_v22 = vunpack.c.l.b16 %v1552_v20  ;;  %v2079_v41 = vunpack.c.l.b16 %v1559_v18  ;;  %v1767_v20 = vpack.c.bf16 %v5970_v46, %v5970_v46  ;;  %v5969_v18 = vunpack.i.l.bf16 %v7373_v32 }
 0x340   : > { %v1993_v5 = vpack.c.b16 %v1988_v17, %v1987_v22  ;;  %v2085_v60 = vpack.c.b16 %v2079_v41, %v2078_v13  ;;  %v7377_v21 = vpop.f32.mrf.mxu1  ;;  %v7379_v16 = vpop.permute.xlu2 %5982  ;;  %v1766_v15 = vpack.c.bf16 %v5969_v18, %v5969_v18 }
 0x341   : > { %v1443_v57 = vpop.permute.xlu0 %1442  ;;  %v1441_v25 = vpop.permute.xlu1 %1440  ;;  %v5985_v37 = vunpack.i.h.bf16 %v7379_v16 }
 0x342   : > { %5235 = vmatmul.msk.bf16.gmra.mxu2 %vm1828_vm13, %v1900_v58  ;;  %v1515_v26 = vmul.f32 0.17677669, %v1443_v57  ;;  %v1514_v12 = vmul.f32 0.17677669, %v1441_v25 }
 0x344   : > { %5239 = vmatmul.msk.bf16.gmra.mxu3 %vm1828_vm13, %v1993_v5  ;;  %5242 = vmatmul.msk.bf16.gmra.mxu0 %vm1828_vm13, %v2085_v60  ;;  %v1547_v38 = vpack.c.bf16 %v1515_v26, %v1515_v26  ;;  %v1546_v40 = vpack.c.bf16 %v1514_v12, %v1514_v12  ;;  %v2630_v12 = vunpack.c.l.b16 %v1767_v20 }
 0x346   : > { %v1897_v36 = vunpack.c.l.b16 %v1547_v38  ;;  %v1896_v45 = vunpack.c.l.b16 %v1546_v40  ;;  %v5984_v38 = vunpack.i.l.bf16 %v7379_v16  ;;  %v2629_v16 = vunpack.c.l.b16 %v1766_v15 }
 0x348   : > { %v7385_v2 = vpop.f32.mrf.mxu1  ;;  %v5988_v44 = vpop.permute.xlu2 %5987  ;;  %v1901_v49 = vpack.c.b16 %v1897_v36, %v1896_v45 }
 0x349   : > { %v1465_v29 = vpop.permute.xlu0 %1464  ;;  %v1487_v4 = vpop.permute.xlu1 %1486  ;;  %v5990_v13 = vunpack.i.h.bf16 %v5988_v44  ;;  %v5989_v5 = vunpack.i.l.bf16 %v5988_v44 }
 0x34a   : > { %v1522_v50 = vmul.f32 0.17677669, %v1465_v29  ;;  %v1529_v43 = vmul.f32 0.17677669, %v1487_v4 }
 0x34b   : > { %v1785_v40 = vpack.c.bf16 %v5990_v13, %v5990_v13  ;;  %v1784_v23 = vpack.c.bf16 %v5989_v5, %v5989_v5 }
 0x34c   : > { %v1554_v30 = vpack.c.bf16 %v1522_v50, %v1522_v50  ;;  %v1561_v35 = vpack.c.bf16 %v1529_v43, %v1529_v43 }
 0x34d   : > { %v2801_v46 = vunpack.c.l.b16 %v1784_v23 }
 0x34e   : > { %v1989_v33 = vunpack.c.l.b16 %v1554_v30  ;;  %v2081_v55 = vunpack.c.l.b16 %v1561_v35 }
 0x350   : > { %v1994_v52 = vpack.c.b16 %v1990_v59, %v1989_v33  ;;  %v2086_v39 = vpack.c.b16 %v2081_v55, %v2080_v51  ;;  %v7387_v53 = vpop.f32.mrf.mxu1  ;;  %v7392_v56 = vpop.permute.xlu2 %5992  ;;  %v1765_v33 = vpack.c.bf16 %v5985_v37, %v5985_v37 }
 0x351   : > { %v1491_v54 = vpop.permute.xlu0 %1490  ;;  %v1489_v3 = vpop.permute.xlu1 %1488 }
 0x352   : > { %5236 = vmatmul.msk.bf16.gmra.mxu2 %vm1828_vm13, %v1901_v49  ;;  %v1531_v48 = vmul.f32 0.17677669, %v1491_v54  ;;  %v1530_v34 = vmul.f32 0.17677669, %v1489_v3  ;;  %v2628_v20 = vunpack.c.l.b16 %v1765_v33 }
 0x354   : > { %5240 = vmatmul.msk.bf16.gmra.mxu3 %vm1828_vm13, %v1994_v52  ;;  %5243 = vmatmul.msk.bf16.gmra.mxu0 %vm1828_vm13, %v2086_v39  ;;  %v1563_v47 = vpack.c.bf16 %v1531_v48, %v1531_v48  ;;  %v1562_v1 = vpack.c.bf16 %v1530_v34, %v1530_v34  ;;  %v1764_v48 = vpack.c.bf16 %v5984_v38, %v5984_v38  ;;  %v2802_v34 = vunpack.c.l.b16 %v1785_v40 }
 0x356   : > { %v2083_v17 = vunpack.c.l.b16 %v1563_v47  ;;  %v2082_v22 = vunpack.c.l.b16 %v1562_v1  ;;  %v2627_v18 = vunpack.c.l.b16 %v1764_v48 }
 0x358   : > { %v7395_v9 = vpop.f32.mrf.mxu1  ;;  %v5998_v29 = vpop.permute.xlu2 %5997  ;;  %v2087_v4 = vpack.c.b16 %v2083_v17, %v2082_v22  ;;  %v2636_v22 = vpack.c.b16 %v2630_v12, %v2629_v16 }
 0x359   : > { %v5948_v10 = vpop.permute.xlu0 %5947  ;;  %v5958_v61 = vpop.permute.xlu1 %5957  ;;  %v2180_v62 = vsel %vm2161_vm14, %v7395_v9, -inf  ;;  %v6000_v55 = vunpack.i.h.bf16 %v5998_v29  ;;  %v5999_v49 = vunpack.i.l.bf16 %v5998_v29 }
 0x35a   : > { %v5950_v42 = vunpack.i.h.bf16 %v5948_v10  ;;  %v5949_v14 = vunpack.i.l.bf16 %v5948_v10  ;;  %v5960_v63 = vunpack.i.h.bf16 %v5958_v61  ;;  %v5959_v27 = vunpack.i.l.bf16 %v5958_v61  ;;  %2181 = vmax.xlane.f32.xlu2 %v2180_v62 }
 0x35c   : > { %v1771_v41 = vpack.c.bf16 %v5950_v42, %v5950_v42  ;;  %v1770_v58 = vpack.c.bf16 %v5949_v14, %v5949_v14  ;;  %v1769_v60 = vpack.c.bf16 %v5960_v63, %v5960_v63  ;;  %v1768_v57 = vpack.c.bf16 %v5959_v27, %v5959_v27 }
 0x35d   : > { %v1783_v42 = vpack.c.bf16 %v6000_v55, %v6000_v55  ;;  %v1782_v14 = vpack.c.bf16 %v5999_v49, %v5999_v49 }
 0x35e   : > { %v2634_v25 = vunpack.c.l.b16 %v1771_v41  ;;  %v2633_v26 = vunpack.c.l.b16 %v1770_v58  ;;  %v2632_v50 = vunpack.c.l.b16 %v1769_v60  ;;  %v2631_v43 = vunpack.c.l.b16 %v1768_v57 }
 0x35f   : > { %v2807_v41 = vpack.c.b16 %v2802_v34, %v2801_v46  ;;  %v2800_v15 = vunpack.c.l.b16 %v1783_v42  ;;  %v2799_v37 = vunpack.c.l.b16 %v1782_v14 }
 0x360   : > { %v2638_v32 = vpack.c.b16 %v2634_v25, %v2633_v26  ;;  %v7402_v11 = vpop.f32.mrf.mxu1  ;;  %v2637_v47 = vpack.c.b16 %v2632_v50, %v2631_v43  ;;  %v5995_v25 = vunpack.i.h.bf16 %v7392_v56  ;;  %v5994_v26 = vunpack.i.l.bf16 %v7392_v56 }
 0x361   : > { %v5953_v44 = vpop.permute.xlu0 %5952  ;;  %v5973_v36 = vpop.permute.xlu1 %5972  ;;  %v2183_v45 = vsel %vm2161_vm14, %v7402_v11, -inf }
 0x362   : > { %v5955_v30 = vunpack.i.h.bf16 %v5953_v44  ;;  %v5954_v35 = vunpack.i.l.bf16 %v5953_v44  ;;  %v5975_v51 = vunpack.i.h.bf16 %v5973_v36  ;;  %v5974_v59 = vunpack.i.l.bf16 %v5973_v36  ;;  %5244 = vmatmul.msk.bf16.vlgmr.msrb.gmra.mxu2 %vm1828_vm13, %v2087_v4  ;;  %2184 = vmax.xlane.f32.xlu1 %v2183_v45 }
 0x363   : > { %2659 = vmatpush.bf16.msra.mxu2 %v2638_v32  ;;  %v2635_v32 = vpack.c.b16 %v2628_v20, %v2627_v18  ;;  %v1773_v50 = vpack.c.bf16 %v5995_v25, %v5995_v25  ;;  %v1772_v43 = vpack.c.bf16 %v5994_v26, %v5994_v26 }
 0x364   : > { %v1779_v52 = vpack.c.bf16 %v5955_v30, %v5955_v30  ;;  %v1778_v39 = vpack.c.bf16 %v5954_v35, %v5954_v35  ;;  %v1787_v54 = vpack.c.bf16 %v5975_v51, %v5975_v51  ;;  %v1786_v3 = vpack.c.bf16 %v5974_v59, %v5974_v59 }
 0x365   : > { %v2806_v30 = vpack.c.b16 %v2800_v15, %v2799_v37  ;;  %v2713_v59 = vunpack.c.l.b16 %v1773_v50  ;;  %v2712_v16 = vunpack.c.l.b16 %v1772_v43 }
 0x366   : > { %v2719_v1 = vunpack.c.l.b16 %v1779_v52  ;;  %v2718_v10 = vunpack.c.l.b16 %v1778_v39  ;;  %v2804_v61 = vunpack.c.l.b16 %v1787_v54  ;;  %v2803_v62 = vunpack.c.l.b16 %v1786_v3 }
 0x367   : > { %2660 = vmatpush.bf16.msra.mxu2 %v2637_v47  ;;  %v2720_v54 = vpack.c.b16 %v2713_v59, %v2712_v16 }
 0x368   : > { %v2723_v63 = vpack.c.b16 %v2719_v1, %v2718_v10  ;;  %v2808_v27 = vpack.c.b16 %v2804_v61, %v2803_v62 }
 0x369   : > { %v5963_v13 = vpop.permute.xlu0 %5962  ;;  %v5978_v17 = vpop.permute.xlu1 %5977 }
 0x36a   : > { %v5965_v58 = vunpack.i.h.bf16 %v5963_v13  ;;  %v5964_v5 = vunpack.i.l.bf16 %v5963_v13  ;;  %v5980_v60 = vunpack.i.h.bf16 %v5978_v17  ;;  %v5979_v57 = vunpack.i.l.bf16 %v5978_v17  ;;  %2744 = vmatpush.bf16.msra.mxu3 %v2723_v63  ;;  %2829 = vmatpush.bf16.msra.mxu0 %v2808_v27 }
 0x36b   : > { %2661 = vmatpush.bf16.msra.mxu2 %v2636_v22 }
 0x36c   : > { %v1777_v38 = vpack.c.bf16 %v5965_v58, %v5965_v58  ;;  %v1776_v40 = vpack.c.bf16 %v5964_v5, %v5964_v5  ;;  %v1775_v29 = vpack.c.bf16 %v5980_v60, %v5980_v60  ;;  %v1774_v4 = vpack.c.bf16 %v5979_v57, %v5979_v57 }
 0x36e   : > { %v2717_v12 = vunpack.c.l.b16 %v1777_v38  ;;  %v2716_v23 = vunpack.c.l.b16 %v1776_v40  ;;  %2830 = vmatpush.bf16.msra.mxu0 %v2807_v41  ;;  %v2715_v44 = vunpack.c.l.b16 %v1775_v29  ;;  %v2714_v36 = vunpack.c.l.b16 %v1774_v4 }
 0x36f   : > { %2662 = vmatpush.bf16.msra.mxu2 %v2635_v32  ;;  %v2171_v29 = vsel %vm2161_vm14, %v7377_v21, -inf }
 0x370   : > { %v2722_v45 = vpack.c.b16 %v2717_v12, %v2716_v23  ;;  %v2721_v49 = vpack.c.b16 %v2715_v44, %v2714_v36 }
 0x371   : > { %v6003_v35 = vpop.permute.xlu1 %6002 }
 0x372   : > { %v6005_v56 = vunpack.i.h.bf16 %v6003_v35  ;;  %v6004_v51 = vunpack.i.l.bf16 %v6003_v35  ;;  %2745 = vmatpush.bf16.msra.mxu3 %v2722_v45  ;;  %2831 = vmatpush.bf16.msra.mxu0 %v2806_v30 }
 0x374   : > { %v1781_v33 = vpack.c.bf16 %v6005_v56, %v6005_v56  ;;  %v1780_v55 = vpack.c.bf16 %v6004_v51, %v6004_v51 }
 0x376   : > { %v2798_v52 = vunpack.c.l.b16 %v1781_v33  ;;  %v2797_v39 = vunpack.c.l.b16 %v1780_v55  ;;  %2746 = vmatpush.bf16.msra.mxu3 %v2721_v49 }
 0x378   : > { %v2805_v3 = vpack.c.b16 %v2798_v52, %v2797_v39 }
 0x37a   : > { %2747 = vmatpush.bf16.msra.mxu3 %v2720_v54  ;;  %2832 = vmatpush.bf16.msra.mxu0 %v2805_v3 }
 0x39d   : > { %v2164_v43 = vpop.xlane.xlu0 %2163 }
 0x39e   : > { %v2258_v30 = vsub.f32 %v7360_v7, %v2164_v43 }
 0x3a0   : > { %v2290_v16 = vmul.f32 1.442695, %v2258_v30 }
 0x3a5   : > { %v7409_v48 = vpop.f32.mrf.mxu2 }
 0x3a6   : > { %v7411_v34 = vpop.f32.mrf.mxu3  ;;  %v2186_v27 = vsel %vm2161_vm14, %v7409_v48, -inf }
 0x3a7   : > { %v2210_v46 = vsel %vm2161_vm14, %v7411_v34, -inf }
 0x3a8   : > { %2211 = vmax.xlane.f32.xlu2 %v2210_v46 }
 0x3ad   : > { %v7415_v47 = vpop.f32.mrf.mxu2 }
 0x3ae   : > { %v2189_v1 = vsel %vm2161_vm14, %v7415_v47, -inf  ;;  %v7423_v62 = vpop.f32.mrf.mxu3 }
 0x3af   : > { %v2213_v14 = vsel %vm2161_vm14, %v7423_v62, -inf }
 0x3b0   : > { %2190 = vmax.xlane.f32.xlu2 %v2189_v1 }
 0x3b1   : > { %v7419_v10 = vpop.f32.mrf.mxu0 }
 0x3b2   : > { %v2234_v61 = vsel %vm2161_vm14, %v7419_v10, -inf }
 0x3b3   : > { %2235 = vmax.xlane.f32.xlu0 %v2234_v61 }
 0x3b5   : > { %v7425_v42 = vpop.f32.mrf.mxu2 }
 0x3b6   : > { %v2192_v13 = vsel %vm2161_vm14, %v7425_v42, -inf }
 0x3b7   : > { %v7445_v58 = vpop.f32.mrf.mxu3 }
 0x3b8   : > { %2214 = vmax.xlane.f32.xlu2 %v2213_v14  ;;  %v2216_v60 = vsel %vm2161_vm14, %v7445_v58, -inf }
 0x3b9   : > { %v7429_v63 = vpop.f32.mrf.mxu0 }
 0x3ba   : > { %v2237_v20 = vsel %vm2161_vm14, %v7429_v63, -inf }
 0x3bb   : > { %2187 = vmax.xlane.f32.xlu0 %v2186_v27  ;;  %2238 = vmax.xlane.f32.xlu1 %v2237_v20 }
 0x3bd   : > { %v7435_v18 = vpop.f32.mrf.mxu2 }
 0x3be   : > { %v2195_v40 = vsel %vm2161_vm14, %v7435_v18, -inf }
 0x3bf   : > { %v7462_v4 = vpop.f32.mrf.mxu3 }
 0x3c0   : > { %2193 = vmax.xlane.f32.xlu2 %v2192_v13  ;;  %v2219_v44 = vsel %vm2161_vm14, %v7462_v4, -inf  ;;  %v2165_v13 = vsel %vm2161_vm14, %v7366_v0, -inf }
 0x3c1   : > { %v7439_v17 = vpop.f32.mrf.mxu0 }
 0x3c2   : > { %v2240_v22 = vsel %vm2161_vm14, %v7439_v17, -inf }
 0x3c3   : > { %2241 = vmax.xlane.f32.xlu0 %v2240_v22 }
 0x3c5   : > { %v7443_v41 = vpop.f32.mrf.mxu2 }
 0x3c6   : > { %v2198_v1 = vsel %vm2161_vm14, %v7443_v41, -inf }
 0x3c7   : > { %v7476_v35 = vpop.f32.mrf.mxu3 }
 0x3c8   : > { %v2222_v20 = vsel %vm2161_vm14, %v7476_v35, -inf }
 0x3c9   : > { %v7447_v5 = vpop.f32.mrf.mxu0 }
 0x3ca   : > { %v2243_v57 = vsel %vm2161_vm14, %v7447_v5, -inf }
 0x3cb   : > { %2217 = vmax.xlane.f32.xlu0 %v2216_v60  ;;  %2244 = vmax.xlane.f32.xlu1 %v2243_v57  ;;  %v2168_v60 = vsel %vm2161_vm14, %v7375_v6, -inf }
 0x3cd   : > { %v7453_v25 = vpop.f32.mrf.mxu2  ;;  %v2182_v26 = vpop.xlane.xlu2 %2181 }
 0x3ce   : > { %v2264_v15 = vsub.f32 %v7395_v9, %v2182_v26  ;;  %v2201_v55 = vsel %vm2161_vm14, %v7453_v25, -inf }
 0x3cf   : > { %v7496_v46 = vpop.f32.mrf.mxu3 }
 0x3d0   : > { %v2302_v38 = vmul.f32 1.442695, %v2264_v15  ;;  %v2225_v61 = vsel %vm2161_vm14, %v7496_v46, -inf }
 0x3d1   : > { %v7456_v37 = vpop.f32.mrf.mxu0 }
 0x3d2   : > { %6030 = vpow2.f32 %v2302_v38  ;;  %v2246_v7 = vsel %vm2161_vm14, %v7456_v37, -inf }
 0x3d3   : > { %2196 = vmax.xlane.f32.xlu0 %v2195_v40  ;;  %2172 = vmax.xlane.f32.xlu1 %v2171_v29 }
 0x3d5   : > { %v7464_v32 = vpop.f32.mrf.mxu2  ;;  %v2185_v12 = vpop.xlane.xlu1 %2184 }
 0x3d6   : > { %v2265_v23 = vsub.f32 %v7402_v11, %v2185_v12  ;;  %v2204_v15 = vsel %vm2161_vm14, %v7464_v32, -inf  ;;  %v2174_v12 = vsel %vm2161_vm14, %v7385_v2, -inf }
 0x3d7   : > { %v7511_v22 = vpop.f32.mrf.mxu3 }
 0x3d8   : > { %v2304_v9 = vmul.f32 1.442695, %v2265_v23  ;;  %v7473_v45 = vpop.eup %6030  ;;  %v2228_v57 = vsel %vm2161_vm14, %v7511_v22, -inf  ;;  %v2177_v23 = vsel %vm2161_vm14, %v7387_v53, -inf }
 0x3d9   : > { %v7467_v50 = vpop.f32.mrf.mxu0  ;;  %v2488_v51 = vpack.c.bf16 %v7473_v45, %v7473_v45 }
 0x3da   : > { %6032 = vpow2.f32 %v2304_v9  ;;  %v2249_v36 = vsel %vm2161_vm14, %v7467_v50, -inf }
 0x3db   : > { %2220 = vmax.xlane.f32.xlu0 %v2219_v44  ;;  %2250 = vmax.xlane.f32.xlu2 %v2249_v36  ;;  %v2528_v49 = vunpack.c.l.b16 %v2488_v51  ;;  %6034 = vpow2.f32 %v2290_v16 }
 0x3dd   : > { %v7478_v11 = vpop.f32.mrf.mxu2 }
 0x3de   : > { %v2207_v56 = vsel %vm2161_vm14, %v7478_v11, -inf }
 0x3df   : > { %2208 = vmax.xlane.f32.xlu1 %v2207_v56  ;;  %v7523_v40 = vpop.f32.mrf.mxu3 }
 0x3e0   : > { %v7484_v59 = vpop.eup %6032  ;;  %v2231_v29 = vsel %vm2161_vm14, %v7523_v40, -inf }
 0x3e1   : > { %v2489_v33 = vpack.c.bf16 %v7484_v59, %v7484_v59  ;;  %v7503_v14 = vpop.eup %6034 }
 0x3e2   : > { %v2354_v27 = vsel %vm2161_vm14, %v7503_v14, 0.0 }
 0x3e3   : > { %v2529_v52 = vunpack.c.l.b16 %v2489_v33  ;;  %2247 = vmax.xlane.f32.xlu0 %v2246_v7  ;;  %2202 = vmax.xlane.f32.xlu2 %v2201_v55 }
 0x3e5   : > { %v2533_v39 = vpack.c.b16 %v2529_v52, %v2528_v49  ;;  %v7492_v54 = vpop.f32.mrf.mxu2 }
 0x3e6   : > { %v2252_v3 = vsel %vm2161_vm14, %v7492_v54, -inf }
 0x3e7   : > { %2253 = vmax.xlane.f32.xlu1 %v2252_v3  ;;  %5248 = vmatmul.msk.bf16.vlgmr.msrb.gmra.mxu3 %vm2161_vm14, %v2533_v39 }
 0x3eb   : > { %2199 = vmax.xlane.f32.xlu0 %v2198_v1  ;;  %2226 = vmax.xlane.f32.xlu2 %v2225_v61 }
 0x3ed   : > { %v7517_v26 = vpop.f32.mrf.mxu2 }
 0x3ee   : > { %v2255_v38 = vsel %vm2161_vm14, %v7517_v26, -inf }
 0x3ef   : > { %2355 = vadd.xlane.f32.xlu1 %v2354_v27 }
 0x3f3   : > { %2223 = vmax.xlane.f32.xlu0 %v2222_v20  ;;  %2166 = vmax.xlane.f32.xlu2 %v2165_v13 }
 0x3fb   : > { %2169 = vmax.xlane.f32.xlu0 %v2168_v60  ;;  %2229 = vmax.xlane.f32.xlu2 %v2228_v57 }
 0x403   : > { %2205 = vmax.xlane.f32.xlu0 %v2204_v15  ;;  %2256 = vmax.xlane.f32.xlu2 %v2255_v38 }
 0x40b   : > { %2232 = vmax.xlane.f32.xlu0 %v2231_v29  ;;  %2175 = vmax.xlane.f32.xlu2 %v2174_v12 }
 0x413   : > { %2178 = vmax.xlane.f32.xlu0 %v2177_v23 }
 0x41b   : > { %v2212_v9 = vpop.xlane.xlu2 %2211 }
 0x41c   : > { %v2274_v44 = vsub.f32 %v7411_v34, %v2212_v9 }
 0x41e   : > { %v2322_v51 = vmul.f32 1.442695, %v2274_v44 }
 0x420   : > { %6036 = vpow2.f32 %v2322_v51 }
 0x423   : > { %v2191_v43 = vpop.xlane.xlu2 %2190 }
 0x424   : > { %v2267_v36 = vsub.f32 %v7415_v47, %v2191_v43 }
 0x426   : > { %v2236_v30 = vpop.xlane.xlu0 %2235  ;;  %v2308_v16 = vmul.f32 1.442695, %v2267_v36 }
 0x427   : > { %v2282_v56 = vsub.f32 %v7419_v10, %v2236_v30  ;;  %v7537_v10 = vpop.eup %6036 }
 0x428   : > { %6038 = vpow2.f32 %v2308_v16 }
 0x429   : > { %v2338_v33 = vmul.f32 1.442695, %v2282_v56 }
 0x42b   : > { %v2215_v7 = vpop.xlane.xlu2 %2214  ;;  %6040 = vpow2.f32 %v2338_v33 }
 0x42c   : > { %v2275_v55 = vsub.f32 %v7423_v62, %v2215_v7  ;;  %v2498_v62 = vpack.c.bf16 %v7537_v10, %v7537_v10 }
 0x42e   : > { %v2324_v49 = vmul.f32 1.442695, %v2275_v55  ;;  %v2188_v52 = vpop.xlane.xlu0 %2187  ;;  %v2239_v39 = vpop.xlane.xlu1 %2238  ;;  %v2692_v15 = vunpack.c.l.b16 %v2498_v62 }
 0x42f   : > { %v2266_v3 = vsub.f32 %v7409_v48, %v2188_v52  ;;  %v2283_v34 = vsub.f32 %v7429_v63, %v2239_v39  ;;  %v7539_v61 = vpop.eup %6038 }
 0x430   : > { %6042 = vpow2.f32 %v2324_v49  ;;  %v2491_v63 = vpack.c.bf16 %v7539_v61, %v7539_v61 }
 0x431   : > { %v2306_v47 = vmul.f32 1.442695, %v2266_v3  ;;  %v2340_v1 = vmul.f32 1.442695, %v2283_v34  ;;  %v7541_v27 = vpop.eup %6040 }
 0x432   : > { %v2506_v38 = vpack.c.bf16 %v7541_v27, %v7541_v27  ;;  %v2608_v44 = vunpack.c.l.b16 %v2491_v63 }
 0x433   : > { %6044 = vpow2.f32 %v2306_v47  ;;  %v2194_v30 = vpop.xlane.xlu2 %2193 }
 0x434   : > { %6046 = vpow2.f32 %v2340_v1  ;;  %v2777_v56 = vunpack.c.l.b16 %v2506_v38  ;;  %v2268_v49 = vsub.f32 %v7425_v42, %v2194_v30 }
 0x436   : > { %v7545_v20 = vpop.eup %6042  ;;  %v2242_v13 = vpop.xlane.xlu0 %2241  ;;  %v2310_v3 = vmul.f32 1.442695, %v2268_v49 }
 0x437   : > { %v2499_v48 = vpack.c.bf16 %v7545_v20, %v7545_v20  ;;  %v2284_v60 = vsub.f32 %v7439_v17, %v2242_v13 }
 0x439   : > { %v7552_v57 = vpop.eup %6044  ;;  %v2693_v29 = vunpack.c.l.b16 %v2499_v48  ;;  %v2342_v17 = vmul.f32 1.442695, %v2284_v60 }
 0x43a   : > { %v7556_v12 = vpop.eup %6046  ;;  %v2490_v23 = vpack.c.bf16 %v7552_v57, %v7552_v57 }
 0x43b   : > { %v2700_v9 = vpack.c.b16 %v2693_v29, %v2692_v15  ;;  %v2507_v43 = vpack.c.bf16 %v7556_v12, %v7556_v12  ;;  %6048 = vpow2.f32 %v2342_v17 }
 0x43c   : > { %v2607_v36 = vunpack.c.l.b16 %v2490_v23 }
 0x43d   : > { %v2778_v51 = vunpack.c.l.b16 %v2507_v43  ;;  %5253 = vmatmul.msk.bf16.vlgmr.msra.gmra.mxu3 %vm2161_vm14, %v2700_v9 }
 0x43e   : > { %v2615_v16 = vpack.c.b16 %v2608_v44, %v2607_v36  ;;  %v2218_v33 = vpop.xlane.xlu0 %2217  ;;  %v2245_v7 = vpop.xlane.xlu1 %2244 }
 0x43f   : > { %v2785_v55 = vpack.c.b16 %v2778_v51, %v2777_v56  ;;  %v2285_v52 = vsub.f32 %v7447_v5, %v2245_v7  ;;  %v2276_v62 = vsub.f32 %v7445_v58, %v2218_v33 }
 0x440   : > { %5249 = vmatmul.msk.bf16.vlgmr.msra.gmra.mxu2 %vm2161_vm14, %v2615_v16 }
 0x441   : > { %v2344_v39 = vmul.f32 1.442695, %v2285_v52  ;;  %5257 = vmatmul.msk.bf16.vlgmr.msra.gmra.mxu0 %vm2161_vm14, %v2785_v55  ;;  %v7567_v34 = vpop.eup %6048  ;;  %v2326_v15 = vmul.f32 1.442695, %v2276_v62 }
 0x442   : > { %v2508_v63 = vpack.c.bf16 %v7567_v34, %v7567_v34 }
 0x443   : > { %6050 = vpow2.f32 %v2344_v39 }
 0x444   : > { %6052 = vpow2.f32 %v2310_v3  ;;  %v2779_v58 = vunpack.c.l.b16 %v2508_v63 }
 0x446   : > { %v2197_v47 = vpop.xlane.xlu0 %2196  ;;  %v2173_v1 = vpop.xlane.xlu1 %2172 }
 0x447   : > { %v2269_v13 = vsub.f32 %v7435_v18, %v2197_v47  ;;  %v2261_v42 = vsub.f32 %v7377_v21, %v2173_v1 }
 0x449   : > { %v2312_v5 = vmul.f32 1.442695, %v2269_v13  ;;  %v2296_v48 = vmul.f32 1.442695, %v2261_v42  ;;  %v7574_v60 = vpop.eup %6050 }
 0x44a   : > { %v2509_v38 = vpack.c.bf16 %v7574_v60, %v7574_v60  ;;  %v7578_v29 = vpop.eup %6052 }
 0x44b   : > { %6054 = vpow2.f32 %v2312_v5  ;;  %v2492_v36 = vpack.c.bf16 %v7578_v29, %v7578_v29 }
 0x44c   : > { %6056 = vpow2.f32 %v2296_v48  ;;  %v2780_v23 = vunpack.c.l.b16 %v2509_v38 }
 0x44d   : > { %6058 = vpow2.f32 %v2326_v15 }
 0x44e   : > { %v2221_v18 = vpop.xlane.xlu0 %2220  ;;  %v2251_v9 = vpop.xlane.xlu2 %2250  ;;  %v2786_v44 = vpack.c.b16 %v2780_v23, %v2779_v58 }
 0x44f   : > { %v2277_v21 = vsub.f32 %v7462_v4, %v2221_v18  ;;  %v2287_v43 = vsub.f32 %v7467_v50, %v2251_v9  ;;  %v2609_v50 = vunpack.c.l.b16 %v2492_v36 }
 0x451   : > { %v7584_v30 = vpop.eup %6054  ;;  %v2328_v17 = vmul.f32 1.442695, %v2277_v21  ;;  %5258 = vmatmul.msk.bf16.gmra.mxu0 %vm2161_vm14, %v2786_v44  ;;  %v2348_v16 = vmul.f32 1.442695, %v2287_v43 }
 0x452   : > { %v7587_v56 = vpop.eup %6056  ;;  %v2493_v51 = vpack.c.bf16 %v7584_v30, %v7584_v30  ;;  %v2209_v43 = vpop.xlane.xlu1 %2208 }
 0x453   : > { %6060 = vpow2.f32 %v2328_v17  ;;  %v2363_v4 = vsel %vm2161_vm14, %v7587_v56, 0.0  ;;  %v7593_v7 = vpop.eup %6058 }
 0x454   : > { %2364 = vadd.xlane.f32.xlu0 %v2363_v4  ;;  %v2610_v33 = vunpack.c.l.b16 %v2493_v51  ;;  %6062 = vpow2.f32 %v2348_v16  ;;  %v2500_v47 = vpack.c.bf16 %v7593_v7, %v7593_v7 }
 0x456   : > { %v2248_v55 = vpop.xlane.xlu0 %2247  ;;  %v2203_v49 = vpop.xlane.xlu2 %2202  ;;  %v2616_v52 = vpack.c.b16 %v2610_v33, %v2609_v50  ;;  %v2694_v5 = vunpack.c.l.b16 %v2500_v47 }
 0x457   : > { %v2286_v39 = vsub.f32 %v7456_v37, %v2248_v55  ;;  %v2271_v3 = vsub.f32 %v7453_v25, %v2203_v49 }
 0x458   : > { %5250 = vmatmul.msk.bf16.gmra.mxu2 %vm2161_vm14, %v2616_v52 }
 0x459   : > { %v7600_v1 = vpop.eup %6060  ;;  %v2346_v62 = vmul.f32 1.442695, %v2286_v39  ;;  %v2316_v42 = vmul.f32 1.442695, %v2271_v3 }
 0x45a   : > { %v2501_v13 = vpack.c.bf16 %v7600_v1, %v7600_v1  ;;  %v7604_v63 = vpop.eup %6062 }
 0x45b   : > { %6064 = vpow2.f32 %v2346_v62  ;;  %v2511_v23 = vpack.c.bf16 %v7604_v63, %v7604_v63 }
 0x45c   : > { %v2695_v48 = vunpack.c.l.b16 %v2501_v13  ;;  %6066 = vpow2.f32 %v2316_v42 }
 0x45d   : > { %v2782_v17 = vunpack.c.l.b16 %v2511_v23 }
 0x45e   : > { %v2200_v37 = vpop.xlane.xlu0 %2199  ;;  %v2227_v15 = vpop.xlane.xlu2 %2226  ;;  %v2701_v25 = vpack.c.b16 %v2695_v48, %v2694_v5 }
 0x45f   : > { %v2270_v38 = vsub.f32 %v7443_v41, %v2200_v37  ;;  %v2279_v58 = vsub.f32 %v7496_v46, %v2227_v15 }
 0x460   : > { %5254 = vmatmul.msk.bf16.gmra.mxu3 %vm2161_vm14, %v2701_v25 }
 0x461   : > { %v7611_v18 = vpop.eup %6064  ;;  %v2314_v9 = vmul.f32 1.442695, %v2270_v38  ;;  %v2332_v44 = vmul.f32 1.442695, %v2279_v58  ;;  %v2482_v38 = vpack.c.bf16 %v7503_v14, %v7503_v14 }
 0x462   : > { %v2510_v21 = vpack.c.bf16 %v7611_v18, %v7611_v18  ;;  %v7615_v51 = vpop.eup %6066 }
 0x463   : > { %6068 = vpow2.f32 %v2314_v9  ;;  %v2495_v33 = vpack.c.bf16 %v7615_v51, %v7615_v51 }
 0x464   : > { %v2781_v36 = vunpack.c.l.b16 %v2510_v21  ;;  %6070 = vpow2.f32 %v2332_v44 }
 0x465   : > { %v2612_v3 = vunpack.c.l.b16 %v2495_v33 }
 0x466   : > { %v2224_v41 = vpop.xlane.xlu0 %2223  ;;  %v2167_v46 = vpop.xlane.xlu2 %2166  ;;  %v2787_v16 = vpack.c.b16 %v2782_v17, %v2781_v36  ;;  %v2522_v36 = vunpack.c.l.b16 %v2482_v38 }
 0x467   : > { %v2278_v4 = vsub.f32 %v7476_v35, %v2224_v41  ;;  %v2259_v50 = vsub.f32 %v7366_v0, %v2167_v46  ;;  %v2254_v35 = vpop.xlane.xlu1 %2253  ;;  %v2273_v0 = vsub.f32 %v7478_v11, %v2209_v43 }
 0x468   : > { %5259 = vmatmul.msk.bf16.gmra.mxu0 %vm2161_vm14, %v2787_v16  ;;  %v2288_v37 = vsub.f32 %v7492_v54, %v2254_v35 }
 0x469   : > { %v7622_v55 = vpop.eup %6068  ;;  %v2330_v49 = vmul.f32 1.442695, %v2278_v4  ;;  %v2292_v52 = vmul.f32 1.442695, %v2259_v50  ;;  %v2320_v11 = vmul.f32 1.442695, %v2273_v0 }
 0x46a   : > { %v2494_v39 = vpack.c.bf16 %v7622_v55, %v7622_v55  ;;  %v7626_v62 = vpop.eup %6070  ;;  %v2350_v54 = vmul.f32 1.442695, %v2288_v37 }
 0x46b   : > { %6072 = vpow2.f32 %v2330_v49  ;;  %v2503_v15 = vpack.c.bf16 %v7626_v62, %v7626_v62 }
 0x46c   : > { %v2611_v47 = vunpack.c.l.b16 %v2494_v39  ;;  %6074 = vpow2.f32 %v2292_v52 }
 0x46d   : > { %v2697_v43 = vunpack.c.l.b16 %v2503_v15 }
 0x46e   : > { %v2170_v13 = vpop.xlane.xlu0 %2169  ;;  %v2230_v42 = vpop.xlane.xlu2 %2229  ;;  %v2617_v5 = vpack.c.b16 %v2612_v3, %v2611_v47 }
 0x46f   : > { %v2260_v48 = vsub.f32 %v7375_v6, %v2170_v13  ;;  %v2280_v4 = vsub.f32 %v7511_v22, %v2230_v42 }
 0x470   : > { %5251 = vmatmul.msk.bf16.gmra.mxu2 %vm2161_vm14, %v2617_v5 }
 0x471   : > { %v7634_v25 = vpop.eup %6072  ;;  %v2294_v58 = vmul.f32 1.442695, %v2260_v48  ;;  %v2334_v47 = vmul.f32 1.442695, %v2280_v4 }
 0x472   : > { %v6075_v23 = vpop.eup %6074  ;;  %v2502_v9 = vpack.c.bf16 %v7634_v25, %v7634_v25 }
 0x473   : > { %v2483_v21 = vpack.c.bf16 %v6075_v23, %v6075_v23  ;;  %6076 = vpow2.f32 %v2294_v58  ;;  %v2357_v6 = vsel %vm2161_vm14, %v6075_v23, 0.0  ;;  %v2485_v58 = vpack.c.bf16 %v7587_v56, %v7587_v56 }
 0x474   : > { %v2696_v44 = vunpack.c.l.b16 %v2502_v9  ;;  %2358 = vadd.xlane.f32.xlu2 %v2357_v6  ;;  %6078 = vpow2.f32 %v2320_v11  ;;  %v2426_v11 = vsel %vm2161_vm14, %v7541_v27, 0.0 }
 0x475   : > { %v2523_v17 = vunpack.c.l.b16 %v2483_v21  ;;  %6080 = vpow2.f32 %v2350_v54 }
 0x476   : > { %v2206_v41 = vpop.xlane.xlu0 %2205  ;;  %v2257_v46 = vpop.xlane.xlu2 %2256  ;;  %v2702_v14 = vpack.c.b16 %v2697_v43, %v2696_v44  ;;  %v2525_v44 = vunpack.c.l.b16 %v2485_v58  ;;  %v2438_v58 = vsel %vm2161_vm14, %v7611_v18, 0.0 }
 0x477   : > { %v2530_v16 = vpack.c.b16 %v2523_v17, %v2522_v36  ;;  %v2272_v50 = vsub.f32 %v7464_v32, %v2206_v41  ;;  %v2289_v33 = vsub.f32 %v7517_v26, %v2257_v46 }
 0x478   : > { %5255 = vmatmul.msk.bf16.gmra.mxu3 %vm2161_vm14, %v2702_v14 }
 0x479   : > { %v6077_v49 = vpop.eup %6076  ;;  %v2318_v52 = vmul.f32 1.442695, %v2272_v50  ;;  %v2352_v39 = vmul.f32 1.442695, %v2289_v33  ;;  %5245 = vmatmul.msk.bf16.vlgmr.msrb.gmra.mxu1 %vm2161_vm14, %v2530_v16 }
 0x47a   : > { %v2360_v3 = vsel %vm2161_vm14, %v6077_v49, 0.0  ;;  %v7647_v35 = vpop.eup %6078  ;;  %v2484_v42 = vpack.c.bf16 %v6077_v49, %v6077_v49 }
 0x47b   : > { %6082 = vpow2.f32 %v2318_v52  ;;  %v7649_v22 = vpop.eup %6080  ;;  %v2497_v5 = vpack.c.bf16 %v7647_v35, %v7647_v35 }
 0x47c   : > { %6084 = vpow2.f32 %v2352_v39  ;;  %2361 = vadd.xlane.f32.xlu2 %v2360_v3  ;;  %v2512_v37 = vpack.c.bf16 %v7649_v22, %v7649_v22  ;;  %v2524_v9 = vunpack.c.l.b16 %v2484_v42 }
 0x47d   : > { %6086 = vpow2.f32 %v2334_v47  ;;  %v2614_v21 = vunpack.c.l.b16 %v2497_v5 }
 0x47e   : > { %v2233_v32 = vpop.xlane.xlu0 %2232  ;;  %v2176_v26 = vpop.xlane.xlu2 %2175  ;;  %v2783_v43 = vunpack.c.l.b16 %v2512_v37  ;;  %v2531_v46 = vpack.c.b16 %v2525_v44, %v2524_v9 }
 0x47f   : > { %v2281_v0 = vsub.f32 %v7523_v40, %v2233_v32  ;;  %v2262_v13 = vsub.f32 %v7385_v2, %v2176_v26 }
 0x481   : > { %v7655_v48 = vpop.eup %6082  ;;  %v2336_v15 = vmul.f32 1.442695, %v2281_v0  ;;  %v2298_v38 = vmul.f32 1.442695, %v2262_v13  ;;  %v2432_v13 = vsel %vm2161_vm14, %v7567_v34, 0.0  ;;  %v2429_v34 = vsel %vm2161_vm14, %v7556_v12, 0.0 }
 0x482   : > { %v7661_v23 = vpop.eup %6084  ;;  %v2496_v40 = vpack.c.bf16 %v7655_v48, %v7655_v48  ;;  %v2393_v12 = vsel %vm2161_vm14, %v7615_v51, 0.0 }
 0x483   : > { %v2513_v2 = vpack.c.bf16 %v7661_v23, %v7661_v23  ;;  %6088 = vpow2.f32 %v2336_v15  ;;  %v6087_v54 = vpop.eup %6086  ;;  %v2378_v15 = vsel %vm2161_vm14, %v7552_v57, 0.0  ;;  %v2384_v57 = vsel %vm2161_vm14, %v7578_v29, 0.0 }
 0x484   : > { %v2613_v6 = vunpack.c.l.b16 %v2496_v40  ;;  %6090 = vpow2.f32 %v2298_v38  ;;  %2427 = vadd.xlane.f32.xlu2 %v2426_v11  ;;  %v2504_v16 = vpack.c.bf16 %v6087_v54, %v6087_v54  ;;  %v2387_v38 = vsel %vm2161_vm14, %v7584_v30, 0.0  ;;  %v2356_v11 = vpop.xlane.xlu1 %2355 }
 0x485   : > { %v2784_v56 = vunpack.c.l.b16 %v2513_v2  ;;  %v2408_v40 = vsel %vm2161_vm14, %v7593_v7, 0.0  ;;  %v2435_v30 = vsel %vm2161_vm14, %v7574_v60, 0.0  ;;  %v2420_v18 = vsel %vm2161_vm14, %v6087_v54, 0.0 }
 0x486   : > { %v2179_v36 = vpop.xlane.xlu0 %2178  ;;  %v2618_v17 = vpack.c.b16 %v2614_v21, %v2613_v6  ;;  %v2698_v52 = vunpack.c.l.b16 %v2504_v16  ;;  %v2414_v7 = vsel %vm2161_vm14, %v7634_v25, 0.0  ;;  %v2390_v29 = vsel %vm2161_vm14, %v7622_v55, 0.0 }
 0x487   : > { %v2263_v41 = vsub.f32 %v7387_v53, %v2179_v36  ;;  %v2788_v14 = vpack.c.b16 %v2784_v56, %v2783_v43  ;;  %v2381_v53 = vsel %vm2161_vm14, %v7539_v61, 0.0  ;;  %v2402_v61 = vsel %vm2161_vm14, %v7537_v10, 0.0  ;;  %v7727_v43 = vpop.f32.mrf.mxu3 }
 0x488   : > { %5252 = vmatmul.msk.bf16.gmra.mxu2 %vm2161_vm14, %v2618_v17  ;;  %v2405_v10 = vsel %vm2161_vm14, %v7545_v20, 0.0  ;;  %v2411_v20 = vsel %vm2161_vm14, %v7600_v1, 0.0  ;;  %v2447_v51 = vsel %vm2161_vm14, %v7661_v23, 0.0  ;;  %v2441_v60 = vsel %vm2161_vm14, %v7604_v63, 0.0 }
 0x489   : > { %v7671_v4 = vpop.eup %6088  ;;  %v2300_v27 = vmul.f32 1.442695, %v2263_v41  ;;  %5246 = vmatmul.msk.bf16.gmra.mxu1 %vm2161_vm14, %v2531_v46  ;;  %5260 = vmatmul.msk.bf16.gmra.mxu0 %vm2161_vm14, %v2788_v14  ;;  %v2417_v1 = vsel %vm2161_vm14, %v7626_v62, 0.0  ;;  %v2396_v25 = vsel %vm2161_vm14, %v7655_v48, 0.0  ;;  %v2399_v55 = vsel %vm2161_vm14, %v7647_v35, 0.0 }
 0x48a   : > { %v6091_v50 = vpop.eup %6090  ;;  %v2505_v33 = vpack.c.bf16 %v7671_v4, %v7671_v4  ;;  %v2423_v23 = vsel %vm2161_vm14, %v7671_v4, 0.0  ;;  %v2444_v63 = vsel %vm2161_vm14, %v7649_v22, 0.0 }
 0x48b   : > { %6092 = vpow2.f32 %v2300_v27  ;;  %v2366_v49 = vsel %vm2161_vm14, %v6091_v50, 0.0  ;;  %v2486_v47 = vpack.c.bf16 %v6091_v50, %v6091_v50 }
 0x48c   : > { %v2699_v39 = vunpack.c.l.b16 %v2505_v33  ;;  %2382 = vadd.xlane.f32.xlu2 %v2381_v53  ;;  %2367 = vadd.xlane.f32.xlu0 %v2366_v49  ;;  %6094 = vrcp.f32 %v2356_v11 }
 0x48d   : > { %v2526_v42 = vunpack.c.l.b16 %v2486_v47 }
 0x48e   : > { %v2703_v3 = vpack.c.b16 %v2699_v39, %v2698_v52 }
 0x48f   : > { %v7731_v50 = vpop.f32.mrf.mxu3 }
 0x490   : > { %5256 = vmatmul.msk.bf16.gmra.mxu3 %vm2161_vm14, %v2703_v3 }
 0x491   : > { %v6093_v32 = vpop.eup %6092 }
 0x492   : > { %v2369_v26 = vsel %vm2161_vm14, %v6093_v32, 0.0  ;;  %v2487_v0 = vpack.c.bf16 %v6093_v32, %v6093_v32  ;;  %v6095_v9 = vpop.eup %6094 }
 0x493   : > { %2370 = vadd.xlane.f32.xlu1 %v2369_v26 }
 0x494   : > { %2433 = vadd.xlane.f32.xlu2 %v2432_v13  ;;  %2403 = vadd.xlane.f32.xlu0 %v2402_v61  ;;  %v2527_v5 = vunpack.c.l.b16 %v2487_v0 }
 0x496   : > { %v2532_v37 = vpack.c.b16 %v2527_v5, %v2526_v42 }
 0x499   : > { %5247 = vmatmul.msk.bf16.gmra.mxu1 %vm2161_vm14, %v2532_v37 }
 0x49b   : > { %2379 = vadd.xlane.f32.xlu1 %v2378_v15 }
 0x49c   : > { %2388 = vadd.xlane.f32.xlu2 %v2387_v38  ;;  %2430 = vadd.xlane.f32.xlu0 %v2429_v34 }
 0x4a3   : > { %2406 = vadd.xlane.f32.xlu1 %v2405_v10 }
 0x4a4   : > { %2439 = vadd.xlane.f32.xlu2 %v2438_v58  ;;  %2409 = vadd.xlane.f32.xlu0 %v2408_v40 }
 0x4ab   : > { %2385 = vadd.xlane.f32.xlu1 %v2384_v57 }
 0x4ac   : > { %2394 = vadd.xlane.f32.xlu2 %v2393_v12  ;;  %2436 = vadd.xlane.f32.xlu0 %v2435_v30 }
 0x4b3   : > { %2412 = vadd.xlane.f32.xlu1 %v2411_v20 }
 0x4b4   : > { %2421 = vadd.xlane.f32.xlu2 %v2420_v18  ;;  %2415 = vadd.xlane.f32.xlu0 %v2414_v7 }
 0x4bb   : > { %2391 = vadd.xlane.f32.xlu1 %v2390_v29 }
 0x4bc   : > { %2448 = vadd.xlane.f32.xlu2 %v2447_v51  ;;  %2442 = vadd.xlane.f32.xlu0 %v2441_v60 }
 0x4be   : > { %v2834_v44 = vpop.f32.mrf.mxu0 }
 0x4c0   : > { %v2749_v32 = vpop.f32.mrf.mxu3 }
 0x4c3   : > { %2418 = vadd.xlane.f32.xlu1 %v2417_v1  ;;  %v2664_v13 = vpop.f32.mrf.mxu2 }
 0x4c4   : > { %2397 = vadd.xlane.f32.xlu0 %v2396_v25 }
 0x4c6   : > { %v2836_v15 = vpop.f32.mrf.mxu0 }
 0x4c7   : > { %v2365_v48 = vpop.xlane.xlu0 %2364 }
 0x4cb   : > { %2400 = vadd.xlane.f32.xlu1 %v2399_v55  ;;  %v2666_v29 = vpop.f32.mrf.mxu2  ;;  %v2751_v55 = vpop.f32.mrf.mxu3 }
 0x4cc   : > { %2424 = vadd.xlane.f32.xlu0 %v2423_v23 }
 0x4ce   : > { %v2839_v23 = vpop.f32.mrf.mxu0 }
 0x4d3   : > { %2445 = vadd.xlane.f32.xlu1 %v2444_v63 }
 0x4e7   : > { %v2359_v2 = vpop.xlane.xlu2 %2358 }
 0x4e8   : > { %6096 = vrcp.f32 %v2359_v2 }
 0x4ee   : > { %v6097_v56 = vpop.eup %6096 }
 0x4ef   : > { %v2362_v62 = vpop.xlane.xlu2 %2361 }
 0x4f6   : > { %v2579_v21 = vpop.f32.mrf.mxu1 }
 0x4f7   : > { %v2854_v6 = vmul.f32 %v6095_v9, %v2579_v21  ;;  %v2428_v54 = vpop.xlane.xlu2 %2427 }
 0x4f8   : > { %6098 = vrcp.f32 %v2428_v54  ;;  %v2669_v54 = vpop.f32.mrf.mxu2 }
 0x4f9   : > { %v2862_v35 = vpack.c.bf16 %v2854_v6, %v2854_v6  ;;  %6100 = vrcp.f32 %v2362_v62 }
 0x4fa   : > { %6102 = vrcp.f32 %v2365_v48 }
 0x4fb   : > { %2871 = vst.msk [vmem:[#allocation2] sm:$0xf] %vm2870_vm15, %v2862_v35 }
 0x4fe   : > { %v6099_v22 = vpop.eup %6098  ;;  %v2581_v36 = vpop.f32.mrf.mxu1 }
 0x4ff   : > { %v2855_v17 = vmul.f32 %v6097_v56, %v2581_v36  ;;  %v2368_v41 = vpop.xlane.xlu0 %2367  ;;  %v2993_v46 = vmul.f32 %v6099_v22, %v2834_v44  ;;  %v2383_v4 = vpop.xlane.xlu2 %2382 }
 0x500   : > { %v6101_v27 = vpop.eup %6100 }
 0x501   : > { %v2863_v14 = vpack.c.bf16 %v2855_v17, %v2855_v17  ;;  %v3001_v16 = vpack.c.bf16 %v2993_v46, %v2993_v46  ;;  %v6103_v47 = vpop.eup %6102  ;;  %v2754_v17 = vpop.f32.mrf.mxu3 }
 0x502   : > { %v2841_v46 = vpop.f32.mrf.mxu0 }
 0x503   : > { %2872 = vst.msk [vmem:[#allocation2 + $0x4] sm:$0xf] %vm2870_vm15, %v2863_v14  ;;  %3017 = vrot.lane.b32.xlu0 %v3001_v16, %s6655_s11 }
 0x506   : > { %v2584_v33 = vpop.f32.mrf.mxu1  ;;  %v2371_v52 = vpop.xlane.xlu1 %2370 }
 0x507   : > { %v2856_v53 = vmul.f32 %v6101_v27, %v2584_v33  ;;  %v2404_v49 = vpop.xlane.xlu0 %2403  ;;  %v2434_v3 = vpop.xlane.xlu2 %2433 }
 0x508   : > { %6104 = vrcp.f32 %v2404_v49 }
 0x509   : > { %v2864_v39 = vpack.c.bf16 %v2856_v53, %v2856_v53  ;;  %6106 = vrcp.f32 %v2368_v41 }
 0x50b   : > { %2873 = vst.msk [vmem:[#allocation2 + $0x8] sm:$0xf] %vm2870_vm15, %v2864_v39 }
 0x50e   : > { %v2586_v26 = vpop.f32.mrf.mxu1  ;;  %v6105_v0 = vpop.eup %6104 }
 0x50f   : > { %v2857_v61 = vmul.f32 %v6103_v47, %v2586_v26  ;;  %v2431_v42 = vpop.xlane.xlu0 %2430  ;;  %v2380_v5 = vpop.xlane.xlu1 %2379  ;;  %v2936_v37 = vmul.f32 %v6105_v0, %v2749_v32 }
 0x510   : > { %6108 = vrcp.f32 %v2431_v42  ;;  %v6107_v10 = vpop.eup %6106  ;;  %v7736_v57 = vpop.xlane.xlu2 %2388 }
 0x511   : > { %v2865_v38 = vpack.c.bf16 %v2857_v61, %v2857_v61  ;;  %6110 = vrcp.f32 %v2380_v5  ;;  %v2944_v34 = vpack.c.bf16 %v2936_v37, %v2936_v37  ;;  %v2844_v47 = vpop.f32.mrf.mxu0  ;;  %v2756_v32 = vpop.f32.mrf.mxu3 }
 0x512   : > { %6112 = vrcp.f32 %v2434_v3  ;;  %v2671_v3 = vpop.f32.mrf.mxu2 }
 0x513   : > { %2874 = vst.msk [vmem:[#allocation2 + $0xc] sm:$0xf] %vm2870_vm15, %v2865_v38  ;;  %2960 = vrot.lane.b32.xlu2 %v2944_v34, %s6657_s2  ;;  %6114 = vrcp.f32 %v2371_v52 }
 0x516   : > { %v2589_v58 = vpop.f32.mrf.mxu1  ;;  %v6109_v40 = vpop.eup %6108 }
 0x517   : > { %v2858_v12 = vmul.f32 %v6107_v10, %v2589_v58  ;;  %v2410_v30 = vpop.xlane.xlu0 %2409  ;;  %v6111_v20 = vpop.eup %6110  ;;  %v2994_v7 = vmul.f32 %v6109_v40, %v2836_v15 }
 0x518   : > { %v2407_v18 = vpop.xlane.xlu1 %2406  ;;  %v2879_v60 = vmul.f32 %v6111_v20, %v2664_v13  ;;  %v6113_v25 = vpop.eup %6112 }
 0x519   : > { %v2866_v51 = vpack.c.bf16 %v2858_v12, %v2858_v12  ;;  %6116 = vrcp.f32 %v2407_v18  ;;  %v3002_v1 = vpack.c.bf16 %v2994_v7, %v2994_v7  ;;  %v6115_v2 = vpop.eup %6114  ;;  %v2995_v62 = vmul.f32 %v6113_v25, %v2839_v23  ;;  %v2440_v35 = vpop.xlane.xlu2 %2439 }
 0x51a   : > { %v2887_v63 = vpack.c.bf16 %v2879_v60, %v2879_v60  ;;  %6118 = vrcp.f32 %v2383_v4  ;;  %v2674_v38 = vpop.f32.mrf.mxu2  ;;  %v2759_v10 = vpop.f32.mrf.mxu3 }
 0x51b   : > { %2875 = vst.msk [vmem:[#allocation2 + $0x10] sm:$0xf] %vm2870_vm15, %v2866_v51  ;;  %3019 = vrot.lane.b32.xlu1 %v3002_v1, %s6655_s11  ;;  %v3003_v44 = vpack.c.bf16 %v2995_v62, %v2995_v62  ;;  %v2846_v12 = vpop.f32.mrf.mxu0 }
 0x51c   : > { %2903 = vrot.lane.b32.xlu0 %v2887_v63, %s6656_s25 }
 0x51e   : > { %v2591_v11 = vpop.f32.mrf.mxu1 }
 0x51f   : > { %v2859_v9 = vmul.f32 %v6115_v2, %v2591_v11  ;;  %v2437_v21 = vpop.xlane.xlu0 %2436  ;;  %v6117_v48 = vpop.eup %6116 }
 0x520   : > { %v2386_v6 = vpop.xlane.xlu1 %2385  ;;  %6120 = vrcp.f32 %v2437_v21  ;;  %v2937_v22 = vmul.f32 %v6117_v48, %v2751_v55  ;;  %v6119_v36 = vpop.eup %6118 }
 0x521   : > { %v2867_v56 = vpack.c.bf16 %v2859_v9, %v2859_v9  ;;  %6122 = vrcp.f32 %v2440_v35  ;;  %v2880_v14 = vmul.f32 %v6119_v36, %v2666_v29  ;;  %v2395_v42 = vpop.xlane.xlu2 %2394 }
 0x522   : > { %v2945_v41 = vpack.c.bf16 %v2937_v22, %v2937_v22  ;;  %6124 = vrcp.f32 %v2386_v6  ;;  %v2676_v55 = vpop.f32.mrf.mxu2  ;;  %v2761_v6 = vpop.f32.mrf.mxu3 }
 0x523   : > { %2876 = vst.msk [vmem:[#allocation2 + $0x14] sm:$0xf] %vm2870_vm15, %v2867_v56  ;;  %3021 = vrot.lane.b32.xlu1 %v3003_v44, %s6655_s11  ;;  %v2888_v52 = vpack.c.bf16 %v2880_v14, %v2880_v14 }
 0x524   : > { %2962 = vrot.lane.b32.xlu0 %v2945_v41, %s6657_s2 }
 0x526   : > { %v6121_v16 = vpop.eup %6120 }
 0x527   : > { %v2416_v4 = vpop.xlane.xlu0 %2415  ;;  %v2996_v33 = vmul.f32 %v6121_v16, %v2841_v46  ;;  %v6123_v53 = vpop.eup %6122 }
 0x528   : > { %v2413_v27 = vpop.xlane.xlu1 %2412  ;;  %v6125_v39 = vpop.eup %6124  ;;  %6126 = vrcp.f32 %v2416_v4  ;;  %v2997_v26 = vmul.f32 %v6123_v53, %v2844_v47 }
 0x529   : > { %v3004_v49 = vpack.c.bf16 %v2996_v33, %v2996_v33  ;;  %6128 = vrcp.f32 %v2410_v30  ;;  %v2881_v0 = vmul.f32 %v6125_v39, %v2669_v54  ;;  %v2422_v56 = vpop.xlane.xlu2 %2421 }
 0x52a   : > { %v3005_v5 = vpack.c.bf16 %v2997_v26, %v2997_v26  ;;  %v2849_v26 = vpop.f32.mrf.mxu0 }
 0x52b   : > { %3023 = vrot.lane.b32.xlu2 %v3004_v49, %s6655_s11  ;;  %2905 = vrot.lane.b32.xlu1 %v2888_v52, %s6656_s25  ;;  %v2889_v37 = vpack.c.bf16 %v2881_v0, %v2881_v0 }
 0x52e   : > { %v6127_v15 = vpop.eup %6126 }
 0x52f   : > { %v2443_v13 = vpop.xlane.xlu0 %2442  ;;  %v6129_v34 = vpop.eup %6128  ;;  %v2940_v58 = vmul.f32 %v6127_v15, %v2759_v10  ;;  %v5682_v10 = vld [vmem:[#allocation12 + $0x18] sm:$0xff] }
 0x530   : > { %v2392_v61 = vpop.xlane.xlu1 %2391  ;;  %6130 = vrcp.f32 %v2443_v13  ;;  %v2938_v30 = vmul.f32 %v6129_v34, %v2754_v17  ;;  %v2679_v17 = vpop.f32.mrf.mxu2  ;;  %v5686_v13 = vld [vmem:[#allocation12 + $0x38] sm:$0xff]  ;;  %v5683_v34 = vld [vmem:[#allocation12 + $0x20] sm:$0xff] }
 0x531   : > { %6132 = vrcp.f32 %v2395_v42  ;;  %v2948_v29 = vpack.c.bf16 %v2940_v58, %v2940_v58  ;;  %3150 = vmatpush.bf16.msra.mxu1 %v5686_v13  ;;  %v2372_v42 = vsel %vm2161_vm14, %v7473_v45, 0.0  ;;  %v2449_v15 = vpop.xlane.xlu2 %2448  ;;  %v6006_v13 = vld [vmem:[%s8972_s7] ss:$0 sm:$0xff] }
 0x532   : > { %6134 = vrcp.f32 %v2392_v61  ;;  %v2946_v1 = vpack.c.bf16 %v2938_v30, %v2938_v30  ;;  %v5679_v30 = vld [vmem:[#allocation12] sm:$0xff] }
 0x533   : > { %3025 = vrot.lane.b32.xlu2 %v3005_v5, %s6655_s11  ;;  %2907 = vrot.lane.b32.xlu1 %v2889_v37, %s6656_s25  ;;  %6136 = vrcp.f32 %v7736_v57  ;;  %v5685_v5 = vld [vmem:[#allocation12 + $0x30] sm:$0xff]  ;;  %v5684_v37 = vld [vmem:[#allocation12 + $0x28] sm:$0xff] }
 0x535   : > { %3151 = vmatpush.bf16.msra.mxu1 %v5685_v5 }
 0x536   : > { %v6131_v40 = vpop.eup %6130 }
 0x537   : > { %v2998_v20 = vmul.f32 %v6131_v40, %v2846_v12  ;;  %v6133_v18 = vpop.eup %6132  ;;  %v2398_v2 = vpop.xlane.xlu0 %2397  ;;  %v5681_v40 = vld [vmem:[#allocation12 + $0x10] sm:$0xff]  ;;  %v5680_v12 = vld [vmem:[#allocation12 + $0x8] sm:$0xff] }
 0x538   : > { %v2419_v7 = vpop.xlane.xlu1 %2418  ;;  %v6135_v60 = vpop.eup %6134  ;;  %v2884_v23 = vmul.f32 %v6133_v18, %v2676_v55 }
 0x539   : > { %v3006_v51 = vpack.c.bf16 %v2998_v20, %v2998_v20  ;;  %v6137_v25 = vpop.eup %6136  ;;  %6138 = vrcp.f32 %v2419_v7  ;;  %v2883_v57 = vmul.f32 %v6135_v60, %v2674_v38  ;;  %3152 = vmatpush.bf16.msra.mxu1 %v5684_v37  ;;  %v2375_v38 = vsel %vm2161_vm14, %v7484_v59, 0.0  ;;  %v2681_v7 = vpop.f32.mrf.mxu2 }
 0x53a   : > { %6140 = vrcp.f32 %v2413_v27  ;;  %v2882_v63 = vmul.f32 %v6137_v25, %v2671_v3  ;;  %v2892_v11 = vpack.c.bf16 %v2884_v23, %v2884_v23  ;;  %v2764_v27 = vpop.f32.mrf.mxu3  ;;  %v2851_v55 = vpop.f32.mrf.mxu0 }
 0x53b   : > { %2968 = vrot.lane.b32.xlu2 %v2948_v29, %s6657_s2  ;;  %3027 = vrot.lane.b32.xlu0 %v3006_v51, %s6655_s11  ;;  %v2891_v62 = vpack.c.bf16 %v2883_v57, %v2883_v57  ;;  %6142 = vrcp.f32 %v2398_v2 }
 0x53c   : > { %2964 = vrot.lane.b32.xlu1 %v2946_v1, %s6657_s2  ;;  %v2890_v21 = vpack.c.bf16 %v2882_v63, %v2882_v63  ;;  %6144 = vrcp.f32 %v2422_v56 }
 0x53d   : > { %3153 = vmatpush.bf16.msra.mxu1 %v5683_v34 }
 0x53f   : > { %v6139_v9 = vpop.eup %6138  ;;  %v2425_v14 = vpop.xlane.xlu0 %2424 }
 0x540   : > { %v6141_v48 = vpop.eup %6140  ;;  %v2941_v54 = vmul.f32 %v6139_v9, %v2761_v6  ;;  %v2401_v46 = vpop.xlane.xlu1 %2400  ;;  %6146 = vrcp.f32 %v2425_v14 }
 0x541   : > { %v2939_v35 = vmul.f32 %v6141_v48, %v2756_v32  ;;  %v6143_v44 = vpop.eup %6142  ;;  %3154 = vmatpush.bf16.msra.mxu1 %v5682_v10 }
 0x542   : > { %v2949_v22 = vpack.c.bf16 %v2941_v54, %v2941_v54  ;;  %v2885_v41 = vmul.f32 %v6143_v44, %v2679_v17  ;;  %v6145_v4 = vpop.eup %6144  ;;  %v2766_v39 = vpop.f32.mrf.mxu3 }
 0x543   : > { %2913 = vrot.lane.b32.xlu2 %v2892_v11, %s6656_s25  ;;  %2911 = vrot.lane.b32.xlu0 %v2891_v62, %s6656_s25  ;;  %v2947_v36 = vpack.c.bf16 %v2939_v35, %v2939_v35  ;;  %v2942_v33 = vmul.f32 %v6145_v4, %v2764_v27 }
 0x544   : > { %2909 = vrot.lane.b32.xlu1 %v2890_v21, %s6656_s25  ;;  %v2893_v16 = vpack.c.bf16 %v2885_v41, %v2885_v41 }
 0x545   : > { %v2950_v49 = vpack.c.bf16 %v2942_v33, %v2942_v33  ;;  %3155 = vmatpush.bf16.msra.mxu1 %v5681_v40  ;;  %v6304_v40 = vld [vmem:[%s6883_s30 + $0x8] sm:$0xff] }
 0x546   : > { %v6147_v52 = vpop.eup %6146 }
 0x547   : > { %v2943_v3 = vmul.f32 %v6147_v52, %v2766_v39 }
 0x548   : > { %v2446_v53 = vpop.xlane.xlu1 %2445 }
 0x549   : > { %6148 = vrcp.f32 %v2446_v53  ;;  %v2951_v47 = vpack.c.bf16 %v2943_v3, %v2943_v3  ;;  %3156 = vmatpush.bf16.msra.mxu1 %v5680_v12 }
 0x54a   : > { %6150 = vrcp.f32 %v2401_v46 }
 0x54b   : > { %2970 = vrot.lane.b32.xlu0 %v2949_v22, %s6657_s2  ;;  %6152 = vrcp.f32 %v2449_v15  ;;  %v6303_v15 = vld [vmem:[%s6883_s30] sm:$0xff] }
 0x54c   : > { %2966 = vrot.lane.b32.xlu1 %v2947_v36, %s6657_s2 }
 0x54d   : > { %3157 = vmatpush.bf16.msra.mxu1 %v5679_v30 }
 0x54f   : > { %v6149_v32 = vpop.eup %6148 }
 0x550   : > { %v2999_v0 = vmul.f32 %v6149_v32, %v2849_v26  ;;  %v6151_v20 = vpop.eup %6150  ;;  %v7798_v26 = vld [vmem:[%s8968_s3] sm:$0x3f] }
 0x551   : > { %v2886_v29 = vmul.f32 %v6151_v20, %v2681_v7  ;;  %v6153_v1 = vpop.eup %6152  ;;  %v6305_v20 = vld [vmem:[%s6883_s30 + $0x10] sm:$0xff] }
 0x552   : > { %v3007_v61 = vpack.c.bf16 %v2999_v0, %v2999_v0  ;;  %v3000_v57 = vmul.f32 %v6153_v1, %v2851_v55 }
 0x553   : > { %2915 = vrot.lane.b32.xlu0 %v2893_v16, %s6656_s25  ;;  %v2894_v60 = vpack.c.bf16 %v2886_v29, %v2886_v29 }
 0x554   : > { %v3008_v2 = vpack.c.bf16 %v3000_v57, %v3000_v57  ;;  %v6307_v57 = vld [vmem:[%s6883_s30 + $0x20] sm:$0xff] }
 0x55b   : > { %2972 = vrot.lane.b32.xlu0 %v2950_v49, %s6657_s2 }
 0x563   : > { %2974 = vrot.lane.b32.xlu0 %v2951_v47, %s6657_s2 }
 0x56b   : > { %3029 = vrot.lane.b32.xlu0 %v3007_v61, %s6655_s11 }
 0x56c   : > { %2373 = vadd.xlane.f32.xlu2 %v2372_v42 }
 0x56d   : > { %v2961_v58 = vpop.permute.xlu2 %2960 }
 0x575   : > { %v3018_v18 = vpop.permute.xlu0 %3017 }
 0x576   : > { %2376 = vadd.xlane.f32.xlu1 %v2375_v38 }
 0x585   : > { %v3024_v45 = vpop.permute.xlu2 %3023 }
 0x58d   : > { %v3026_v59 = vpop.permute.xlu2 %3025  ;;  %v3020_v51 = vpop.permute.xlu1 %3019 }
 0x58e   : > { %v2904_v25 = vpop.permute.xlu0 %2903 }
 0x58f   : > { %2928 = vst.msk [vmem:[#allocation2] sm:$0xf] %vm2927_vm0, %v2904_v25  ;;  %2917 = vrot.lane.b32.xlu1 %v2894_v60, %s6656_s25  ;;  %s9072_s25 = sld [smem:[#allocation34_spill]] }
 0x590   : > { %2985 = vst.msk [vmem:[#allocation2] sm:$0xf] %vm2984_vm1, %v2961_v58 }
 0x591   : > { %3042 = vst.msk [vmem:[#allocation2] sm:$0xf] %vm3041_vm2, %v3018_v18 }
 0x595   : > { %v2969_v23 = vpop.permute.xlu2 %2968  ;;  %v3022_v63 = vpop.permute.xlu1 %3021 }
 0x596   : > { %v2963_v9 = vpop.permute.xlu0 %2962 }
 0x597   : > { %3031 = vrot.lane.b32.xlu1 %v3008_v2, %s6655_s11 }
 0x59d   : > { %v2914_v11 = vpop.permute.xlu2 %2913  ;;  %v2906_v62 = vpop.permute.xlu1 %2905 }
 0x59e   : > { %2933 = vst.msk [vmem:[#allocation2 + $0x14] sm:$0xf] %vm2927_vm0, %v2914_v11 }
 0x59f   : > { %2929 = vst.msk [vmem:[#allocation2 + $0x4] sm:$0xf] %vm2927_vm0, %v2906_v62  ;;  %v6308_v62 = vld [vmem:[%s6883_s30 + $0x28] sm:$0xff] }
 0x5a0   : > { %2986 = vst.msk [vmem:[#allocation2 + $0x4] sm:$0xf] %vm2984_vm1, %v2963_v9 }
 0x5a1   : > { %3043 = vst.msk [vmem:[#allocation2 + $0x4] sm:$0xf] %vm3041_vm2, %v3020_v51  ;;  %v6306_v51 = vld [vmem:[%s6883_s30 + $0x18] sm:$0xff] }
 0x5a5   : > { %v2908_v21 = vpop.permute.xlu1 %2907 }
 0x5a6   : > { %2930 = vst.msk [vmem:[#allocation2 + $0x8] sm:$0xf] %vm2927_vm0, %v2908_v21 }
 0x5a8   : > { %v5675_v48 = vld [vmem:[#allocation2] sm:$0xff] }
 0x5a9   : > { %3158 = vmatmul.bf16.vlgmr.msra.gmra.mxu1 %v5675_v48 }
 0x5ad   : > { %v3028_v6 = vpop.permute.xlu0 %3027 }
 0x5ae   : > { %v2965_v54 = vpop.permute.xlu1 %2964 }
 0x5af   : > { %2987 = vst.msk [vmem:[#allocation2 + $0x8] sm:$0xf] %vm2984_vm1, %v2965_v54 }
 0x5b0   : > { %3044 = vst.msk [vmem:[#allocation2 + $0x8] sm:$0xf] %vm3041_vm2, %v3022_v63 }
 0x5b5   : > { %v2912_v35 = vpop.permute.xlu0 %2911 }
 0x5b6   : > { %2932 = vst.msk [vmem:[#allocation2 + $0x10] sm:$0xf] %vm2927_vm0, %v2912_v35  ;;  %v2910_v56 = vpop.permute.xlu1 %2909  ;;  %v6309_v35 = vld [vmem:[%s6883_s30 + $0x38] sm:$0xff] }
 0x5b7   : > { %2989 = vst.msk [vmem:[#allocation2 + $0x10] sm:$0xf] %vm2984_vm1, %v2969_v23 }
 0x5b8   : > { %3046 = vst.msk [vmem:[#allocation2 + $0x10] sm:$0xf] %vm3041_vm2, %v3026_v59 }
 0x5b9   : > { %2931 = vst.msk [vmem:[#allocation2 + $0xc] sm:$0xf] %vm2927_vm0, %v2910_v56 }
 0x5bd   : > { %v2971_v22 = vpop.permute.xlu0 %2970 }
 0x5be   : > { %2990 = vst.msk [vmem:[#allocation2 + $0x14] sm:$0xf] %vm2984_vm1, %v2971_v22  ;;  %v2967_v44 = vpop.permute.xlu1 %2966 }
 0x5bf   : > { %3047 = vst.msk [vmem:[#allocation2 + $0x14] sm:$0xf] %vm3041_vm2, %v3028_v6 }
 0x5c0   : > { %2988 = vst.msk [vmem:[#allocation2 + $0xc] sm:$0xf] %vm2984_vm1, %v2967_v44 }
 0x5c1   : > { %3045 = vst.msk [vmem:[#allocation2 + $0xc] sm:$0xf] %vm3041_vm2, %v3024_v45 }
 0x5c5   : > { %v2916_v17 = vpop.permute.xlu0 %2915 }
 0x5c6   : > { %v5677_v41 = vld [vmem:[#allocation2 + $0x10] sm:$0xff] }
 0x5c8   : > { %v5676_v36 = vld [vmem:[#allocation2 + $0x8] sm:$0xff] }
 0x5c9   : > { %3163 = vmatmul.bf16.gmra.mxu1 %v5676_v36 }
 0x5cd   : > { %v2973_v46 = vpop.permute.xlu0 %2972 }
 0x5d5   : > { %v2975_v16 = vpop.permute.xlu0 %2974 }
 0x5d9   : > { %3168 = vmatmul.bf16.gmra.mxu1 %v5677_v41 }
 0x5dd   : > { %v3030_v49 = vpop.permute.xlu0 %3029 }
 0x5df   : > { %v2374_v14 = vpop.xlane.xlu2 %2373 }
 0x5e0   : > { %6154 = vrcp.f32 %v2374_v14 }
 0x5e6   : > { %v6155_v4 = vpop.eup %6154 }
 0x5e7   : > { %v2860_v27 = vmul.f32 %v6155_v4, %v7727_v43 }
 0x5e9   : > { %v2868_v33 = vpack.c.bf16 %v2860_v27, %v2860_v27  ;;  %v2377_v53 = vpop.xlane.xlu1 %2376 }
 0x5ea   : > { %6156 = vrcp.f32 %v2377_v53 }
 0x5eb   : > { %2877 = vst.msk [vmem:[#allocation2 + $0x18] sm:$0xf] %vm2870_vm15, %v2868_v33  ;;  %v6310_v33 = vld [vmem:[%s6883_s30 + $0x30] sm:$0xff]  ;;  %s6566_s30 = sshra.s32 %s4770_s19, 4  ;;  %s6567_s30 = int_to_ptr.hbm [resolvable:$true] %s6566_s30 }
 0x5ec   : > { %2934 = vst.msk [vmem:[#allocation2 + $0x18] sm:$0xf] %vm2927_vm0, %v2916_v17  ;;  %s6568_s23 = scalar_lea.hbm %s6567_s30, 64  ;;  %p6573_p7 = scmp.lt.s32.totalorder %s6567_s30, %s9073_s5 }
 0x5ed   : > { %2991 = vst.msk [vmem:[#allocation2 + $0x18] sm:$0xf] %vm2984_vm1, %v2973_v46  ;;  %p6569_p1 = scmp.ne.s32.totalorder %s6567_s30, %s6568_s23  ;;  %p6574_p9 = scmp.lt.s32.totalorder %s6572_s17, %s6568_s23 }
 0x5ee   : > { %3048 = vst.msk [vmem:[#allocation2 + $0x18] sm:$0xf] %vm3041_vm2, %v3030_v49 }
 0x5ef   : > { %p6570_p3 = pnand %p6569_p1, %p6824_p4  ;;  %p6575_p5 = por %p6574_p9, %p6573_p7 }
 0x5f0   : > { %v6157_v52 = vpop.eup %6156 }
 0x5f1   : > { %v2861_v39 = vmul.f32 %v6157_v52, %v7731_v50  ;;  %v887_v50 = vperm.slane %v7798_v26, 2  ;;  %p6571_p12 = pneg %p6570_p3 }
 0x5f3   : > { %v2869_v3 = vpack.c.bf16 %v2861_v39, %v2861_v39  ;;  %v933_v0 = vadd.f32 %v7065_v24, %v887_v50  ;;  %p6576_p8 = pnand %p6575_p5, %p6571_p12 }
 0x5f5   : > { %2878 = vst.msk [vmem:[#allocation2 + $0x1c] sm:$0xf] %vm2870_vm15, %v2869_v3  ;;  %v3179_v42 = vperm.slane %v933_v0, 0 }
 0x601   : > { %v2918_v43 = vpop.permute.xlu1 %2917 }
 0x602   : > { %2935 = vst.msk [vmem:[#allocation2 + $0x1c] sm:$0xf] %vm2927_vm0, %v2918_v43 }
 0x603   : > { %2992 = vst.msk [vmem:[#allocation2 + $0x1c] sm:$0xf] %vm2984_vm1, %v2975_v16 }
 0x609   : > { %v3032_v47 = vpop.permute.xlu1 %3031 }
 0x60a   : > { %3049 = vst.msk [vmem:[#allocation2 + $0x1c] sm:$0xf] %vm3041_vm2, %v3032_v47 }
 0x611   : > { %v5678_v32 = vld [vmem:[#allocation2 + $0x18] sm:$0xff] }
 0x612   : > { %3173 = vmatmul.bf16.gmra.mxu1 %v5678_v32 }
 0x626   : > { %v3159_v61 = vpop.f32.mrf.mxu1 }
 0x627   : > { %v3160_v5 = vadd.f32 %v6006_v13, %v3159_v61 }
 0x629   : > { %v3180_v37 = vmul.f32 %v3179_v42, %v3160_v5 }
 0x62b   : > { %v7806_v38 = vadd.f32 %v6303_v15, %v3180_v37 }
 0x62d   : > { %3196 = vadd.xlane.f32.xlu0 %v7806_v38 }
 0x62e   : > { %v3161_v34 = vpop.f32.mrf.mxu1 }
 0x62f   : > { %v3162_v10 = vadd.f32 %v6006_v13, %v3161_v34 }
 0x631   : > { %v3181_v58 = vmul.f32 %v3179_v42, %v3162_v10  ;;  %v5423_v10 = vld [vmem:[%s9007_s10 + $0xe0] sm:$0xf] }
 0x633   : > { %v7810_v24 = vadd.f32 %v6304_v40, %v3181_v58  ;;  %v5717_v58 = vld [vmem:[%s9007_s10 + $0xec] sm:$0xf0]  ;;  %v5715_v40 = vld [vmem:[%s9007_s10 + $0xe4] sm:$0xf] }
 0x635   : > { %3198 = vadd.xlane.f32.xlu2 %v7810_v24 }
 0x646   : > { %v3164_v12 = vpop.f32.mrf.mxu1 }
 0x647   : > { %v3165_v45 = vadd.f32 %v6006_v13, %v3164_v12  ;;  %v5424_v12 = vor.u32 %v5717_v58, %v5423_v10  ;;  %v5704_v10 = vld [vmem:[%s9007_s10 + $0x8c] sm:$0xf]  ;;  %v5385_v58 = vld [vmem:[%s9007_s10 + $0x98] sm:$0xf0] }
 0x649   : > { %v3182_v30 = vmul.f32 %v3179_v42, %v3165_v45  ;;  %v5425_v45 = vld [vmem:[%s9007_s10 + $0xf0] sm:$0xf0]  ;;  %3581 = vmatpush.bf16.msrb.mxu2 %v5424_v12 }
 0x64b   : > { %v7814_v18 = vadd.f32 %v6305_v20, %v3182_v30  ;;  %v5431_v30 = vld [vmem:[%s9007_s10 + $0xe8] sm:$0xf]  ;;  %v5718_v20 = vld [vmem:[%s9007_s10 + $0xf4] sm:$0xf0] }
 0x64d   : > { %3200 = vadd.xlane.f32.xlu1 %v7814_v18 }
 0x64e   : > { %v3166_v7 = vpop.f32.mrf.mxu1 }
 0x64f   : > { %v3167_v29 = vadd.f32 %v6006_v13, %v3166_v7  ;;  %v5428_v7 = vor.u32 %v5715_v40, %v5425_v45  ;;  %v5388_v40 = vor.u32 %v5704_v10, %v5385_v58  ;;  %v5359_v45 = vld [vmem:[%s9007_s10 + $0x60] sm:$0xf] }
 0x650   : > { %v5311_v58 = vld [vmem:[%s9007_s10] sm:$0xf] }
 0x651   : > { %v3183_v59 = vmul.f32 %v3179_v42, %v3167_v29  ;;  %v5432_v29 = vor.u32 %v5718_v20, %v5431_v30  ;;  %3610 = vmatpush.bf16.msrb.mxu3 %v5428_v7  ;;  %v5701_v30 = vld [vmem:[%s9007_s10 + $0x6c] sm:$0xf0]  ;;  %v5699_v20 = vld [vmem:[%s9007_s10 + $0x64] sm:$0xf] }
 0x653   : > { %v7818_v60 = vadd.f32 %v6306_v51, %v3183_v59  ;;  %v5716_v59 = vld [vmem:[%s9007_s10 + $0xec] sm:$0xf]  ;;  %v5433_v51 = vld [vmem:[%s9007_s10 + $0xf8] sm:$0xf0]  ;;  %3639 = vmatpush.bf16.msrb.mxu0 %v5432_v29  ;;  %v5360_v29 = vor.u32 %v5701_v30, %v5359_v45  ;;  %v5687_v45 = vld [vmem:[%s9007_s10 + $0x4] sm:$0xf] }
 0x654   : > { %v5313_v30 = vld [vmem:[%s9007_s10 + $0x10] sm:$0xf0] }
 0x655   : > { %3202 = vadd.xlane.f32.xlu2 %v7818_v60 }
 0x656   : > { %v3169_v1 = vpop.f32.mrf.mxu1 }
 0x657   : > { %v3170_v25 = vadd.f32 %v6006_v13, %v3169_v1  ;;  %v5436_v1 = vor.u32 %v5716_v59, %v5433_v51  ;;  %v5361_v59 = vld [vmem:[%s9007_s10 + $0x70] sm:$0xf0]  ;;  %v5367_v51 = vld [vmem:[%s9007_s10 + $0x68] sm:$0xf] }
 0x659   : > { %v3184_v55 = vmul.f32 %v3179_v42, %v3170_v25  ;;  %v5407_v25 = vld [vmem:[%s9007_s10 + $0xc0] sm:$0xf]  ;;  %3668 = vmatpush.bf16.msrb.mxu1 %v5436_v1  ;;  %v5702_v1 = vld [vmem:[%s9007_s10 + $0x74] sm:$0xf0] }
 0x65b   : > { %v7822_v23 = vadd.f32 %v6307_v57, %v3184_v55  ;;  %v5713_v55 = vld [vmem:[%s9007_s10 + $0xcc] sm:$0xf0]  ;;  %v5711_v57 = vld [vmem:[%s9007_s10 + $0xc4] sm:$0xf] }
 0x65d   : > { %3204 = vadd.xlane.f32.xlu2 %v7822_v23 }
 0x65e   : > { %v3171_v63 = vpop.f32.mrf.mxu1 }
 0x65f   : > { %v3172_v2 = vadd.f32 %v6006_v13, %v3171_v63  ;;  %v5408_v63 = vor.u32 %v5713_v55, %v5407_v25  ;;  %v5364_v25 = vor.u32 %v5699_v20, %v5361_v59  ;;  %v5368_v55 = vor.u32 %v5702_v1, %v5367_v51  ;;  %v5319_v20 = vld [vmem:[%s9007_s10 + $0x8] sm:$0xf]  ;;  %v5688_v59 = vld [vmem:[%s9007_s10 + $0xc] sm:$0xf]  ;;  %v5321_v51 = vld [vmem:[%s9007_s10 + $0x18] sm:$0xf0] }
 0x661   : > { %v3185_v11 = vmul.f32 %v3179_v42, %v3172_v2  ;;  %v5409_v2 = vld [vmem:[%s9007_s10 + $0xd0] sm:$0xf0]  ;;  %3582 = vmatpush.bf16.msrb.mxu2 %v5408_v63  ;;  %v5369_v63 = vld [vmem:[%s9007_s10 + $0x78] sm:$0xf0] }
 0x663   : > { %v7826_v9 = vadd.f32 %v6308_v62, %v3185_v11  ;;  %v5415_v11 = vld [vmem:[%s9007_s10 + $0xc8] sm:$0xf]  ;;  %v5714_v62 = vld [vmem:[%s9007_s10 + $0xd4] sm:$0xf0] }
 0x665   : > { %3206 = vadd.xlane.f32.xlu2 %v7826_v9 }
 0x68f   : > { %v3174_v21 = vpop.f32.mrf.mxu1 }
 0x690   : > { %v3175_v17 = vadd.f32 %v6006_v13, %v3174_v21  ;;  %v5412_v21 = vor.u32 %v5711_v57, %v5409_v2  ;;  %v5700_v57 = vld [vmem:[%s9007_s10 + $0x6c] sm:$0xf] }
 0x692   : > { %v3186_v14 = vmul.f32 %v3179_v42, %v3175_v17  ;;  %3611 = vmatpush.bf16.msrb.mxu3 %v5412_v21  ;;  %v5707_v17 = vld [vmem:[%s9007_s10 + $0xa4] sm:$0xf]  ;;  %v5697_v21 = vld [vmem:[%s9007_s10 + $0x4c] sm:$0xf0] }
 0x694   : > { %v7846_v53 = vadd.f32 %v6310_v33, %v3186_v14  ;;  %v5399_v14 = vld [vmem:[%s9007_s10 + $0xa8] sm:$0xf] }
 0x697   : > { %v3176_v48 = vpop.f32.mrf.mxu1 }
 0x698   : > { %v3177_v6 = vadd.f32 %v6006_v13, %v3176_v48  ;;  %v5416_v48 = vor.u32 %v5714_v62, %v5415_v11  ;;  %v5372_v11 = vor.u32 %v5700_v57, %v5369_v63  ;;  %v5343_v62 = vld [vmem:[%s9007_s10 + $0x40] sm:$0xf] }
 0x69a   : > { %v3187_v54 = vmul.f32 %v3179_v42, %v3177_v6  ;;  %v5712_v6 = vld [vmem:[%s9007_s10 + $0xcc] sm:$0xf]  ;;  %3640 = vmatpush.bf16.msrb.mxu0 %v5416_v48  ;;  %v5695_v48 = vld [vmem:[%s9007_s10 + $0x44] sm:$0xf] }
 0x69c   : > { %v7830_v56 = vadd.f32 %v6309_v35, %v3187_v54  ;;  %v5417_v54 = vld [vmem:[%s9007_s10 + $0xd8] sm:$0xf0] }
 0x69d   : > { %v5420_v35 = vor.u32 %v5712_v6, %v5417_v54  ;;  %v5344_v54 = vor.u32 %v5697_v21, %v5343_v62 }
 0x69e   : > { %3210 = vadd.xlane.f32.xlu1 %v7830_v56 }
 0x69f   : > { %3669 = vmatpush.bf16.msrb.mxu1 %v5420_v35  ;;  %v5345_v35 = vld [vmem:[%s9007_s10 + $0x50] sm:$0xf0] }
 0x6a0   : > { %v3197_v22 = vpop.xlane.xlu0 %3196 }
 0x6a1   : > { %v3212_v44 = vmul.f32 %v3197_v22, %v6945_v19  ;;  %v5391_v22 = vld [vmem:[%s9007_s10 + $0xa0] sm:$0xf] }
 0x6a3   : > { %v7835_v36 = vsub.f32 %v7806_v38, %v3212_v44  ;;  %v5709_v44 = vld [vmem:[%s9007_s10 + $0xac] sm:$0xf0] }
 0x6a5   : > { %v3228_v41 = vmul.f32 %v7835_v36, %v7835_v36 }
 0x6a7   : > { %3236 = vadd.xlane.f32.xlu2 %v3228_v41  ;;  %v5392_v41 = vor.u32 %v5709_v44, %v5391_v22  ;;  %v5351_v22 = vld [vmem:[%s9007_s10 + $0x48] sm:$0xf]  ;;  %v5698_v44 = vld [vmem:[%s9007_s10 + $0x54] sm:$0xf0] }
 0x6a8   : > { %v3199_v46 = vpop.xlane.xlu2 %3198 }
 0x6a9   : > { %v3213_v16 = vmul.f32 %v3199_v46, %v6945_v19  ;;  %v5393_v46 = vld [vmem:[%s9007_s10 + $0xb0] sm:$0xf0]  ;;  %3583 = vmatpush.bf16.msrb.mxu2 %v5392_v41  ;;  %v5352_v41 = vor.u32 %v5698_v44, %v5351_v22  ;;  %v889_v44 = vperm.slane %v7798_v26, 4 }
 0x6ab   : > { %v7841_v4 = vsub.f32 %v7810_v24, %v3213_v16  ;;  %v5710_v16 = vld [vmem:[%s9007_s10 + $0xb4] sm:$0xf0] }
 0x6ac   : > { %v5400_v33 = vor.u32 %v5710_v16, %v5399_v14  ;;  %v5353_v14 = vld [vmem:[%s9007_s10 + $0x58] sm:$0xf0] }
 0x6ad   : > { %v3229_v27 = vmul.f32 %v7841_v4, %v7841_v4 }
 0x6ae   : > { %3641 = vmatpush.bf16.msrb.mxu0 %v5400_v33  ;;  %v5693_v33 = vld [vmem:[%s9007_s10 + $0x2c] sm:$0xf0] }
 0x6af   : > { %3238 = vadd.xlane.f32.xlu0 %v3229_v27  ;;  %3208 = vadd.xlane.f32.xlu2 %v7846_v53  ;;  %v5396_v27 = vor.u32 %v5707_v17, %v5393_v46  ;;  %v5348_v17 = vor.u32 %v5695_v48, %v5345_v35  ;;  %v5696_v46 = vld [vmem:[%s9007_s10 + $0x4c] sm:$0xf] }
 0x6b0   : > { %v5356_v16 = vor.u32 %v5696_v46, %v5353_v14 }
 0x6b1   : > { %3612 = vmatpush.bf16.msrb.mxu3 %v5396_v27  ;;  %v5327_v27 = vld [vmem:[%s9007_s10 + $0x20] sm:$0xf] }
 0x6c0   : > { %v3201_v49 = vpop.xlane.xlu1 %3200 }
 0x6c1   : > { %v3214_v52 = vmul.f32 %v3201_v49, %v6945_v19  ;;  %v5708_v49 = vld [vmem:[%s9007_s10 + $0xac] sm:$0xf] }
 0x6c3   : > { %v7851_v39 = vsub.f32 %v7814_v18, %v3214_v52  ;;  %v5401_v52 = vld [vmem:[%s9007_s10 + $0xb8] sm:$0xf0] }
 0x6c5   : > { %v3230_v3 = vmul.f32 %v7851_v39, %v7851_v39 }
 0x6c7   : > { %3240 = vadd.xlane.f32.xlu0 %v3230_v3  ;;  %v5404_v3 = vor.u32 %v5708_v49, %v5401_v52  ;;  %v5691_v49 = vld [vmem:[%s9007_s10 + $0x24] sm:$0xf] }
 0x6c8   : > { %v3203_v43 = vpop.xlane.xlu2 %3202 }
 0x6c9   : > { %v3215_v47 = vmul.f32 %v3203_v43, %v6945_v19  ;;  %v5375_v43 = vld [vmem:[%s9007_s10 + $0x80] sm:$0xf]  ;;  %3670 = vmatpush.bf16.msrb.mxu1 %v5404_v3  ;;  %v5328_v3 = vor.u32 %v5693_v33, %v5327_v27 }
 0x6cb   : > { %v7857_v32 = vsub.f32 %v7818_v60, %v3215_v47  ;;  %v5705_v47 = vld [vmem:[%s9007_s10 + $0x8c] sm:$0xf0] }
 0x6cd   : > { %v3231_v50 = vmul.f32 %v7857_v32, %v7857_v32  ;;  %3671 = vmatpush.bf16.msrb.mxu1 %v5388_v40  ;;  %v5689_v40 = vld [vmem:[%s9007_s10 + $0xc] sm:$0xf0] }
 0x6cf   : > { %3242 = vadd.xlane.f32.xlu2 %v3231_v50  ;;  %v5703_v50 = vld [vmem:[%s9007_s10 + $0x84] sm:$0xf] }
 0x6d0   : > { %v3205_v0 = vpop.xlane.xlu2 %3204 }
 0x6d1   : > { %v3216_v13 = vmul.f32 %v3205_v0, %v6945_v19  ;;  %v5376_v0 = vor.u32 %v5705_v47, %v5375_v43  ;;  %3672 = vmatpush.bf16.msrb.mxu1 %v5372_v11  ;;  %v5329_v43 = vld [vmem:[%s9007_s10 + $0x30] sm:$0xf0]  ;;  %v5335_v47 = vld [vmem:[%s9007_s10 + $0x28] sm:$0xf] }
 0x6d3   : > { %v7863_v61 = vsub.f32 %v7822_v23, %v3216_v13  ;;  %v5377_v13 = vld [vmem:[%s9007_s10 + $0x90] sm:$0xf0]  ;;  %3584 = vmatpush.bf16.msrb.mxu2 %v5376_v0 }
 0x6d5   : > { %v3232_v42 = vmul.f32 %v7863_v61, %v7863_v61  ;;  %3673 = vmatpush.bf16.msrb.mxu1 %v5356_v16  ;;  %v959_v16 = vadd.f32 %v7063_v28, %v889_v44 }
 0x6d7   : > { %3244 = vadd.xlane.f32.xlu1 %v3232_v42  ;;  %v5383_v42 = vld [vmem:[%s9007_s10 + $0x88] sm:$0xf]  ;;  %3585 = vmatpush.bf16.msrb.mxu2 %v5360_v29  ;;  %v5690_v29 = vld [vmem:[%s9007_s10 + $0x14] sm:$0xf0] }
 0x6d8   : > { %v3207_v5 = vpop.xlane.xlu2 %3206  ;;  %v5320_v1 = vor.u32 %v5690_v29, %v5319_v20 }
 0x6d9   : > { %v3217_v37 = vmul.f32 %v3207_v5, %v6945_v19  ;;  %v5706_v5 = vld [vmem:[%s9007_s10 + $0x94] sm:$0xf0] }
 0x6db   : > { %v7869_v15 = vsub.f32 %v7826_v9, %v3217_v37  ;;  %v5380_v37 = vor.u32 %v5703_v50, %v5377_v13  ;;  %3586 = vmatpush.bf16.msrb.mxu2 %v5344_v54  ;;  %v5694_v50 = vld [vmem:[%s9007_s10 + $0x34] sm:$0xf0]  ;;  %v5332_v13 = vor.u32 %v5691_v49, %v5329_v43 }
 0x6dd   : > { %v3233_v34 = vmul.f32 %v7869_v15, %v7869_v15  ;;  %3613 = vmatpush.bf16.msrb.mxu3 %v5380_v37  ;;  %v5337_v37 = vld [vmem:[%s9007_s10 + $0x38] sm:$0xf0] }
 0x6df   : > { %3246 = vadd.xlane.f32.xlu0 %v3233_v34  ;;  %v5384_v34 = vor.u32 %v5706_v5, %v5383_v42  ;;  %v5336_v42 = vor.u32 %v5694_v50, %v5335_v47  ;;  %v5692_v5 = vld [vmem:[%s9007_s10 + $0x2c] sm:$0xf]  ;;  %3587 = vmatpush.bf16.msrb.mxu2 %v5328_v3  ;;  %v888_v3 = vperm.slane %v7798_v26, 3 }
 0x6e1   : > { %3642 = vmatpush.bf16.msrb.mxu0 %v5384_v34  ;;  %3614 = vmatpush.bf16.msrb.mxu3 %v5364_v25  ;;  %v5340_v34 = vor.u32 %v5692_v5, %v5337_v37  ;;  %v5324_v25 = vor.u32 %v5688_v59, %v5321_v51 }
 0x6e3   : > { %3674 = vmatpush.bf16.msrb.mxu1 %v5340_v34 }
 0x6e5   : > { %3643 = vmatpush.bf16.msrb.mxu0 %v5368_v55  ;;  %3615 = vmatpush.bf16.msrb.mxu3 %v5348_v17 }
 0x6e7   : > { %3675 = vmatpush.bf16.msrb.mxu1 %v5324_v25 }
 0x6e9   : > { %3644 = vmatpush.bf16.msrb.mxu0 %v5352_v41  ;;  %3616 = vmatpush.bf16.msrb.mxu3 %v5332_v13  ;;  %v946_v13 = vadd.f32 %v7067_v8, %v888_v3 }
 0x6eb   : > { %v8088_v34 = vperm.slane %v946_v13, 0 }
 0x6ed   : > { %3645 = vmatpush.bf16.msrb.mxu0 %v5336_v42 }
 0x6f1   : > { %3646 = vmatpush.bf16.msrb.mxu0 %v5320_v1 }
 0x711   : > { %v3211_v12 = vpop.xlane.xlu1 %3210 }
 0x712   : > { %v3219_v7 = vmul.f32 %v3211_v12, %v6945_v19  ;;  %v5312_v12 = vor.u32 %v5689_v40, %v5311_v58 }
 0x714   : > { %v7995_v2 = vsub.f32 %v7830_v56, %v3219_v7  ;;  %v5316_v7 = vor.u32 %v5687_v45, %v5313_v30  ;;  %3588 = vmatpush.bf16.msrb.mxu2 %v5312_v12 }
 0x716   : > { %v3235_v6 = vmul.f32 %v7995_v2, %v7995_v2  ;;  %3617 = vmatpush.bf16.msrb.mxu3 %v5316_v7 }
 0x718   : > { %3250 = vadd.xlane.f32.xlu1 %v3235_v6 }
 0x71a   : > { %v3237_v52 = vpop.xlane.xlu2 %3236 }
 0x71b   : > { %v3252_v0 = vmul.f32 %v3237_v52, %v6945_v19  ;;  %v3356_v52 = vadd.f32 1.0, %v959_v16 }
 0x71d   : > { %v3260_v10 = vadd.f32 1e-06, %v3252_v0  ;;  %v8083_v0 = vperm.slane %v3356_v52, 0 }
 0x71f   : > { %6158 = vrsqrt.f32 %v3260_v10  ;;  %vm3274_vm4 = vweird.f32 %v3260_v10 }
 0x722   : > { %v3239_v55 = vpop.xlane.xlu0 %3238  ;;  %v3209_v57 = vpop.xlane.xlu2 %3208 }
 0x723   : > { %v3253_v63 = vmul.f32 %v3239_v55, %v6945_v19  ;;  %v3218_v11 = vmul.f32 %v3209_v57, %v6945_v19 }
 0x725   : > { %v6159_v62 = vpop.eup %6158  ;;  %v3261_v21 = vadd.f32 1e-06, %v3253_v63  ;;  %v8075_v48 = vsub.f32 %v7846_v53, %v3218_v11 }
 0x726   : > { %v3269_v6 = vmul.f32 %v6159_v62, %v3260_v10  ;;  %vm3275_vm3 = vweird.f32 %v6159_v62 }
 0x727   : > { %6160 = vrsqrt.f32 %v3261_v21  ;;  %v3234_v54 = vmul.f32 %v8075_v48, %v8075_v48  ;;  %vm3276_vm5 = vmor %vm3274_vm4, %vm3275_vm3  ;;  %vm3284_vm7 = vweird.f32 %v3261_v21 }
 0x728   : > { %v3270_v35 = vmul.f32 %v6159_v62, %v3269_v6 }
 0x729   : > { %3248 = vadd.xlane.f32.xlu2 %v3234_v54 }
 0x72a   : > { %v3271_v22 = vmul.f32 0.5, %v3270_v35 }
 0x72c   : > { %v3272_v17 = vsub.f32 1.5, %v3271_v22 }
 0x72d   : > { %v6161_v41 = vpop.eup %6160 }
 0x72e   : > { %v3273_v46 = vmul.f32 %v6159_v62, %v3272_v17  ;;  %v3279_v14 = vmul.f32 %v6161_v41, %v3261_v21  ;;  %vm3285_vm6 = vweird.f32 %v6161_v41 }
 0x72f   : > { %vm3286_vm8 = vmor %vm3284_vm7, %vm3285_vm6 }
 0x730   : > { %v3280_v27 = vmul.f32 %v6161_v41, %v3279_v14  ;;  %v3277_v33 = vsel %vm3276_vm5, %v6159_v62, %v3273_v46 }
 0x731   : > { %v3348_v47 = vmul.f32 %v3277_v33, %v7835_v36 }
 0x732   : > { %v3281_v49 = vmul.f32 0.5, %v3280_v27 }
 0x733   : > { %v3358_v42 = vmul.f32 %v8083_v0, %v3348_v47 }
 0x734   : > { %v3282_v43 = vsub.f32 1.5, %v3281_v49 }
 0x735   : > { %v3367_v36 = vadd.f32 %v8088_v34, %v3358_v42 }
 0x736   : > { %v3283_v50 = vmul.f32 %v6161_v41, %v3282_v43 }
 0x738   : > { %v3287_v28 = vsel %vm3286_vm8, %v6161_v41, %v3283_v50 }
 0x739   : > { %v3349_v5 = vmul.f32 %v3287_v28, %v7841_v4 }
 0x73a   : > { %v3241_v37 = vpop.xlane.xlu0 %3240 }
 0x73b   : > { %v3359_v26 = vmul.f32 %v8083_v0, %v3349_v5  ;;  %v3254_v10 = vmul.f32 %v3241_v37, %v6945_v19 }
 0x73d   : > { %v3368_v58 = vadd.f32 %v8088_v34, %v3359_v26  ;;  %v3262_v40 = vadd.f32 1e-06, %v3254_v10 }
 0x73f   : > { %6162 = vrsqrt.f32 %v3262_v40  ;;  %v3375_v8 = vpack.c.bf16 %v3368_v58, %v3367_v36  ;;  %vm3294_vm10 = vweird.f32 %v3262_v40 }
 0x741   : > { %3589 = vmatmul.bf16.vlgmr.msrb.gmra.mxu2 %v3375_v8  ;;  %3618 = vmatmul.bf16.vlgmr.msrb.gmra.mxu3 %v3375_v8 }
 0x742   : > { %3647 = vmatmul.bf16.vlgmr.msrb.gmra.mxu0 %v3375_v8  ;;  %3676 = vmatmul.bf16.vlgmr.msrb.gmra.mxu1 %v3375_v8  ;;  %v3243_v12 = vpop.xlane.xlu2 %3242 }
 0x743   : > { %v3255_v4 = vmul.f32 %v3243_v12, %v6945_v19 }
 0x745   : > { %v6163_v45 = vpop.eup %6162  ;;  %v3263_v30 = vadd.f32 1e-06, %v3255_v4 }
 0x746   : > { %v3289_v20 = vmul.f32 %v6163_v45, %v3262_v40  ;;  %vm3295_vm9 = vweird.f32 %v6163_v45 }
 0x747   : > { %6164 = vrsqrt.f32 %v3263_v30  ;;  %vm3296_vm11 = vmor %vm3294_vm10, %vm3295_vm9  ;;  %vm3304_vm13 = vweird.f32 %v3263_v30 }
 0x748   : > { %v3290_v7 = vmul.f32 %v6163_v45, %v3289_v20 }
 0x74a   : > { %v3291_v29 = vmul.f32 0.5, %v3290_v7  ;;  %v3245_v59 = vpop.xlane.xlu1 %3244 }
 0x74b   : > { %v3256_v51 = vmul.f32 %v3245_v59, %v6945_v19 }
 0x74c   : > { %v3292_v1 = vsub.f32 1.5, %v3291_v29 }
 0x74d   : > { %v6165_v25 = vpop.eup %6164  ;;  %v3264_v55 = vadd.f32 1e-06, %v3256_v51 }
 0x74e   : > { %v3293_v57 = vmul.f32 %v6163_v45, %v3292_v1  ;;  %v3299_v63 = vmul.f32 %v6165_v25, %v3263_v30  ;;  %vm3305_vm12 = vweird.f32 %v6165_v25 }
 0x74f   : > { %6166 = vrsqrt.f32 %v3264_v55  ;;  %vm3306_vm14 = vmor %vm3304_vm13, %vm3305_vm12  ;;  %vm3314_vm0 = vweird.f32 %v3264_v55 }
 0x750   : > { %v3300_v11 = vmul.f32 %v6165_v25, %v3299_v63  ;;  %v3297_v62 = vsel %vm3296_vm11, %v6163_v45, %v3293_v57 }
 0x751   : > { %v3350_v44 = vmul.f32 %v3297_v62, %v7851_v39 }
 0x752   : > { %v3301_v21 = vmul.f32 0.5, %v3300_v11  ;;  %v3247_v6 = vpop.xlane.xlu0 %3246 }
 0x753   : > { %v3257_v54 = vmul.f32 %v3247_v6, %v6945_v19  ;;  %v3360_v33 = vmul.f32 %v8083_v0, %v3350_v44  ;;  %v5742_v44 = vld [vmem:[#allocation15 + $0xb8] sm:$0xff] }
 0x754   : > { %v3302_v35 = vsub.f32 1.5, %v3301_v21  ;;  %4671 = vmatpush.bf16.msra.mxu0 %v5742_v44  ;;  %v5730_v44 = vld [vmem:[#allocation15 + $0x58] sm:$0xff] }
 0x755   : > { %v6167_v22 = vpop.eup %6166  ;;  %v3265_v17 = vadd.f32 1e-06, %v3257_v54  ;;  %v3369_v47 = vadd.f32 %v8088_v34, %v3360_v33 }
 0x756   : > { %v3303_v41 = vmul.f32 %v6165_v25, %v3302_v35  ;;  %v3309_v46 = vmul.f32 %v6167_v22, %v3264_v55  ;;  %vm3315_vm15 = vweird.f32 %v6167_v22 }
 0x757   : > { %6168 = vrsqrt.f32 %v3265_v17  ;;  %vm3316_vm1 = vmor %vm3314_vm0, %vm3315_vm15  ;;  %vm3324_vm3 = vweird.f32 %v3265_v17 }
 0x758   : > { %v3307_v14 = vsel %vm3306_vm14, %v6165_v25, %v3303_v41  ;;  %v3310_v16 = vmul.f32 %v6167_v22, %v3309_v46 }
 0x759   : > { %v3351_v27 = vmul.f32 %v3307_v14, %v7857_v32 }
 0x75a   : > { %v3311_v49 = vmul.f32 0.5, %v3310_v16 }
 0x75b   : > { %v3361_v52 = vmul.f32 %v8083_v0, %v3351_v27 }
 0x75c   : > { %v3312_v3 = vsub.f32 1.5, %v3311_v49 }
 0x75d   : > { %v6169_v43 = vpop.eup %6168  ;;  %v3370_v39 = vadd.f32 %v8088_v34, %v3361_v52 }
 0x75e   : > { %v3313_v50 = vmul.f32 %v6167_v22, %v3312_v3  ;;  %v3319_v13 = vmul.f32 %v6169_v43, %v3265_v17  ;;  %vm3325_vm2 = vweird.f32 %v6169_v43  ;;  %v5750_v17 = vld [vmem:[#allocation15 + $0xf8] sm:$0xff]  ;;  %v5749_v3 = vld [vmem:[#allocation15 + $0xf0] sm:$0xff] }
 0x75f   : > { %v3376_v28 = vpack.c.bf16 %v3370_v39, %v3369_v47  ;;  %vm3326_vm4 = vmor %vm3324_vm3, %vm3325_vm2  ;;  %4700 = vmatpush.bf16.msra.mxu1 %v5750_v17 }
 0x760   : > { %v3320_v42 = vmul.f32 %v6169_v43, %v3319_v13  ;;  %v3317_v32 = vsel %vm3316_vm1, %v6167_v22, %v3313_v50  ;;  %v5740_v13 = vld [vmem:[#allocation15 + $0xa8] sm:$0xff] }
 0x761   : > { %3594 = vmatmul.bf16.gmra.mxu2 %v3376_v28  ;;  %3623 = vmatmul.bf16.gmra.mxu3 %v3376_v28  ;;  %v3352_v26 = vmul.f32 %v3317_v32, %v7863_v61 }
 0x762   : > { %v3321_v5 = vmul.f32 0.5, %v3320_v42  ;;  %3652 = vmatmul.bf16.gmra.mxu0 %v3376_v28  ;;  %3681 = vmatmul.bf16.gmra.mxu1 %v3376_v28  ;;  %v5748_v28 = vld [vmem:[#allocation15 + $0xe8] sm:$0xff] }
 0x763   : > { %v3362_v40 = vmul.f32 %v8083_v0, %v3352_v26  ;;  %4701 = vmatpush.bf16.msra.mxu1 %v5749_v3  ;;  %v5725_v26 = vld [vmem:[#allocation15 + $0x30] sm:$0xff] }
 0x764   : > { %v3322_v37 = vsub.f32 1.5, %v3321_v5  ;;  %v5729_v3 = vld [vmem:[#allocation15 + $0x50] sm:$0xff] }
 0x765   : > { %v3371_v12 = vadd.f32 %v8088_v34, %v3362_v40  ;;  %v5739_v40 = vld [vmem:[#allocation15 + $0xa0] sm:$0xff] }
 0x766   : > { %v3323_v10 = vmul.f32 %v6169_v43, %v3322_v37 }
 0x767   : > { %4702 = vmatpush.bf16.msra.mxu1 %v5748_v28 }
 0x768   : > { %v3327_v36 = vsel %vm3326_vm4, %v6169_v43, %v3323_v10  ;;  %v5726_v43 = vld [vmem:[#allocation15 + $0x38] sm:$0xff]  ;;  %v5733_v10 = vld [vmem:[#allocation15 + $0x70] sm:$0xff] }
 0x769   : > { %v3353_v58 = vmul.f32 %v3327_v36, %v7869_v15  ;;  %4613 = vmatpush.bf16.msra.mxu2 %v5726_v43 }
 0x76b   : > { %v3363_v8 = vmul.f32 %v8083_v0, %v3353_v58 }
 0x76d   : > { %v3372_v4 = vadd.f32 %v8088_v34, %v3363_v8  ;;  %4614 = vmatpush.bf16.msra.mxu2 %v5725_v26  ;;  %v5747_v8 = vld [vmem:[#allocation15 + $0xe0] sm:$0xff] }
 0x76e   : > { %4703 = vmatpush.bf16.msra.mxu1 %v5747_v8  ;;  %v5743_v26 = vld [vmem:[#allocation15 + $0xc0] sm:$0xff] }
 0x76f   : > { %v3377_v45 = vpack.c.bf16 %v3372_v4, %v3371_v12 }
 0x771   : > { %3599 = vmatmul.bf16.gmra.mxu2 %v3377_v45  ;;  %3628 = vmatmul.bf16.gmra.mxu3 %v3377_v45 }
 0x772   : > { %3657 = vmatmul.bf16.gmra.mxu0 %v3377_v45  ;;  %3686 = vmatmul.bf16.gmra.mxu1 %v3377_v45  ;;  %v5724_v45 = vld [vmem:[#allocation15 + $0x28] sm:$0xff] }
 0x773   : > { %4615 = vmatpush.bf16.msra.mxu2 %v5724_v45  ;;  %v5720_v45 = vld [vmem:[#allocation15 + $0x8] sm:$0xff] }
 0x78b   : > { %v3251_v61 = vpop.xlane.xlu1 %3250 }
 0x78c   : > { %v3259_v30 = vmul.f32 %v3251_v61, %v6945_v19  ;;  %v5732_v61 = vld [vmem:[#allocation15 + $0x68] sm:$0xff] }
 0x78e   : > { %v3267_v20 = vadd.f32 1e-06, %v3259_v30 }
 0x790   : > { %6170 = vrsqrt.f32 %v3267_v20  ;;  %vm3344_vm6 = vweird.f32 %v3267_v20 }
 0x796   : > { %v6171_v7 = vpop.eup %6170 }
 0x797   : > { %v3339_v15 = vmul.f32 %v6171_v7, %v3267_v20  ;;  %vm3345_vm5 = vweird.f32 %v6171_v7 }
 0x798   : > { %vm3346_vm7 = vmor %vm3344_vm6, %vm3345_vm5 }
 0x799   : > { %v3340_v29 = vmul.f32 %v6171_v7, %v3339_v15 }
 0x79b   : > { %v3341_v25 = vmul.f32 0.5, %v3340_v29 }
 0x79c   : > { %v3249_v59 = vpop.xlane.xlu2 %3248 }
 0x79d   : > { %v3258_v51 = vmul.f32 %v3249_v59, %v6945_v19  ;;  %v3342_v55 = vsub.f32 1.5, %v3341_v25 }
 0x79f   : > { %v3266_v1 = vadd.f32 1e-06, %v3258_v51  ;;  %v3343_v63 = vmul.f32 %v6171_v7, %v3342_v55  ;;  %v5738_v51 = vld [vmem:[#allocation15 + $0x98] sm:$0xff] }
 0x7a1   : > { %6172 = vrsqrt.f32 %v3266_v1  ;;  %v3347_v21 = vsel %vm3346_vm7, %v6171_v7, %v3343_v63  ;;  %vm3334_vm9 = vweird.f32 %v3266_v1  ;;  %v5731_v63 = vld [vmem:[#allocation15 + $0x60] sm:$0xff] }
 0x7a2   : > { %v3355_v35 = vmul.f32 %v3347_v21, %v7995_v2  ;;  %v3411_v2 = vld [vmem:[#allocation14] sm:$0xf] }
 0x7a3   : > { %v8117_v49 = vperm.slane %v3411_v2, 2  ;;  %v8119_v52 = vperm.slane %v3411_v2, 3  ;;  %v8127_v42 = vperm.slane %v3411_v2, 0  ;;  %v8129_v32 = vperm.slane %v3411_v2, 1 }
 0x7a4   : > { %v3365_v46 = vmul.f32 %v8083_v0, %v3355_v35  ;;  %v5737_v35 = vld [vmem:[#allocation15 + $0x90] sm:$0xff] }
 0x7a6   : > { %v3374_v27 = vadd.f32 %v8088_v34, %v3365_v46 }
 0x7a7   : > { %v6173_v57 = vpop.eup %6172 }
 0x7a8   : > { %v3329_v11 = vmul.f32 %v6173_v57, %v3266_v1  ;;  %vm3335_vm8 = vweird.f32 %v6173_v57  ;;  %v5746_v1 = vld [vmem:[#allocation15 + $0xd8] sm:$0xff] }
 0x7a9   : > { %vm3336_vm10 = vmor %vm3334_vm9, %vm3335_vm8  ;;  %4704 = vmatpush.bf16.msra.mxu1 %v5746_v1 }
 0x7aa   : > { %v3330_v62 = vmul.f32 %v6173_v57, %v3329_v11 }
 0x7ac   : > { %v3331_v6 = vmul.f32 0.5, %v3330_v62 }
 0x7ae   : > { %v3332_v54 = vsub.f32 1.5, %v3331_v6 }
 0x7b0   : > { %v3333_v22 = vmul.f32 %v6173_v57, %v3332_v54 }
 0x7b2   : > { %v3337_v19 = vsel %vm3336_vm10, %v6173_v57, %v3333_v22  ;;  %v5723_v57 = vld [vmem:[#allocation15 + $0x20] sm:$0xff]  ;;  %v5745_v22 = vld [vmem:[#allocation15 + $0xd0] sm:$0xff] }
 0x7b3   : > { %v3354_v41 = vmul.f32 %v3337_v19, %v8075_v48  ;;  %v5741_v48 = vld [vmem:[#allocation15 + $0xb0] sm:$0xff]  ;;  %4616 = vmatpush.bf16.msra.mxu2 %v5723_v57  ;;  %4705 = vmatpush.bf16.msra.mxu1 %v5745_v22  ;;  %v5722_v19 = vld [vmem:[#allocation15 + $0x18] sm:$0xff] }
 0x7b4   : > { %4672 = vmatpush.bf16.msra.mxu0 %v5741_v48  ;;  %v5721_v48 = vld [vmem:[#allocation15 + $0x10] sm:$0xff] }
 0x7b5   : > { %v3364_v14 = vmul.f32 %v8083_v0, %v3354_v41  ;;  %v5734_v0 = vld [vmem:[#allocation15 + $0x78] sm:$0xff] }
 0x7b6   : > { %4642 = vmatpush.bf16.msra.mxu3 %v5734_v0 }
 0x7b7   : > { %v3373_v16 = vadd.f32 %v8088_v34, %v3364_v14  ;;  %4617 = vmatpush.bf16.msra.mxu2 %v5722_v19 }
 0x7b8   : > { %4673 = vmatpush.bf16.msra.mxu0 %v5740_v13 }
 0x7b9   : > { %v3378_v33 = vpack.c.bf16 %v3374_v27, %v3373_v16  ;;  %v5736_v16 = vld [vmem:[#allocation15 + $0x88] sm:$0xff] }
 0x7ba   : > { %4643 = vmatpush.bf16.msra.mxu3 %v5733_v10  ;;  %v5744_v27 = vld [vmem:[#allocation15 + $0xc8] sm:$0xff] }
 0x7bb   : > { %3604 = vmatmul.bf16.gmra.mxu2 %v3378_v33  ;;  %3633 = vmatmul.bf16.gmra.mxu3 %v3378_v33 }
 0x7bc   : > { %3662 = vmatmul.bf16.gmra.mxu0 %v3378_v33  ;;  %3691 = vmatmul.bf16.gmra.mxu1 %v3378_v33 }
 0x7bd   : > { %4674 = vmatpush.bf16.msra.mxu0 %v5739_v40  ;;  %4706 = vmatpush.bf16.msra.mxu1 %v5744_v27 }
 0x7be   : > { %4644 = vmatpush.bf16.msra.mxu3 %v5732_v61  ;;  %4618 = vmatpush.bf16.msra.mxu2 %v5721_v48  ;;  %v5728_v61 = vld [vmem:[#allocation15 + $0x48] sm:$0xff] }
 0x7bf   : > { %v3648_v47 = vpop.f32.mrf.mxu0  ;;  %v3677_v39 = vpop.f32.mrf.mxu1 }
 0x7c0   : > { %v8122_v34 = vadd.f32 %v3648_v47, %v8117_v49  ;;  %v8125_v50 = vadd.f32 %v3677_v39, %v8119_v52 }
 0x7c1   : > { %4675 = vmatpush.bf16.msra.mxu0 %v5738_v51  ;;  %4707 = vmatpush.bf16.msra.mxu1 %v5743_v26  ;;  %v5719_v26 = vld [vmem:[#allocation15] sm:$0xff] }
 0x7c2   : > { %v5439_v5 = vmul.f32 -1.442695, %v8122_v34  ;;  %v5440_v37 = vmul.f32 -1.442695, %v8125_v50  ;;  %4645 = vmatpush.bf16.msra.mxu3 %v5731_v63  ;;  %4619 = vmatpush.bf16.msra.mxu2 %v5720_v45 }
 0x7c4   : > { %6174 = vpow2.f32 %v5439_v5  ;;  %v3590_v36 = vpop.f32.mrf.mxu2  ;;  %v3619_v58 = vpop.f32.mrf.mxu3 }
 0x7c5   : > { %6176 = vpow2.f32 %v5440_v37  ;;  %v8134_v12 = vadd.f32 %v3590_v36, %v8127_v42  ;;  %v8137_v4 = vadd.f32 %v3619_v58, %v8129_v32  ;;  %4676 = vmatpush.bf16.msra.mxu0 %v5737_v35  ;;  %v5735_v37 = vld [vmem:[#allocation15 + $0x80] sm:$0xff] }
 0x7c6   : > { %4646 = vmatpush.bf16.msra.mxu3 %v5730_v44  ;;  %4620 = vmatpush.bf16.msra.mxu2 %v5719_v26 }
 0x7c7   : > { %v5437_v30 = vmul.f32 -1.442695, %v8134_v12  ;;  %v5438_v20 = vmul.f32 -1.442695, %v8137_v4  ;;  %v3650_v7 = vpop.f32.mrf.mxu0  ;;  %v3679_v15 = vpop.f32.mrf.mxu1 }
 0x7c8   : > { %v8142_v29 = vadd.f32 %v3650_v7, %v8117_v49  ;;  %v8145_v59 = vadd.f32 %v3679_v15, %v8119_v52 }
 0x7c9   : > { %6178 = vpow2.f32 %v5437_v30  ;;  %4677 = vmatpush.bf16.msra.mxu0 %v5736_v16 }
 0x7ca   : > { %v6175_v25 = vpop.eup %6174  ;;  %6180 = vpow2.f32 %v5438_v20  ;;  %v5443_v55 = vmul.f32 -1.442695, %v8142_v29  ;;  %v5444_v21 = vmul.f32 -1.442695, %v8145_v59  ;;  %4647 = vmatpush.bf16.msra.mxu3 %v5729_v3 }
 0x7cb   : > { %v6177_v11 = vpop.eup %6176  ;;  %v8148_v62 = vadd.f32 1.0, %v6175_v25 }
 0x7cc   : > { %v8151_v6 = vadd.f32 1.0, %v6177_v11  ;;  %6182 = vpow2.f32 %v5443_v55  ;;  %v3592_v54 = vpop.f32.mrf.mxu2  ;;  %v3621_v5 = vpop.f32.mrf.mxu3 }
 0x7cd   : > { %6184 = vrcp.f32 %v8148_v62  ;;  %v8156_v41 = vadd.f32 %v3592_v54, %v8127_v42  ;;  %v3864_v36 = vand.u32 2147483647, %v8148_v62  ;;  %4678 = vmatpush.bf16.msra.mxu0 %v5735_v37  ;;  %v3866_v20 = vand.u32 2147483648, %v8148_v62 }
 0x7ce   : > { %6186 = vrcp.f32 %v8151_v6  ;;  %v8182_v7 = vadd.f32 %v3621_v5, %v8129_v32  ;;  %v3879_v51 = vand.u32 2147483647, %v8151_v6  ;;  %v3881_v1 = vand.u32 2147483648, %v8151_v6  ;;  %4648 = vmatpush.bf16.msra.mxu3 %v5728_v61 }
 0x7cf   : > { %v6179_v17 = vpop.eup %6178  ;;  %6188 = vpow2.f32 %v5444_v21  ;;  %v5441_v0 = vmul.f32 -1.442695, %v8156_v41  ;;  %vm3860_vm11 = vweird.f32 %v8148_v62  ;;  %vm8189_vm12 = vcmp.eq.f32.partialorder %v3864_v36, 8.507059e+37 }
 0x7d0   : > { %v6181_v46 = vpop.eup %6180  ;;  %v8158_v14 = vadd.f32 1.0, %v6179_v17  ;;  %vm3875_vm13 = vweird.f32 %v8151_v6  ;;  %v3867_v21 = vor.u32 1.1754944e-38, %v3866_v20  ;;  %v5442_v22 = vmul.f32 -1.442695, %v8182_v7 }
 0x7d1   : > { %v8160_v33 = vadd.f32 1.0, %v6181_v46  ;;  %vm8205_vm15 = vcmp.eq.f32.partialorder %v3879_v51, 8.507059e+37  ;;  %v3882_v17 = vor.u32 1.1754944e-38, %v3881_v1 }
 0x7d2   : > { %v6183_v2 = vpop.eup %6182  ;;  %6190 = vrcp.f32 %v8158_v14  ;;  %v3836_v55 = vand.u32 2147483648, %v8158_v14  ;;  %v3834_v46 = vand.u32 2147483647, %v8158_v14  ;;  %vm3830_vm6 = vweird.f32 %v8158_v14 }
 0x7d3   : > { %v8162_v43 = vpop.eup %6184  ;;  %6192 = vrcp.f32 %v8160_v33  ;;  %v8174_v58 = vadd.f32 1.0, %v6183_v2  ;;  %v3849_v16 = vand.u32 2147483647, %v8160_v33 }
 0x7d4   : > { %v8166_v47 = vpop.eup %6186  ;;  %v3856_v39 = vmul.f32 %v8162_v43, %v8148_v62  ;;  %6194 = vpow2.f32 %v5441_v0  ;;  %vm3861_vm14 = vweird.f32 %v8162_v43  ;;  %v8219_v3 = vor.u32 1.1754944e-38, %v3836_v55 }
 0x7d5   : > { %v6189_v13 = vpop.eup %6188  ;;  %v3871_v28 = vmul.f32 %v8166_v47, %v8151_v6  ;;  %6196 = vrcp.f32 %v8174_v58  ;;  %v3924_v35 = vand.u32 2147483647, %v8174_v58  ;;  %v3926_v27 = vand.u32 2147483648, %v8174_v58  ;;  %vm8214_vm0 = vmor %vm3860_vm11, %vm3861_vm14 }
 0x7d6   : > { %v3857_v10 = vsub.f32 1.0, %v3856_v39  ;;  %v8176_v8 = vadd.f32 1.0, %v6189_v13  ;;  %vm3876_vm1 = vweird.f32 %v8166_v47  ;;  %v3851_v39 = vand.u32 2147483648, %v8160_v33 }
 0x7d7   : > { %v3872_v40 = vsub.f32 1.0, %v3871_v28  ;;  %vm3920_vm2 = vweird.f32 %v8174_v58  ;;  %vm8231_vm4 = vcmp.eq.f32.partialorder %v3924_v35, 8.507059e+37  ;;  %vm8249_vm5 = vmor %vm3875_vm13, %vm3876_vm1  ;;  %vm8268_vm9 = vcmp.eq.f32.partialorder %v3834_v46, 8.507059e+37 }
 0x7d8   : > { %v3858_v30 = vmul.f32 %v8162_v43, %v3857_v10  ;;  %v8184_v15 = vpop.eup %6190  ;;  %6198 = vrcp.f32 %v8176_v8  ;;  %v5727_v10 = vld [vmem:[#allocation15 + $0x40] sm:$0xff]  ;;  %vm3935_vm7 = vweird.f32 %v8176_v8  ;;  %v3939_v35 = vand.u32 2147483647, %v8176_v8 }
 0x7d9   : > { %v8195_v57 = vpop.eup %6192  ;;  %v3873_v11 = vmul.f32 %v8166_v47, %v3872_v40  ;;  %v3826_v54 = vmul.f32 %v8184_v15, %v8158_v14  ;;  %vm3831_vm3 = vweird.f32 %v8184_v15  ;;  %6200 = vpow2.f32 %v5442_v22  ;;  %4649 = vmatpush.bf16.msra.mxu3 %v5727_v10 }
 0x7da   : > { %v3859_v63 = vadd.f32 %v8162_v43, %v3858_v30  ;;  %v6195_v19 = vpop.eup %6194  ;;  %v3841_v0 = vmul.f32 %v8195_v57, %v8160_v33  ;;  %v3927_v30 = vor.u32 1.1754944e-38, %v3926_v27  ;;  %v3941_v22 = vand.u32 2147483648, %v8176_v8 }
 0x7db   : > { %v6197_v2 = vpop.eup %6196  ;;  %v3874_v28 = vadd.f32 %v8166_v47, %v3873_v11  ;;  %v3827_v36 = vsub.f32 1.0, %v3826_v54  ;;  %v8235_v45 = vadd.f32 1.0, %v6195_v19  ;;  %vm3846_vm14 = vweird.f32 %v8195_v57 }
 0x7dc   : > { %v3863_v13 = vsel %vm8214_vm0, %v8162_v43, %v3859_v63  ;;  %v3916_v62 = vmul.f32 %v6197_v2, %v8174_v58  ;;  %v3842_v63 = vsub.f32 1.0, %v3841_v0  ;;  %vm3921_vm8 = vweird.f32 %v6197_v2  ;;  %vm8296_vm0 = vmor %vm3830_vm6, %vm3831_vm3 }
 0x7dd   : > { %v3868_v1 = vsel %vm8189_vm12, %v3867_v21, %v3863_v13  ;;  %v3878_v25 = vsel %vm8249_vm5, %v8166_v47, %v3874_v28  ;;  %6202 = vrcp.f32 %v8235_v45  ;;  %v3828_v6 = vmul.f32 %v8184_v15, %v3827_v36  ;;  %vm3922_vm10 = vmor %vm3920_vm2, %vm3921_vm8 }
 0x7de   : > { %v6199_v43 = vpop.eup %6198  ;;  %v3917_v61 = vsub.f32 1.0, %v3916_v62  ;;  %v4307_v27 = vmul.f32 %v3868_v1, %v8122_v34  ;;  %v3883_v28 = vsel %vm8205_vm15, %v3882_v17, %v3878_v25  ;;  %vm3845_vm12 = vweird.f32 %v8160_v33 }
 0x7df   : > { %v3653_v5 = vpop.f32.mrf.mxu0  ;;  %v3682_v37 = vpop.f32.mrf.mxu1  ;;  %v3931_v11 = vmul.f32 %v6199_v43, %v8176_v8  ;;  %vm3936_vm11 = vweird.f32 %v6199_v43  ;;  %v3829_v44 = vadd.f32 %v8184_v15, %v3828_v6  ;;  %v3942_v1 = vor.u32 1.1754944e-38, %v3941_v22  ;;  %vm8333_vm3 = vmor %vm3845_vm12, %vm3846_vm14 }
 0x7e0   : > { %v8238_v20 = vadd.f32 %v3653_v5, %v8117_v49  ;;  %v8241_v51 = vadd.f32 %v3682_v37, %v8119_v52  ;;  %v3918_v21 = vmul.f32 %v6197_v2, %v3917_v61  ;;  %v6201_v47 = vpop.eup %6200  ;;  %v3843_v37 = vmul.f32 %v8195_v57, %v3842_v63  ;;  %vm3937_vm13 = vmor %vm3935_vm7, %vm3936_vm11 }
 0x7e1   : > { %v3932_v54 = vsub.f32 1.0, %v3931_v11  ;;  %v8279_v10 = vadd.f32 1.0, %v6201_v47  ;;  %vm3940_vm15 = vcmp.eq.f32.partialorder %v3939_v35, 8.507059e+37  ;;  %v4308_v63 = vmul.f32 %v3883_v28, %v8125_v50 }
 0x7e2   : > { %v3919_v48 = vadd.f32 %v6197_v2, %v3918_v21  ;;  %v5447_v0 = vmul.f32 -1.442695, %v8238_v20  ;;  %v5448_v13 = vmul.f32 -1.442695, %v8241_v51  ;;  %v3844_v21 = vadd.f32 %v8195_v57, %v3843_v37 }
 0x7e3   : > { %v3933_v5 = vmul.f32 %v6199_v43, %v3932_v54  ;;  %v6203_v36 = vpop.eup %6202  ;;  %vm8309_vm1 = vcmp.eq.f32.partialorder %v3849_v16, 8.507059e+37  ;;  %v3894_v35 = vand.u32 2147483647, %v8235_v45  ;;  %v3896_v22 = vand.u32 2147483648, %v8235_v45 }
 0x7e4   : > { %v3595_v19 = vpop.f32.mrf.mxu2  ;;  %v3923_v26 = vsel %vm3922_vm10, %v6197_v2, %v3919_v48  ;;  %6204 = vpow2.f32 %v5447_v0  ;;  %v3624_v46 = vpop.f32.mrf.mxu3  ;;  %v3886_v40 = vmul.f32 %v6203_v36, %v8235_v45  ;;  %vm3891_vm2 = vweird.f32 %v6203_v36 }
 0x7e5   : > { %v8275_v34 = vadd.f32 %v3595_v19, %v8127_v42  ;;  %v3928_v17 = vsel %vm8231_vm4, %v3927_v30, %v3923_v26  ;;  %v3934_v58 = vadd.f32 %v6199_v43, %v3933_v5  ;;  %6206 = vpow2.f32 %v5448_v13 }
 0x7e6   : > { %v4311_v61 = vmul.f32 %v3928_v17, %v8142_v29  ;;  %6208 = vrcp.f32 %v8279_v10  ;;  %v8301_v25 = vadd.f32 %v3624_v46, %v8129_v32  ;;  %v3887_v6 = vsub.f32 1.0, %v3886_v40 }
 0x7e7   : > { %v5445_v2 = vmul.f32 -1.442695, %v8275_v34  ;;  %v3938_v55 = vsel %vm3937_vm13, %v6199_v43, %v3934_v58  ;;  %v3655_v30 = vpop.f32.mrf.mxu0  ;;  %v3833_v43 = vsel %vm8296_vm0, %v8184_v15, %v3829_v44  ;;  %v3852_v13 = vor.u32 1.1754944e-38, %v3851_v39  ;;  %v3684_v39 = vpop.f32.mrf.mxu1 }
 0x7e8   : > { %v4339_v8 = vpack.c.bf16 %v4311_v61, %v4307_v27  ;;  %v3943_v11 = vsel %vm3940_vm15, %v3942_v1, %v3938_v55  ;;  %v8317_v19 = vadd.f32 %v3655_v30, %v8117_v49  ;;  %v3888_v48 = vmul.f32 %v6203_v36, %v3887_v6 }
 0x7e9   : > { %v4312_v14 = vmul.f32 %v3943_v11, %v8145_v59  ;;  %6210 = vpow2.f32 %v5445_v2  ;;  %v3838_v59 = vsel %vm8268_vm9, %v8219_v3, %v3833_v43  ;;  %v5446_v28 = vmul.f32 -1.442695, %v8301_v25 }
 0x7ea   : > { %v6205_v54 = vpop.eup %6204  ;;  %4679 = vmatmul.bf16.vlgmr.msra.gmra.mxu0 %v4339_v8  ;;  %v3889_v37 = vadd.f32 %v6203_v36, %v3888_v48  ;;  %vm3890_vm4 = vweird.f32 %v8235_v45  ;;  %v3848_v62 = vsel %vm8333_vm3, %v8195_v57, %v3844_v21  ;;  %v3897_v33 = vor.u32 1.1754944e-38, %v3896_v22 }
 0x7eb   : > { %v6207_v15 = vpop.eup %6206  ;;  %v4340_v27 = vpack.c.bf16 %v4312_v14, %v4308_v63  ;;  %v8319_v16 = vadd.f32 1.0, %v6205_v54  ;;  %vm3892_vm5 = vmor %vm3890_vm4, %vm3891_vm2  ;;  %v5451_v26 = vmul.f32 -1.442695, %v8317_v19  ;;  %v4305_v44 = vmul.f32 %v3838_v59, %v8134_v12 }
 0x7ec   : > { %v6209_v0 = vpop.eup %6208  ;;  %v8326_v47 = vadd.f32 1.0, %v6207_v15  ;;  %v3893_v45 = vsel %vm3892_vm5, %v6203_v36, %v3889_v37  ;;  %vm3895_vm6 = vcmp.eq.f32.partialorder %v3894_v35, 8.507059e+37  ;;  %v3911_v61 = vand.u32 2147483648, %v8279_v10  ;;  %v3597_v43 = vpop.f32.mrf.mxu2 }
 0x7ed   : > { %v3901_v3 = vmul.f32 %v6209_v0, %v8279_v10  ;;  %6212 = vrcp.f32 %v8319_v16  ;;  %4708 = vmatmul.bf16.vlgmr.msra.gmra.mxu1 %v4340_v27  ;;  %v3898_v46 = vsel %vm3895_vm6, %v3897_v33, %v3893_v45  ;;  %v8349_v1 = vadd.f32 %v3684_v39, %v8119_v52  ;;  %v3626_v50 = vpop.f32.mrf.mxu3 }
 0x7ee   : > { %6214 = vrcp.f32 %v8326_v47  ;;  %v4309_v57 = vmul.f32 %v3898_v46, %v8156_v41  ;;  %vm3906_vm7 = vweird.f32 %v6209_v0  ;;  %v3909_v55 = vand.u32 2147483647, %v8279_v10 }
 0x7ef   : > { %v3902_v17 = vsub.f32 1.0, %v3901_v3  ;;  %v6211_v58 = vpop.eup %6210  ;;  %6216 = vpow2.f32 %v5446_v28  ;;  %v3853_v12 = vsel %vm8309_vm1, %v3852_v13, %v3848_v62  ;;  %vm3905_vm8 = vweird.f32 %v8279_v10  ;;  %v3658_v62 = vpop.f32.mrf.mxu0 }
 0x7f0   : > { %6218 = vpow2.f32 %v5451_v26  ;;  %v4337_v40 = vpack.c.bf16 %v4309_v57, %v4305_v44  ;;  %v8358_v63 = vadd.f32 1.0, %v6211_v58  ;;  %vm3907_vm9 = vmor %vm3905_vm8, %vm3906_vm7  ;;  %v3912_v41 = vor.u32 1.1754944e-38, %v3911_v61 }
 0x7f1   : > { %v3903_v2 = vmul.f32 %v6209_v0, %v3902_v17  ;;  %v5452_v11 = vmul.f32 -1.442695, %v8349_v1  ;;  %vm3910_vm10 = vcmp.eq.f32.partialorder %v3909_v55, 8.507059e+37  ;;  %v4306_v6 = vmul.f32 %v3853_v12, %v8137_v4 }
 0x7f2   : > { %4621 = vmatmul.bf16.vlgmr.msra.gmra.mxu2 %v4337_v40  ;;  %6220 = vrcp.f32 %v8358_v63  ;;  %v8371_v22 = vadd.f32 %v3597_v43, %v8127_v42  ;;  %v8374_v48 = vadd.f32 %v3626_v50, %v8129_v32  ;;  %v3984_v3 = vand.u32 2147483647, %v8319_v16 }
 0x7f3   : > { %v8355_v36 = vpop.eup %6212  ;;  %v3904_v30 = vadd.f32 %v6209_v0, %v3903_v2  ;;  %6222 = vpow2.f32 %v5452_v11  ;;  %v3986_v39 = vand.u32 2147483648, %v8319_v16  ;;  %vm3980_vm11 = vweird.f32 %v8319_v16  ;;  %v3687_v11 = vpop.f32.mrf.mxu1 }
 0x7f4   : > { %v8360_v29 = vpop.eup %6214  ;;  %v3976_v8 = vmul.f32 %v8355_v36, %v8319_v16  ;;  %v5449_v13 = vmul.f32 -1.442695, %v8371_v22  ;;  %v5450_v5 = vmul.f32 -1.442695, %v8374_v48  ;;  %vm3995_vm12 = vweird.f32 %v8326_v47 }
 0x7f5   : > { %v3908_v21 = vsel %vm3907_vm9, %v6209_v0, %v3904_v30  ;;  %v6217_v14 = vpop.eup %6216  ;;  %v3991_v35 = vmul.f32 %v8360_v29, %v8326_v47  ;;  %v3999_v26 = vand.u32 2147483647, %v8326_v47  ;;  %v4001_v44 = vand.u32 2147483648, %v8326_v47 }
 0x7f6   : > { %v3913_v10 = vsel %vm3910_vm10, %v3912_v41, %v3908_v21  ;;  %v6219_v15 = vpop.eup %6218  ;;  %v3977_v27 = vsub.f32 1.0, %v3976_v8  ;;  %v8376_v59 = vadd.f32 1.0, %v6217_v14  ;;  %v3956_v17 = vand.u32 2147483648, %v8358_v63 }
 0x7f7   : > { %v4310_v54 = vmul.f32 %v3913_v10, %v8182_v7  ;;  %v8378_v4 = vadd.f32 1.0, %v6219_v15  ;;  %v3992_v7 = vsub.f32 1.0, %v3991_v35  ;;  %vm3981_vm13 = vweird.f32 %v8355_v36  ;;  %v3600_v35 = vpop.f32.mrf.mxu2 }
 0x7f8   : > { %v3978_v28 = vmul.f32 %v8355_v36, %v3977_v27  ;;  %v8384_v37 = vpop.eup %6220  ;;  %v8400_v61 = vadd.f32 %v3658_v62, %v8117_v49  ;;  %vm8402_vm14 = vcmp.eq.f32.partialorder %v3984_v3, 8.507059e+37  ;;  %v3987_v55 = vor.u32 1.1754944e-38, %v3986_v39  ;;  %vm8421_vm0 = vmor %vm3980_vm11, %vm3981_vm13  ;;  %v3629_v39 = vpop.f32.mrf.mxu3 }
 0x7f9   : > { %v4338_v0 = vpack.c.bf16 %v4310_v54, %v4306_v6  ;;  %6224 = vrcp.f32 %v8378_v4  ;;  %v6223_v33 = vpop.eup %6222  ;;  %v3993_v45 = vmul.f32 %v8360_v29, %v3992_v7  ;;  %v8408_v12 = vmul.f32 %v8384_v37, %v8358_v63 }
 0x7fa   : > { %6226 = vrcp.f32 %v8376_v59  ;;  %v8395_v58 = vadd.f32 1.0, %v6223_v33  ;;  %v3979_v46 = vadd.f32 %v8355_v36, %v3978_v28  ;;  %vm8411_vm15 = vcmp.eq.f32.partialorder %v3999_v26, 8.507059e+37 }
 0x7fb   : > { %4650 = vmatmul.bf16.vlgmr.msra.gmra.mxu3 %v4338_v0  ;;  %6228 = vpow2.f32 %v5449_v13  ;;  %v4002_v30 = vor.u32 1.1754944e-38, %v4001_v44  ;;  %v3954_v41 = vand.u32 2147483647, %v8358_v63  ;;  %v3994_v50 = vadd.f32 %v8360_v29, %v3993_v45 }
 0x7fc   : > { %6230 = vpow2.f32 %v5450_v5  ;;  %vm3996_vm1 = vweird.f32 %v8360_v29  ;;  %v8427_v14 = vor.u32 1.1754944e-38, %v3956_v17  ;;  %v5455_v6 = vmul.f32 -1.442695, %v8400_v61 }
 0x7fd   : > { %6232 = vrcp.f32 %v8395_v58  ;;  %v3983_v10 = vsel %vm8421_vm0, %v8355_v36, %v3979_v46  ;;  %vm4040_vm2 = vweird.f32 %v8378_v4  ;;  %v4044_v16 = vand.u32 2147483647, %v8378_v4  ;;  %vm8442_vm3 = vmor %vm3995_vm12, %vm3996_vm1  ;;  %v3660_v46 = vpop.f32.mrf.mxu0 }
 0x7fe   : > { %v3947_v27 = vsub.f32 1.0, %v8408_v12  ;;  %v4046_v0 = vand.u32 2147483648, %v8378_v4  ;;  %6234 = vpow2.f32 %v5455_v6  ;;  %v8438_v7 = vadd.f32 %v3687_v11, %v8119_v52 }
 0x7ff   : > { %v6225_v57 = vpop.eup %6224  ;;  %v3988_v33 = vsel %vm8402_vm14, %v3987_v55, %v3983_v10  ;;  %v3998_v47 = vsel %vm8442_vm3, %v8360_v29, %v3994_v50  ;;  %v8458_v44 = vadd.f32 %v3600_v35, %v8127_v42  ;;  %vm4045_vm5 = vcmp.eq.f32.partialorder %v4044_v16, 8.507059e+37 }
 0x800   : > { %v4036_v8 = vmul.f32 %v6225_v57, %v8378_v4  ;;  %v8417_v43 = vpop.eup %6226  ;;  %vm4041_vm4 = vweird.f32 %v6225_v57  ;;  %v4047_v2 = vor.u32 1.1754944e-38, %v4046_v0  ;;  %v5456_v29 = vmul.f32 -1.442695, %v8438_v7 }
 0x801   : > { %v6229_v15 = vpop.eup %6228  ;;  %v3961_v28 = vmul.f32 %v8417_v43, %v8376_v59  ;;  %vm4042_vm6 = vmor %vm4040_vm2, %vm4041_vm4  ;;  %v8467_v55 = vadd.f32 %v3629_v39, %v8129_v32  ;;  %v4315_v12 = vmul.f32 %v3988_v33, %v8238_v20  ;;  %v4061_v21 = vand.u32 2147483648, %v8395_v58  ;;  %v3689_v20 = vpop.f32.mrf.mxu1 }
 0x802   : > { %v4037_v54 = vsub.f32 1.0, %v4036_v8  ;;  %v6231_v13 = vpop.eup %6230  ;;  %v8448_v3 = vadd.f32 1.0, %v6229_v15  ;;  %v4003_v6 = vsel %vm8411_vm15, %v4002_v30, %v3998_v47  ;;  %v5453_v10 = vmul.f32 -1.442695, %v8458_v44 }
 0x803   : > { %v6233_v62 = vpop.eup %6232  ;;  %v8455_v26 = vadd.f32 1.0, %v6231_v13  ;;  %v4059_v35 = vand.u32 2147483647, %v8395_v58  ;;  %vm4055_vm8 = vweird.f32 %v8395_v58  ;;  %v5454_v40 = vmul.f32 -1.442695, %v8467_v55 }
 0x804   : > { %v4038_v5 = vmul.f32 %v6225_v57, %v4037_v54  ;;  %v4051_v17 = vmul.f32 %v6233_v62, %v8395_v58  ;;  %6236 = vrcp.f32 %v8448_v3  ;;  %v6235_v50 = vpop.eup %6234  ;;  %v8475_v54 = vadd.f32 %v3660_v46, %v8117_v49 }
 0x805   : > { %6238 = vrcp.f32 %v8455_v26  ;;  %vm4056_vm7 = vweird.f32 %v6233_v62  ;;  %v8478_v15 = vadd.f32 1.0, %v6235_v50  ;;  %vm3950_vm9 = vweird.f32 %v8358_v63 }
 0x806   : > { %v4039_v45 = vadd.f32 %v6225_v57, %v4038_v5  ;;  %v4052_v11 = vsub.f32 1.0, %v4051_v17  ;;  %6240 = vpow2.f32 %v5456_v29  ;;  %v4062_v36 = vor.u32 1.1754944e-38, %v4061_v21  ;;  %vm4057_vm10 = vmor %vm4055_vm8, %vm4056_vm7 }
 0x807   : > { %6242 = vrcp.f32 %v8478_v15  ;;  %v8494_v39 = vadd.f32 %v3689_v20, %v8119_v52  ;;  %v3948_v33 = vmul.f32 %v8384_v37, %v3947_v27  ;;  %vm4060_vm11 = vcmp.eq.f32.partialorder %v4059_v35, 8.507059e+37  ;;  %v3602_v35 = vpop.f32.mrf.mxu2 }
 0x808   : > { %v4043_v8 = vsel %vm4042_vm6, %v6225_v57, %v4039_v45  ;;  %v4053_v16 = vmul.f32 %v6233_v62, %v4052_v11  ;;  %v3962_v57 = vsub.f32 1.0, %v3961_v28  ;;  %6244 = vpow2.f32 %v5453_v10 }
 0x809   : > { %v4048_v4 = vsel %vm4045_vm5, %v4047_v2, %v4043_v8  ;;  %v5459_v28 = vmul.f32 -1.442695, %v8475_v54  ;;  %6246 = vpow2.f32 %v5454_v40  ;;  %v4316_v2 = vmul.f32 %v4003_v6, %v8241_v51 }
 0x80a   : > { %v8482_v30 = vpop.eup %6236  ;;  %v4319_v0 = vmul.f32 %v4048_v4, %v8317_v19  ;;  %v4054_v13 = vadd.f32 %v6233_v62, %v4053_v16  ;;  %v3963_v45 = vmul.f32 %v8417_v43, %v3962_v57  ;;  %vm3965_vm12 = vweird.f32 %v8376_v59 }
 0x80b   : > { %v8487_v5 = vpop.eup %6238  ;;  %v4006_v58 = vmul.f32 %v8482_v30, %v8448_v3  ;;  %6248 = vpow2.f32 %v5459_v28  ;;  %vm3951_vm13 = vweird.f32 %v8384_v37  ;;  %v3969_v4 = vand.u32 2147483647, %v8376_v59 }
 0x80c   : > { %v4058_v19 = vsel %vm4057_vm10, %v6233_v62, %v4054_v13  ;;  %v4021_v47 = vmul.f32 %v8487_v5, %v8455_v26  ;;  %v6241_v11 = vpop.eup %6240  ;;  %v5460_v62 = vmul.f32 -1.442695, %v8494_v39  ;;  %v4343_v21 = vpack.c.bf16 %v4319_v0, %v4315_v12  ;;  %vm8530_vm1 = vmor %vm3950_vm9, %vm3951_vm13 }
 0x80d   : > { %v4063_v17 = vsel %vm4060_vm11, %v4062_v36, %v4058_v19  ;;  %v4007_v46 = vsub.f32 1.0, %v4006_v58  ;;  %v8505_v50 = vpop.eup %6242  ;;  %v8509_v10 = vadd.f32 1.0, %v6241_v11  ;;  %vm8514_vm14 = vcmp.eq.f32.partialorder %v3954_v41, 8.507059e+37 }
 0x80e   : > { %v4320_v29 = vmul.f32 %v4063_v17, %v8349_v1  ;;  %v4022_v8 = vsub.f32 1.0, %v4021_v47  ;;  %v6245_v6 = vpop.eup %6244  ;;  %v3949_v1 = vadd.f32 %v8384_v37, %v3948_v33  ;;  %v3964_v12 = vadd.f32 %v8417_v43, %v3963_v45  ;;  %4684 = vmatmul.bf16.gmra.mxu0 %v4343_v21 }
 0x80f   : > { %v4008_v27 = vmul.f32 %v8482_v30, %v4007_v46  ;;  %vm3966_vm15 = vweird.f32 %v8417_v43  ;;  %vm4011_vm0 = vweird.f32 %v8482_v30  ;;  %v4096_v40 = vmul.f32 %v8505_v50, %v8478_v15  ;;  %v6247_v41 = vpop.eup %6246  ;;  %v3631_v46 = vpop.f32.mrf.mxu3 }
 0x810   : > { %v4344_v51 = vpack.c.bf16 %v4320_v29, %v4316_v2  ;;  %v4023_v57 = vmul.f32 %v8487_v5, %v4022_v8  ;;  %6250 = vrcp.f32 %v8509_v10  ;;  %v3971_v13 = vand.u32 2147483648, %v8376_v59  ;;  %vm8542_vm2 = vmor %vm3965_vm12, %vm3966_vm15 }
 0x811   : > { %v4009_v20 = vadd.f32 %v8482_v30, %v4008_v27  ;;  %v4016_v36 = vand.u32 2147483648, %v8448_v3  ;;  %v8536_v58 = vadd.f32 1.0, %v6245_v6  ;;  %6252 = vpow2.f32 %v5460_v62  ;;  %v6249_v47 = vpop.eup %6248 }
 0x812   : > { %4713 = vmatmul.bf16.gmra.mxu1 %v4344_v51  ;;  %vm8546_vm3 = vcmp.eq.f32.partialorder %v3969_v4, 8.507059e+37  ;;  %vm4010_vm4 = vweird.f32 %v8448_v3  ;;  %v4014_v33 = vand.u32 2147483647, %v8448_v3  ;;  %v8553_v19 = vadd.f32 %v3602_v35, %v8127_v42 }
 0x813   : > { %v3953_v59 = vsel %vm8530_vm1, %v8384_v37, %v3949_v1  ;;  %v3968_v45 = vsel %vm8542_vm2, %v8417_v43, %v3964_v12  ;;  %vm8563_vm5 = vmor %vm4010_vm4, %vm4011_vm0  ;;  %vm4026_vm6 = vweird.f32 %v8487_v5  ;;  %v8568_v3 = vadd.f32 1.0, %v6247_v41 }
 0x814   : > { %v4013_v2 = vsel %vm8563_vm5, %v8482_v30, %v4009_v20  ;;  %v4024_v37 = vadd.f32 %v8487_v5, %v4023_v57  ;;  %v4097_v29 = vsub.f32 1.0, %v4096_v40  ;;  %6254 = vrcp.f32 %v8536_v58 }
 0x815   : > { %v4017_v43 = vor.u32 1.1754944e-38, %v4016_v36  ;;  %vm4025_vm7 = vweird.f32 %v8455_v26  ;;  %v4029_v8 = vand.u32 2147483647, %v8455_v26  ;;  %v4031_v11 = vand.u32 2147483648, %v8455_v26 }
 0x816   : > { %v8578_v27 = vpop.eup %6250  ;;  %vm4015_vm8 = vcmp.eq.f32.partialorder %v4014_v33, 8.507059e+37  ;;  %v8580_v62 = vadd.f32 1.0, %v6249_v47  ;;  %v5457_v21 = vmul.f32 -1.442695, %v8553_v19  ;;  %v8584_v30 = vadd.f32 %v3631_v46, %v8129_v32  ;;  %vm8588_vm9 = vmor %vm4025_vm7, %vm4026_vm6 }
 0x817   : > { %v6253_v4 = vpop.eup %6252  ;;  %v3972_v51 = vor.u32 1.1754944e-38, %v3971_v13  ;;  %v4018_v6 = vsel %vm4015_vm8, %v4017_v43, %v4013_v2  ;;  %v4111_v26 = vmul.f32 %v8578_v27, %v8509_v10  ;;  %6256 = vrcp.f32 %v8568_v3 }
 0x818   : > { %v3958_v12 = vsel %vm8514_vm14, %v8427_v14, %v3953_v59  ;;  %v4028_v35 = vsel %vm8588_vm9, %v8487_v5, %v4024_v37  ;;  %v4098_v20 = vmul.f32 %v8505_v50, %v4097_v29  ;;  %6258 = vrcp.f32 %v8580_v62 }
 0x819   : > { %v3973_v57 = vsel %vm8546_vm3, %v3972_v51, %v3968_v45  ;;  %vm4030_vm10 = vcmp.eq.f32.partialorder %v4029_v8, 8.507059e+37  ;;  %v4032_v40 = vor.u32 1.1754944e-38, %v4031_v11  ;;  %v4104_v41 = vand.u32 2147483647, %v8478_v15 }
 0x81a   : > { %v8606_v0 = vpop.eup %6254  ;;  %v4317_v16 = vmul.f32 %v4018_v6, %v8371_v22  ;;  %v8609_v14 = vadd.f32 1.0, %v6253_v4  ;;  %6260 = vpow2.f32 %v5457_v21  ;;  %v5458_v5 = vmul.f32 -1.442695, %v8584_v30 }
 0x81b   : > { %v4313_v13 = vmul.f32 %v3958_v12, %v8275_v34  ;;  %v4033_v36 = vsel %vm4030_vm10, %v4032_v40, %v4028_v35  ;;  %v4106_v28 = vand.u32 2147483648, %v8478_v15  ;;  %v4112_v63 = vsub.f32 1.0, %v4111_v26 }
 0x81c   : > { %v4099_v33 = vadd.f32 %v8505_v50, %v4098_v20  ;;  %vm4101_vm11 = vweird.f32 %v8505_v50  ;;  %v4121_v47 = vand.u32 2147483648, %v8509_v10  ;;  %6262 = vrcp.f32 %v8609_v14 }
 0x81d   : > { %v8618_v22 = vpop.eup %6256  ;;  %v4314_v59 = vmul.f32 %v3973_v57, %v8301_v25  ;;  %vm4100_vm12 = vweird.f32 %v8478_v15  ;;  %v4119_v34 = vand.u32 2147483647, %v8509_v10  ;;  %v4066_v45 = vmul.f32 %v8606_v0, %v8536_v58 }
 0x81e   : > { %v6259_v17 = vpop.eup %6258  ;;  %v4318_v46 = vmul.f32 %v4033_v36, %v8374_v48  ;;  %vm8626_vm13 = vcmp.eq.f32.partialorder %v4104_v41, 8.507059e+37  ;;  %6264 = vpow2.f32 %v5458_v5  ;;  %v4341_v37 = vpack.c.bf16 %v4317_v16, %v4313_v13  ;;  %vm8630_vm14 = vmor %vm4100_vm12, %vm4101_vm11 }
 0x81f   : > { %v4107_v25 = vor.u32 1.1754944e-38, %v4106_v28  ;;  %v4113_v15 = vmul.f32 %v8578_v27, %v4112_v63  ;;  %vm4115_vm15 = vweird.f32 %v8509_v10  ;;  %v4156_v43 = vmul.f32 %v6259_v17, %v8580_v62 }
 0x820   : > { %v6261_v8 = vpop.eup %6260  ;;  %v4103_v48 = vsel %vm8630_vm14, %v8505_v50, %v4099_v33  ;;  %v4122_v11 = vor.u32 1.1754944e-38, %v4121_v47  ;;  %v4074_v21 = vand.u32 2147483647, %v8536_v58  ;;  %v4081_v4 = vmul.f32 %v8618_v22, %v8568_v3  ;;  %4626 = vmatmul.bf16.gmra.mxu2 %v4341_v37 }
 0x821   : > { %vm8643_vm0 = vcmp.eq.f32.partialorder %v4119_v34, 8.507059e+37  ;;  %v4067_v6 = vsub.f32 1.0, %v4066_v45  ;;  %v4157_v1 = vsub.f32 1.0, %v4156_v43  ;;  %v4164_v26 = vand.u32 2147483647, %v8580_v62 }
 0x822   : > { %v8648_v12 = vadd.f32 1.0, %v6261_v8  ;;  %v6263_v35 = vpop.eup %6262  ;;  %vm4116_vm1 = vweird.f32 %v8578_v27  ;;  %v4076_v50 = vand.u32 2147483648, %v8536_v58  ;;  %v4166_v20 = vand.u32 2147483648, %v8580_v62 }
 0x823   : > { %v4342_v57 = vpack.c.bf16 %v4318_v46, %v4314_v59  ;;  %v4114_v40 = vadd.f32 %v8578_v27, %v4113_v15  ;;  %vm4070_vm2 = vweird.f32 %v8536_v58  ;;  %v4158_v41 = vmul.f32 %v6259_v17, %v4157_v1  ;;  %vm8664_vm5 = vmor %vm4115_vm15, %vm4116_vm1 }
 0x824   : > { %vm4161_vm3 = vweird.f32 %v6259_v17  ;;  %v4171_v16 = vmul.f32 %v6263_v35, %v8609_v14  ;;  %v6265_v5 = vpop.eup %6264  ;;  %v4108_v13 = vsel %vm8626_vm13, %v4107_v25, %v4103_v48  ;;  %v4082_v36 = vsub.f32 1.0, %v4081_v4 }
 0x825   : > { %vm4160_vm4 = vweird.f32 %v8580_v62  ;;  %6266 = vrcp.f32 %v8648_v12  ;;  %4655 = vmatmul.bf16.gmra.mxu3 %v4342_v57  ;;  %v4068_v63 = vmul.f32 %v8606_v0, %v4067_v6  ;;  %v4159_v33 = vadd.f32 %v6259_v17, %v4158_v41 }
 0x826   : > { %vm4165_vm6 = vcmp.eq.f32.partialorder %v4164_v26, 8.507059e+37  ;;  %v4172_v47 = vsub.f32 1.0, %v4171_v16  ;;  %vm4085_vm7 = vweird.f32 %v8568_v3  ;;  %vm4162_vm8 = vmor %vm4160_vm4, %vm4161_vm3  ;;  %v4167_v62 = vor.u32 1.1754944e-38, %v4166_v20 }
 0x827   : > { %v4179_v59 = vand.u32 2147483647, %v8609_v14  ;;  %v4181_v34 = vand.u32 2147483648, %v8609_v14  ;;  %v8672_v45 = vadd.f32 1.0, %v6265_v5  ;;  %v4118_v10 = vsel %vm8664_vm5, %v8578_v27, %v4114_v40 }
 0x828   : > { %v4163_v46 = vsel %vm4162_vm8, %v6259_v17, %v4159_v33  ;;  %v4173_v2 = vmul.f32 %v6263_v35, %v4172_v47  ;;  %vm4176_vm9 = vweird.f32 %v6263_v35  ;;  %vm4071_vm10 = vweird.f32 %v8606_v0 }
 0x829   : > { %v4083_v37 = vmul.f32 %v8618_v22, %v4082_v36  ;;  %v4168_v29 = vsel %vm4165_vm6, %v4167_v62, %v4163_v46  ;;  %6268 = vrcp.f32 %v8672_v45  ;;  %v4069_v25 = vadd.f32 %v8606_v0, %v4068_v63  ;;  %vm8696_vm1 = vmor %vm4070_vm2, %vm4071_vm10 }
 0x82a   : > { %v4327_v15 = vmul.f32 %v4168_v29, %v8475_v54  ;;  %v4174_v43 = vadd.f32 %v6263_v35, %v4173_v2  ;;  %vm4175_vm11 = vweird.f32 %v8609_v14  ;;  %v4323_v27 = vmul.f32 %v4108_v13, %v8400_v61 }
 0x82b   : > { %v6267_v8 = vpop.eup %6266  ;;  %v4123_v17 = vsel %vm8643_vm0, %v4122_v11, %v4118_v10  ;;  %vm8686_vm12 = vcmp.eq.f32.partialorder %v4074_v21, 8.507059e+37  ;;  %vm4177_vm13 = vmor %vm4175_vm11, %vm4176_vm9  ;;  %v4182_v4 = vor.u32 1.1754944e-38, %v4181_v34  ;;  %vm4086_vm14 = vweird.f32 %v8618_v22 }
 0x82c   : > { %v4178_v6 = vsel %vm4177_vm13, %v6263_v35, %v4174_v43  ;;  %vm4180_vm15 = vcmp.eq.f32.partialorder %v4179_v59, 8.507059e+37  ;;  %v4126_v54 = vmul.f32 %v6267_v8, %v8648_v12  ;;  %v4084_v14 = vadd.f32 %v8618_v22, %v4083_v37  ;;  %vm8714_vm0 = vmor %vm4085_vm7, %vm4086_vm14 }
 0x82d   : > { %v4183_v11 = vsel %vm4180_vm15, %v4182_v4, %v4178_v6  ;;  %v4134_v21 = vand.u32 2147483647, %v8648_v12  ;;  %v4347_v51 = vpack.c.bf16 %v4327_v15, %v4323_v27  ;;  %v4324_v1 = vmul.f32 %v4123_v17, %v8438_v7 }
 0x82e   : > { %v4073_v26 = vsel %vm8696_vm1, %v8606_v0, %v4069_v25  ;;  %v4328_v35 = vmul.f32 %v4183_v11, %v8494_v39  ;;  %v4127_v20 = vsub.f32 1.0, %v4126_v54  ;;  %v4077_v57 = vor.u32 1.1754944e-38, %v4076_v50 }
 0x82f   : > { %v6269_v58 = vpop.eup %6268  ;;  %v4089_v40 = vand.u32 2147483647, %v8568_v3  ;;  %v4091_v41 = vand.u32 2147483648, %v8568_v3  ;;  %v4136_v16 = vand.u32 2147483648, %v8648_v12  ;;  %4689 = vmatmul.bf16.gmra.mxu0 %v4347_v51  ;;  %vm4131_vm2 = vweird.f32 %v6267_v8 }
 0x830   : > { %v4128_v0 = vmul.f32 %v6267_v8, %v4127_v20  ;;  %v4141_v39 = vmul.f32 %v6269_v58, %v8672_v45  ;;  %v4348_v50 = vpack.c.bf16 %v4328_v35, %v4324_v1  ;;  %v4078_v5 = vsel %vm8686_vm12, %v4077_v57, %v4073_v26 }
 0x831   : > { %v4088_v13 = vsel %vm8714_vm0, %v8618_v22, %v4084_v14  ;;  %vm4130_vm3 = vweird.f32 %v8648_v12  ;;  %vm8725_vm4 = vcmp.eq.f32.partialorder %v4134_v21, 8.507059e+37  ;;  %v4137_v59 = vor.u32 1.1754944e-38, %v4136_v16 }
 0x832   : > { %v4129_v63 = vadd.f32 %v6267_v8, %v4128_v0  ;;  %v4142_v33 = vsub.f32 1.0, %v4141_v39  ;;  %4718 = vmatmul.bf16.gmra.mxu1 %v4348_v50  ;;  %vm4132_vm5 = vmor %vm4130_vm3, %vm4131_vm2  ;;  %vm4146_vm6 = vweird.f32 %v6269_v58  ;;  %v4149_v22 = vand.u32 2147483647, %v8672_v45 }
 0x833   : > { %v4151_v12 = vand.u32 2147483648, %v8672_v45  ;;  %v4321_v37 = vmul.f32 %v4078_v5, %v8458_v44  ;;  %vm4090_vm7 = vcmp.eq.f32.partialorder %v4089_v40, 8.507059e+37  ;;  %v4092_v29 = vor.u32 1.1754944e-38, %v4091_v41 }
 0x834   : > { %v4133_v34 = vsel %vm4132_vm5, %v6267_v8, %v4129_v63  ;;  %v4143_v10 = vmul.f32 %v6269_v58, %v4142_v33  ;;  %vm4145_vm8 = vweird.f32 %v8672_v45  ;;  %vm4150_vm10 = vcmp.eq.f32.partialorder %v4149_v22, 8.507059e+37 }
 0x835   : > { %v4138_v25 = vsel %vm8725_vm4, %v4137_v59, %v4133_v34  ;;  %v4093_v8 = vsel %vm4090_vm7, %v4092_v29, %v4088_v13  ;;  %vm4147_vm9 = vmor %vm4145_vm8, %vm4146_vm6  ;;  %v4152_v17 = vor.u32 1.1754944e-38, %v4151_v12 }
 0x836   : > { %v4325_v15 = vmul.f32 %v4138_v25, %v8553_v19  ;;  %v4144_v43 = vadd.f32 %v6269_v58, %v4143_v10  ;;  %v4322_v45 = vmul.f32 %v4093_v8, %v8467_v55 }
 0x838   : > { %v4148_v44 = vsel %vm4147_vm9, %v6269_v58, %v4144_v43  ;;  %v4345_v4 = vpack.c.bf16 %v4325_v15, %v4321_v37 }
 0x839   : > { %v3663_v36 = vpop.f32.mrf.mxu0  ;;  %v3692_v28 = vpop.f32.mrf.mxu1  ;;  %v4153_v6 = vsel %vm4150_vm10, %v4152_v17, %v4148_v44 }
 0x83a   : > { %v8730_v47 = vadd.f32 %v3663_v36, %v8117_v49  ;;  %v8733_v62 = vadd.f32 %v3692_v28, %v8119_v52  ;;  %v4326_v14 = vmul.f32 %v4153_v6, %v8584_v30  ;;  %4631 = vmatmul.bf16.gmra.mxu2 %v4345_v4 }
 0x83c   : > { %v5463_v46 = vmul.f32 -1.442695, %v8730_v47  ;;  %v5464_v2 = vmul.f32 -1.442695, %v8733_v62  ;;  %v4346_v1 = vpack.c.bf16 %v4326_v14, %v4322_v45 }
 0x83e   : > { %6270 = vpow2.f32 %v5463_v46  ;;  %v3605_v27 = vpop.f32.mrf.mxu2  ;;  %v3634_v19 = vpop.f32.mrf.mxu3  ;;  %4660 = vmatmul.bf16.gmra.mxu3 %v4346_v1 }
 0x83f   : > { %6272 = vpow2.f32 %v5464_v2  ;;  %v8746_v48 = vadd.f32 %v3605_v27, %v8127_v42  ;;  %v8755_v26 = vadd.f32 %v3634_v19, %v8129_v32 }
 0x841   : > { %v5461_v54 = vmul.f32 -1.442695, %v8746_v48  ;;  %v3665_v61 = vpop.f32.mrf.mxu0  ;;  %v3694_v21 = vpop.f32.mrf.mxu1  ;;  %v5462_v40 = vmul.f32 -1.442695, %v8755_v26 }
 0x842   : > { %v8752_v11 = vadd.f32 %v3665_v61, %v8117_v49  ;;  %v8759_v20 = vadd.f32 %v3694_v21, %v8119_v52 }
 0x843   : > { %6274 = vpow2.f32 %v5461_v54 }
 0x844   : > { %v6271_v51 = vpop.eup %6270  ;;  %v5467_v35 = vmul.f32 -1.442695, %v8752_v11  ;;  %v5468_v49 = vmul.f32 -1.442695, %v8759_v20 }
 0x845   : > { %v6273_v58 = vpop.eup %6272  ;;  %v3819_v55 = vadd.f32 1.0, %v6271_v51 }
 0x846   : > { %v8761_v30 = vadd.f32 1.0, %v6273_v58  ;;  %6276 = vpow2.f32 %v5467_v35  ;;  %v3607_v57 = vpop.f32.mrf.mxu2  ;;  %v3636_v22 = vpop.f32.mrf.mxu3 }
 0x847   : > { %6278 = vrcp.f32 %v3819_v55  ;;  %v8767_v16 = vadd.f32 %v3607_v57, %v8127_v42  ;;  %v4224_v10 = vand.u32 2147483647, %v3819_v55  ;;  %v4226_v46 = vand.u32 2147483648, %v3819_v55 }
 0x848   : > { %6280 = vrcp.f32 %v8761_v30  ;;  %v4239_v37 = vand.u32 2147483647, %v8761_v30  ;;  %v8795_v25 = vadd.f32 %v3636_v22, %v8129_v32  ;;  %vm4220_vm11 = vweird.f32 %v3819_v55 }
 0x849   : > { %v6275_v41 = vpop.eup %6274  ;;  %6282 = vpow2.f32 %v5468_v49  ;;  %v5465_v39 = vmul.f32 -1.442695, %v8767_v16  ;;  %vm4235_vm12 = vweird.f32 %v8761_v30  ;;  %v4241_v27 = vand.u32 2147483648, %v8761_v30 }
 0x84a   : > { %v8769_v52 = vadd.f32 1.0, %v6275_v41  ;;  %6284 = vpow2.f32 %v5462_v40  ;;  %vm8804_vm14 = vcmp.eq.f32.partialorder %v4224_v10, 8.507059e+37  ;;  %v4227_v32 = vor.u32 1.1754944e-38, %v4226_v46 }
 0x84b   : > { %vm8811_vm15 = vcmp.eq.f32.partialorder %v4239_v37, 8.507059e+37  ;;  %v5466_v14 = vmul.f32 -1.442695, %v8795_v25 }
 0x84c   : > { %v6277_v7 = vpop.eup %6276  ;;  %6286 = vrcp.f32 %v8769_v52 }
 0x84d   : > { %v8771_v0 = vpop.eup %6278  ;;  %v8780_v42 = vadd.f32 1.0, %v6277_v7  ;;  %6288 = vpow2.f32 %v5465_v39 }
 0x84e   : > { %v8774_v50 = vpop.eup %6280  ;;  %v4216_v5 = vmul.f32 %v8771_v0, %v3819_v55  ;;  %vm4221_vm13 = vweird.f32 %v8771_v0  ;;  %v4242_v55 = vor.u32 1.1754944e-38, %v4241_v27 }
 0x84f   : > { %v6283_v13 = vpop.eup %6282  ;;  %v4231_v3 = vmul.f32 %v8774_v50, %v8761_v30  ;;  %6290 = vrcp.f32 %v8780_v42  ;;  %v4286_v4 = vand.u32 2147483648, %v8780_v42  ;;  %vm8817_vm1 = vmor %vm4220_vm11, %vm4221_vm13  ;;  %vm4236_vm0 = vweird.f32 %v8774_v50 }
 0x850   : > { %v4217_v36 = vsub.f32 1.0, %v4216_v5  ;;  %v8782_v28 = vadd.f32 1.0, %v6283_v13  ;;  %v6285_v63 = vpop.eup %6284  ;;  %v4284_v1 = vand.u32 2147483647, %v8780_v42  ;;  %vm4280_vm3 = vweird.f32 %v8780_v42  ;;  %vm8834_vm4 = vmor %vm4235_vm12, %vm4236_vm0 }
 0x851   : > { %v4232_v59 = vsub.f32 1.0, %v4231_v3  ;;  %v8788_v34 = vadd.f32 1.0, %v6285_v63  ;;  %v4287_v57 = vor.u32 1.1754944e-38, %v4286_v4  ;;  %vm4190_vm12 = vweird.f32 %v8769_v52 }
 0x852   : > { %v8785_v33 = vpop.eup %6286  ;;  %v4218_v12 = vmul.f32 %v8771_v0, %v4217_v36  ;;  %6292 = vrcp.f32 %v8782_v28  ;;  %v4301_v5 = vand.u32 2147483648, %v8782_v28  ;;  %vm4285_vm8 = vcmp.eq.f32.partialorder %v4284_v1, 8.507059e+37 }
 0x853   : > { %v6289_v2 = vpop.eup %6288  ;;  %v4186_v29 = vmul.f32 %v8785_v33, %v8769_v52  ;;  %v4233_v43 = vmul.f32 %v8774_v50, %v4232_v59  ;;  %6294 = vrcp.f32 %v8788_v34  ;;  %vm4191_vm7 = vweird.f32 %v8785_v33 }
 0x854   : > { %v4219_v8 = vadd.f32 %v8771_v0, %v4218_v12  ;;  %v8809_v6 = vadd.f32 1.0, %v6289_v2  ;;  %vm4295_vm9 = vweird.f32 %v8782_v28  ;;  %vm8860_vm13 = vmor %vm4190_vm12, %vm4191_vm7 }
 0x855   : > { %v6291_v15 = vpop.eup %6290  ;;  %v4187_v61 = vsub.f32 1.0, %v4186_v29  ;;  %v4234_v51 = vadd.f32 %v8774_v50, %v4233_v43 }
 0x856   : > { %v4276_v17 = vmul.f32 %v6291_v15, %v8780_v42  ;;  %v4223_v58 = vsel %vm8817_vm1, %v8771_v0, %v4219_v8  ;;  %vm4281_vm2 = vweird.f32 %v6291_v15  ;;  %6296 = vrcp.f32 %v8809_v6 }
 0x857   : > { %v4188_v39 = vmul.f32 %v8785_v33, %v4187_v61  ;;  %6298 = vpow2.f32 %v5466_v14  ;;  %v4228_v13 = vsel %vm8804_vm14, %v4227_v32, %v4223_v58  ;;  %vm4282_vm5 = vmor %vm4280_vm3, %vm4281_vm2  ;;  %v4299_v42 = vand.u32 2147483647, %v8782_v28 }
 0x858   : > { %v6293_v54 = vpop.eup %6292  ;;  %v4277_v45 = vsub.f32 1.0, %v4276_v17  ;;  %v4238_v30 = vsel %vm8834_vm4, %v8774_v50, %v4234_v51  ;;  %v4331_v10 = vmul.f32 %v4228_v13, %v8730_v47  ;;  %v4302_v50 = vor.u32 1.1754944e-38, %v4301_v5 }
 0x859   : > { %v4291_v35 = vmul.f32 %v6293_v54, %v8782_v28  ;;  %v8830_v41 = vpop.eup %6294  ;;  %vm4296_vm6 = vweird.f32 %v6293_v54  ;;  %v4189_v46 = vadd.f32 %v8785_v33, %v4188_v39  ;;  %v4243_v37 = vsel %vm8811_vm15, %v4242_v55, %v4238_v30 }
 0x85a   : > { %v4278_v49 = vmul.f32 %v6291_v15, %v4277_v45  ;;  %v4201_v63 = vmul.f32 %v8830_v41, %v8788_v34  ;;  %vm4297_vm10 = vmor %vm4295_vm9, %vm4296_vm6  ;;  %vm4300_vm11 = vcmp.eq.f32.partialorder %v4299_v42, 8.507059e+37  ;;  %v4196_v28 = vand.u32 2147483648, %v8769_v52 }
 0x85b   : > { %v4292_v40 = vsub.f32 1.0, %v4291_v35  ;;  %v4194_v8 = vand.u32 2147483647, %v8769_v52  ;;  %v4332_v4 = vmul.f32 %v4243_v37, %v8733_v62  ;;  %v4256_v61 = vand.u32 2147483648, %v8809_v6 }
 0x85c   : > { %v4279_v0 = vadd.f32 %v6291_v15, %v4278_v49  ;;  %v6297_v12 = vpop.eup %6296  ;;  %v4202_v19 = vsub.f32 1.0, %v4201_v63  ;;  %v4254_v14 = vand.u32 2147483647, %v8809_v6  ;;  %v4197_v52 = vor.u32 1.1754944e-38, %v4196_v28 }
 0x85d   : > { %v4293_v3 = vmul.f32 %v6293_v54, %v4292_v40  ;;  %v6299_v43 = vpop.eup %6298  ;;  %vm4251_vm14 = vweird.f32 %v6297_v12  ;;  %vm4195_vm15 = vcmp.eq.f32.partialorder %v4194_v8, 8.507059e+37  ;;  %vm4250_vm1 = vweird.f32 %v8809_v6 }
 0x85e   : > { %v4283_v36 = vsel %vm4282_vm5, %v6291_v15, %v4279_v0  ;;  %v4246_v15 = vmul.f32 %v6297_v12, %v8809_v6  ;;  %v3822_v32 = vadd.f32 1.0, %v6299_v43  ;;  %v4203_v51 = vmul.f32 %v8830_v41, %v4202_v19  ;;  %vm4252_vm0 = vmor %vm4250_vm1, %vm4251_vm14 }
 0x85f   : > { %v4288_v59 = vsel %vm4285_vm8, %v4287_v57, %v4283_v36  ;;  %v4294_v22 = vadd.f32 %v6293_v54, %v4293_v3  ;;  %vm4255_vm2 = vcmp.eq.f32.partialorder %v4254_v14, 8.507059e+37  ;;  %vm4206_vm3 = vweird.f32 %v8830_v41 }
 0x860   : > { %v4335_v2 = vmul.f32 %v4288_v59, %v8752_v11  ;;  %v4247_v44 = vsub.f32 1.0, %v4246_v15  ;;  %6300 = vrcp.f32 %v3822_v32  ;;  %v4204_v57 = vadd.f32 %v8830_v41, %v4203_v51 }
 0x861   : > { %v4298_v29 = vsel %vm4297_vm10, %v6293_v54, %v4294_v22  ;;  %v4193_v54 = vsel %vm8860_vm13, %v8785_v33, %v4189_v46  ;;  %v4257_v33 = vor.u32 1.1754944e-38, %v4256_v61  ;;  %v4211_v6 = vand.u32 2147483648, %v8788_v34  ;;  %v6311_v46 = vld [vmem:[%s8968_s3] sm:$0x3f] }
 0x862   : > { %v4303_v27 = vsel %vm4300_vm11, %v4302_v50, %v4298_v29  ;;  %v4351_v47 = vpack.c.bf16 %v4335_v2, %v4331_v10  ;;  %v4248_v45 = vmul.f32 %v6297_v12, %v4247_v44  ;;  %v4198_v62 = vsel %vm4195_vm15, %v4197_v52, %v4193_v54 }
 0x863   : > { %v4336_v17 = vmul.f32 %v4303_v27, %v8759_v20  ;;  %v4329_v49 = vmul.f32 %v4198_v62, %v8746_v48  ;;  %vm4205_vm4 = vweird.f32 %v8788_v34  ;;  %v4209_v39 = vand.u32 2147483647, %v8788_v34 }
 0x864   : > { %4694 = vmatmul.bf16.gmra.mxu0 %v4351_v47  ;;  %v4249_v20 = vadd.f32 %v6297_v12, %v4248_v45  ;;  %vm4207_vm5 = vmor %vm4205_vm4, %vm4206_vm3  ;;  %v4271_v5 = vand.u32 2147483648, %v3822_v32  ;;  %v4212_v3 = vor.u32 1.1754944e-38, %v4211_v6  ;;  %vm4265_vm8 = vweird.f32 %v3822_v32 }
 0x865   : > { %v4352_v21 = vpack.c.bf16 %v4336_v17, %v4332_v4  ;;  %v4208_v48 = vsel %vm4207_vm5, %v8830_v41, %v4204_v57  ;;  %vm4210_vm7 = vcmp.eq.f32.partialorder %v4209_v39, 8.507059e+37  ;;  %v8887_v41 = vld [vmem:[%s9072_s25] ss:$0 sm:$0xff]  ;;  %v890_v2 = vperm.slane %v6311_v46, 5 }
 0x866   : > { %v4253_v1 = vsel %vm4252_vm0, %v6297_v12, %v4249_v20  ;;  %v6301_v58 = vpop.eup %6300  ;;  %v4213_v30 = vsel %vm4210_vm7, %v4212_v3, %v4208_v48  ;;  %v4272_v36 = vor.u32 1.1754944e-38, %v4271_v5 }
 0x867   : > { %4723 = vmatmul.bf16.gmra.mxu1 %v4352_v21  ;;  %v4258_v35 = vsel %vm4255_vm2, %v4257_v33, %v4253_v1  ;;  %v4261_v40 = vmul.f32 %v6301_v58, %v3822_v32  ;;  %vm4266_vm6 = vweird.f32 %v6301_v58  ;;  %v4330_v34 = vmul.f32 %v4213_v30, %v8755_v26  ;;  %v4680_v37 = vpop.f32.mrf.mxu0 }
 0x868   : > { %v4333_v55 = vmul.f32 %v4258_v35, %v8767_v16  ;;  %v4269_v16 = vand.u32 2147483647, %v3822_v32  ;;  %vm4267_vm9 = vmor %vm4265_vm8, %vm4266_vm6 }
 0x869   : > { %v4262_v0 = vsub.f32 1.0, %v4261_v40 }
 0x86a   : > { %v4349_v7 = vpack.c.bf16 %v4333_v55, %v4329_v49  ;;  %vm4270_vm10 = vcmp.eq.f32.partialorder %v4269_v16, 8.507059e+37  ;;  %v4709_v15 = vpop.f32.mrf.mxu1 }
 0x86b   : > { %v4263_v13 = vmul.f32 %v6301_v58, %v4262_v0 }
 0x86c   : > { %4636 = vmatmul.bf16.gmra.mxu2 %v4349_v7 }
 0x86d   : > { %v4264_v42 = vadd.f32 %v6301_v58, %v4263_v13 }
 0x86f   : > { %v4268_v63 = vsel %vm4267_vm9, %v6301_v58, %v4264_v42  ;;  %v4682_v4 = vpop.f32.mrf.mxu0 }
 0x870   : > { %v4273_v59 = vsel %vm4270_vm10, %v4272_v36, %v4268_v63 }
 0x871   : > { %v4334_v22 = vmul.f32 %v4273_v59, %v8795_v25  ;;  %v972_v25 = vadd.f32 %v7316_v31, %v890_v2 }
 0x872   : > { %v4711_v54 = vpop.f32.mrf.mxu1 }
 0x873   : > { %v4350_v12 = vpack.c.bf16 %v4334_v22, %v4330_v34  ;;  %v8894_v27 = vperm.slane %v972_v25, 0 }
 0x875   : > { %v4622_v10 = vpop.f32.mrf.mxu2  ;;  %4665 = vmatmul.bf16.gmra.mxu3 %v4350_v12 }
 0x876   : > { %v4623_v50 = vadd.f32 %v8887_v41, %v4622_v10 }
 0x87d   : > { %v4624_v43 = vpop.f32.mrf.mxu2 }
 0x87e   : > { %v4651_v26 = vpop.f32.mrf.mxu3  ;;  %v4625_v11 = vadd.f32 %v8887_v41, %v4624_v43 }
 0x87f   : > { %v4652_v29 = vadd.f32 %v4651_v26, %v4623_v50 }
 0x881   : > { %v4681_v28 = vadd.f32 %v4680_v37, %v4652_v29 }
 0x883   : > { %v4710_v47 = vadd.f32 %v4709_v15, %v4681_v28 }
 0x885   : > { %v4730_v8 = vmul.f32 %v8894_v27, %v4710_v47 }
 0x886   : > { %v4653_v17 = vpop.f32.mrf.mxu3 }
 0x887   : > { %v4738_v44 = vadd.f32 %v4730_v8, %v7806_v38  ;;  %v4654_v32 = vadd.f32 %v4653_v17, %v4625_v11 }
 0x889   : > { %4746 = vst [vmem:[%s8901_s9] sm:$0xff] %v4738_v44  ;;  %v4683_v31 = vadd.f32 %v4682_v4, %v4654_v32 }
 0x88b   : > { %v4712_v19 = vadd.f32 %v4711_v54, %v4683_v31  ;;  %v4685_v52 = vpop.f32.mrf.mxu0 }
 0x88d   : > { %v4731_v61 = vmul.f32 %v8894_v27, %v4712_v19 }
 0x88f   : > { %v4739_v45 = vadd.f32 %v4731_v61, %v7810_v24  ;;  %v4714_v62 = vpop.f32.mrf.mxu1 }
 0x891   : > { %4747 = vst [vmem:[%s8901_s9 + $0x8] sm:$0xff] %v4739_v45 }
 0x893   : > { %v4687_v57 = vpop.f32.mrf.mxu0 }
 0x897   : > { %v4716_v6 = vpop.f32.mrf.mxu1 }
 0x8a3   : > { %v4627_v14 = vpop.f32.mrf.mxu2 }
 0x8a4   : > { %v4628_v38 = vadd.f32 %v8887_v41, %v4627_v14 }
 0x8a8   : > { %v4656_v21 = vpop.f32.mrf.mxu3 }
 0x8a9   : > { %v4657_v20 = vadd.f32 %v4656_v21, %v4628_v38 }
 0x8ab   : > { %v4686_v51 = vadd.f32 %v4685_v52, %v4657_v20  ;;  %v4629_v33 = vpop.f32.mrf.mxu2 }
 0x8ac   : > { %v4630_v35 = vadd.f32 %v8887_v41, %v4629_v33  ;;  %v4690_v13 = vpop.f32.mrf.mxu0 }
 0x8ad   : > { %v4715_v1 = vadd.f32 %v4714_v62, %v4686_v51 }
 0x8af   : > { %v4732_v58 = vmul.f32 %v8894_v27, %v4715_v1  ;;  %v4719_v42 = vpop.f32.mrf.mxu1 }
 0x8b0   : > { %v4658_v49 = vpop.f32.mrf.mxu3 }
 0x8b1   : > { %v4740_v24 = vadd.f32 %v4732_v58, %v7814_v18  ;;  %v4659_v55 = vadd.f32 %v4658_v49, %v4630_v35 }
 0x8b3   : > { %4748 = vst [vmem:[%s8901_s9 + $0x10] sm:$0xff] %v4740_v24  ;;  %v4688_v40 = vadd.f32 %v4687_v57, %v4659_v55 }
 0x8b4   : > { %v4692_v12 = vpop.f32.mrf.mxu0 }
 0x8b5   : > { %v4717_v7 = vadd.f32 %v4716_v6, %v4688_v40 }
 0x8b7   : > { %v4733_v39 = vmul.f32 %v8894_v27, %v4717_v7  ;;  %v4721_v46 = vpop.f32.mrf.mxu1 }
 0x8b9   : > { %v4741_v0 = vadd.f32 %v4733_v39, %v7818_v60 }
 0x8bb   : > { %4749 = vst [vmem:[%s8901_s9 + $0x18] sm:$0xff] %v4741_v0 }
 0x8bd   : > { %v4632_v5 = vpop.f32.mrf.mxu2 }
 0x8be   : > { %v4633_v48 = vadd.f32 %v8887_v41, %v4632_v5 }
 0x8c1   : > { %v4661_v16 = vpop.f32.mrf.mxu3 }
 0x8c2   : > { %v4662_v3 = vadd.f32 %v4661_v16, %v4633_v48 }
 0x8c4   : > { %v4691_v18 = vadd.f32 %v4690_v13, %v4662_v3 }
 0x8c5   : > { %v4634_v30 = vpop.f32.mrf.mxu2 }
 0x8c6   : > { %v4720_v36 = vadd.f32 %v4719_v42, %v4691_v18  ;;  %v4635_v63 = vadd.f32 %v8887_v41, %v4634_v30 }
 0x8c8   : > { %v4734_v59 = vmul.f32 %v8894_v27, %v4720_v36 }
 0x8c9   : > { %v4663_v34 = vpop.f32.mrf.mxu3 }
 0x8ca   : > { %v4742_v60 = vadd.f32 %v4734_v59, %v7822_v23  ;;  %v4664_v22 = vadd.f32 %v4663_v34, %v4635_v63 }
 0x8cc   : > { %4750 = vst [vmem:[%s8901_s9 + $0x20] sm:$0xff] %v4742_v60  ;;  %v4693_v10 = vadd.f32 %v4692_v12, %v4664_v22 }
 0x8ce   : > { %v4722_v2 = vadd.f32 %v4721_v46, %v4693_v10 }
 0x8d0   : > { %v4735_v50 = vmul.f32 %v8894_v27, %v4722_v2 }
 0x8d2   : > { %v4743_v37 = vadd.f32 %v4735_v50, %v7826_v9 }
 0x8d4   : > { %4751 = vst [vmem:[%s8901_s9 + $0x28] sm:$0xff] %v4743_v37 }
 0x8e1   : > { %v4695_v29 = vpop.f32.mrf.mxu0 }
 0x8e4   : > { %v4724_v23 = vpop.f32.mrf.mxu1 }
 0x8e9   : > { %v4697_v4 = vpop.f32.mrf.mxu0 }
 0x8ec   : > { %v4726_v54 = vpop.f32.mrf.mxu1 }
 0x8ef   : > { %v4637_v26 = vpop.f32.mrf.mxu2 }
 0x8f0   : > { %v4638_v25 = vadd.f32 %v8887_v41, %v4637_v26 }
 0x8f7   : > { %v4639_v28 = vpop.f32.mrf.mxu2 }
 0x8f8   : > { %v4666_v15 = vpop.f32.mrf.mxu3  ;;  %v4640_v8 = vadd.f32 %v8887_v41, %v4639_v28 }
 0x8f9   : > { %v4667_v43 = vadd.f32 %v4666_v15, %v4638_v25 }
 0x8fb   : > { %v4696_v47 = vadd.f32 %v4695_v29, %v4667_v43 }
 0x8fd   : > { %v4725_v11 = vadd.f32 %v4724_v23, %v4696_v47 }
 0x8ff   : > { %v4736_v17 = vmul.f32 %v8894_v27, %v4725_v11 }
 0x900   : > { %v4668_v9 = vpop.f32.mrf.mxu3 }
 0x901   : > { %v4744_v44 = vadd.f32 %v4736_v17, %v7846_v53  ;;  %v4669_v32 = vadd.f32 %v4668_v9, %v4640_v8 }
 0x903   : > { %4752 = vst [vmem:[%s8901_s9 + $0x30] sm:$0xff] %v4744_v44  ;;  %v4698_v31 = vadd.f32 %v4697_v4, %v4669_v32 }
 0x905   : > { %v4727_v19 = vadd.f32 %v4726_v54, %v4698_v31 }
 0x907   : > { %v4737_v41 = vmul.f32 %v8894_v27, %v4727_v19 }
 0x909   : > { %v4745_v61 = vadd.f32 %v4737_v41, %v7830_v56 }
 0x90b   : > { %4753 = vst [vmem:[%s8901_s9 + $0x38] sm:$0xff] %v4745_v61 }
 0x90c   : > { %6579 = shalt.err (!%p6576_p8)
}
 0x90d   : > { %s6658_s27 = smov 128   ;;  %s6659_s25 = smov 8  }
 0x90e   : > { %5788 = dma.vmem_to_hbm [thread:$0]  (%p6824_p4), %s4768_s20, 1024, %s4770_s19, %s4755_s28, %s6658_s27, %s6658_s27, %s6659_s25  }
 0x90f PF: > { %s4784_s2 = sand.u32 1, %s6626_s21   ;;  %p9074_p10 = scmp.ge.s32.totalorder %s6638_s24, 2 }
 0x910   : > { %s4785_s6 = scalar_lea.sflag [#allocation5], %s4784_s2 }
 0x911   : > { %p5817_p13 = pnand %p9074_p10, %p6828_p6 }
 0x913   : > { %p5818_p11 = pneg %p5817_p13 }
 0x915   : > { %6621 = dma.done.wait (%p5818_p11), %s4785_s6, 1024  }
 0x916   : > { %6623 = vsyncadd (%p5818_p11), %s4785_s6, 4294966272  ;;  %s9075_s9 = sld [smem:[#allocation25_spill]]  ;;  %p31_p0 = scmp.ge.s32.totalorder %s6796_s18, 4  }
 0x917   : > { %s9076_s23 = sld [smem:[#allocation26_spill]]  ;;  %s9077_s21 = smov %s6630_s22 }
 0x918   : > { %s9079_s24 = smov %s6796_s18  ;;  %33 = sbr.rel (!%p31_p0) target bundleno = 20 (0x14), region = 150 }
 0x91c   : > { %s9078_s22 = smov %s9075_s9 }
 0x91d   :  { %4791 = vsyncpa [#allocation4], 1 }
 0x91e   :  { %4793 = vsyncpa [#allocation4 + $0x1], 1 }
 0x91f   :  { %4794 = vsyncpa [#allocation7], 1 }
 0x920   :  { %4796 = vsyncpa [#allocation7 + $0x1], 1 }
 0x921   :  { %4797 = vsyncpa [#allocation10], 1 }
 0x922   :  { %4798 = vsyncpa [#allocation13], 1 }
 0x923   :  { %4799 = vsyncpa [#allocation16], 1 }
 0x924   :  { %4800 = vsyncpa [#allocation5], 1 }
 0x925   :  { %4802 = vsyncpa [#allocation5 + $0x1], 1 }

</bundles_post_ra>
